<compile_context>
chip_gen: v5e
topology: v5e:2x2
jax: 0.10.0
libtpu: 0.0.40
codegen_flags: <defaults>
</compile_context>

<pallas_src>
import math

import jax
import jax.numpy as jnp
from jax.experimental import pallas as pl
from jax.experimental.pallas import tpu as pltpu


def _sine_pos_kernel(y_ref, x_ref, scale_ref, phase_ref, o_ref):
    """One (2N channels, t_hw lanes) tile of the embedding.

    y_ref, x_ref : (1, 1, t_hw)  normalized row / col embeddings for this batch
    scale_ref    : (N, t_hw)     1 / dim_t, pre-broadcast along lanes
    phase_ref    : (N, t_hw)     0 (sin channel) or pi/2 (cos channel)
    o_ref        : (2N, t_hw)    [pos_y ; pos_x]
    """
    n = scale_ref.shape[0]
    sc = scale_ref[...]          # (N, t_hw) -- no per-step lane broadcast needed
    ph = phase_ref[...]          # (N, t_hw)
    y = y_ref[0]                 # (1, t_hw) -> sublane-broadcast by the multiply
    x = x_ref[0]                 # (1, t_hw)
    # cos(v) == sin(v + pi/2): single transcendental per output element.
    o_ref[pl.ds(0, n), :] = jnp.sin(y * sc + ph).astype(o_ref.dtype)
    o_ref[pl.ds(n, n), :] = jnp.sin(x * sc + ph).astype(o_ref.dtype)


def _round_up(x: int, m: int) -> int:
    return (x + m - 1) // m * m


def _pick_hw_tile(hw: int, num_pos_feats: int):
    """Pick (lane_tile, padded_hw): lane tile is a multiple of 128 chosen so the
    double-buffered per-step VMEM footprint stays under a conservative budget
    that fits v5e (16 MiB) and v7x (32 MiB) scoped-VMEM defaults."""
    lane = 128
    # f32 lanes per output lane across all blocks: out(2N) + scale(N) + phase(N)
    # + y(1) + x(1); x2 for double buffering, x4 bytes.
    bytes_per_lane = (4 * num_pos_feats + 2) * 4 * 2
    budget = 8 * 1024 * 1024
    cap = max(lane, min(2048, (budget // bytes_per_lane) // lane * lane))
    hw128 = _round_up(hw, lane)
    if hw128 <= cap:
        return hw128, hw128
    n_tiles = -(-hw128 // cap)                       # cdiv
    t = _round_up(-(-hw128 // n_tiles), lane)        # balanced tiles, <= cap
    return t, n_tiles * t


def position_embedding_sine(x, mask, num_pos_feats=64, temperature=10000,
                            normalize=False, scale=None, out_dtype=jnp.float32):
    """Forward pass of PositionEmbeddingSine.

    x:    (B, C, H, W) float (interface parity only, like the PyTorch module)
    mask: (B, H, W) bool     (True = padded position)
    Returns pos: (B, 2*num_pos_feats, H, W) in `out_dtype` (f32 by default;
    pass bfloat16 if the consumer accepts it to halve output HBM traffic).
    """
    del x  # embedding depends only on the mask (matches the PyTorch module)
    if scale is not None and not normalize:
        raise ValueError('normalize should be True if scale is passed')
    if scale is None:
        scale = 2 * math.pi

    B, H, W = mask.shape
    HW = H * W
    N = num_pos_feats
    C = 2 * N
    assert N % 8 == 0, "num_pos_feats must be a multiple of 8 (sublane tile)"

    # ---- O(B*H*W) prep in plain JAX (tiny vs the O(B*C*H*W) output). ----
    # TODO(synk): cumsum over H/W + normalization stays in the wrapper; the
    # Pallas kernel only does the C-times-larger sin/cos expansion.
    not_mask = jnp.logical_not(mask).astype(jnp.float32)
    y_embed = jnp.cumsum(not_mask, axis=1)
    x_embed = jnp.cumsum(not_mask, axis=2)
    if normalize:
        eps = 1e-6
        y_embed = y_embed / (y_embed[:, -1:, :] + eps) * scale
        x_embed = x_embed / (x_embed[:, :, -1:] + eps) * scale

    t_hw, hw_pad = _pick_hw_tile(HW, N)
    grid_hw = hw_pad // t_hw
    grid = (grid_hw, B)   # larger axis leads -> better dual-TC sharding on v7x

    # Lane-dense views (spatial on the lane axis), padded to the lane tile.
    y_flat = y_embed.reshape(B, HW)
    x_flat = x_embed.reshape(B, HW)
    if hw_pad != HW:
        pad = hw_pad - HW
        y_flat = jnp.pad(y_flat, ((0, 0), (0, pad)))
        x_flat = jnp.pad(x_flat, ((0, 0), (0, pad)))
    y3 = y_flat.reshape(B, 1, hw_pad)
    x3 = x_flat.reshape(B, 1, hw_pad)

    # Per-channel constants, pre-broadcast along lanes so the kernel does no
    # per-step broadcast_in_dim. Their block index is constant across the
    # grid, so Pallas only DMAs them once per core.
    f = jnp.arange(N, dtype=jnp.float32)
    dim_t = jnp.float32(temperature) ** (2.0 * jnp.floor(f / 2.0) / N)
    inv_dim_t = (1.0 / dim_t).reshape(N, 1)
    half_phase = jnp.where(jnp.arange(N) % 2 == 1,
                           jnp.float32(math.pi / 2.0),
                           jnp.float32(0.0)).reshape(N, 1)
    chan_scale = jnp.broadcast_to(inv_dim_t, (N, t_hw))
    chan_phase = jnp.broadcast_to(half_phase, (N, t_hw))

    out2d = pl.pallas_call(
        _sine_pos_kernel,
        out_shape=jax.ShapeDtypeStruct((B * C, hw_pad), out_dtype),
        grid=grid,
        in_specs=[
            pl.BlockSpec((1, 1, t_hw), lambda j, b: (b, 0, j)),   # y_embed
            pl.BlockSpec((1, 1, t_hw), lambda j, b: (b, 0, j)),   # x_embed
            pl.BlockSpec((N, t_hw), lambda j, b: (0, 0)),         # 1/dim_t
            pl.BlockSpec((N, t_hw), lambda j, b: (0, 0)),         # phase
        ],
        out_specs=pl.BlockSpec((C, t_hw), lambda j, b: (b, j)),
        compiler_params=pltpu.CompilerParams(
            dimension_semantics=("parallel", "parallel")),
    )(y3, x3, chan_scale, chan_phase)

    pos = out2d.reshape(B, C, hw_pad)[:, :, :HW].reshape(B, C, H, W)
    return pos


def _reference_pos_embed(mask, num_pos_feats, temperature, normalize, scale):
    """Pure-JAX transcription of the PyTorch module (for verification)."""
    not_mask = jnp.logical_not(mask).astype(jnp.float32)
    y_embed = jnp.cumsum(not_mask, axis=1)
    x_embed = jnp.cumsum(not_mask, axis=2)
    if normalize:
        eps = 1e-6
        y_embed = y_embed / (y_embed[:, -1:, :] + eps) * scale
        x_embed = x_embed / (x_embed[:, :, -1:] + eps) * scale
    dim_t = jnp.arange(num_pos_feats, dtype=jnp.float32)
    dim_t = jnp.float32(temperature) ** (2.0 * jnp.floor(dim_t / 2.0) / num_pos_feats)
    pos_x = x_embed[:, :, :, None] / dim_t
    pos_y = y_embed[:, :, :, None] / dim_t
    B, H, W, Nf = pos_x.shape
    pos_x = jnp.stack((jnp.sin(pos_x[:, :, :, 0::2]),
                       jnp.cos(pos_x[:, :, :, 1::2])), axis=4).reshape(B, H, W, Nf)
    pos_y = jnp.stack((jnp.sin(pos_y[:, :, :, 0::2]),
                       jnp.cos(pos_y[:, :, :, 1::2])), axis=4).reshape(B, H, W, Nf)
    pos = jnp.concatenate((pos_y, pos_x), axis=3).transpose(0, 3, 1, 2)
    return pos


if __name__ == "__main__":
    key = jax.random.PRNGKey(0)
    N_steps = 64

    # Two configs: H*W a multiple of 128, and the (common) padded path.
    for (B, C_in, H, W) in [(2, 4, 16, 16), (2, 4, 15, 13)]:
        x = jax.random.normal(key, (B, C_in, H, W), dtype=jnp.float32)
        # Deterministic mask: batch 0 unpadded, batch 1 padded right/bottom
        # (exercises the cumsum + normalization path).
        mask = jnp.zeros((B, H, W), dtype=bool)
        mask = mask.at[1, :, W - 3:].set(True)
        mask = mask.at[1, H - 2:, :].set(True)

        pos = position_embedding_sine(x, mask, num_pos_feats=N_steps,
                                      temperature=10000, normalize=True)
        jax.block_until_ready(pos)

        ref = _reference_pos_embed(mask, N_steps, 10000, True, 2 * math.pi)

        assert pos.shape == (B, 2 * N_steps, H, W), pos.shape
        assert pos.dtype == jnp.float32
        assert bool(jnp.allclose(pos, ref, atol=1e-5, rtol=1e-5)), (
            float(jnp.max(jnp.abs(pos - ref))))

    print("KERNEL_OK")
</pallas_src>

<mosaic_0001>
module attributes {stable_mosaic.version = 11 : i64} {
  func.func @_sine_pos_kernel(%arg0: i32, %arg1: i32, %arg2: memref<1x1x256xf32, #tpu.memory_space<vmem>>, %arg3: memref<1x1x256xf32, #tpu.memory_space<vmem>>, %arg4: memref<64x256xf32, #tpu.memory_space<vmem>>, %arg5: memref<64x256xf32, #tpu.memory_space<vmem>>, %arg6: memref<128x256xf32, #tpu.memory_space<vmem>>) attributes {dimension_semantics = [#tpu.dimension_semantics<parallel>, #tpu.dimension_semantics<parallel>], iteration_bounds = array<i64: 1, 2>, scalar_prefetch = 0 : i64, scratch_operands = 0 : i64, tpu.core_type = #tpu.core_type<tc>, window_params = [{transform_indices = @transform_0, window_bounds = array<i64: 1, 1, 256>}, {transform_indices = @transform_1, window_bounds = array<i64: 1, 1, 256>}, {pipeline_mode = #tpu.pipeline_mode<synchronous>, transform_indices = @transform_2, window_bounds = array<i64: 64, 256>}, {pipeline_mode = #tpu.pipeline_mode<synchronous>, transform_indices = @transform_3, window_bounds = array<i64: 64, 256>}, {transform_indices = @transform_4, window_bounds = array<i64: 128, 256>}]} {
    %c0 = arith.constant 0 : index
    %c0_0 = arith.constant 0 : index
    %0 = vector.load %arg4[%c0, %c0_0] : memref<64x256xf32, #tpu.memory_space<vmem>>, vector<64x256xf32>
    %c0_1 = arith.constant 0 : index
    %c0_2 = arith.constant 0 : index
    %1 = vector.load %arg5[%c0_1, %c0_2] : memref<64x256xf32, #tpu.memory_space<vmem>>, vector<64x256xf32>
    %c0_3 = arith.constant 0 : index
    %c0_4 = arith.constant 0 : index
    %c0_5 = arith.constant 0 : index
    %2 = vector.load %arg2[%c0_3, %c0_4, %c0_5] : memref<1x1x256xf32, #tpu.memory_space<vmem>>, vector<1x1x256xf32>
    %3 = vector.shape_cast %2 : vector<1x1x256xf32> to vector<1x256xf32>
    %c0_6 = arith.constant 0 : index
    %c0_7 = arith.constant 0 : index
    %c0_8 = arith.constant 0 : index
    %4 = vector.load %arg3[%c0_6, %c0_7, %c0_8] : memref<1x1x256xf32, #tpu.memory_space<vmem>>, vector<1x1x256xf32>
    %5 = vector.shape_cast %4 : vector<1x1x256xf32> to vector<1x256xf32>
    %6 = vector.broadcast %3 : vector<1x256xf32> to vector<64x256xf32>
    %7 = arith.mulf %6, %0 : vector<64x256xf32>
    %8 = arith.addf %7, %1 : vector<64x256xf32>
    %9 = math.sin %8 : vector<64x256xf32>
    %c0_9 = arith.constant 0 : index
    %c0_10 = arith.constant 0 : index
    %10 = vector.load %arg6[%c0_9, %c0_10] : memref<128x256xf32, #tpu.memory_space<vmem>>, vector<64x256xf32>
    tpu.vector_store %arg6[%c0_9, %c0_10], %9 {strides = array<i32>} : memref<128x256xf32, #tpu.memory_space<vmem>>, vector<64x256xf32>,
    %11 = vector.broadcast %5 : vector<1x256xf32> to vector<64x256xf32>
    %12 = arith.mulf %11, %0 : vector<64x256xf32>
    %13 = arith.addf %12, %1 : vector<64x256xf32>
    %14 = math.sin %13 : vector<64x256xf32>
    %c64 = arith.constant 64 : index
    %c0_11 = arith.constant 0 : index
    %15 = vector.load %arg6[%c64, %c0_11] : memref<128x256xf32, #tpu.memory_space<vmem>>, vector<64x256xf32>
    tpu.vector_store %arg6[%c64, %c0_11], %14 {strides = array<i32>} : memref<128x256xf32, #tpu.memory_space<vmem>>, vector<64x256xf32>,
    return
  }
  func.func @transform_0(%arg0: i32, %arg1: i32) -> (i32, i32, i32) {
    %c0_i32 = arith.constant 0 : i32
    %c0_i32_0 = arith.constant 0 : i32
    return %arg1, %c0_i32, %arg0 : i32, i32, i32
  }
  func.func @transform_1(%arg0: i32, %arg1: i32) -> (i32, i32, i32) {
    %c0_i32 = arith.constant 0 : i32
    %c0_i32_0 = arith.constant 0 : i32
    return %arg1, %c0_i32, %arg0 : i32, i32, i32
  }
  func.func @transform_2(%arg0: i32, %arg1: i32) -> (i32, i32) {
    %c0_i32 = arith.constant 0 : i32
    %c0_i32_0 = arith.constant 0 : i32
    %c0_i32_1 = arith.constant 0 : i32
    return %c0_i32, %c0_i32_0 : i32, i32
  }
  func.func @transform_3(%arg0: i32, %arg1: i32) -> (i32, i32) {
    %c0_i32 = arith.constant 0 : i32
    %c0_i32_0 = arith.constant 0 : i32
    %c0_i32_1 = arith.constant 0 : i32
    return %c0_i32, %c0_i32_0 : i32, i32
  }
  func.func @transform_4(%arg0: i32, %arg1: i32) -> (i32, i32) {
    %c0_i32 = arith.constant 0 : i32
    return %arg1, %arg0 : i32, i32
  }
}

</mosaic_0001>

<bundles_post_ra>
// kernel: tpu_custom_call.1
= control target key start
LH: loop header
LB: loop body
LE: loop exit
PB: predicated region body
PF: predicated region fallthrough
CT: control target
= control target key end

     0   :  { %s10063_s0 = inlined_call_operand.hbm [shape: f32[2,1,256], index: 0, kind: input, shape index: {}]   ;;  %s10064_s1 = inlined_call_operand.hbm [shape: f32[2,1,256], index: 1, kind: input, shape index: {}]   ;;  %s10065_s2 = inlined_call_operand.hbm [shape: f32[64,256], index: 2, kind: input, shape index: {}]   ;;  %s10066_s3 = inlined_call_operand.hbm [shape: f32[64,256], index: 3, kind: input, shape index: {}]   ;;  %s10067_s4 = inlined_call_operand.hbm [shape: f32[256,256], index: 4, kind: output, shape index: {}]  }
   0x1   :  { %10070 = sst [smem:[#allocation19_spill]] %s10065_s2 }
   0x2   :  { %10071 = sst [smem:[#allocation20_spill]] %s10066_s3 }
   0x3   :  { %9 = vsyncpa [#allocation3], 0 }
   0x4   :  { %11 = vsyncpa [#allocation3 + $0x1], 0 }
   0x5   :  { %12 = vsyncpa [#allocation6], 0 }
   0x6   :  { %14 = vsyncpa [#allocation6 + $0x1], 0 }
   0x7   :  { %15 = vsyncpa [#allocation9], 0 }
   0x8   :  { %16 = vsyncpa [#allocation4], 0 }
   0x9   :  { %18 = vsyncpa [#allocation4 + $0x1], 0  ;;  %s6067_s15 = smov 0   ;;  %s6069_s16 = smov 0  }
   0xa   :  { %s6071_s17 = smov 0   ;;  %s6073_s18 = smov 0  }
   0xb   :  { %s6075_s19 = smov 0   ;;  %s6077_s20 = smov 0  }
   0xc LB: > { %10072 = sst [smem:[#allocation16_spill]] %s6023_s19  ;;  %s6098_s21 = sadd.s32 4294967295, %s6027_s20   ;;  %s6027_s20 = sphi %s6077_s20, %s24_s20   ;;  %s6023_s19 = sphi %s6075_s19, %s10144_s19   ;;  %s6019_s18 = sphi %s6073_s18, %s10143_s18   ;;  %s6015_s17 = sphi %s6071_s17, %s10147_s17   ;;  %s6011_s16 = sphi %s6069_s16, %s10146_s16   ;;  %s6007_s15 = sphi %s6067_s15, %s10145_s15  }
   0xd   : > { %p5564_p0 = scmp.ge.s32.totalorder %s6027_s20, 1  ;;  %p59_p1 = scmp.eq.s32.totalorder %s6098_s21, 0 }
   0xe   : > { %p167_p2 = scmp.lt.s32.totalorder %s6027_s20, 3  ;;  %s10073_s2 = sld [smem:[#allocation19_spill]] }
   0xf   : > { %s6029_s26 = smov [#allocation7]   ;;  %p5567_p6 = scmp.ge.s32.totalorder %s6027_s20, 2 }
  0x10   : > { %p6106_p3 = pnand %p5564_p0, %p167_p2  ;;  %s180_s27 = sshll.u32 %s6029_s26, 4  ;;  %s181_s27 = int_to_ptr.vmem [resolvable:$true] %s180_s27 }
  0x11   : > { %s10075_s3 = sld [smem:[#allocation20_spill]]  ;;  %s6030_s5 = smov 256  }
  0x12   : > { %p5696_p4 = pneg %p6106_p3  ;;  %s6031_s6 = smov 16  }
  0x13   : > { %s6032_s7 = smov [#allocation8]   ;;  %s5563_s9 = sadd.s32 4294967294, %s6027_s20  }
  0x14   : > { %s178_s24 = sshll.u32 %s10073_s2, 4  ;;  %p5697_p5 = pnand %p5696_p4, %p59_p1  ;;  %s179_s24 = int_to_ptr.hbm [resolvable:$true] %s178_s24 }
  0x15   : > { %s194_s8 = sshll.u32 %s6032_s7, 4  ;;  %s33_s10 = sadd.s32 1, %s6023_s19  ;;  %s195_s8 = int_to_ptr.vmem [resolvable:$true] %s194_s8 }
  0x16   : > { %5699 = dma.hbm_to_vmem [thread:$0]  (!%p5697_p5), %s179_s24, 2048, %s181_s27, [#allocation6], %s6030_s5, %s6030_s5, %s6031_s6  }
  0x17   : > { %s192_s30 = sshll.u32 %s10075_s3, 4  ;;  %p34_p7 = scmp.ge.s32.totalorder %s33_s10, 2  ;;  %s193_s30 = int_to_ptr.hbm [resolvable:$true] %s192_s30 }
  0x18   : > { %5702 = dma.hbm_to_vmem [thread:$0]  (!%p5697_p5), %s193_s30, 2048, %s195_s8, [#allocation9], %s6030_s5, %s6030_s5, %s6031_s6  }
  0x19   : > { %s45_s11 = sadd.s32 1, %s6015_s17  ;;  %p52_p8 = scmp.ne.s32.totalorder %s6015_s17, %s6011_s16 }
  0x1a   : > { %p53_p9 = scmp.eq.s32.totalorder %s6027_s20, 0  ;;  %s10149_s10 = smov (%p34_p7, %s33_s10), 0 }
  0x1b   : > { %10076 = sst [smem:[#allocation17_spill]] %s10149_s10  ;;  %p58_p11 = scmp.ne.s32.totalorder %s6011_s16, %s6007_s15 }
  0x1c   : > { %p6126_p10 = por %p53_p9, %p52_p8  ;;  %s40_s13 = ssub.s32 %s6023_s19, %s10149_s10 }
  0x1d   : > { %p154_p12 = scmp.eq.s32.totalorder %s6098_s21, 1  ;;  %p43_p13 = scmp.eq.s32.totalorder %s40_s13, 0 }
  0x1e   : > { %p6137_p0 = por %p59_p1, %p58_p11  ;;  %p160_p4 = scmp.eq.s32.totalorder %s5563_s9, 1 }
  0x1f   : > { %p6141_p2 = por %p154_p12, %p52_p8  ;;  %p5716_p7 = scmp.lt.s32.totalorder %s6027_s20, 2 }
  0x20   : > { %s6146_s23 = scalar_select %p43_p13, %s6015_s17, %s45_s11  }
  0x21   : > { %p6148_p5 = por %p160_p4, %p58_p11  ;;  %s208_s26 = sand.u32 1, %s6015_s17  }
  0x22   : > { %10080 = sst [smem:[#allocation18_spill]] %s6146_s23  ;;  %s5569_s27 = sshll.u32 %s6023_s19, 1 }
  0x23   : > { %s5568_s28 = sshll.u32 %s208_s26, 1  ;;  %s218_s5 = scalar_lea.hbm %s10063_s0, %s5569_s27 }
  0x24   : > { %s220_s6 = sshll.u32 %s218_s5, 4  ;;  %s212_s7 = scalar_lea.vmem [#allocation2], %s5568_s28  ;;  %s221_s6 = int_to_ptr.hbm [resolvable:$true] %s220_s6 }
  0x25   : > { %s222_s8 = sshll.u32 %s212_s7, 4  ;;  %p5704_p8 = pnand %p5716_p7, %p6126_p10  ;;  %s223_s8 = int_to_ptr.vmem [resolvable:$true] %s222_s8 }
  0x26   : > { %s239_s13 = scalar_lea.hbm %s10064_s1, %s5569_s27  ;;  %s229_s2 = sand.u32 1, %s6027_s20  }
  0x27   : > { %s209_s3 = scalar_lea.sflag [#allocation3], %s208_s26  ;;  %s241_s10 = sshll.u32 %s239_s13, 4  ;;  %s242_s10 = int_to_ptr.hbm [resolvable:$true] %s241_s10 }
  0x28   : > { %5706 = dma.hbm_to_vmem [thread:$0]  (!%p5704_p8), %s221_s6, 32, %s223_s8, %s209_s3  }
  0x29   : > { %s233_s19 = scalar_lea.vmem [#allocation5], %s5568_s28  ;;  %s230_s29 = scalar_lea.sflag [#allocation6], %s229_s2 }
  0x2a   : > { %s243_s23 = sshll.u32 %s233_s19, 4  ;;  %252 = sbr.rel (%p6106_p3) target bundleno = 1309 (0x51d), region = 36  ;;  %s244_s23 = int_to_ptr.vmem [resolvable:$true] %s243_s23 }
  0x2b   : > { %5709 = dma.hbm_to_vmem [thread:$0]  (!%p5704_p8), %s242_s10, 32, %s244_s23, %s230_s29  }
  0x2c   : > { %s6167_s12 = sand.u32 (!%p6106_p3), 1, %s6011_s16  }
  0x2d   : > { %s5573_s27 = sshll.u32 (!%p6106_p3), %s6167_s12, 1  ;;  %s255_s30 = scalar_lea.sflag (!%p6106_p3), [#allocation3], %s6167_s12 }
  0x2e   : > { %s258_s26 = scalar_lea.vmem (!%p6106_p3), [#allocation2], %s5573_s27 }
  0x2f   : > { %5986 = dma.done.wait (%p6137_p0), %s255_s30, 32  }
  0x30   : > { %5988 = vsyncadd (%p6137_p0), %s255_s30, 4294967264  ;;  %s264_s2 = sand.u32 1, %s6098_s21   ;;  %s6176_s19 = scalar_lea.vmem [#allocation5], %s5573_s27 }
  0x31   : > { %s265_s3 = scalar_lea.sflag [#allocation6], %s264_s2 }
  0x32   : > { %5990 = dma.done.wait (%p6137_p0), %s265_s3, 32  }
  0x33   : > { %5992 = vsyncadd (%p6137_p0), %s265_s3, 4294967264 }
  0x34   : > { %5994 = dma.done.wait (%p59_p1), [#allocation6], 2048  }
  0x35   : > { %5996 = vsyncadd (%p59_p1), [#allocation6], 4294965248 }
  0x36   : > { %5998 = dma.done.wait (%p59_p1), [#allocation9], 2048  }
  0x37   : > { %6000 = vsyncadd (%p59_p1), [#allocation9], 4294965248  ;;  %v313_v0 = vld [vmem:[#allocation7] sm:$0xff]  ;;  %v345_v1 = vld [vmem:[%s258_s26] sm:$0x3]  ;;  %s5577_s21 = sshll.u32 %s6167_s12, 8 }
  0x38   : > { %v314_v2 = vld [vmem:[#allocation7 + $0x8] sm:$0xff]  ;;  %v315_v3 = vld [vmem:[#allocation7 + $0x10] sm:$0xff]  ;;  %v6190_v4 = vperm.slane %v345_v1, 0  ;;  %v6192_v5 = vperm.slane %v345_v1, 1  ;;  %v329_v7 = vld [vmem:[#allocation8] sm:$0xff]  ;;  %s6516_s25 = scalar_lea.vmem [#allocation10], %s5577_s21 }
  0x39   : > { %v330_v10 = vld [vmem:[#allocation8 + $0x8] sm:$0xff]  ;;  %v331_v11 = vld [vmem:[#allocation8 + $0x10] sm:$0xff]  ;;  %v6033_v40 = vmov 683565275   ;;  %v6034_v42 = vmov 2475754826  }
  0x3a   : > { %v352_v6 = vmul.f32 %v6190_v4, %v313_v0  ;;  %v353_v8 = vmul.f32 %v6192_v5, %v314_v2  ;;  %v354_v9 = vmul.f32 %v6190_v4, %v315_v3  ;;  %v6035_v44 = vmov 2131351028   ;;  %s5681_s10 = sshll.u32 %s6019_s18, 8  ;;  %s5429_s5 = sshll.u32 %s6516_s25, 4  ;;  %s5430_s5 = int_to_ptr.vmem [resolvable:$true] %s5429_s5 }
  0x3b   : > { %v6036_v46 = vmov 2102212464   ;;  %v6037_v48 = vmov 920167782   ;;  %v6038_v57 = vmov 1326507024   ;;  %s5428_s28 = scalar_lea.hbm %s10067_s4, %s5681_s10 }
  0x3c   : > { %v6197_v12 = vadd.f32 %v352_v6, %v329_v7  ;;  %v6199_v13 = vadd.f32 %v353_v8, %v330_v10  ;;  %v6201_v14 = vadd.f32 %v354_v9, %v331_v11  ;;  %s5431_s6 = sshll.u32 %s5428_s28, 4  ;;  %s5414_s18 = scalar_lea.sflag [#allocation4], %s6167_s12  ;;  %s5432_s6 = int_to_ptr.hbm [resolvable:$true] %s5431_s6 }
  0x3d   : > { %s5947_s7 = sshra.s32 %s5432_s6, 4  ;;  %s5953_s13 = scalar_lea.hbm %s10067_s4, 512  ;;  %s5948_s7 = int_to_ptr.hbm [resolvable:$true] %s5947_s7 }
  0x3e   : > { %v384_v15 = vand.u32 2147483647, %v6197_v12  ;;  %v387_v16 = vand.u32 2139095040, %v6197_v12  ;;  %v539_v17 = vand.u32 2147483647, %v6199_v13  ;;  %v542_v18 = vand.u32 2139095040, %v6199_v13  ;;  %p5954_p10 = scmp.lt.s32.totalorder %s5948_s7, %s10067_s4 }
  0x3f   : > { %v697_v19 = vand.u32 2139095040, %v6201_v14  ;;  %s5949_s8 = scalar_lea.hbm %s5948_s7, 256 }
  0x40   : > { %v388_v20 = vshrl.u32 %v387_v16, 23  ;;  %v391_v21 = vand.u32 8388607, %v384_v15  ;;  %v543_v22 = vshrl.u32 %v542_v18, 23  ;;  %v546_v23 = vand.u32 8388607, %v539_v17  ;;  %p5950_p1 = scmp.ne.s32.totalorder %s5948_s7, %s5949_s8  ;;  %p5955_p11 = scmp.lt.s32.totalorder %s5953_s13, %s5949_s8 }
  0x41   : > { %v698_v27 = vshrl.u32 %v697_v19, 23 }
  0x42   : > { %v5578_v24 = vadd.s32 4294967169, %v388_v20  ;;  %v392_v25 = vor.u32 8388608, %v391_v21  ;;  %v5581_v26 = vadd.s32 4294967169, %v543_v22  ;;  %v547_v29 = vor.u32 8388608, %v546_v23  ;;  %p5951_p3 = pnand %p5950_p1, %p6141_p2  ;;  %p5956_p12 = por %p5955_p11, %p5954_p10 }
  0x43   : > { %v5584_v33 = vadd.s32 4294967169, %v698_v27 }
  0x44   : > { %v394_v28 = vadd.s32 1, %v5578_v24  ;;  %v549_v30 = vadd.s32 1, %v5581_v26  ;;  %v6212_v32 = vshll.u32 %v392_v25, 8  ;;  %v6218_v38 = vshll.u32 %v547_v29, 8  ;;  %p5952_p9 = pneg %p5951_p3 }
  0x45   : > { %v6226_v51 = vadd.s32 1, %v5584_v33 }
  0x46   : > { %vm395_vm0 = vcmp.gt.s32.totalorder %v394_v28, 0  ;;  %vm550_vm1 = vcmp.gt.s32.totalorder %v549_v30, 0  ;;  %v433_v50 = vand.u32 65535, %v6212_v32  ;;  %v434_v55 = vshrl.u32 %v6212_v32, 16  ;;  %p5957_p13 = pnand %p5956_p12, %p5952_p9 }
  0x47   : > { %v396_v31 = vsel %vm395_vm0, %v394_v28, 0  ;;  %v551_v35 = vsel %vm550_vm1, %v549_v30, 0  ;;  %vm705_vm15 = vcmp.gt.s32.totalorder %v6226_v51, 0 }
  0x48   : > { %v398_v34 = vand.u32 31, %v396_v31  ;;  %v6214_v36 = vshrl.u32 %v396_v31, 5  ;;  %v6216_v37 = vand.u32 31, %v551_v35  ;;  %v6246_v6 = vshrl.u32 %v551_v35, 5 }
  0x4a   : > { %v399_v39 = vsub.s32 32, %v398_v34  ;;  %v401_v41 = vshll.u32 %v6033_v40, %v398_v34  ;;  %v404_v43 = vshll.u32 %v6034_v42, %v398_v34  ;;  %v407_v45 = vshll.u32 %v6035_v44, %v398_v34 }
  0x4b   : > { %v410_v47 = vshll.u32 %v6036_v46, %v398_v34  ;;  %v413_v49 = vshll.u32 %v6037_v48, %v398_v34  ;;  %vm416_vm2 = vcmp.lt.s32.totalorder %v6214_v36, 1  ;;  %vm419_vm3 = vcmp.lt.s32.totalorder %v6214_v36, 4 }
  0x4c   : > { %v402_v52 = vshrl.u32 %v6034_v42, %v399_v39  ;;  %v405_v53 = vshrl.u32 %v6035_v44, %v399_v39  ;;  %v408_v54 = vshrl.u32 %v6036_v46, %v399_v39  ;;  %v411_v56 = vshrl.u32 %v6037_v48, %v399_v39 }
  0x4d   : > { %v414_v58 = vshrl.u32 %v6038_v57, %v399_v39  ;;  %v6237_v62 = vsub.s32 32, %v6216_v37  ;;  %v400_v63 = vshrl.u32 %v6033_v40, %v399_v39  ;;  %vm418_vm4 = vcmp.lt.s32.totalorder %v6214_v36, 3 }
  0x4e   : > { %v403_v59 = vor.u32 %v402_v52, %v401_v41  ;;  %v406_v60 = vor.u32 %v405_v53, %v404_v43  ;;  %v409_v61 = vor.u32 %v408_v54, %v407_v45  ;;  %v412_v0 = vor.u32 %v411_v56, %v410_v47 }
  0x4f   : > { %v415_v1 = vor.u32 %v414_v58, %v413_v49  ;;  %vm417_vm5 = vcmp.lt.s32.totalorder %v6214_v36, 2  ;;  %v556_v9 = vshll.u32 %v6033_v40, %v6216_v37  ;;  %v559_v10 = vshll.u32 %v6034_v42, %v6216_v37 }
  0x50   : > { %v424_v2 = vsel %vm416_vm2, %v403_v59, %v406_v60  ;;  %v428_v3 = vsel %vm416_vm2, %v406_v60, %v409_v61  ;;  %v425_v7 = vsel %vm419_vm3, %v412_v0, 920167782  ;;  %v421_v11 = vsel %vm419_vm3, %v409_v61, 2102212464 }
  0x51   : > { %v429_v8 = vsel %vm419_vm3, %v415_v1, 1326507024  ;;  %v426_v16 = vsel %vm418_vm4, %v409_v61, %v425_v7  ;;  %v557_v19 = vshrl.u32 %v6034_v42, %v6237_v62  ;;  %v420_v20 = vsel %vm416_vm2, %v400_v63, %v403_v59 }
  0x52   : > { %v430_v18 = vsel %vm418_vm4, %v412_v0, %v429_v8  ;;  %v427_v21 = vsel %vm417_vm5, %v424_v2, %v426_v16  ;;  %v560_v23 = vshrl.u32 %v6035_v44, %v6237_v62  ;;  %v422_v28 = vsel %vm418_vm4, %v406_v60, %v421_v11 }
  0x53   : > { %v431_v22 = vsel %vm417_vm5, %v428_v3, %v430_v18  ;;  %v457_v26 = vand.u32 65535, %v427_v21  ;;  %v458_v27 = vshrl.u32 %v427_v21, 16  ;;  %v6274_v29 = vor.u32 %v557_v19, %v556_v9 }
  0x54   : > { %v435_v24 = vand.u32 65535, %v431_v22  ;;  %v436_v25 = vshrl.u32 %v431_v22, 16  ;;  %v6276_v30 = vor.u32 %v560_v23, %v559_v10  ;;  %v562_v31 = vshll.u32 %v6035_v44, %v6216_v37 }
  0x55   : > { %v563_v39 = vshrl.u32 %v6036_v46, %v6237_v62  ;;  %v459_v43 = vmul.u32 %v457_v26, %v433_v50  ;;  %v460_v45 = vmul.u32 %v458_v27, %v433_v50  ;;  %v461_v47 = vmul.u32 %v457_v26, %v434_v55 }
  0x56   : > { %v437_v33 = vmul.u32 %v435_v24, %v433_v50  ;;  %v438_v34 = vmul.u32 %v436_v25, %v433_v50  ;;  %v439_v35 = vmul.u32 %v435_v24, %v434_v55  ;;  %v440_v41 = vmul.u32 %v436_v25, %v434_v55 }
  0x57   : > { %v462_v54 = vmul.u32 %v458_v27, %v434_v55  ;;  %v463_v58 = vshll.u32 %v460_v45, 16  ;;  %v464_v59 = vshrl.u32 %v460_v45, 16  ;;  %v465_v60 = vshll.u32 %v461_v47, 16 }
  0x58   : > { %v441_v49 = vshll.u32 %v438_v34, 16  ;;  %v442_v52 = vshrl.u32 %v438_v34, 16  ;;  %v443_v53 = vshll.u32 %v439_v35, 16  ;;  %v444_v56 = vshrl.u32 %v439_v35, 16 }
  0x59   : > { %v466_v63 = vshrl.u32 %v461_v47, 16  ;;  %v565_v0 = vshll.u32 %v6036_v46, %v6216_v37  ;;  %v6039_v1 = vmov 0   ;;  %vm467_vm7 = vc.u32 %v459_v43, %v463_v58 }
  0x5a   : > { %vm445_vm6 = vc.u32 %v437_v33, %v441_v49  ;;  %v447_v61 = vadd.s32 %v441_v49, %v437_v33  ;;  %v469_v50 = vadd.s32 %v463_v58, %v459_v43  ;;  %v566_v3 = vshrl.u32 %v6037_v48, %v6237_v62 }
  0x5b   : > { %v446_v2 = vsel %vm445_vm6, 1, %v6039_v1  ;;  %v468_v55 = vsel %vm467_vm7, 1, %v6039_v1  ;;  %v568_v8 = vshll.u32 %v6037_v48, %v6216_v37  ;;  %v564_v11 = vor.u32 %v563_v39, %v562_v31 }
  0x5c   : > { %v448_v7 = vadd.s32 %v446_v2, %v440_v41  ;;  %vm449_vm8 = vc.u32 %v447_v61, %v443_v53  ;;  %v470_v10 = vadd.s32 %v468_v55, %v462_v54  ;;  %vm471_vm9 = vc.u32 %v469_v50, %v465_v60 }
  0x5d   : > { %v450_v9 = vsel %vm449_vm8, 1, %v6039_v1  ;;  %v472_v18 = vsel %vm471_vm9, 1, %v6039_v1  ;;  %v567_v19 = vor.u32 %v566_v3, %v565_v0  ;;  %v569_v21 = vshrl.u32 %v6038_v57, %v6237_v62 }
  0x5e   : > { %v452_v16 = vadd.s32 %v450_v9, %v448_v7  ;;  %v6294_v22 = vadd.s32 %v469_v50, %v465_v60  ;;  %v474_v23 = vadd.s32 %v472_v18, %v470_v10  ;;  %vm571_vm10 = vcmp.lt.s32.totalorder %v6246_v6, 1 }
  0x5f   : > { %vm573_vm11 = vcmp.lt.s32.totalorder %v6246_v6, 3  ;;  %v570_v24 = vor.u32 %v569_v21, %v568_v8  ;;  %vm572_vm12 = vcmp.lt.s32.totalorder %v6246_v6, 2  ;;  %vm574_vm13 = vcmp.lt.s32.totalorder %v6246_v6, 4 }
  0x60   : > { %v453_v37 = vadd.s32 %v452_v16, %v442_v52  ;;  %v423_v25 = vsel %vm417_vm5, %v420_v20, %v422_v28  ;;  %v475_v26 = vadd.s32 %v474_v23, %v464_v59  ;;  %v579_v27 = vsel %vm571_vm10, %v6274_v29, %v6276_v30 }
  0x61   : > { %v580_v31 = vsel %vm574_vm13, %v567_v19, 920167782  ;;  %v583_v35 = vsel %vm571_vm10, %v6276_v30, %v564_v11  ;;  %v588_v36 = vand.u32 65535, %v6218_v38  ;;  %v584_v39 = vsel %vm574_vm13, %v570_v24, 1326507024 }
  0x62   : > { %v6308_v33 = vadd.s32 %v453_v37, %v444_v56  ;;  %v581_v34 = vsel %vm573_vm11, %v564_v11, %v580_v31  ;;  %v476_v20 = vadd.s32 %v475_v26, %v466_v63  ;;  %v589_v41 = vshrl.u32 %v6218_v38, 16 }
  0x63   : > { %v582_v28 = vsel %vm572_vm12, %v579_v27, %v581_v34  ;;  %v477_v43 = vmul.u32 %v6212_v32, %v423_v25  ;;  %v585_v45 = vsel %vm573_vm11, %v567_v19, %v584_v39  ;;  %v555_v54 = vshrl.u32 %v6033_v40, %v6237_v62 }
  0x64   : > { %vm479_vm14 = vc.u32 %v6308_v33, %v6294_v22  ;;  %v612_v47 = vand.u32 65535, %v582_v28  ;;  %v480_v49 = vadd.s32 1, %v476_v20  ;;  %v586_v52 = vsel %vm572_vm12, %v583_v35, %v585_v45 }
  0x65   : > { %v613_v53 = vshrl.u32 %v582_v28, 16  ;;  %v590_v56 = vand.u32 65535, %v586_v52  ;;  %v591_v58 = vshrl.u32 %v586_v52, 16  ;;  %v576_v59 = vsel %vm574_vm13, %v564_v11, 2102212464 }
  0x66   : > { %v481_v32 = vsel %vm479_vm14, %v480_v49, %v476_v20  ;;  %v616_v61 = vmul.u32 %v612_v47, %v589_v41  ;;  %v614_v50 = vmul.u32 %v612_v47, %v588_v36  ;;  %v706_v55 = vsel %vm705_vm15, %v6226_v51, 0 }
  0x67   : > { %v615_v60 = vmul.u32 %v613_v53, %v588_v36  ;;  %v482_v63 = vadd.s32 %v481_v32, %v477_v43  ;;  %v592_v0 = vmul.u32 %v590_v56, %v588_v36  ;;  %v593_v2 = vmul.u32 %v591_v58, %v588_v36 }
  0x68   : > { %v594_v3 = vmul.u32 %v590_v56, %v589_v41  ;;  %v575_v62 = vsel %vm571_vm10, %v555_v54, %v6274_v29  ;;  %v595_v9 = vmul.u32 %v591_v58, %v589_v41  ;;  %v577_v11 = vsel %vm573_vm11, %v6276_v30, %v576_v59 }
  0x69   : > { %v618_v7 = vshll.u32 %v615_v60, 16  ;;  %v483_v8 = vadd.s32 536870912, %v482_v63  ;;  %v596_v10 = vshll.u32 %v593_v2, 16  ;;  %v617_v18 = vmul.u32 %v613_v53, %v589_v41 }
  0x6a   : > { %v598_v16 = vshll.u32 %v594_v3, 16  ;;  %v620_v19 = vshll.u32 %v616_v61, 16  ;;  %v597_v51 = vshrl.u32 %v593_v2, 16  ;;  %v619_v27 = vshrl.u32 %v615_v60, 16 }
  0x6b   : > { %v6340_v21 = vshrl.u32 %v483_v8, 30  ;;  %vm600_vm0 = vc.u32 %v592_v0, %v596_v10  ;;  %v602_v23 = vadd.s32 %v596_v10, %v592_v0  ;;  %vm622_vm1 = vc.u32 %v614_v50, %v618_v7 }
  0x6c   : > { %v601_v37 = vsel %vm600_vm0, 1, %v6039_v1  ;;  %v623_v24 = vsel %vm622_vm1, 1, %v6039_v1  ;;  %v624_v29 = vadd.s32 %v618_v7, %v614_v50  ;;  %v708_v34 = vand.u32 31, %v706_v55 }
  0x6d   : > { %v485_v25 = vshll.u32 %v6340_v21, 30  ;;  %v603_v26 = vadd.s32 %v601_v37, %v595_v9  ;;  %vm604_vm2 = vc.u32 %v602_v23, %v598_v16  ;;  %v625_v31 = vadd.s32 %v623_v24, %v617_v18 }
  0x6e   : > { %v605_v30 = vsel %vm604_vm2, 1, %v6039_v1  ;;  %vm626_vm3 = vc.u32 %v624_v29, %v620_v19  ;;  %v599_v36 = vshrl.u32 %v594_v3, 16  ;;  %v621_v39 = vshrl.u32 %v616_v61, 16 }
  0x6f   : > { %v486_v35 = vsub.s32 %v482_v63, %v485_v25  ;;  %v607_v20 = vadd.s32 %v605_v30, %v603_v26  ;;  %v627_v28 = vsel %vm626_vm3, 1, %v6039_v1  ;;  %v694_v43 = vand.u32 2147483647, %v6201_v14 }
  0x70   : > { %v629_v41 = vadd.s32 %v627_v28, %v625_v31  ;;  %v6348_v49 = vadd.s32 %v624_v29, %v620_v19  ;;  %v578_v52 = vsel %vm572_vm12, %v575_v62, %v577_v11  ;;  %v709_v54 = vsub.s32 32, %v708_v34 }
  0x71   : > { %vm487_vm4 = vcmp.lt.s32.totalorder %v486_v35, 0  ;;  %v488_v45 = vsub.s32 0, %v486_v35  ;;  %v608_v47 = vadd.s32 %v607_v20, %v597_v51  ;;  %vm386_vm5 = vcmp.lt.s32.totalorder %v6197_v12, 0 }
  0x72   : > { %v630_v53 = vadd.s32 %v629_v41, %v619_v27  ;;  %v478_v32 = vadd.s32 %v6294_v22, %v6308_v33  ;;  %v701_v61 = vand.u32 8388607, %v694_v43  ;;  %v508_v63 = vsub.s32 4, %v6340_v21  ;;  %v316_v27 = vld [vmem:[#allocation7 + $0x18] sm:$0xff] }
  0x73   : > { %v489_v56 = vsel %vm487_vm4, %v488_v45, %v486_v35  ;;  %v6353_v58 = vadd.s32 %v608_v47, %v599_v36  ;;  %v632_v6 = vmul.u32 %v6218_v38, %v578_v52  ;;  %v6363_v0 = vshrl.u32 %v706_v55, 5 }
  0x74   : > { %v490_v59 = vclz %v489_v56  ;;  %v631_v60 = vadd.s32 %v630_v53, %v621_v39  ;;  %vm6367_vm7 = vcmp.le.f32.partialorder %v384_v15, 0.7853982  ;;  %v720_v50 = vshll.u32 %v6036_v46, %v708_v34 }
  0x75   : > { %vm634_vm6 = vc.u32 %v6353_v58, %v6348_v49  ;;  %v721_v3 = vshrl.u32 %v6037_v48, %v709_v54  ;;  %v711_v7 = vshll.u32 %v6033_v40, %v708_v34  ;;  %v712_v38 = vshrl.u32 %v6034_v42, %v709_v54 }
  0x76   : > { %v5579_v22 = vadd.s32 4294967294, %v490_v59  ;;  %v635_v33 = vadd.s32 1, %v631_v60  ;;  %v714_v8 = vshll.u32 %v6034_v42, %v708_v34  ;;  %v715_v55 = vshrl.u32 %v6035_v44, %v709_v54 }
  0x77   : > { %v717_v15 = vshll.u32 %v6035_v44, %v708_v34  ;;  %v718_v9 = vshrl.u32 %v6036_v46, %v709_v54  ;;  %v723_v16 = vshll.u32 %v6037_v48, %v708_v34  ;;  %v724_v18 = vshrl.u32 %v6038_v57, %v709_v54 }
  0x78   : > { %vm5580_vm8 = vcmp.lt.s32.totalorder %v5579_v22, 0  ;;  %v636_v62 = vsel %vm634_vm6, %v635_v33, %v631_v60  ;;  %v722_v37 = vor.u32 %v721_v3, %v720_v50  ;;  %v509_v24 = vsel %vm386_vm5, %v508_v63, %v6340_v21 }
  0x79   : > { %v493_v10 = vsel %vm5580_vm8, 0, %v5579_v22  ;;  %v637_v11 = vadd.s32 %v636_v62, %v632_v6  ;;  %v713_v25 = vor.u32 %v712_v38, %v711_v7  ;;  %v6384_v26 = vor.u32 %v715_v55, %v714_v8  ;;  %v332_v6 = vld [vmem:[#allocation8 + $0x18] sm:$0xff] }
  0x7a   : > { %v494_v19 = vsub.s32 32, %v493_v10  ;;  %v495_v23 = vshll.u32 %v486_v35, %v493_v10  ;;  %v498_v51 = vsub.s32 4294967266, %v493_v10  ;;  %v719_v36 = vor.u32 %v718_v9, %v717_v15 }
  0x7b   : > { %v638_v29 = vadd.s32 536870912, %v637_v11  ;;  %vm726_vm9 = vcmp.lt.s32.totalorder %v6363_v0, 1  ;;  %v725_v20 = vor.u32 %v724_v18, %v723_v16  ;;  %vm728_vm10 = vcmp.lt.s32.totalorder %v6363_v0, 3 }
  0x7c   : > { %v496_v30 = vshrl.u32 %v478_v32, %v494_v19  ;;  %v499_v31 = vadd.s32 127, %v498_v51  ;;  %vm729_vm11 = vcmp.lt.s32.totalorder %v6363_v0, 4  ;;  %v702_v21 = vor.u32 8388608, %v701_v61 }
  0x7d   : > { %v6387_v34 = vshrl.u32 %v638_v29, 30  ;;  %v735_v39 = vsel %vm729_vm11, %v722_v37, 920167782  ;;  %v355_v41 = vmul.f32 %v6192_v5, %v316_v27  ;;  %v511_v45 = vsel %vm6367_vm7, 0, %v509_v24 }
  0x7e   : > { %v497_v35 = vor.u32 %v496_v30, %v495_v23  ;;  %v500_v28 = vshll.u32 %v499_v31, 23  ;;  %vm727_vm12 = vcmp.lt.s32.totalorder %v6363_v0, 2  ;;  %v734_v56 = vsel %vm726_vm9, %v713_v25, %v6384_v26 }
  0x7f   : > { %v640_v47 = vshll.u32 %v6387_v34, 30  ;;  %v736_v32 = vsel %vm728_vm10, %v719_v36, %v735_v39  ;;  %v710_v60 = vshrl.u32 %v6033_v40, %v709_v54  ;;  %v738_v61 = vsel %vm726_vm9, %v6384_v26, %v719_v36 }
  0x80   : > { %v501_v52 = vor.u32 4788187, %v500_v28  ;;  %v504_v53 = vcvt.s32.f32 %v497_v35  ;;  %v739_v63 = vsel %vm729_vm11, %v725_v20, 1326507024  ;;  %v528_v33 = vadd.s32 3, %v511_v45 }
  0x81   : > { %v6403_v59 = vsub.s32 %v637_v11, %v640_v47  ;;  %v740_v50 = vsel %vm728_vm10, %v722_v37, %v739_v63  ;;  %v6413_v3 = vshll.u32 %v702_v21, 8  ;;  %v737_v54 = vsel %vm727_vm12, %v734_v56, %v736_v32 }
  0x82   : > { %v502_v22 = vand.u32 2147483647, %v501_v52  ;;  %v741_v38 = vsel %vm727_vm12, %v738_v61, %v740_v50  ;;  %v6423_v9 = vadd.f32 %v355_v41, %v332_v6  ;;  %v633_v10 = vadd.s32 %v6348_v49, %v6353_v58 }
  0x83   : > { %vm642_vm13 = vcmp.lt.s32.totalorder %v6403_v59, 0  ;;  %v643_v7 = vsub.s32 0, %v6403_v59  ;;  %v743_v55 = vand.u32 65535, %v6413_v3  ;;  %v744_v62 = vshrl.u32 %v6413_v3, 16 }
  0x84   : > { %v505_v8 = vmul.f32 %v504_v53, %v502_v22  ;;  %v745_v15 = vand.u32 65535, %v741_v38  ;;  %v746_v16 = vshrl.u32 %v741_v38, 16  ;;  %v6428_v19 = vand.u32 3, %v528_v33 }
  0x85   : > { %v644_v11 = vsel %vm642_vm13, %v643_v7, %v6403_v59  ;;  %vm541_vm14 = vcmp.lt.s32.totalorder %v6199_v13, 0  ;;  %v731_v37 = vsel %vm729_vm11, %v719_v36, 2102212464  ;;  %v768_v27 = vshrl.u32 %v737_v54, 16 }
  0x86   : > { %v506_v18 = vxor.u32 2147483648, %v505_v8  ;;  %v645_v23 = vclz %v644_v11  ;;  %v6431_v51 = vmul.u32 %v745_v15, %v744_v62  ;;  %v747_v24 = vmul.u32 %v745_v15, %v743_v55 }
  0x87   : > { %v748_v29 = vmul.u32 %v746_v16, %v743_v55  ;;  %v663_v30 = vsub.s32 4, %v6387_v34  ;;  %v730_v31 = vsel %vm726_vm9, %v710_v60, %v713_v25  ;;  %v767_v28 = vand.u32 65535, %v737_v54 }
  0x88   : > { %v507_v49 = vsel %vm386_vm5, %v506_v18, %v505_v8  ;;  %v5582_v58 = vadd.s32 4294967294, %v645_v23  ;;  %v753_v36 = vshll.u32 %v6431_v51, 16  ;;  %vm6450_vm15 = vcmp.le.f32.partialorder %v539_v17, 0.7853982 }
  0x89   : > { %v6443_v20 = vsel %vm6367_vm7, %v6197_v12, %v507_v49  ;;  %v751_v35 = vshll.u32 %v748_v29, 16  ;;  %v732_v2 = vsel %vm728_vm10, %v6384_v26, %v731_v37  ;;  %v750_v25 = vmul.u32 %v746_v16, %v744_v62 }
  0x8a   : > { %v512_v21 = vmul.f32 %v6443_v20, %v6443_v20  ;;  %vm5583_vm0 = vcmp.lt.s32.totalorder %v5582_v58, 0  ;;  %v6457_v47 = vmul.u32 %v768_v27, %v743_v55  ;;  %v6461_v61 = vmul.u32 %v767_v28, %v744_v62 }
  0x8b   : > { %v648_v41 = vsel %vm5583_vm0, 0, %v5582_v58  ;;  %vm755_vm1 = vc.u32 %v747_v24, %v751_v35  ;;  %v757_v45 = vadd.s32 %v751_v35, %v747_v24  ;;  %vm534_vm3 = vcmp.eq.s32.totalorder %v6428_v19, 2 }
  0x8c   : > { %v513_v52 = vmul.f32 -0.001358992, %v512_v21  ;;  %v520_v53 = vmul.f32 -0.00019511016, %v512_v21  ;;  %v649_v56 = vsub.s32 32, %v648_v41  ;;  %v650_v32 = vshll.u32 %v6403_v59, %v648_v41 }
  0x8d   : > { %v653_v17 = vsub.s32 4294967266, %v648_v41  ;;  %v756_v60 = vsel %vm755_vm1, 1, %v6039_v1  ;;  %vm759_vm2 = vc.u32 %v757_v45, %v753_v36  ;;  %v664_v50 = vsel %vm541_vm14, %v663_v30, %v6387_v34 }
  0x8e   : > { %v514_v63 = vadd.f32 0.041655596, %v513_v52  ;;  %v521_v6 = vadd.f32 0.008332121, %v520_v53  ;;  %v651_v26 = vshrl.u32 %v633_v10, %v649_v56  ;;  %v758_v22 = vadd.s32 %v756_v60, %v750_v25  ;;  %v317_v53 = vld [vmem:[#allocation7 + $0x20] sm:$0xff] }
  0x8f   : > { %v654_v33 = vadd.s32 127, %v653_v17  ;;  %v752_v7 = vshrl.u32 %v748_v29, 16  ;;  %v769_v54 = vmul.u32 %v767_v28, %v743_v55  ;;  %v760_v15 = vsel %vm759_vm2, 1, %v6039_v1 }
  0x90   : > { %v515_v59 = vmul.f32 %v514_v63, %v512_v21  ;;  %v522_v38 = vmul.f32 %v521_v6, %v512_v21  ;;  %v652_v8 = vor.u32 %v651_v26, %v650_v32  ;;  %vm531_vm4 = vcmp.eq.s32.totalorder %v6428_v19, 0 }
  0x91   : > { %v655_v11 = vshll.u32 %v654_v33, 23  ;;  %v762_v16 = vadd.s32 %v760_v15, %v758_v22  ;;  %v772_v10 = vmul.u32 %v768_v27, %v744_v62  ;;  %v773_v18 = vshll.u32 %v6457_v47, 16 }
  0x92   : > { %v516_v23 = vadd.f32 -0.4999988, %v515_v59  ;;  %v523_v37 = vadd.f32 -0.16666654, %v522_v38  ;;  %vm530_vm5 = vcmp.lt.s32.totalorder %v6428_v19, 2  ;;  %v6473_v34 = vsel %vm727_vm12, %v730_v31, %v732_v2 }
  0x93   : > { %v775_v55 = vshll.u32 %v6461_v61, 16  ;;  %v656_v24 = vor.u32 4788187, %v655_v11  ;;  %v659_v29 = vcvt.s32.f32 %v652_v8  ;;  %v666_v49 = vsel %vm6450_vm15, 0, %v664_v50 }
  0x94   : > { %vm777_vm6 = vc.u32 %v769_v54, %v773_v18  ;;  %v517_v58 = vmul.f32 %v516_v23, %v512_v21  ;;  %v524_v62 = vmul.f32 %v523_v37, %v512_v21  ;;  %v779_v30 = vadd.s32 %v773_v18, %v769_v54  ;;  %v318_v37 = vld [vmem:[#allocation7 + $0x28] sm:$0xff] }
  0x95   : > { %v778_v27 = vsel %vm777_vm6, 1, %v6039_v1  ;;  %v657_v35 = vand.u32 2147483647, %v656_v24  ;;  %v754_v36 = vshrl.u32 %v6431_v51, 16  ;;  %v763_v0 = vadd.s32 %v762_v16, %v752_v7  ;;  %v333_v16 = vld [vmem:[#allocation8 + $0x20] sm:$0xff] }
  0x96   : > { %v780_v31 = vadd.s32 %v778_v27, %v772_v10  ;;  %v518_v28 = vadd.f32 1.0, %v517_v58  ;;  %v525_v2 = vadd.f32 1.0, %v524_v62  ;;  %v774_v25 = vshrl.u32 %v6457_v47, 16 }
  0x97   : > { %vm781_vm7 = vc.u32 %v779_v30, %v775_v55  ;;  %v660_v41 = vmul.f32 %v659_v29, %v657_v35  ;;  %v683_v45 = vadd.s32 3, %v666_v49  ;;  %v852_v21 = vand.u32 2139095040, %v6423_v9 }
  0x98   : > { %v782_v52 = vsel %vm781_vm7, 1, %v6039_v1  ;;  %v526_v56 = vmul.f32 %v525_v2, %v6443_v20  ;;  %v535_v32 = vxor.u32 2147483648, %v518_v28  ;;  %v776_v51 = vshrl.u32 %v6461_v61, 16 }
  0x99   : > { %v784_v17 = vadd.s32 %v782_v52, %v780_v31  ;;  %v661_v60 = vxor.u32 2147483648, %v660_v41  ;;  %v6486_v63 = vadd.s32 %v763_v0, %v754_v36  ;;  %v6488_v6 = vadd.s32 %v779_v30, %v775_v55 }
  0x9a   : > { %v853_v47 = vshrl.u32 %v852_v21, 23  ;;  %v532_v26 = vxor.u32 2147483648, %v526_v56  ;;  %v536_v22 = vsel %vm534_vm3, %v535_v32, %v526_v56  ;;  %v849_v50 = vand.u32 2147483647, %v6423_v9 }
  0x9b   : > { %v785_v33 = vadd.s32 %v784_v17, %v774_v25  ;;  %v356_v20 = vmul.f32 %v6190_v4, %v317_v53  ;;  %vm527_vm8 = vweird.f32 %v6197_v12  ;;  %v662_v61 = vsel %vm541_vm14, %v661_v60, %v660_v41 }
  0x9c   : > { %v5587_v7 = vadd.s32 4294967169, %v853_v47  ;;  %v533_v54 = vsel %vm531_vm4, %v518_v28, %v532_v26  ;;  %v6502_v59 = vsel %vm6450_vm15, %v6199_v13, %v662_v61  ;;  %v787_v8 = vmul.u32 %v6413_v3, %v6473_v34 }
  0x9d   : > { %v786_v38 = vadd.s32 %v785_v33, %v776_v51  ;;  %v537_v15 = vsel %vm530_vm5, %v533_v54, %v536_v22  ;;  %v667_v12 = vmul.f32 %v6502_v59, %v6502_v59  ;;  %vm789_vm9 = vc.u32 %v6486_v63, %v6488_v6 }
  0x9e   : > { %v859_v11 = vadd.s32 1, %v5587_v7  ;;  %v538_v10 = vsel %vm527_vm8, nan, %v537_v15  ;;  %v6512_v18 = vand.u32 3, %v683_v45  ;;  %v856_v23 = vand.u32 8388607, %v849_v50 }
  0x9f   : > { %v790_v39 = vadd.s32 1, %v786_v38  ;;  %v668_v3 = vmul.f32 -0.001358992, %v667_v12  ;;  %v675_v34 = vmul.f32 -0.00019511016, %v667_v12  ;;  %2864 = vst [vmem:[%s6516_s25] sm:$0xff] %v538_v10  ;;  %v6519_v24 = vadd.f32 %v356_v20, %v333_v16 }
  0xa0   : > { %vm860_vm10 = vcmp.gt.s32.totalorder %v859_v11, 0  ;;  %v6522_v62 = vmul.f32 %v6192_v5, %v318_v37  ;;  %vm689_vm11 = vcmp.eq.s32.totalorder %v6512_v18, 2  ;;  %v857_v27 = vor.u32 8388608, %v856_v23 }
  0xa1   : > { %v791_v19 = vsel %vm789_vm9, %v790_v39, %v786_v38  ;;  %v861_v55 = vsel %vm860_vm10, %v859_v11, 0  ;;  %v669_v29 = vadd.f32 0.041655596, %v668_v3  ;;  %v676_v49 = vadd.f32 0.008332121, %v675_v34 }
  0xa2   : > { %v792_v58 = vadd.s32 %v791_v19, %v787_v8  ;;  %v863_v30 = vand.u32 31, %v861_v55  ;;  %v1004_v31 = vand.u32 2147483647, %v6519_v24  ;;  %vm686_vm12 = vcmp.eq.s32.totalorder %v6512_v18, 0 }
  0xa3   : > { %v670_v35 = vmul.f32 %v669_v29, %v667_v12  ;;  %v677_v36 = vmul.f32 %v676_v49, %v667_v12  ;;  %v6527_v28 = vshrl.u32 %v861_v55, 5  ;;  %vm685_vm13 = vcmp.lt.s32.totalorder %v6512_v18, 2 }
  0xa4   : > { %v793_v0 = vadd.s32 536870912, %v792_v58  ;;  %v6529_v2 = vsub.s32 32, %v863_v30  ;;  %v866_v25 = vshll.u32 %v6033_v40, %v863_v30  ;;  %v869_v41 = vshll.u32 %v6034_v42, %v863_v30 }
  0xa5   : > { %v671_v45 = vadd.f32 -0.4999988, %v670_v35  ;;  %v678_v52 = vadd.f32 -0.16666654, %v677_v36  ;;  %v872_v53 = vshll.u32 %v6035_v44, %v863_v30  ;;  %vm682_vm14 = vweird.f32 %v6199_v13 }
  0xa6   : > { %v794_v21 = vshrl.u32 %v793_v0, 30  ;;  %v867_v56 = vshrl.u32 %v6034_v42, %v6529_v2  ;;  %v870_v32 = vshrl.u32 %v6035_v44, %v6529_v2  ;;  %v873_v51 = vshrl.u32 %v6036_v46, %v6529_v2 }
  0xa7   : > { %v875_v17 = vshll.u32 %v6036_v46, %v863_v30  ;;  %v672_v60 = vmul.f32 %v671_v45, %v667_v12  ;;  %v679_v47 = vmul.f32 %v678_v52, %v667_v12  ;;  %v6543_v22 = vshll.u32 %v857_v27, 8 }
  0xa8   : > { %v795_v26 = vshll.u32 %v794_v21, 30  ;;  %v6545_v33 = vor.u32 %v867_v56, %v866_v25  ;;  %v876_v20 = vshrl.u32 %v6037_v48, %v6529_v2  ;;  %vm881_vm15 = vcmp.lt.s32.totalorder %v6527_v28, 1 }
  0xa9   : > { %v1007_v61 = vand.u32 2139095040, %v6519_v24  ;;  %v673_v7 = vadd.f32 1.0, %v672_v60  ;;  %v680_v54 = vadd.f32 1.0, %v679_v47  ;;  %vm696_vm0 = vcmp.lt.s32.totalorder %v6201_v14, 0 }
  0xaa   : > { %v796_v38 = vsub.s32 %v792_v58, %v795_v26  ;;  %v6552_v8 = vor.u32 %v870_v32, %v869_v41  ;;  %v874_v15 = vor.u32 %v873_v51, %v872_v53  ;;  %v877_v12 = vor.u32 %v876_v20, %v875_v17 }
  0xab   : > { %v878_v11 = vshll.u32 %v6037_v48, %v863_v30  ;;  %v879_v16 = vshrl.u32 %v6038_v57, %v6529_v2  ;;  %v681_v10 = vmul.f32 %v680_v54, %v6502_v59  ;;  %v690_v39 = vxor.u32 2147483648, %v673_v7 }
  0xac   : > { %vm797_vm1 = vcmp.lt.s32.totalorder %v796_v38, 0  ;;  %v798_v23 = vsub.s32 0, %v796_v38  ;;  %v818_v37 = vsub.s32 4, %v794_v21  ;;  %vm883_vm2 = vcmp.lt.s32.totalorder %v6527_v28, 3 }
  0xad   : > { %vm884_vm3 = vcmp.lt.s32.totalorder %v6527_v28, 4  ;;  %v1008_v3 = vshrl.u32 %v1007_v61, 23  ;;  %v687_v34 = vxor.u32 2147483648, %v681_v10  ;;  %v691_v19 = vsel %vm689_vm11, %v690_v39, %v681_v10 }
  0xae   : > { %v799_v55 = vsel %vm797_vm1, %v798_v23, %v796_v38  ;;  %v880_v29 = vor.u32 %v879_v16, %v878_v11  ;;  %vm882_vm4 = vcmp.lt.s32.totalorder %v6527_v28, 2  ;;  %v889_v59 = vsel %vm881_vm15, %v6545_v33, %v6552_v8 }
  0xaf   : > { %v800_v49 = vclz %v799_v55  ;;  %v890_v58 = vsel %vm884_vm3, %v877_v12, 920167782  ;;  %v688_v27 = vsel %vm686_vm12, %v673_v7, %v687_v34  ;;  %vm6573_vm5 = vcmp.le.f32.partialorder %v694_v43, 0.7853982 }
  0xb0   : > { %v788_v35 = vadd.s32 %v6488_v6, %v6486_v63  ;;  %v891_v36 = vsel %vm883_vm2, %v874_v15, %v890_v58  ;;  %v692_v0 = vsel %vm685_vm13, %v688_v27, %v691_v19  ;;  %v898_v41 = vand.u32 65535, %v6543_v22 }
  0xb1   : > { %v5585_v25 = vadd.s32 4294967294, %v800_v49  ;;  %v6586_v45 = vand.u32 8388607, %v1004_v31  ;;  %v693_v43 = vsel %vm682_vm14, nan, %v692_v0  ;;  %v892_v52 = vsel %vm882_vm4, %v889_v59, %v891_v36 }
  0xb2   : > { %v893_v63 = vsel %vm881_vm15, %v6552_v8, %v874_v15  ;;  %v5590_v6 = vadd.s32 4294967169, %v1008_v3  ;;  %v819_v18 = vsel %vm696_vm0, %v818_v37, %v794_v21  ;;  %v894_v53 = vsel %vm884_vm3, %v880_v29, 1326507024  ;;  %2865 = vst [vmem:[%s6516_s25 + $0x8] sm:$0xff] %v693_v43 }
  0xb3   : > { %vm5586_vm6 = vcmp.lt.s32.totalorder %v5585_v25, 0  ;;  %v899_v56 = vshrl.u32 %v6543_v22, 16  ;;  %v895_v32 = vsel %vm883_vm2, %v877_v12, %v894_v53  ;;  %v922_v51 = vand.u32 65535, %v892_v52 }
  0xb4   : > { %v803_v13 = vsel %vm5586_vm6, 0, %v5585_v25  ;;  %v923_v17 = vshrl.u32 %v892_v52, 16  ;;  %v896_v20 = vsel %vm882_vm4, %v893_v63, %v895_v32  ;;  %v821_v21 = vsel %vm6573_vm5, 0, %v819_v18 }
  0xb5   : > { %v804_v60 = vsub.s32 32, %v803_v13  ;;  %v805_v47 = vshll.u32 %v796_v38, %v803_v13  ;;  %v808_v26 = vsub.s32 4294967266, %v803_v13  ;;  %v865_v61 = vshrl.u32 %v6033_v40, %v6529_v2 }
  0xb6   : > { %v900_v7 = vand.u32 65535, %v896_v20  ;;  %v1014_v54 = vadd.s32 1, %v5590_v6  ;;  %v886_v12 = vsel %vm884_vm3, %v874_v15, 2102212464  ;;  %v901_v10 = vshrl.u32 %v896_v20, 16 }
  0xb7   : > { %v806_v11 = vshrl.u32 %v788_v35, %v804_v60  ;;  %v809_v16 = vadd.s32 127, %v808_v26  ;;  %v924_v38 = vmul.u32 %v922_v51, %v898_v41  ;;  %v925_v23 = vmul.u32 %v923_v17, %v898_v41 }
  0xb8   : > { %v904_v39 = vmul.u32 %v900_v7, %v899_v56  ;;  %v926_v37 = vmul.u32 %v922_v51, %v899_v56  ;;  %v902_v19 = vmul.u32 %v900_v7, %v898_v41  ;;  %v903_v55 = vmul.u32 %v901_v10, %v898_v41 }
  0xb9   : > { %v807_v3 = vor.u32 %v806_v11, %v805_v47  ;;  %v810_v34 = vshll.u32 %v809_v16, 23  ;;  %v885_v2 = vsel %vm881_vm15, %v865_v61, %v6545_v33  ;;  %v905_v29 = vmul.u32 %v901_v10, %v899_v56 }
  0xba   : > { %v927_v49 = vmul.u32 %v923_v17, %v899_v56  ;;  %v928_v59 = vshll.u32 %v925_v23, 16  ;;  %v906_v35 = vshll.u32 %v903_v55, 16  ;;  %v908_v15 = vshll.u32 %v904_v39, 16 }
  0xbb   : > { %v811_v58 = vor.u32 4788187, %v810_v34  ;;  %v814_v27 = vcvt.s32.f32 %v807_v3  ;;  %v838_v36 = vadd.s32 3, %v821_v21  ;;  %v887_v0 = vsel %vm883_vm2, %v6552_v8, %v886_v12 }
  0xbc   : > { %v930_v25 = vshll.u32 %v926_v37, 16  ;;  %vm932_vm7 = vc.u32 %v924_v38, %v928_v59  ;;  %vm910_vm8 = vc.u32 %v902_v19, %v906_v35  ;;  %v912_v41 = vadd.s32 %v906_v35, %v902_v19 }
  0xbd   : > { %v812_v43 = vand.u32 2147483647, %v811_v58  ;;  %v933_v52 = vsel %vm932_vm7, 1, %v6039_v1  ;;  %v907_v33 = vshrl.u32 %v903_v55, 16  ;;  %v911_v63 = vsel %vm910_vm8, 1, %v6039_v1 }
  0xbe   : > { %v934_v6 = vadd.s32 %v928_v59, %v924_v38  ;;  %v935_v18 = vadd.s32 %v933_v52, %v927_v49  ;;  %v913_v56 = vadd.s32 %v911_v63, %v905_v29  ;;  %vm914_vm9 = vc.u32 %v912_v41, %v908_v15 }
  0xbf   : > { %v815_v53 = vmul.f32 %v814_v27, %v812_v43  ;;  %vm1015_vm10 = vcmp.gt.s32.totalorder %v1014_v54, 0  ;;  %v915_v13 = vsel %vm914_vm9, 1, %v6039_v1  ;;  %v929_v32 = vshrl.u32 %v925_v23, 16 }
  0xc0   : > { %vm936_vm11 = vc.u32 %v934_v6, %v930_v25  ;;  %v1016_v8 = vsel %vm1015_vm10, %v1014_v54, 0  ;;  %v909_v17 = vshrl.u32 %v904_v39, 16  ;;  %v917_v60 = vadd.s32 %v915_v13, %v913_v56 }
  0xc1   : > { %v816_v51 = vxor.u32 2147483648, %v815_v53  ;;  %v937_v47 = vsel %vm936_vm11, 1, %v6039_v1  ;;  %v888_v26 = vsel %vm882_vm4, %v885_v2, %v887_v0  ;;  %v931_v20 = vshrl.u32 %v926_v37, 16 }
  0xc2   : > { %v939_v21 = vadd.s32 %v937_v47, %v935_v18  ;;  %v1018_v61 = vand.u32 31, %v1016_v8  ;;  %v918_v11 = vadd.s32 %v917_v60, %v907_v33  ;;  %v6625_v16 = vadd.s32 %v934_v6, %v930_v25  ;;  %v334_v6 = vld [vmem:[#allocation8 + $0x28] sm:$0xff] }
  0xc3   : > { %v817_v7 = vsel %vm696_vm0, %v816_v51, %v815_v53  ;;  %v1012_v12 = vor.u32 8388608, %v6586_v45  ;;  %v6631_v39 = vshrl.u32 %v1016_v8, 5  ;;  %v6633_v23 = vand.u32 3, %v838_v36 }
  0xc4   : > { %v820_v54 = vsel %vm6573_vm5, %v6201_v14, %v817_v7  ;;  %v940_v10 = vadd.s32 %v939_v21, %v929_v32  ;;  %v1019_v28 = vsub.s32 32, %v1018_v61  ;;  %v6635_v37 = vadd.s32 %v918_v11, %v909_v17 }
  0xc5   : > { %v822_v38 = vmul.f32 %v820_v54, %v820_v54  ;;  %v942_v3 = vmul.u32 %v6543_v22, %v888_v26  ;;  %v1021_v19 = vshll.u32 %v6033_v40, %v1018_v61  ;;  %v1024_v55 = vshll.u32 %v6034_v42, %v1018_v61 }
  0xc6   : > { %v941_v34 = vadd.s32 %v940_v10, %v931_v20  ;;  %v1022_v45 = vshrl.u32 %v6034_v42, %v1019_v28  ;;  %vm944_vm12 = vc.u32 %v6635_v37, %v6625_v16  ;;  %v1025_v29 = vshrl.u32 %v6035_v44, %v1019_v28 }
  0xc7   : > { %v823_v30 = vmul.f32 -0.001358992, %v822_v38  ;;  %v830_v2 = vmul.f32 -0.00019511016, %v822_v38  ;;  %v1027_v59 = vshll.u32 %v6035_v44, %v1018_v61  ;;  %v1028_v58 = vshrl.u32 %v6036_v46, %v1019_v28 }
  0xc8   : > { %v945_v49 = vadd.s32 1, %v941_v34  ;;  %vm1036_vm13 = vcmp.lt.s32.totalorder %v6631_v39, 1  ;;  %v1030_v35 = vshll.u32 %v6036_v46, %v1018_v61  ;;  %v1031_v15 = vshrl.u32 %v6037_v48, %v1019_v28 }
  0xc9   : > { %v824_v22 = vadd.f32 0.041655596, %v823_v30  ;;  %v831_v27 = vadd.f32 0.008332121, %v830_v2  ;;  %v1023_v0 = vor.u32 %v1022_v45, %v1021_v19  ;;  %v1033_v25 = vshll.u32 %v6037_v48, %v1018_v61 }
  0xca   : > { %v946_v36 = vsel %vm944_vm12, %v945_v49, %v941_v34  ;;  %v1034_v43 = vshrl.u32 %v6038_v57, %v1019_v28  ;;  %v6651_v63 = vor.u32 %v1025_v29, %v1024_v55  ;;  %v1029_v18 = vor.u32 %v1028_v58, %v1027_v59 }
  0xcb   : > { %v825_v41 = vmul.f32 %v824_v22, %v822_v38  ;;  %v832_v52 = vmul.f32 %v831_v27, %v822_v38  ;;  %v947_v33 = vadd.s32 %v946_v36, %v942_v3  ;;  %v1032_v53 = vor.u32 %v1031_v15, %v1030_v35 }
  0xcc   : > { %v1035_v56 = vor.u32 %v1034_v43, %v1033_v25  ;;  %vm1038_vm14 = vcmp.lt.s32.totalorder %v6631_v39, 3  ;;  %vm1039_vm15 = vcmp.lt.s32.totalorder %v6631_v39, 4  ;;  %vm1037_vm0 = vcmp.lt.s32.totalorder %v6631_v39, 2 }
  0xcd   : > { %v826_v13 = vadd.f32 -0.4999988, %v825_v41  ;;  %v833_v32 = vadd.f32 -0.16666654, %v832_v52  ;;  %v948_v8 = vadd.s32 536870912, %v947_v33  ;;  %v6658_v17 = vshll.u32 %v1012_v12, 8 }
  0xce   : > { %v1045_v51 = vsel %vm1039_vm15, %v1032_v53, 920167782  ;;  %v1044_v20 = vsel %vm1036_vm13, %v1023_v0, %v6651_v63  ;;  %v6666_v21 = vadd.f32 %v6522_v62, %v334_v6  ;;  %vm840_vm1 = vcmp.lt.s32.totalorder %v6633_v23, 2 }
  0xcf   : > { %v827_v60 = vmul.f32 %v826_v13, %v822_v38  ;;  %v834_v47 = vmul.f32 %v833_v32, %v822_v38  ;;  %v6660_v26 = vshrl.u32 %v948_v8, 30  ;;  %v1046_v61 = vsel %vm1038_vm14, %v1029_v18, %v1045_v51 }
  0xd0   : > { %v1049_v7 = vsel %vm1039_vm15, %v1035_v56, 1326507024  ;;  %v1048_v38 = vsel %vm1036_vm13, %v6651_v63, %v1029_v18  ;;  %vm841_vm2 = vcmp.eq.s32.totalorder %v6633_v23, 0  ;;  %vm844_vm3 = vcmp.eq.s32.totalorder %v6633_v23, 2 }
  0xd1   : > { %v828_v11 = vadd.f32 1.0, %v827_v60  ;;  %v835_v12 = vadd.f32 1.0, %v834_v47  ;;  %v950_v10 = vshll.u32 %v6660_v26, 30  ;;  %v1047_v62 = vsel %vm1037_vm0, %v1044_v20, %v1046_v61 }
  0xd2   : > { %v1050_v3 = vsel %vm1038_vm14, %v1032_v53, %v1049_v7  ;;  %v1053_v55 = vand.u32 65535, %v6658_v17  ;;  %v1020_v30 = vshrl.u32 %v6033_v40, %v1019_v28  ;;  %v1054_v29 = vshrl.u32 %v6658_v17, 16 }
  0xd3   : > { %v836_v34 = vmul.f32 %v835_v12, %v820_v54  ;;  %v845_v19 = vxor.u32 2147483648, %v828_v11  ;;  %v951_v45 = vsub.s32 %v947_v33, %v950_v10  ;;  %v1051_v2 = vsel %vm1037_vm0, %v1048_v38, %v1050_v3 }
  0xd4   : > { %v1078_v49 = vshrl.u32 %v1047_v62, 16  ;;  %vm837_vm5 = vweird.f32 %v6201_v14  ;;  %vm851_vm6 = vcmp.lt.s32.totalorder %v6423_v9, 0  ;;  %v1055_v54 = vand.u32 65535, %v1051_v2 }
  0xd5   : > { %v842_v59 = vxor.u32 2147483648, %v836_v34  ;;  %v846_v58 = vsel %vm844_vm3, %v845_v19, %v836_v34  ;;  %vm952_vm4 = vcmp.lt.s32.totalorder %v951_v45, 0  ;;  %v953_v22 = vsub.s32 0, %v951_v45 }
  0xd6   : > { %v1056_v27 = vshrl.u32 %v1051_v2, 16  ;;  %v1077_v15 = vand.u32 65535, %v1047_v62  ;;  %v6692_v36 = vmul.u32 %v1078_v49, %v1053_v55  ;;  %v1057_v41 = vmul.u32 %v1055_v54, %v1053_v55 }
  0xd7   : > { %v843_v35 = vsel %vm841_vm2, %v828_v11, %v842_v59  ;;  %v954_v28 = vsel %vm952_vm4, %v953_v22, %v951_v45  ;;  %v943_v14 = vadd.s32 %v6625_v16, %v6635_v37  ;;  %v1040_v6 = vsel %vm1036_vm13, %v1020_v30, %v1023_v0 }
  0xd8   : > { %v847_v25 = vsel %vm840_vm1, %v843_v35, %v846_v58  ;;  %v955_v43 = vclz %v954_v28  ;;  %v1058_v52 = vmul.u32 %v1056_v27, %v1053_v55  ;;  %v1059_v53 = vmul.u32 %v1055_v54, %v1054_v29 }
  0xd9   : > { %v848_v33 = vsel %vm837_vm5, nan, %v847_v25  ;;  %v1041_v13 = vsel %vm1039_vm15, %v1029_v18, 2102212464  ;;  %v1060_v32 = vmul.u32 %v1056_v27, %v1054_v29  ;;  %v973_v23 = vsub.s32 4, %v6660_v26  ;;  %v319_v27 = vld [vmem:[#allocation7 + $0x30] sm:$0xff] }
  0xda   : > { %v5588_v56 = vadd.s32 4294967294, %v955_v43  ;;  %v1061_v8 = vshll.u32 %v1058_v52, 16  ;;  %2866 = vst [vmem:[%s6516_s25 + $0x10] sm:$0xff] %v848_v33  ;;  %v1063_v51 = vshll.u32 %v1059_v53, 16  ;;  %v1079_v60 = vmul.u32 %v1077_v15, %v1053_v55 }
  0xdb   : > { %v1081_v47 = vmul.u32 %v1077_v15, %v1054_v29  ;;  %vm6706_vm7 = vcmp.le.f32.partialorder %v849_v50, 0.7853982  ;;  %v1083_v0 = vshll.u32 %v6692_v36, 16  ;;  %v1042_v20 = vsel %vm1038_vm14, %v6651_v63, %v1041_v13 }
  0xdc   : > { %vm5589_vm8 = vcmp.lt.s32.totalorder %v5588_v56, 0  ;;  %vm1065_vm9 = vc.u32 %v1057_v41, %v1061_v8  ;;  %v1067_v37 = vadd.s32 %v1061_v8, %v1057_v41  ;;  %v1082_v7 = vmul.u32 %v1078_v49, %v1054_v29  ;;  %v335_v8 = vld [vmem:[#allocation8 + $0x30] sm:$0xff] }
  0xdd   : > { %v958_v18 = vsel %vm5589_vm8, 0, %v5588_v56  ;;  %v1066_v61 = vsel %vm1065_vm9, 1, %v6039_v1  ;;  %v974_v38 = vsel %vm851_vm6, %v973_v23, %v6660_v26  ;;  %v1062_v62 = vshrl.u32 %v1058_v52, 16 }
  0xde   : > { %v959_v11 = vsub.s32 32, %v958_v18  ;;  %v960_v12 = vshll.u32 %v951_v45, %v958_v18  ;;  %v963_v10 = vsub.s32 4294967266, %v958_v18  ;;  %v1068_v50 = vadd.s32 %v1066_v61, %v1060_v32 }
  0xdf   : > { %vm1069_vm10 = vc.u32 %v1067_v37, %v1063_v51  ;;  %v1085_v3 = vshll.u32 %v1081_v47, 16  ;;  %vm1087_vm11 = vc.u32 %v1079_v60, %v1083_v0  ;;  %v1064_v63 = vshrl.u32 %v1059_v53, 16 }
  0xe0   : > { %v961_v34 = vshrl.u32 %v943_v14, %v959_v11  ;;  %v964_v19 = vadd.s32 127, %v963_v10  ;;  %v1070_v55 = vsel %vm1069_vm10, 1, %v6039_v1  ;;  %v1088_v2 = vsel %vm1087_vm11, 1, %v6039_v1 }
  0xe1   : > { %v1072_v30 = vadd.s32 %v1070_v55, %v1068_v50  ;;  %v1089_v29 = vadd.s32 %v1083_v0, %v1079_v60  ;;  %v1090_v59 = vadd.s32 %v1088_v2, %v1082_v7  ;;  %v1162_v58 = vand.u32 2139095040, %v6666_v21 }
  0xe2   : > { %v962_v45 = vor.u32 %v961_v34, %v960_v12  ;;  %v965_v49 = vshll.u32 %v964_v19, 23  ;;  %v1084_v26 = vshrl.u32 %v6692_v36, 16  ;;  %v1159_v54 = vand.u32 2147483647, %v6666_v21 }
  0xe3   : > { %v1073_v22 = vadd.s32 %v1072_v30, %v1062_v62  ;;  %vm1091_vm12 = vc.u32 %v1089_v29, %v1085_v3  ;;  %v1163_v25 = vshrl.u32 %v1162_v58, 23  ;;  %v976_v43 = vsel %vm6706_vm7, 0, %v974_v38 }
  0xe4   : > { %v966_v35 = vor.u32 4788187, %v965_v49  ;;  %v969_v28 = vcvt.s32.f32 %v962_v45  ;;  %v1092_v15 = vsel %vm1091_vm12, 1, %v6039_v1  ;;  %v1043_v41 = vsel %vm1037_vm0, %v1040_v6, %v1042_v20 }
  0xe5   : > { %v1086_v52 = vshrl.u32 %v1081_v47, 16  ;;  %v1094_v33 = vadd.s32 %v1092_v15, %v1090_v59  ;;  %v1074_v53 = vadd.s32 %v1073_v22, %v1064_v63  ;;  %v1093_v36 = vadd.s32 %v1089_v29, %v1085_v3 }
  0xe6   : > { %v967_v14 = vand.u32 2147483647, %v966_v35  ;;  %v5593_v56 = vadd.s32 4294967169, %v1163_v25  ;;  %v358_v13 = vmul.f32 %v6190_v4, %v319_v27  ;;  %v993_v60 = vadd.s32 3, %v976_v43 }
  0xe7   : > { %v1095_v32 = vadd.s32 %v1094_v33, %v1084_v26  ;;  %v1097_v0 = vmul.u32 %v6658_v17, %v1043_v41  ;;  %vm1099_vm13 = vc.u32 %v1074_v53, %v1093_v36  ;;  %v1166_v39 = vand.u32 8388607, %v1159_v54 }
  0xe8   : > { %v970_v23 = vmul.f32 %v969_v28, %v967_v14  ;;  %v1169_v51 = vadd.s32 1, %v5593_v56  ;;  %v6732_v6 = vadd.f32 %v358_v13, %v335_v8  ;;  %v6741_v17 = vand.u32 3, %v993_v60 }
  0xe9   : > { %v1096_v37 = vadd.s32 %v1095_v32, %v1086_v52  ;;  %v1167_v38 = vor.u32 8388608, %v1166_v39  ;;  %v6762_v35 = vadd.s32 %v1093_v36, %v1074_v53  ;;  %vm1006_vm2 = vcmp.lt.s32.totalorder %v6519_v24, 0 }
  0xea   : > { %v971_v18 = vxor.u32 2147483648, %v970_v23  ;;  %vm1170_vm14 = vcmp.gt.s32.totalorder %v1169_v51, 0  ;;  %v1314_v19 = vand.u32 2147483647, %v6732_v6  ;;  %v1317_v16 = vand.u32 2139095040, %v6732_v6 }
  0xeb   : > { %v1100_v47 = vadd.s32 1, %v1096_v37  ;;  %v1171_v20 = vsel %vm1170_vm14, %v1169_v51, 0  ;;  %vm999_vm15 = vcmp.eq.s32.totalorder %v6741_v17, 2  ;;  %v6767_v25 = vshll.u32 %v1167_v38, 8 }
  0xec   : > { %v972_v61 = vsel %vm851_vm6, %v971_v18, %v970_v23  ;;  %v1173_v7 = vand.u32 31, %v1171_v20  ;;  %v6764_v28 = vshrl.u32 %v1171_v20, 5  ;;  %v1318_v33 = vshrl.u32 %v1317_v16, 23 }
  0xed   : > { %v6739_v11 = vsel %vm6706_vm7, %v6423_v9, %v972_v61  ;;  %v1101_v12 = vsel %vm1099_vm13, %v1100_v47, %v1096_v37  ;;  %vm996_vm0 = vcmp.eq.s32.totalorder %v6741_v17, 0  ;;  %vm995_vm1 = vcmp.lt.s32.totalorder %v6741_v17, 2 }
  0xee   : > { %v977_v10 = vmul.f32 %v6739_v11, %v6739_v11  ;;  %v1102_v50 = vadd.s32 %v1101_v12, %v1097_v0  ;;  %v6745_v62 = vsub.s32 32, %v1173_v7  ;;  %v1176_v3 = vshll.u32 %v6033_v40, %v1173_v7 }
  0xef   : > { %v1179_v34 = vshll.u32 %v6034_v42, %v1173_v7  ;;  %v1182_v2 = vshll.u32 %v6035_v44, %v1173_v7  ;;  %v1185_v59 = vshll.u32 %v6036_v46, %v1173_v7  ;;  %v1188_v15 = vshll.u32 %v6037_v48, %v1173_v7 }
  0xf0   : > { %v978_v55 = vmul.f32 -0.001358992, %v977_v10  ;;  %v985_v63 = vmul.f32 -0.00019511016, %v977_v10  ;;  %v1103_v30 = vadd.s32 536870912, %v1102_v50  ;;  %v1177_v29 = vshrl.u32 %v6034_v42, %v6745_v62 }
  0xf1   : > { %v1180_v45 = vshrl.u32 %v6035_v44, %v6745_v62  ;;  %v1183_v49 = vshrl.u32 %v6036_v46, %v6745_v62  ;;  %v1186_v27 = vshrl.u32 %v6037_v48, %v6745_v62  ;;  %v1189_v53 = vshrl.u32 %v6038_v57, %v6745_v62 }
  0xf2   : > { %v979_v58 = vadd.f32 0.041655596, %v978_v55  ;;  %v986_v22 = vadd.f32 0.008332121, %v985_v63  ;;  %v1104_v26 = vshrl.u32 %v1103_v30, 30  ;;  %v6770_v14 = vor.u32 %v1177_v29, %v1176_v3 }
  0xf3   : > { %v6772_v56 = vor.u32 %v1180_v45, %v1179_v34  ;;  %v1187_v13 = vor.u32 %v1186_v27, %v1185_v59  ;;  %v1184_v23 = vor.u32 %v1183_v49, %v1182_v2  ;;  %vm992_vm3 = vweird.f32 %v6423_v9 }
  0xf4   : > { %v980_v43 = vmul.f32 %v979_v58, %v977_v10  ;;  %v987_v41 = vmul.f32 %v986_v22, %v977_v10  ;;  %v1105_v52 = vshll.u32 %v1104_v26, 30  ;;  %v1190_v51 = vor.u32 %v1189_v53, %v1188_v15 }
  0xf5   : > { %vm1191_vm4 = vcmp.lt.s32.totalorder %v6764_v28, 1  ;;  %vm1193_vm5 = vcmp.lt.s32.totalorder %v6764_v28, 3  ;;  %vm1194_vm6 = vcmp.lt.s32.totalorder %v6764_v28, 4  ;;  %vm6784_vm8 = vcmp.le.f32.partialorder %v1004_v31, 0.7853982 }
  0xf6   : > { %v981_v36 = vadd.f32 -0.4999988, %v980_v43  ;;  %v988_v32 = vadd.f32 -0.16666654, %v987_v41  ;;  %v1106_v8 = vsub.s32 %v1102_v50, %v1105_v52  ;;  %vm1192_vm9 = vcmp.lt.s32.totalorder %v6764_v28, 2 }
  0xf7   : > { %v1200_v39 = vsel %vm1194_vm6, %v1187_v13, 920167782  ;;  %v5596_v47 = vadd.s32 4294967169, %v1318_v33  ;;  %v6793_v20 = vand.u32 8388607, %v1314_v19  ;;  %v1199_v31 = vsel %vm1191_vm4, %v6770_v14, %v6772_v56 }
  0xf8   : > { %v982_v60 = vmul.f32 %v981_v36, %v977_v10  ;;  %v989_v37 = vmul.f32 %v988_v32, %v977_v10  ;;  %vm1107_vm7 = vcmp.lt.s32.totalorder %v1106_v8, 0  ;;  %v1108_v0 = vsub.s32 0, %v1106_v8 }
  0xf9   : > { %v1128_v50 = vsub.s32 4, %v1104_v26  ;;  %v1201_v38 = vsel %vm1193_vm5, %v1184_v23, %v1200_v39  ;;  %v1203_v3 = vsel %vm1191_vm4, %v6772_v56, %v1184_v23  ;;  %v1204_v55 = vsel %vm1194_vm6, %v1190_v51, 1326507024 }
  0xfa   : > { %v983_v61 = vadd.f32 1.0, %v982_v60  ;;  %v990_v7 = vadd.f32 1.0, %v989_v37  ;;  %v1109_v12 = vsel %vm1107_vm7, %v1108_v0, %v1106_v8  ;;  %v1208_v63 = vand.u32 65535, %v6767_v25 }
  0xfb   : > { %v1110_v10 = vclz %v1109_v12  ;;  %v1202_v2 = vsel %vm1192_vm9, %v1199_v31, %v1201_v38  ;;  %v1205_v29 = vsel %vm1193_vm5, %v1187_v13, %v1204_v55  ;;  %v1209_v45 = vshrl.u32 %v6767_v25, 16 }
  0xfc   : > { %v991_v34 = vmul.f32 %v990_v7, %v6739_v11  ;;  %v1000_v16 = vxor.u32 2147483648, %v983_v61  ;;  %v1206_v11 = vsel %vm1192_vm9, %v1203_v3, %v1205_v29  ;;  %v1324_v58 = vadd.s32 1, %v5596_v47 }
  0xfd   : > { %v5591_v30 = vadd.s32 4294967294, %v1110_v10  ;;  %v1129_v22 = vsel %vm1006_vm2, %v1128_v50, %v1104_v26  ;;  %v1210_v27 = vand.u32 65535, %v1206_v11  ;;  %v1211_v15 = vshrl.u32 %v1206_v11, 16 }
  0xfe   : > { %v997_v49 = vxor.u32 2147483648, %v991_v34  ;;  %v1001_v59 = vsel %vm999_vm15, %v1000_v16, %v991_v34  ;;  %v1232_v52 = vand.u32 65535, %v1202_v2  ;;  %v1233_v33 = vshrl.u32 %v1202_v2, 16 }
  0xff   : > { %vm5592_vm10 = vcmp.lt.s32.totalorder %v5591_v30, 0  ;;  %v1131_v26 = vsel %vm6784_vm8, 0, %v1129_v22  ;;  %v1175_v60 = vshrl.u32 %v6033_v40, %v6745_v62  ;;  %v1196_v37 = vsel %vm1194_vm6, %v1184_v23, 2102212464 }
 0x100   : > { %v998_v43 = vsel %vm996_vm0, %v983_v61, %v997_v49  ;;  %v1113_v41 = vsel %vm5592_vm10, 0, %v5591_v30  ;;  %v1212_v17 = vmul.u32 %v1210_v27, %v1208_v63  ;;  %v1213_v47 = vmul.u32 %v1211_v15, %v1208_v63 }
 0x101   : > { %v1002_v13 = vsel %vm995_vm1, %v998_v43, %v1001_v59  ;;  %v1114_v53 = vsub.s32 32, %v1113_v41  ;;  %v1115_v36 = vshll.u32 %v1106_v8, %v1113_v41  ;;  %v1118_v32 = vsub.s32 4294967266, %v1113_v41  ;;  %v320_v43 = vld [vmem:[#allocation7 + $0x38] sm:$0xff] }
 0x102   : > { %v1003_v51 = vsel %vm992_vm3, nan, %v1002_v13  ;;  %v1214_v8 = vmul.u32 %v1210_v27, %v1209_v45  ;;  %v1234_v61 = vmul.u32 %v1232_v52, %v1208_v63  ;;  %v1235_v7 = vmul.u32 %v1233_v33, %v1208_v63 }
 0x103   : > { %v1116_v0 = vshrl.u32 %v6762_v35, %v1114_v53  ;;  %v1119_v39 = vadd.s32 127, %v1118_v32  ;;  %2867 = vst [vmem:[%s6516_s25 + $0x18] sm:$0xff] %v1003_v51  ;;  %v1236_v9 = vmul.u32 %v1232_v52, %v1209_v45  ;;  %v1215_v10 = vmul.u32 %v1211_v15, %v1209_v45 }
 0x104   : > { %v1216_v50 = vshll.u32 %v1213_v47, 16  ;;  %v1195_v62 = vsel %vm1191_vm4, %v1175_v60, %v6770_v14  ;;  %v1218_v38 = vshll.u32 %v1214_v8, 16  ;;  %v1237_v23 = vmul.u32 %v1233_v33, %v1209_v45 }
 0x105   : > { %v1117_v12 = vor.u32 %v1116_v0, %v1115_v36  ;;  %v1120_v31 = vshll.u32 %v1119_v39, 23  ;;  %v1238_v3 = vshll.u32 %v1235_v7, 16  ;;  %v1197_v55 = vsel %vm1193_vm5, %v6772_v56, %v1196_v37 }
 0x106   : > { %vm1220_vm11 = vc.u32 %v1212_v17, %v1216_v50  ;;  %v1222_v16 = vadd.s32 %v1216_v50, %v1212_v17  ;;  %v1217_v63 = vshrl.u32 %v1213_v47, 16  ;;  %v1240_v2 = vshll.u32 %v1236_v9, 16 }
 0x107   : > { %v1121_v35 = vor.u32 4788187, %v1120_v31  ;;  %v1124_v34 = vcvt.s32.f32 %v1117_v12  ;;  %v1221_v30 = vsel %vm1220_vm11, 1, %v6039_v1  ;;  %vm1242_vm13 = vc.u32 %v1234_v61, %v1238_v3 }
 0x108   : > { %v1223_v49 = vadd.s32 %v1221_v30, %v1215_v10  ;;  %vm1224_vm12 = vc.u32 %v1222_v16, %v1218_v38  ;;  %v1219_v14 = vshrl.u32 %v1214_v8, 16  ;;  %v1243_v59 = vsel %vm1242_vm13, 1, %v6039_v1 }
 0x109   : > { %v1122_v29 = vand.u32 2147483647, %v1121_v35  ;;  %v1225_v45 = vsel %vm1224_vm12, 1, %v6039_v1  ;;  %v1244_v11 = vadd.s32 %v1238_v3, %v1234_v61  ;;  %v1245_v15 = vadd.s32 %v1243_v59, %v1237_v23  ;;  %v336_v59 = vld [vmem:[#allocation8 + $0x38] sm:$0xff] }
 0x10a   : > { %v1227_v27 = vadd.s32 %v1225_v45, %v1223_v49  ;;  %vm1325_vm14 = vcmp.gt.s32.totalorder %v1324_v58, 0  ;;  %v1198_v56 = vsel %vm1192_vm9, %v1195_v62, %v1197_v55  ;;  %v1239_v41 = vshrl.u32 %v1235_v7, 16 }
 0x10b   : > { %v1125_v22 = vmul.f32 %v1124_v34, %v1122_v29  ;;  %vm1246_vm15 = vc.u32 %v1244_v11, %v1240_v2  ;;  %v1326_v52 = vsel %vm1325_vm14, %v1324_v58, 0  ;;  %v1148_v13 = vadd.s32 3, %v1131_v26 }
 0x10c   : > { %v1228_v53 = vadd.s32 %v1227_v27, %v1217_v63  ;;  %v1247_v36 = vsel %vm1246_vm15, 1, %v6039_v1  ;;  %v1241_v32 = vshrl.u32 %v1236_v9, 16  ;;  %v6845_v51 = vadd.s32 %v1244_v11, %v1240_v2 }
 0x10d   : > { %v1126_v33 = vxor.u32 2147483648, %v1125_v22  ;;  %v1249_v60 = vadd.s32 %v1247_v36, %v1245_v15  ;;  %v1328_v37 = vand.u32 31, %v1326_v52  ;;  %v359_v0 = vmul.f32 %v6192_v5, %v320_v43 }
 0x10e   : > { %v6850_v28 = vadd.s32 %v1228_v53, %v1219_v14  ;;  %v1322_v17 = vor.u32 8388608, %v6793_v20  ;;  %v6856_v61 = vand.u32 3, %v1148_v13  ;;  %v1252_v7 = vmul.u32 %v6767_v25, %v1198_v56 }
 0x10f   : > { %v1127_v39 = vsel %vm1006_vm2, %v1126_v33, %v1125_v22  ;;  %v1250_v26 = vadd.s32 %v1249_v60, %v1239_v41  ;;  %v1329_v47 = vsub.s32 32, %v1328_v37  ;;  %v6859_v9 = vshrl.u32 %v1326_v52, 5 }
 0x110   : > { %v1130_v58 = vsel %vm6784_vm8, %v6519_v24, %v1127_v39  ;;  %vm1254_vm0 = vc.u32 %v6850_v28, %v6845_v51  ;;  %v1331_v31 = vshll.u32 %v6033_v40, %v1328_v37  ;;  %v1334_v20 = vshll.u32 %v6034_v42, %v1328_v37 }
 0x111   : > { %v1132_v8 = vmul.f32 %v1130_v58, %v1130_v58  ;;  %v1251_v12 = vadd.s32 %v1250_v26, %v1241_v32  ;;  %v1332_v18 = vshrl.u32 %v6034_v42, %v1329_v47  ;;  %v1335_v62 = vshrl.u32 %v6035_v44, %v1329_v47 }
 0x112   : > { %v1337_v23 = vshll.u32 %v6035_v44, %v1328_v37  ;;  %v1338_v25 = vshrl.u32 %v6036_v46, %v1329_v47  ;;  %v1340_v3 = vshll.u32 %v6036_v46, %v1328_v37  ;;  %v1341_v16 = vshrl.u32 %v6037_v48, %v1329_v47 }
 0x113   : > { %v1133_v10 = vmul.f32 -0.001358992, %v1132_v8  ;;  %v1140_v50 = vmul.f32 -0.00019511016, %v1132_v8  ;;  %v1255_v38 = vadd.s32 1, %v1251_v12  ;;  %vm1346_vm1 = vcmp.lt.s32.totalorder %v6859_v9, 1 }
 0x114   : > { %v6872_v63 = vor.u32 %v1332_v18, %v1331_v31  ;;  %v1343_v30 = vshll.u32 %v6037_v48, %v1328_v37  ;;  %v1344_v2 = vshrl.u32 %v6038_v57, %v1329_v47  ;;  %v1336_v45 = vor.u32 %v1335_v62, %v1334_v20 }
 0x115   : > { %v1134_v35 = vadd.f32 0.041655596, %v1133_v10  ;;  %v1141_v34 = vadd.f32 0.008332121, %v1140_v50  ;;  %v1256_v55 = vsel %vm1254_vm0, %v1255_v38, %v1251_v12  ;;  %v1339_v11 = vor.u32 %v1338_v25, %v1337_v23 }
 0x116   : > { %v1257_v14 = vadd.s32 %v1256_v55, %v1252_v7  ;;  %v1342_v22 = vor.u32 %v1341_v16, %v1340_v3  ;;  %v1345_v27 = vor.u32 %v1344_v2, %v1343_v30  ;;  %vm1349_vm2 = vcmp.lt.s32.totalorder %v6859_v9, 4 }
 0x117   : > { %v1135_v29 = vmul.f32 %v1134_v35, %v1132_v8  ;;  %v1142_v49 = vmul.f32 %v1141_v34, %v1132_v8  ;;  %vm1348_vm3 = vcmp.lt.s32.totalorder %v6859_v9, 3  ;;  %vm1347_vm4 = vcmp.lt.s32.totalorder %v6859_v9, 2 }
 0x118   : > { %v1258_v56 = vadd.s32 536870912, %v1257_v14  ;;  %v1355_v41 = vsel %vm1349_vm2, %v1342_v22, 920167782  ;;  %v6881_v52 = vshll.u32 %v1322_v17, 8  ;;  %v1354_v36 = vsel %vm1346_vm1, %v6872_v63, %v1336_v45 }
 0x119   : > { %v1136_v15 = vadd.f32 -0.4999988, %v1135_v29  ;;  %v1143_v43 = vadd.f32 -0.16666654, %v1142_v49  ;;  %v6888_v32 = vadd.f32 %v359_v0, %v336_v59  ;;  %vm1150_vm5 = vcmp.lt.s32.totalorder %v6856_v61, 2 }
 0x11a   : > { %v6883_v53 = vshrl.u32 %v1258_v56, 30  ;;  %v1356_v60 = vsel %vm1348_vm3, %v1339_v11, %v1355_v41  ;;  %v1359_v37 = vsel %vm1349_vm2, %v1345_v27, 1326507024  ;;  %vm1151_vm6 = vcmp.eq.s32.totalorder %v6856_v61, 0 }
 0x11b   : > { %v1137_v33 = vmul.f32 %v1136_v15, %v1132_v8  ;;  %v1144_v13 = vmul.f32 %v1143_v43, %v1132_v8  ;;  %v1358_v8 = vsel %vm1346_vm1, %v1336_v45, %v1339_v11  ;;  %vm1154_vm7 = vcmp.eq.s32.totalorder %v6856_v61, 2 }
 0x11c   : > { %v1260_v17 = vshll.u32 %v6883_v53, 30  ;;  %v1357_v0 = vsel %vm1347_vm4, %v1354_v36, %v1356_v60  ;;  %v1360_v7 = vsel %vm1348_vm3, %v1342_v22, %v1359_v37  ;;  %v1363_v10 = vand.u32 65535, %v6881_v52 }
 0x11d   : > { %v1138_v39 = vadd.f32 1.0, %v1137_v33  ;;  %v1145_v26 = vadd.f32 1.0, %v1144_v13  ;;  %v1330_v50 = vshrl.u32 %v6033_v40, %v1329_v47  ;;  %v1361_v20 = vsel %vm1347_vm4, %v1358_v8, %v1360_v7 }
 0x11e   : > { %v1261_v18 = vsub.s32 %v1257_v14, %v1260_v17  ;;  %v1364_v62 = vshrl.u32 %v6881_v52, 16  ;;  %v1388_v38 = vshrl.u32 %v1357_v0, 16  ;;  %vm1147_vm9 = vweird.f32 %v6519_v24 }
 0x11f   : > { %v1146_v12 = vmul.f32 %v1145_v26, %v1130_v58  ;;  %v1155_v31 = vxor.u32 2147483648, %v1138_v39  ;;  %vm1161_vm10 = vcmp.lt.s32.totalorder %v6666_v21, 0  ;;  %v1351_v58 = vsel %vm1349_vm2, %v1339_v11, 2102212464 }
 0x120   : > { %vm1262_vm8 = vcmp.lt.s32.totalorder %v1261_v18, 0  ;;  %v1263_v3 = vsub.s32 0, %v1261_v18  ;;  %v1365_v35 = vand.u32 65535, %v1361_v20  ;;  %v1366_v34 = vshrl.u32 %v1361_v20, 16 }
 0x121   : > { %v1152_v23 = vxor.u32 2147483648, %v1146_v12  ;;  %v1156_v25 = vsel %vm1154_vm7, %v1155_v31, %v1146_v12  ;;  %v1387_v55 = vand.u32 65535, %v1357_v0  ;;  %v6915_v30 = vmul.u32 %v1388_v38, %v1363_v10 }
 0x122   : > { %v1264_v16 = vsel %vm1262_vm8, %v1263_v3, %v1261_v18  ;;  %v1367_v24 = vmul.u32 %v1365_v35, %v1363_v10  ;;  %v1368_v49 = vmul.u32 %v1366_v34, %v1363_v10  ;;  %v1253_v59 = vadd.s32 %v6845_v51, %v6850_v28 }
 0x123   : > { %v1153_v47 = vsel %vm1151_vm6, %v1138_v39, %v1152_v23  ;;  %v1265_v29 = vclz %v1264_v16  ;;  %v1350_v11 = vsel %vm1346_vm1, %v1330_v50, %v6872_v63  ;;  %v1369_v22 = vmul.u32 %v1365_v35, %v1364_v62 }
 0x124   : > { %v1157_v2 = vsel %vm1150_vm5, %v1153_v47, %v1156_v25  ;;  %v1352_v15 = vsel %vm1348_vm3, %v1336_v45, %v1351_v58  ;;  %v1370_v43 = vmul.u32 %v1366_v34, %v1364_v62  ;;  %v1371_v56 = vshll.u32 %v1368_v49, 16 }
 0x125   : > { %v1158_v14 = vsel %vm1147_vm9, nan, %v1157_v2  ;;  %v5594_v27 = vadd.s32 4294967294, %v1265_v29  ;;  %v1283_v61 = vsub.s32 4, %v6883_v53  ;;  %v1373_v41 = vshll.u32 %v1369_v22, 16 }
 0x126   : > { %2868 = vst [vmem:[%s6516_s25 + $0x20] sm:$0xff] %v1158_v14  ;;  %v1389_v33 = vmul.u32 %v1387_v55, %v1363_v10  ;;  %v1391_v13 = vmul.u32 %v1387_v55, %v1364_v62  ;;  %vm6930_vm11 = vcmp.le.f32.partialorder %v1159_v54, 0.7853982  ;;  %vm1375_vm13 = vc.u32 %v1367_v24, %v1371_v56 }
 0x127   : > { %vm5595_vm12 = vcmp.lt.s32.totalorder %v5594_v27, 0  ;;  %v1377_v28 = vadd.s32 %v1371_v56, %v1367_v24  ;;  %v1393_v63 = vshll.u32 %v6915_v30, 16  ;;  %v1376_v36 = vsel %vm1375_vm13, 1, %v6039_v1 }
 0x128   : > { %v1268_v45 = vsel %vm5595_vm12, 0, %v5594_v27  ;;  %v1392_v60 = vmul.u32 %v1388_v38, %v1364_v62  ;;  %v1472_v37 = vand.u32 2139095040, %v6888_v32  ;;  %v1378_v8 = vadd.s32 %v1376_v36, %v1370_v43 }
 0x129   : > { %v1269_v39 = vsub.s32 32, %v1268_v45  ;;  %v1270_v26 = vshll.u32 %v1261_v18, %v1268_v45  ;;  %v1273_v17 = vsub.s32 4294967266, %v1268_v45  ;;  %v1284_v54 = vsel %vm1161_vm10, %v1283_v61, %v6883_v53 }
 0x12a   : > { %v1372_v0 = vshrl.u32 %v1368_v49, 16  ;;  %vm1379_vm14 = vc.u32 %v1377_v28, %v1373_v41  ;;  %v1395_v7 = vshll.u32 %v1391_v13, 16  ;;  %vm1397_vm15 = vc.u32 %v1389_v33, %v1393_v63 }
 0x12b   : > { %v1271_v12 = vshrl.u32 %v1253_v59, %v1269_v39  ;;  %v1274_v31 = vadd.s32 127, %v1273_v17  ;;  %v1380_v10 = vsel %vm1379_vm14, 1, %v6039_v1  ;;  %v1398_v20 = vsel %vm1397_vm15, 1, %v6039_v1  ;;  %v337_v39 = vld [vmem:[#allocation8 + $0x40] sm:$0xff] }
 0x12c   : > { %v1382_v50 = vadd.s32 %v1380_v10, %v1378_v8  ;;  %v1399_v62 = vadd.s32 %v1393_v63, %v1389_v33  ;;  %v1473_v38 = vshrl.u32 %v1472_v37, 23  ;;  %v1374_v25 = vshrl.u32 %v1369_v22, 16  ;;  %v321_v33 = vld [vmem:[#allocation7 + $0x40] sm:$0xff] }
 0x12d   : > { %v1272_v18 = vor.u32 %v1271_v12, %v1270_v26  ;;  %v1275_v23 = vshll.u32 %v1274_v31, 23  ;;  %v1400_v3 = vadd.s32 %v1398_v20, %v1392_v60  ;;  %v1394_v53 = vshrl.u32 %v6915_v30, 16 }
 0x12e   : > { %v1383_v58 = vadd.s32 %v1382_v50, %v1372_v0  ;;  %vm1401_vm0 = vc.u32 %v1399_v62, %v1395_v7  ;;  %v5599_v35 = vadd.s32 4294967169, %v1473_v38  ;;  %v1469_v55 = vand.u32 2147483647, %v6888_v32 }
 0x12f   : > { %v1276_v34 = vor.u32 4788187, %v1275_v23  ;;  %v1279_v47 = vcvt.s32.f32 %v1272_v18  ;;  %v1402_v16 = vsel %vm1401_vm0, 1, %v6039_v1  ;;  %v1286_v2 = vsel %vm6930_vm11, 0, %v1284_v54 }
 0x130   : > { %v1396_v29 = vshrl.u32 %v1391_v13, 16  ;;  %v1404_v24 = vadd.s32 %v1402_v16, %v1400_v3  ;;  %v1479_v49 = vadd.s32 1, %v5599_v35  ;;  %v6947_v59 = vadd.s32 %v1383_v58, %v1374_v25 }
 0x131   : > { %v1277_v14 = vand.u32 2147483647, %v1276_v34  ;;  %v6949_v22 = vadd.s32 %v1399_v62, %v1395_v7  ;;  %v1353_v30 = vsel %vm1347_vm4, %v1350_v11, %v1352_v15  ;;  %v1303_v56 = vadd.s32 3, %v1286_v2 }
 0x132   : > { %v1405_v27 = vadd.s32 %v1404_v24, %v1394_v53  ;;  %vm1480_vm1 = vcmp.gt.s32.totalorder %v1479_v49, 0  ;;  %v1476_v61 = vand.u32 8388607, %v1469_v55  ;;  %v1407_v45 = vmul.u32 %v6881_v52, %v1353_v30 }
 0x133   : > { %v1280_v43 = vmul.f32 %v1279_v47, %v1277_v14  ;;  %v1481_v41 = vsel %vm1480_vm1, %v1479_v49, 0  ;;  %vm1409_vm2 = vc.u32 %v6947_v59, %v6949_v22  ;;  %v360_v11 = vmul.f32 %v6190_v4, %v321_v33 }
 0x134   : > { %v1406_v13 = vadd.s32 %v1405_v27, %v1396_v29  ;;  %v1483_v28 = vand.u32 31, %v1481_v41  ;;  %v6961_v60 = vand.u32 3, %v1303_v56  ;;  %v1477_v37 = vor.u32 8388608, %v1476_v61 }
 0x135   : > { %v1281_v63 = vxor.u32 2147483648, %v1280_v43  ;;  %v6968_v17 = vshrl.u32 %v1481_v41, 5  ;;  %v6979_v20 = vadd.f32 %v360_v11, %v337_v39  ;;  %vm1302_vm9 = vweird.f32 %v6666_v21 }
 0x136   : > { %v1410_v36 = vadd.s32 1, %v1406_v13  ;;  %v1484_v9 = vsub.s32 32, %v1483_v28  ;;  %v1489_v8 = vshll.u32 %v6034_v42, %v1483_v28  ;;  %v1492_v7 = vshll.u32 %v6035_v44, %v1483_v28 }
 0x137   : > { %v1282_v15 = vsel %vm1161_vm10, %v1281_v63, %v1280_v43  ;;  %v1495_v12 = vshll.u32 %v6036_v46, %v1483_v28  ;;  %v1498_v50 = vshll.u32 %v6037_v48, %v1483_v28  ;;  %v1486_v23 = vshll.u32 %v6033_v40, %v1483_v28 }
 0x138   : > { %v6966_v26 = vsel %vm6930_vm11, %v6666_v21, %v1282_v15  ;;  %v1411_v52 = vsel %vm1409_vm2, %v1410_v36, %v1406_v13  ;;  %v1490_v31 = vshrl.u32 %v6035_v44, %v1484_v9  ;;  %v1493_v10 = vshrl.u32 %v6036_v46, %v1484_v9 }
 0x139   : > { %v1287_v54 = vmul.f32 %v6966_v26, %v6966_v26  ;;  %v1412_v0 = vadd.s32 %v1411_v52, %v1407_v45  ;;  %v1496_v51 = vshrl.u32 %v6037_v48, %v1484_v9  ;;  %v1487_v25 = vshrl.u32 %v6034_v42, %v1484_v9 }
 0x13a   : > { %v1499_v3 = vshrl.u32 %v6038_v57, %v1484_v9  ;;  %v6984_v58 = vshll.u32 %v1477_v37, 8  ;;  %vm1309_vm3 = vcmp.eq.s32.totalorder %v6961_v60, 2  ;;  %v6989_v16 = vor.u32 %v1490_v31, %v1489_v8 }
 0x13b   : > { %v1288_v62 = vmul.f32 -0.001358992, %v1287_v54  ;;  %v1295_v38 = vmul.f32 -0.00019511016, %v1287_v54  ;;  %v1413_v18 = vadd.s32 536870912, %v1412_v0  ;;  %v1497_v47 = vor.u32 %v1496_v51, %v1495_v12 }
 0x13c   : > { %v6991_v2 = vor.u32 %v1493_v10, %v1492_v7  ;;  %v1500_v29 = vor.u32 %v1499_v3, %v1498_v50  ;;  %vm1504_vm4 = vcmp.lt.s32.totalorder %v6968_v17, 4  ;;  %vm1501_vm5 = vcmp.lt.s32.totalorder %v6968_v17, 1 }
 0x13d   : > { %v1289_v53 = vadd.f32 0.041655596, %v1288_v62  ;;  %v1296_v35 = vadd.f32 0.008332121, %v1295_v38  ;;  %v6986_v34 = vshrl.u32 %v1413_v18, 30  ;;  %vm1306_vm6 = vcmp.eq.s32.totalorder %v6961_v60, 0 }
 0x13e   : > { %v1488_v30 = vor.u32 %v1487_v25, %v1486_v23  ;;  %vm1503_vm7 = vcmp.lt.s32.totalorder %v6968_v17, 3  ;;  %v6999_v27 = vand.u32 65535, %v6984_v58  ;;  %v1627_v43 = vand.u32 2139095040, %v6979_v20 }
 0x13f   : > { %v1290_v24 = vmul.f32 %v1289_v53, %v1287_v54  ;;  %v1297_v49 = vmul.f32 %v1296_v35, %v1287_v54  ;;  %v1415_v14 = vshll.u32 %v6986_v34, 30  ;;  %vm1305_vm8 = vcmp.lt.s32.totalorder %v6961_v60, 2 }
 0x140   : > { %v1510_v33 = vsel %vm1504_vm4, %v1497_v47, 920167782  ;;  %vm1502_vm10 = vcmp.lt.s32.totalorder %v6968_v17, 2  ;;  %v1513_v13 = vsel %vm1501_vm5, %v6989_v16, %v6991_v2  ;;  %v1514_v28 = vsel %vm1504_vm4, %v1500_v29, 1326507024 }
 0x141   : > { %v1291_v56 = vadd.f32 -0.4999988, %v1290_v24  ;;  %v1298_v61 = vadd.f32 -0.16666654, %v1297_v49  ;;  %v7003_v41 = vsub.s32 %v1412_v0, %v1415_v14  ;;  %v1519_v63 = vshrl.u32 %v6984_v58, 16 }
 0x142   : > { %vm1316_vm12 = vcmp.lt.s32.totalorder %v6732_v6, 0  ;;  %v1485_v15 = vshrl.u32 %v6033_v40, %v1484_v9  ;;  %v1509_v37 = vsel %vm1501_vm5, %v1488_v30, %v6989_v16  ;;  %v1511_v39 = vsel %vm1503_vm7, %v6991_v2, %v1510_v33 }
 0x143   : > { %v1292_v45 = vmul.f32 %v1291_v56, %v1287_v54  ;;  %v1299_v36 = vmul.f32 %v1298_v61, %v1287_v54  ;;  %vm1417_vm11 = vcmp.lt.s32.totalorder %v7003_v41, 0  ;;  %v1418_v11 = vsub.s32 0, %v7003_v41 }
 0x144   : > { %v1515_v52 = vsel %vm1503_vm7, %v1497_v47, %v1514_v28  ;;  %v1624_v10 = vand.u32 2147483647, %v6979_v20  ;;  %v1408_v62 = vadd.s32 %v6949_v22, %v6947_v59  ;;  %v1628_v38 = vshrl.u32 %v1627_v43, 23 }
 0x145   : > { %v1293_v8 = vadd.f32 1.0, %v1292_v45  ;;  %v1300_v54 = vadd.f32 1.0, %v1299_v36  ;;  %v1419_v0 = vsel %vm1417_vm11, %v1418_v11, %v7003_v41  ;;  %v1516_v7 = vsel %vm1502_vm10, %v1513_v13, %v1515_v52 }
 0x146   : > { %v1420_v12 = vclz %v1419_v0  ;;  %v1520_v9 = vand.u32 65535, %v1516_v7  ;;  %v1521_v31 = vshrl.u32 %v1516_v7, 16  ;;  %v7037_v23 = vsel %vm1501_vm5, %v1485_v15, %v1488_v30 }
 0x147   : > { %v1301_v51 = vmul.f32 %v1300_v54, %v6966_v26  ;;  %v1310_v50 = vxor.u32 2147483648, %v1293_v8  ;;  %v1512_v25 = vsel %vm1502_vm10, %v1509_v37, %v1511_v39  ;;  %v1438_v26 = vsub.s32 4, %v6986_v34 }
 0x148   : > { %v5597_v18 = vadd.s32 4294967294, %v1420_v12  ;;  %v1523_v3 = vmul.u32 %v1521_v31, %v6999_v27  ;;  %v1524_v47 = vmul.u32 %v1520_v9, %v1519_v63  ;;  %v1522_v59 = vmul.u32 %v1520_v9, %v6999_v27 }
 0x149   : > { %v1307_v53 = vxor.u32 2147483648, %v1301_v51  ;;  %v1311_v35 = vsel %vm1309_vm3, %v1310_v50, %v1301_v51  ;;  %v1542_v29 = vand.u32 65535, %v1512_v25  ;;  %v1525_v14 = vmul.u32 %v1521_v31, %v1519_v63 }
 0x14a   : > { %vm5598_vm13 = vcmp.lt.s32.totalorder %v5597_v18, 0  ;;  %v1526_v22 = vshll.u32 %v1523_v3, 16  ;;  %v1543_v30 = vshrl.u32 %v1512_v25, 16  ;;  %vm7055_vm14 = vcmp.le.f32.partialorder %v1314_v19, 0.7853982 }
 0x14b   : > { %v1308_v24 = vsel %vm1306_vm6, %v1293_v8, %v1307_v53  ;;  %v1423_v49 = vsel %vm5598_vm13, 0, %v5597_v18  ;;  %v1439_v45 = vsel %vm1316_vm12, %v1438_v26, %v6986_v34  ;;  %v1506_v60 = vsel %vm1504_vm4, %v6991_v2, 2102212464  ;;  %v322_v26 = vld [vmem:[#allocation7 + $0x48] sm:$0xff] }
 0x14c   : > { %v1312_v43 = vsel %vm1305_vm8, %v1308_v24, %v1311_v35  ;;  %v1424_v56 = vsub.s32 32, %v1423_v49  ;;  %v1425_v61 = vshll.u32 %v7003_v41, %v1423_v49  ;;  %v1428_v33 = vsub.s32 4294967266, %v1423_v49 }
 0x14d   : > { %v1313_v13 = vsel %vm1302_vm9, nan, %v1312_v43  ;;  %v1528_v36 = vshll.u32 %v1524_v47, 16  ;;  %vm1530_vm15 = vc.u32 %v1522_v59, %v1526_v22  ;;  %v5602_v21 = vadd.s32 4294967169, %v1628_v38 }
 0x14e   : > { %v1426_v41 = vshrl.u32 %v1408_v62, %v1424_v56  ;;  %v1429_v11 = vadd.s32 127, %v1428_v33  ;;  %2869 = vst [vmem:[%s6516_s25 + $0x28] sm:$0xff] %v1313_v13  ;;  %v1531_v15 = vsel %vm1530_vm15, 1, %v6039_v1  ;;  %v1532_v19 = vadd.s32 %v1526_v22, %v1522_v59 }
 0x14f   : > { %v1544_v37 = vmul.u32 %v1542_v29, %v6999_v27  ;;  %v1545_v39 = vmul.u32 %v1543_v30, %v6999_v27  ;;  %v1533_v34 = vadd.s32 %v1531_v15, %v1525_v14  ;;  %v1546_v54 = vmul.u32 %v1542_v29, %v1519_v63 }
 0x150   : > { %v1427_v52 = vor.u32 %v1426_v41, %v1425_v61  ;;  %v1430_v8 = vshll.u32 %v1429_v11, 23  ;;  %v1527_v0 = vshrl.u32 %v1523_v3, 16  ;;  %vm1534_vm0 = vc.u32 %v1532_v19, %v1528_v36 }
 0x151   : > { %v1547_v2 = vmul.u32 %v1543_v30, %v1519_v63  ;;  %v1548_v7 = vshll.u32 %v1545_v39, 16  ;;  %v1535_v31 = vsel %vm1534_vm0, 1, %v6039_v1  ;;  %v1550_v51 = vshll.u32 %v1546_v54, 16 }
 0x152   : > { %v1431_v12 = vor.u32 4788187, %v1430_v8  ;;  %v1434_v9 = vcvt.s32.f32 %v1427_v52  ;;  %v1507_v50 = vsel %vm1503_vm7, %v6989_v16, %v1506_v60  ;;  %v1537_v62 = vadd.s32 %v1535_v31, %v1533_v34 }
 0x153   : > { %vm1552_vm1 = vc.u32 %v1544_v37, %v1548_v7  ;;  %v1554_v27 = vadd.s32 %v1548_v7, %v1544_v37  ;;  %v1529_v18 = vshrl.u32 %v1524_v47, 16  ;;  %v1634_v3 = vadd.s32 1, %v5602_v21 }
 0x154   : > { %v1432_v38 = vand.u32 2147483647, %v1431_v12  ;;  %v1553_v25 = vsel %vm1552_vm1, 1, %v6039_v1  ;;  %v1538_v53 = vadd.s32 %v1537_v62, %v1527_v0  ;;  %v1549_v63 = vshrl.u32 %v1545_v39, 16 }
 0x155   : > { %v1555_v35 = vadd.s32 %v1553_v25, %v1547_v2  ;;  %vm1556_vm2 = vc.u32 %v1554_v27, %v1550_v51  ;;  %v1441_v22 = vsel %vm7055_vm14, 0, %v1439_v45  ;;  %vm1635_vm3 = vcmp.gt.s32.totalorder %v1634_v3, 0 }
 0x156   : > { %v1435_v59 = vmul.f32 %v1434_v9, %v1432_v38  ;;  %v1557_v29 = vsel %vm1556_vm2, 1, %v6039_v1  ;;  %v1508_v16 = vsel %vm1502_vm10, %v7037_v23, %v1507_v50  ;;  %v1551_v47 = vshrl.u32 %v1546_v54, 16  ;;  %v338_v9 = vld [vmem:[#allocation8 + $0x48] sm:$0xff] }
 0x157   : > { %v1559_v24 = vadd.s32 %v1557_v29, %v1555_v35  ;;  %v1636_v49 = vsel %vm1635_vm3, %v1634_v3, 0  ;;  %v7080_v30 = vadd.s32 %v1538_v53, %v1529_v18  ;;  %v7082_v43 = vadd.s32 %v1554_v27, %v1550_v51 }
 0x158   : > { %v1436_v14 = vxor.u32 2147483648, %v1435_v59  ;;  %v1638_v56 = vand.u32 31, %v1636_v49  ;;  %v361_v61 = vmul.f32 %v6192_v5, %v322_v26  ;;  %v1562_v45 = vmul.u32 %v6984_v58, %v1508_v16 }
 0x159   : > { %v1560_v33 = vadd.s32 %v1559_v24, %v1549_v63  ;;  %v1631_v17 = vand.u32 8388607, %v1624_v10  ;;  %v1458_v36 = vadd.s32 3, %v1441_v22  ;;  %v7097_v11 = vshrl.u32 %v1636_v49, 5 }
 0x15a   : > { %v1437_v13 = vsel %vm1316_vm12, %v1436_v14, %v1435_v59  ;;  %v7090_v23 = vsub.s32 32, %v1638_v56  ;;  %vm1564_vm4 = vc.u32 %v7080_v30, %v7082_v43  ;;  %v1644_v58 = vshll.u32 %v6034_v42, %v1638_v56 }
 0x15b   : > { %v7095_v60 = vsel %vm7055_vm14, %v6732_v6, %v1437_v13  ;;  %v1561_v41 = vadd.s32 %v1560_v33, %v1551_v47  ;;  %v1650_v15 = vshll.u32 %v6036_v46, %v1638_v56  ;;  %v1653_v39 = vshll.u32 %v6037_v48, %v1638_v56 }
 0x15c   : > { %v1442_v21 = vmul.f32 %v7095_v60, %v7095_v60  ;;  %v1645_v28 = vshrl.u32 %v6035_v44, %v7090_v23  ;;  %v1651_v37 = vshrl.u32 %v6037_v48, %v7090_v23  ;;  %v1647_v34 = vshll.u32 %v6035_v44, %v1638_v56 }
 0x15d   : > { %v1565_v19 = vadd.s32 1, %v1561_v41  ;;  %v1648_v54 = vshrl.u32 %v6036_v46, %v7090_v23  ;;  %v1641_v2 = vshll.u32 %v6033_v40, %v1638_v56  ;;  %v1642_v7 = vshrl.u32 %v6034_v42, %v7090_v23 }
 0x15e   : > { %v1443_v52 = vmul.f32 -0.001358992, %v1442_v21  ;;  %v1450_v8 = vmul.f32 -0.00019511016, %v1442_v21  ;;  %v1654_v12 = vshrl.u32 %v6038_v57, %v7090_v23  ;;  %v1459_v50 = vand.u32 3, %v1458_v36 }
 0x15f   : > { %v1566_v0 = vsel %vm1564_vm4, %v1565_v19, %v1561_v41  ;;  %v1632_v27 = vor.u32 8388608, %v1631_v17  ;;  %v7118_v38 = vor.u32 %v1645_v28, %v1644_v58  ;;  %v1652_v18 = vor.u32 %v1651_v37, %v1650_v15 }
 0x160   : > { %v1444_v31 = vadd.f32 0.041655596, %v1443_v52  ;;  %v1451_v51 = vadd.f32 0.008332121, %v1450_v8  ;;  %v1567_v62 = vadd.s32 %v1566_v0, %v1562_v45  ;;  %v1655_v25 = vor.u32 %v1654_v12, %v1653_v39 }
 0x161   : > { %v1649_v35 = vor.u32 %v1648_v54, %v1647_v34  ;;  %v7120_v26 = vadd.f32 %v361_v61, %v338_v9  ;;  %v1643_v59 = vor.u32 %v1642_v7, %v1641_v2  ;;  %vm1656_vm5 = vcmp.lt.s32.totalorder %v7097_v11, 1 }
 0x162   : > { %v1445_v3 = vmul.f32 %v1444_v31, %v1442_v21  ;;  %v1452_v53 = vmul.f32 %v1451_v51, %v1442_v21  ;;  %v1568_v63 = vadd.s32 536870912, %v1567_v62  ;;  %vm1659_vm6 = vcmp.lt.s32.totalorder %v7097_v11, 4 }
 0x163   : > { %vm1460_vm7 = vcmp.lt.s32.totalorder %v1459_v50, 2  ;;  %vm1658_vm8 = vcmp.lt.s32.totalorder %v7097_v11, 3  ;;  %vm1457_vm9 = vweird.f32 %v6732_v6  ;;  %vm1657_vm10 = vcmp.lt.s32.totalorder %v7097_v11, 2 }
 0x164   : > { %v1446_v22 = vadd.f32 -0.4999988, %v1445_v3  ;;  %v1453_v29 = vadd.f32 -0.16666654, %v1452_v53  ;;  %v7124_v16 = vshrl.u32 %v1568_v63, 30  ;;  %v7133_v49 = vshll.u32 %v1632_v27, 8 }
 0x165   : > { %v1665_v47 = vsel %vm1659_vm6, %v1652_v18, 920167782  ;;  %v1669_v24 = vsel %vm1659_vm6, %v1655_v25, 1326507024  ;;  %v1668_v33 = vsel %vm1656_vm5, %v7118_v38, %v1649_v35  ;;  %vm1461_vm11 = vcmp.eq.s32.totalorder %v1459_v50, 0 }
 0x166   : > { %v1447_v14 = vmul.f32 %v1446_v22, %v1442_v21  ;;  %v1454_v56 = vmul.f32 %v1453_v29, %v1442_v21  ;;  %v1570_v61 = vshll.u32 %v7124_v16, 30  ;;  %vm1464_vm12 = vcmp.eq.s32.totalorder %v1459_v50, 2 }
 0x167   : > { %v1664_v13 = vsel %vm1656_vm5, %v1643_v59, %v7118_v38  ;;  %v1670_v45 = vsel %vm1658_vm8, %v1652_v18, %v1669_v24  ;;  %v1666_v21 = vsel %vm1658_vm8, %v1649_v35, %v1665_v47  ;;  %v1673_v15 = vand.u32 65535, %v7133_v49 }
 0x168   : > { %v1448_v17 = vadd.f32 1.0, %v1447_v14  ;;  %v1455_v36 = vadd.f32 1.0, %v1454_v56  ;;  %v1571_v41 = vsub.s32 %v1567_v62, %v1570_v61  ;;  %v1671_v58 = vsel %vm1657_vm10, %v1668_v33, %v1670_v45 }
 0x169   : > { %v1674_v19 = vshrl.u32 %v7133_v49, 16  ;;  %v1779_v28 = vand.u32 2147483647, %v7120_v26  ;;  %v1640_v8 = vshrl.u32 %v6033_v40, %v7090_v23  ;;  %v1667_v34 = vsel %vm1657_vm10, %v1664_v13, %v1666_v21 }
 0x16a   : > { %v1456_v37 = vmul.f32 %v1455_v36, %v7095_v60  ;;  %v1465_v39 = vxor.u32 2147483648, %v1448_v17  ;;  %vm1572_vm13 = vcmp.lt.s32.totalorder %v1571_v41, 0  ;;  %v1573_v52 = vsub.s32 0, %v1571_v41 }
 0x16b   : > { %v1675_v54 = vand.u32 65535, %v1671_v58  ;;  %v1676_v0 = vshrl.u32 %v1671_v58, 16  ;;  %v1782_v9 = vand.u32 2139095040, %v7120_v26  ;;  %v1563_v23 = vadd.s32 %v7082_v43, %v7080_v30 }
 0x16c   : > { %v1462_v2 = vxor.u32 2147483648, %v1456_v37  ;;  %v1466_v7 = vsel %vm1464_vm12, %v1465_v39, %v1456_v37  ;;  %v1574_v12 = vsel %vm1572_vm13, %v1573_v52, %v1571_v41  ;;  %v1697_v18 = vand.u32 65535, %v1667_v34 }
 0x16d   : > { %v1575_v31 = vclz %v1574_v12  ;;  %v1677_v51 = vmul.u32 %v1675_v54, %v1673_v15  ;;  %v1678_v60 = vmul.u32 %v1676_v0, %v1673_v15  ;;  %v1679_v62 = vmul.u32 %v1675_v54, %v1674_v19 }
 0x16e   : > { %v1463_v27 = vsel %vm1461_vm11, %v1448_v17, %v1462_v2  ;;  %v1698_v25 = vshrl.u32 %v1667_v34, 16  ;;  %v1680_v63 = vmul.u32 %v1676_v0, %v1674_v19  ;;  %v1660_v47 = vsel %vm1656_vm5, %v1640_v8, %v1643_v59 }
 0x16f   : > { %v1467_v3 = vsel %vm1460_vm7, %v1463_v27, %v1466_v7  ;;  %v5600_v53 = vadd.s32 4294967294, %v1575_v31  ;;  %v1681_v22 = vshll.u32 %v1678_v60, 16  ;;  %v1661_v24 = vsel %vm1659_vm6, %v1649_v35, 2102212464 }
 0x170   : > { %v1468_v29 = vsel %vm1457_vm9, nan, %v1467_v3  ;;  %v1683_v14 = vshll.u32 %v1679_v62, 16  ;;  %v1783_v43 = vshrl.u32 %v1782_v9, 23  ;;  %v1700_v61 = vmul.u32 %v1698_v25, %v1673_v15 }
 0x171   : > { %vm5601_vm14 = vcmp.lt.s32.totalorder %v5600_v53, 0  ;;  %vm1685_vm15 = vc.u32 %v1677_v51, %v1681_v22  ;;  %v1687_v30 = vadd.s32 %v1681_v22, %v1677_v51  ;;  %2870 = vst [vmem:[%s6516_s25 + $0x30] sm:$0xff] %v1468_v29  ;;  %v1701_v33 = vmul.u32 %v1697_v18, %v1674_v19 }
 0x172   : > { %v1578_v50 = vsel %vm5601_vm14, 0, %v5600_v53  ;;  %v1686_v56 = vsel %vm1685_vm15, 1, %v6039_v1  ;;  %v1593_v59 = vsub.s32 4, %v7124_v16  ;;  %v1682_v36 = vshrl.u32 %v1678_v60, 16 }
 0x173   : > { %v1579_v13 = vsub.s32 32, %v1578_v50  ;;  %v1580_v6 = vshll.u32 %v1571_v41, %v1578_v50  ;;  %v1583_v45 = vsub.s32 4294967266, %v1578_v50  ;;  %v1688_v17 = vadd.s32 %v1686_v56, %v1680_v63 }
 0x174   : > { %vm1689_vm0 = vc.u32 %v1687_v30, %v1683_v14  ;;  %v1699_v35 = vmul.u32 %v1697_v18, %v1673_v15  ;;  %v1684_v37 = vshrl.u32 %v1679_v62, 16  ;;  %v1702_v8 = vmul.u32 %v1698_v25, %v1674_v19 }
 0x175   : > { %v1581_v21 = vshrl.u32 %v1563_v23, %v1579_v13  ;;  %v1584_v58 = vadd.s32 127, %v1583_v45  ;;  %v1690_v39 = vsel %vm1689_vm0, 1, %v6039_v1  ;;  %v1703_v34 = vshll.u32 %v1700_v61, 16 }
 0x176   : > { %v1692_v52 = vadd.s32 %v1690_v39, %v1688_v17  ;;  %v1705_v54 = vshll.u32 %v1701_v33, 16  ;;  %v1662_v41 = vsel %vm1658_vm8, %v7118_v38, %v1661_v24  ;;  %v5605_v7 = vadd.s32 4294967169, %v1783_v43 }
 0x177   : > { %v1582_v0 = vor.u32 %v1581_v21, %v1580_v6  ;;  %v1585_v2 = vshll.u32 %v1584_v58, 23  ;;  %v1704_v9 = vshrl.u32 %v1700_v61, 16  ;;  %vm1707_vm1 = vc.u32 %v1699_v35, %v1703_v34 }
 0x178   : > { %v1693_v12 = vadd.s32 %v1692_v52, %v1682_v36  ;;  %v1709_v15 = vadd.s32 %v1703_v34, %v1699_v35  ;;  %v1708_v60 = vsel %vm1707_vm1, 1, %v6039_v1  ;;  %v1789_v62 = vadd.s32 1, %v5605_v7 }
 0x179   : > { %v1586_v31 = vor.u32 4788187, %v1585_v2  ;;  %v1589_v51 = vcvt.s32.f32 %v1582_v0  ;;  %v1710_v19 = vadd.s32 %v1708_v60, %v1702_v8  ;;  %v1663_v38 = vsel %vm1657_vm10, %v1660_v47, %v1662_v41  ;;  %v323_v0 = vld [vmem:[#allocation7 + $0x50] sm:$0xff] }
 0x17a   : > { %v7176_v27 = vadd.s32 %v1693_v12, %v1684_v37  ;;  %vm1711_vm2 = vc.u32 %v1709_v15, %v1705_v54  ;;  %v7178_v23 = vadd.s32 %v1709_v15, %v1705_v54  ;;  %vm1790_vm3 = vcmp.gt.s32.totalorder %v1789_v62, 0 }
 0x17b   : > { %v1587_v18 = vand.u32 2147483647, %v1586_v31  ;;  %v1712_v25 = vsel %vm1711_vm2, 1, %v6039_v1  ;;  %vm1471_vm4 = vcmp.lt.s32.totalorder %v6888_v32, 0  ;;  %v1706_v3 = vshrl.u32 %v1701_v33, 16 }
 0x17c   : > { %v1714_v53 = vadd.s32 %v1712_v25, %v1710_v19  ;;  %v1791_v63 = vsel %vm1790_vm3, %v1789_v62, 0  ;;  %vm7186_vm5 = vcmp.le.f32.partialorder %v1469_v55, 0.7853982  ;;  %v1594_v11 = vsel %vm1471_vm4, %v1593_v59, %v7124_v16 }
 0x17d   : > { %v1590_v29 = vmul.f32 %v1589_v51, %v1587_v18  ;;  %v1793_v47 = vand.u32 31, %v1791_v63  ;;  %v1717_v14 = vmul.u32 %v7133_v49, %v1663_v38  ;;  %vm1719_vm6 = vc.u32 %v7176_v27, %v7178_v23  ;;  %v339_v38 = vld [vmem:[#allocation8 + $0x50] sm:$0xff] }
 0x17e   : > { %v1715_v24 = vadd.s32 %v1714_v53, %v1704_v9  ;;  %v1786_v30 = vand.u32 8388607, %v1779_v28  ;;  %v7198_v55 = vshrl.u32 %v1791_v63, 5  ;;  %v1596_v58 = vsel %vm7186_vm5, 0, %v1594_v11 }
 0x17f   : > { %v1591_v43 = vxor.u32 2147483648, %v1590_v29  ;;  %v7200_v50 = vsub.s32 32, %v1793_v47  ;;  %v1796_v56 = vshll.u32 %v6033_v40, %v1793_v47  ;;  %v1799_v16 = vshll.u32 %v6034_v42, %v1793_v47 }
 0x180   : > { %v1716_v61 = vadd.s32 %v1715_v24, %v1706_v3  ;;  %v1802_v33 = vshll.u32 %v6035_v44, %v1793_v47  ;;  %v1805_v49 = vshll.u32 %v6036_v46, %v1793_v47  ;;  %v1808_v17 = vshll.u32 %v6037_v48, %v1793_v47 }
 0x181   : > { %v1592_v13 = vsel %vm1471_vm4, %v1591_v43, %v1590_v29  ;;  %v1797_v6 = vshrl.u32 %v6034_v42, %v7200_v50  ;;  %v1800_v45 = vshrl.u32 %v6035_v44, %v7200_v50  ;;  %v1803_v35 = vshrl.u32 %v6036_v46, %v7200_v50 }
 0x182   : > { %v1595_v59 = vsel %vm7186_vm5, %v6888_v32, %v1592_v13  ;;  %v1720_v36 = vadd.s32 1, %v1716_v61  ;;  %v1806_v21 = vshrl.u32 %v6037_v48, %v7200_v50  ;;  %v1809_v39 = vshrl.u32 %v6038_v57, %v7200_v50 }
 0x183   : > { %v1597_v37 = vmul.f32 %v1595_v59, %v1595_v59  ;;  %v1787_v8 = vor.u32 8388608, %v1786_v30  ;;  %v7227_v34 = vor.u32 %v1797_v6, %v1796_v56  ;;  %v7229_v12 = vor.u32 %v1800_v45, %v1799_v16 }
 0x184   : > { %v1721_v52 = vsel %vm1719_vm6, %v1720_v36, %v1716_v61  ;;  %v1807_v54 = vor.u32 %v1806_v21, %v1805_v49  ;;  %v7231_v9 = vor.u32 %v1803_v35, %v1802_v33  ;;  %v1810_v15 = vor.u32 %v1809_v39, %v1808_v17 }
 0x185   : > { %v1598_v2 = vmul.f32 -0.001358992, %v1597_v37  ;;  %v1605_v41 = vmul.f32 -0.00019511016, %v1597_v37  ;;  %v1722_v7 = vadd.s32 %v1721_v52, %v1717_v14  ;;  %vm1811_vm7 = vcmp.lt.s32.totalorder %v7198_v55, 1 }
 0x186   : > { %vm1813_vm8 = vcmp.lt.s32.totalorder %v7198_v55, 3  ;;  %vm1814_vm9 = vcmp.lt.s32.totalorder %v7198_v55, 4  ;;  %v362_v62 = vmul.f32 %v6190_v4, %v323_v0  ;;  %v1613_v19 = vadd.s32 3, %v1596_v58 }
 0x187   : > { %v1599_v31 = vadd.f32 0.041655596, %v1598_v2  ;;  %v1606_v51 = vadd.f32 0.008332121, %v1605_v41  ;;  %v1723_v60 = vadd.s32 536870912, %v1722_v7  ;;  %vm1812_vm10 = vcmp.lt.s32.totalorder %v7198_v55, 2 }
 0x188   : > { %v1820_v18 = vsel %vm1814_vm9, %v1807_v54, 920167782  ;;  %v1819_v63 = vsel %vm1811_vm7, %v7227_v34, %v7229_v12  ;;  %v1824_v29 = vsel %vm1814_vm9, %v1810_v15, 1326507024  ;;  %v7251_v11 = vshll.u32 %v1787_v8, 8 }
 0x189   : > { %v1600_v25 = vmul.f32 %v1599_v31, %v1597_v37  ;;  %v1607_v3 = vmul.f32 %v1606_v51, %v1597_v37  ;;  %v7240_v53 = vshrl.u32 %v1723_v60, 30  ;;  %v1821_v22 = vsel %vm1813_vm8, %v7231_v9, %v1820_v18 }
 0x18a   : > { %v1823_v30 = vsel %vm1811_vm7, %v7229_v12, %v7231_v9  ;;  %v7258_v43 = vadd.f32 %v362_v62, %v339_v38  ;;  %v1614_v56 = vand.u32 3, %v1613_v19  ;;  %v1822_v61 = vsel %vm1812_vm10, %v1819_v63, %v1821_v22 }
 0x18b   : > { %v1601_v47 = vadd.f32 -0.4999988, %v1600_v25  ;;  %v1608_v24 = vadd.f32 -0.16666654, %v1607_v3  ;;  %v1725_v14 = vshll.u32 %v7240_v53, 30  ;;  %v1825_v16 = vsel %vm1813_vm8, %v1807_v54, %v1824_v29 }
 0x18c   : > { %vm1612_vm11 = vweird.f32 %v6888_v32  ;;  %v1826_v6 = vsel %vm1812_vm10, %v1823_v30, %v1825_v16  ;;  %v1828_v45 = vand.u32 65535, %v7251_v11  ;;  %v1829_v17 = vshrl.u32 %v7251_v11, 16 }
 0x18d   : > { %v1602_v33 = vmul.f32 %v1601_v47, %v1597_v37  ;;  %v1609_v49 = vmul.f32 %v1608_v24, %v1597_v37  ;;  %v1726_v13 = vsub.s32 %v1722_v7, %v1725_v14  ;;  %v1853_v36 = vshrl.u32 %v1822_v61, 16 }
 0x18e   : > { %vm1616_vm13 = vcmp.eq.s32.totalorder %v1614_v56, 0  ;;  %vm1619_vm14 = vcmp.eq.s32.totalorder %v1614_v56, 2  ;;  %v1830_v39 = vand.u32 65535, %v1826_v6  ;;  %v1831_v52 = vshrl.u32 %v1826_v6, 16 }
 0x18f   : > { %v1603_v35 = vadd.f32 1.0, %v1602_v33  ;;  %v1610_v21 = vadd.f32 1.0, %v1609_v49  ;;  %vm1727_vm12 = vcmp.lt.s32.totalorder %v1726_v13, 0  ;;  %v1728_v58 = vsub.s32 0, %v1726_v13 }
 0x190   : > { %v1852_v0 = vand.u32 65535, %v1822_v61  ;;  %v1832_v41 = vmul.u32 %v1830_v39, %v1828_v45  ;;  %v1833_v7 = vmul.u32 %v1831_v52, %v1828_v45  ;;  %v7269_v15 = vmul.u32 %v1830_v39, %v1829_v17 }
 0x191   : > { %v1611_v37 = vmul.f32 %v1610_v21, %v1595_v59  ;;  %v1620_v8 = vxor.u32 2147483648, %v1603_v35  ;;  %v1729_v54 = vsel %vm1727_vm12, %v1728_v58, %v1726_v13  ;;  %vm1615_vm15 = vcmp.lt.s32.totalorder %v1614_v56, 2 }
 0x192   : > { %v1730_v2 = vclz %v1729_v54  ;;  %v7271_v60 = vmul.u32 %v1853_v36, %v1828_v45  ;;  %vm1626_vm0 = vcmp.lt.s32.totalorder %v6979_v20, 0  ;;  %v1718_v62 = vadd.s32 %v7178_v23, %v7176_v27 }
 0x193   : > { %v1617_v31 = vxor.u32 2147483648, %v1611_v37  ;;  %v1621_v51 = vsel %vm1619_vm14, %v1620_v8, %v1611_v37  ;;  %v1836_v59 = vshll.u32 %v1833_v7, 16  ;;  %v1937_v18 = vand.u32 2139095040, %v7258_v43 }
 0x194   : > { %v5603_v19 = vadd.s32 4294967294, %v1730_v2  ;;  %v1835_v25 = vmul.u32 %v1831_v52, %v1829_v17  ;;  %v1854_v3 = vmul.u32 %v1852_v0, %v1828_v45  ;;  %v7278_v63 = vmul.u32 %v1852_v0, %v1829_v17 }
 0x195   : > { %v1618_v38 = vsel %vm1616_vm13, %v1603_v35, %v1617_v31  ;;  %v1838_v29 = vshll.u32 %v7269_v15, 16  ;;  %vm1840_vm2 = vc.u32 %v1832_v41, %v1836_v59  ;;  %v1858_v24 = vshll.u32 %v7271_v60, 16 }
 0x196   : > { %v1622_v22 = vsel %vm1615_vm15, %v1618_v38, %v1621_v51  ;;  %vm5604_vm1 = vcmp.lt.s32.totalorder %v5603_v19, 0  ;;  %v1841_v23 = vsel %vm1840_vm2, 1, %v6039_v1  ;;  %vm7287_vm3 = vcmp.le.f32.partialorder %v1624_v10, 0.7853982 }
 0x197   : > { %v1623_v47 = vsel %vm1612_vm11, nan, %v1622_v22  ;;  %v1733_v27 = vsel %vm5604_vm1, 0, %v5603_v19  ;;  %v1842_v16 = vadd.s32 %v1836_v59, %v1832_v41  ;;  %v1748_v33 = vsub.s32 4, %v7240_v53 }
 0x198   : > { %v1734_v30 = vsub.s32 32, %v1733_v27  ;;  %v1735_v56 = vshll.u32 %v1726_v13, %v1733_v27  ;;  %v1738_v61 = vsub.s32 4294967266, %v1733_v27  ;;  %2871 = vst [vmem:[%s6516_s25 + $0x38] sm:$0xff] %v1623_v47  ;;  %v1795_v32 = vshrl.u32 %v6033_v40, %v7200_v50  ;;  %v340_v27 = vld [vmem:[#allocation8 + $0x58] sm:$0xff] }
 0x199   : > { %v1843_v49 = vadd.s32 %v1841_v23, %v1835_v25  ;;  %v1857_v6 = vmul.u32 %v1853_v36, %v1829_v17  ;;  %v1837_v21 = vshrl.u32 %v1833_v7, 16  ;;  %vm1844_vm4 = vc.u32 %v1842_v16, %v1838_v29 }
 0x19a   : > { %v1736_v45 = vshrl.u32 %v1718_v62, %v1734_v30  ;;  %v1739_v35 = vadd.s32 127, %v1738_v61  ;;  %v1816_v10 = vsel %vm1814_vm9, %v7231_v9, 2102212464  ;;  %v1845_v13 = vsel %vm1844_vm4, 1, %v6039_v1  ;;  %v324_v62 = vld [vmem:[#allocation7 + $0x58] sm:$0xff] }
 0x19b   : > { %v1860_v58 = vshll.u32 %v7278_v63, 16  ;;  %vm1862_vm5 = vc.u32 %v1854_v3, %v1858_v24  ;;  %v1847_v37 = vadd.s32 %v1845_v13, %v1843_v49  ;;  %v1749_v17 = vsel %vm1626_vm0, %v1748_v33, %v7240_v53 }
 0x19c   : > { %v1737_v39 = vor.u32 %v1736_v45, %v1735_v56  ;;  %v1740_v52 = vshll.u32 %v1739_v35, 23  ;;  %v1863_v50 = vsel %vm1862_vm5, 1, %v6039_v1  ;;  %v1864_v36 = vadd.s32 %v1858_v24, %v1854_v3 }
 0x19d   : > { %v1865_v8 = vadd.s32 %v1863_v50, %v1857_v6  ;;  %v1938_v54 = vshrl.u32 %v1937_v18, 23  ;;  %v1839_v9 = vshrl.u32 %v7269_v15, 16  ;;  %v1848_v41 = vadd.s32 %v1847_v37, %v1837_v21 }
 0x19e   : > { %v1741_v0 = vor.u32 4788187, %v1740_v52  ;;  %v1744_v2 = vcvt.s32.f32 %v1737_v39  ;;  %v1859_v7 = vshrl.u32 %v7271_v60, 16  ;;  %vm1866_vm6 = vc.u32 %v1864_v36, %v1860_v58 }
 0x19f   : > { %v1934_v31 = vand.u32 2147483647, %v7258_v43  ;;  %v5608_v51 = vadd.s32 4294967169, %v1938_v54  ;;  %v1815_v53 = vsel %vm1811_vm7, %v1795_v32, %v7227_v34  ;;  %v1817_v59 = vsel %vm1813_vm8, %v7229_v12, %v1816_v10 }
 0x1a0   : > { %v1742_v19 = vand.u32 2147483647, %v1741_v0  ;;  %v1867_v18 = vsel %vm1866_vm6, 1, %v6039_v1  ;;  %v1751_v15 = vsel %vm7287_vm3, 0, %v1749_v17  ;;  %v1861_v60 = vshrl.u32 %v7278_v63, 16 }
 0x1a1   : > { %v1869_v38 = vadd.s32 %v1867_v18, %v1865_v8  ;;  %v1944_v25 = vadd.s32 1, %v5608_v51  ;;  %v7317_v22 = vadd.s32 %v1848_v41, %v1839_v9  ;;  %v7319_v29 = vadd.s32 %v1864_v36, %v1860_v58 }
 0x1a2   : > { %v1745_v3 = vmul.f32 %v1744_v2, %v1742_v19  ;;  %v363_v34 = vmul.f32 %v6192_v5, %v324_v62  ;;  %v1818_v47 = vsel %vm1812_vm10, %v1815_v53, %v1817_v59  ;;  %v1768_v24 = vadd.s32 3, %v1751_v15 }
 0x1a3   : > { %v1870_v12 = vadd.s32 %v1869_v38, %v1859_v7  ;;  %vm1945_vm7 = vcmp.gt.s32.totalorder %v1944_v25, 0  ;;  %v1941_v63 = vand.u32 8388607, %v1934_v31  ;;  %v1872_v33 = vmul.u32 %v7251_v11, %v1818_v47 }
 0x1a4   : > { %v1746_v23 = vxor.u32 2147483648, %v1745_v3  ;;  %v1946_v30 = vsel %vm1945_vm7, %v1944_v25, 0  ;;  %vm1874_vm8 = vc.u32 %v7317_v22, %v7319_v29  ;;  %v7331_v55 = vadd.f32 %v363_v34, %v340_v27 }
 0x1a5   : > { %v1871_v56 = vadd.s32 %v1870_v12, %v1861_v60  ;;  %v1948_v61 = vand.u32 31, %v1946_v30  ;;  %v7340_v35 = vand.u32 3, %v1768_v24  ;;  %v1942_v21 = vor.u32 8388608, %v1941_v63 }
 0x1a6   : > { %v1747_v16 = vsel %vm1626_vm0, %v1746_v23, %v1745_v3  ;;  %v7347_v17 = vshrl.u32 %v1946_v30, 5  ;;  %v2092_v54 = vand.u32 2139095040, %v7331_v55  ;;  %vm1767_vm15 = vweird.f32 %v6979_v20 }
 0x1a7   : > { %v7336_v32 = vsel %vm7287_vm3, %v6979_v20, %v1747_v16  ;;  %v1875_v49 = vadd.s32 1, %v1871_v56  ;;  %v1949_v6 = vsub.s32 32, %v1948_v61  ;;  %v1951_v11 = vshll.u32 %v6033_v40, %v1948_v61 }
 0x1a8   : > { %v1752_v45 = vmul.f32 %v7336_v32, %v7336_v32  ;;  %v1954_v58 = vshll.u32 %v6034_v42, %v1948_v61  ;;  %v1960_v50 = vshll.u32 %v6036_v46, %v1948_v61  ;;  %v1957_v36 = vshll.u32 %v6035_v44, %v1948_v61 }
 0x1a9   : > { %v1876_v10 = vsel %vm1874_vm8, %v1875_v49, %v1871_v56  ;;  %v1952_v13 = vshrl.u32 %v6034_v42, %v1949_v6  ;;  %v1955_v39 = vshrl.u32 %v6035_v44, %v1949_v6  ;;  %v1958_v8 = vshrl.u32 %v6036_v46, %v1949_v6 }
 0x1aa   : > { %v1753_v14 = vmul.f32 -0.001358992, %v1752_v45  ;;  %v1760_v52 = vmul.f32 -0.00019511016, %v1752_v45  ;;  %v1877_v37 = vadd.s32 %v1876_v10, %v1872_v33  ;;  %v1961_v41 = vshrl.u32 %v6037_v48, %v1949_v6 }
 0x1ab   : > { %vm1774_vm9 = vcmp.eq.s32.totalorder %v7340_v35, 2  ;;  %v1953_v7 = vor.u32 %v1952_v13, %v1951_v11  ;;  %v7354_v51 = vor.u32 %v1955_v39, %v1954_v58  ;;  %v1963_v62 = vshll.u32 %v6037_v48, %v1948_v61 }
 0x1ac   : > { %v1754_v0 = vadd.f32 0.041655596, %v1753_v14  ;;  %v1761_v2 = vadd.f32 0.008332121, %v1760_v52  ;;  %v1878_v9 = vadd.s32 536870912, %v1877_v37  ;;  %v1964_v19 = vshrl.u32 %v6038_v57, %v1949_v6 }
 0x1ad   : > { %v1962_v15 = vor.u32 %v1961_v41, %v1960_v50  ;;  %vm1771_vm10 = vcmp.eq.s32.totalorder %v7340_v35, 0  ;;  %v1959_v60 = vor.u32 %v1958_v8, %v1957_v36  ;;  %vm1966_vm11 = vcmp.lt.s32.totalorder %v7347_v17, 1 }
 0x1ae   : > { %v1755_v53 = vmul.f32 %v1754_v0, %v1752_v45  ;;  %v1762_v59 = vmul.f32 %v1761_v2, %v1752_v45  ;;  %v1879_v18 = vshrl.u32 %v1878_v9, 30  ;;  %vm1969_vm12 = vcmp.lt.s32.totalorder %v7347_v17, 4 }
 0x1af   : > { %v7361_v38 = vshll.u32 %v1942_v21, 8  ;;  %vm1770_vm13 = vcmp.lt.s32.totalorder %v7340_v35, 2  ;;  %vm1968_vm14 = vcmp.lt.s32.totalorder %v7347_v17, 3  ;;  %v1965_v47 = vor.u32 %v1964_v19, %v1963_v62 }
 0x1b0   : > { %v1756_v25 = vadd.f32 -0.4999988, %v1755_v53  ;;  %v1763_v3 = vadd.f32 -0.16666654, %v1762_v59  ;;  %v1880_v34 = vshll.u32 %v1879_v18, 30  ;;  %vm1967_vm0 = vcmp.lt.s32.totalorder %v7347_v17, 2 }
 0x1b1   : > { %v1975_v12 = vsel %vm1969_vm12, %v1962_v15, 920167782  ;;  %v2089_v27 = vand.u32 2147483647, %v7331_v55  ;;  %vm1781_vm1 = vcmp.lt.s32.totalorder %v7120_v26, 0  ;;  %v1974_v30 = vsel %vm1966_vm11, %v1953_v7, %v7354_v51 }
 0x1b2   : > { %v1757_v23 = vmul.f32 %v1756_v25, %v1752_v45  ;;  %v1764_v24 = vmul.f32 %v1763_v3, %v1752_v45  ;;  %v1881_v63 = vsub.s32 %v1877_v37, %v1880_v34  ;;  %v1976_v56 = vsel %vm1968_vm14, %v1959_v60, %v1975_v12 }
 0x1b3   : > { %v1978_v61 = vsel %vm1966_vm11, %v7354_v51, %v1959_v60  ;;  %v1983_v16 = vand.u32 65535, %v7361_v38  ;;  %v2093_v33 = vshrl.u32 %v2092_v54, 23  ;;  %vm7382_vm3 = vcmp.le.f32.partialorder %v1779_v28, 0.7853982 }
 0x1b4   : > { %v1758_v49 = vadd.f32 1.0, %v1757_v23  ;;  %v1765_v21 = vadd.f32 1.0, %v1764_v24  ;;  %vm1882_vm2 = vcmp.lt.s32.totalorder %v1881_v63, 0  ;;  %v1883_v45 = vsub.s32 0, %v1881_v63 }
 0x1b5   : > { %v1950_v10 = vshrl.u32 %v6033_v40, %v1949_v6  ;;  %v1977_v13 = vsel %vm1967_vm0, %v1974_v30, %v1976_v56  ;;  %v1979_v58 = vsel %vm1969_vm12, %v1965_v47, 1326507024  ;;  %v1984_v39 = vshrl.u32 %v7361_v38, 16 }
 0x1b6   : > { %v1766_v14 = vmul.f32 %v1765_v21, %v7336_v32  ;;  %v1775_v52 = vxor.u32 2147483648, %v1758_v49  ;;  %v1884_v37 = vsel %vm1882_vm2, %v1883_v45, %v1881_v63  ;;  %v1980_v28 = vsel %vm1968_vm14, %v1962_v15, %v1979_v58 }
 0x1b7   : > { %v1885_v50 = vclz %v1884_v37  ;;  %v1903_v36 = vsub.s32 4, %v1879_v18  ;;  %v1981_v6 = vsel %vm1967_vm0, %v1978_v61, %v1980_v28  ;;  %v2008_v8 = vshrl.u32 %v1977_v13, 16 }
 0x1b8   : > { %v1772_v54 = vxor.u32 2147483648, %v1766_v14  ;;  %v1776_v0 = vsel %vm1774_vm9, %v1775_v52, %v1766_v14  ;;  %v1985_v2 = vand.u32 65535, %v1981_v6  ;;  %v1986_v9 = vshrl.u32 %v1981_v6, 16 }
 0x1b9   : > { %v1873_v32 = vadd.s32 %v7319_v29, %v7317_v22  ;;  %v5606_v41 = vadd.s32 4294967294, %v1885_v50  ;;  %v1970_v62 = vsel %vm1966_vm11, %v1950_v10, %v1953_v7  ;;  %v5611_v19 = vadd.s32 4294967169, %v2093_v33 }
 0x1ba   : > { %v1773_v53 = vsel %vm1771_vm10, %v1758_v49, %v1772_v54  ;;  %v1971_v59 = vsel %vm1969_vm12, %v1959_v60, 2102212464  ;;  %v1988_v15 = vmul.u32 %v1986_v9, %v1983_v16  ;;  %v2007_v25 = vand.u32 65535, %v1977_v13 }
 0x1bb   : > { %v1777_v3 = vsel %vm1770_vm13, %v1773_v53, %v1776_v0  ;;  %vm5607_vm4 = vcmp.lt.s32.totalorder %v5606_v41, 0  ;;  %v1904_v22 = vsel %vm1781_vm1, %v1903_v36, %v1879_v18  ;;  %v1989_v29 = vmul.u32 %v1985_v2, %v1984_v39 }
 0x1bc   : > { %v1778_v7 = vsel %vm1767_vm15, nan, %v1777_v3  ;;  %v1888_v34 = vsel %vm5607_vm4, 0, %v5606_v41  ;;  %v1987_v47 = vmul.u32 %v1985_v2, %v1983_v16  ;;  %v2010_v12 = vmul.u32 %v2008_v8, %v1983_v16 }
 0x1bd   : > { %v1889_v23 = vsub.s32 32, %v1888_v34  ;;  %v1890_v24 = vshll.u32 %v1881_v63, %v1888_v34  ;;  %v1893_v30 = vsub.s32 4294967266, %v1888_v34  ;;  %v1991_v60 = vshll.u32 %v1988_v15, 16  ;;  %2872 = vst [vmem:[%s6516_s25 + $0x40] sm:$0xff] %v1778_v7 }
 0x1be   : > { %v1906_v35 = vsel %vm7382_vm3, 0, %v1904_v22  ;;  %v1972_v56 = vsel %vm1968_vm14, %v7354_v51, %v1971_v59  ;;  %v1990_v18 = vmul.u32 %v1986_v9, %v1984_v39  ;;  %v2011_v61 = vmul.u32 %v2007_v25, %v1984_v39  ;;  %v325_v9 = vld [vmem:[#allocation7 + $0x60] sm:$0xff] }
 0x1bf   : > { %v1891_v33 = vshrl.u32 %v1873_v32, %v1889_v23  ;;  %v1894_v20 = vadd.s32 127, %v1893_v30  ;;  %v1993_v49 = vshll.u32 %v1989_v29, 16  ;;  %v2009_v21 = vmul.u32 %v2007_v25, %v1983_v16 }
 0x1c0   : > { %vm1995_vm5 = vc.u32 %v1987_v47, %v1991_v60  ;;  %v1997_v45 = vadd.s32 %v1991_v60, %v1987_v47  ;;  %v2013_v10 = vshll.u32 %v2010_v12, 16  ;;  %v2099_v63 = vadd.s32 1, %v5611_v19 }
 0x1c1   : > { %v1892_v13 = vor.u32 %v1891_v33, %v1890_v24  ;;  %v1895_v58 = vshll.u32 %v1894_v20, 23  ;;  %v1996_v14 = vsel %vm1995_vm5, 1, %v6039_v1  ;;  %v2012_v52 = vmul.u32 %v2008_v8, %v1984_v39  ;;  %v326_v8 = vld [vmem:[#allocation7 + $0x68] sm:$0xff]  ;;  %v341_v20 = vld [vmem:[#allocation8 + $0x60] sm:$0xff] }
 0x1c2   : > { %v1992_v37 = vshrl.u32 %v1988_v15, 16  ;;  %v1998_v28 = vadd.s32 %v1996_v14, %v1990_v18  ;;  %vm1999_vm6 = vc.u32 %v1997_v45, %v1993_v49  ;;  %v2015_v50 = vshll.u32 %v2011_v61, 16 }
 0x1c3   : > { %v1896_v51 = vor.u32 4788187, %v1895_v58  ;;  %v1899_v36 = vcvt.s32.f32 %v1892_v13  ;;  %v2000_v6 = vsel %vm1999_vm6, 1, %v6039_v1  ;;  %vm2017_vm7 = vc.u32 %v2009_v21, %v2013_v10 }
 0x1c4   : > { %v1994_v54 = vshrl.u32 %v1989_v29, 16  ;;  %v2002_v16 = vadd.s32 %v2000_v6, %v1998_v28  ;;  %v2018_v0 = vsel %vm2017_vm7, 1, %v6039_v1  ;;  %v2019_v2 = vadd.s32 %v2013_v10, %v2009_v21 }
 0x1c5   : > { %v1897_v32 = vand.u32 2147483647, %v1896_v51  ;;  %v1973_v41 = vsel %vm1967_vm0, %v1970_v62, %v1972_v56  ;;  %v2020_v39 = vadd.s32 %v2018_v0, %v2012_v52  ;;  %vm2100_vm8 = vcmp.gt.s32.totalorder %v2099_v63, 0 }
 0x1c6   : > { %v2003_v19 = vadd.s32 %v2002_v16, %v1992_v37  ;;  %v2014_v53 = vshrl.u32 %v2010_v12, 16  ;;  %vm2021_vm9 = vc.u32 %v2019_v2, %v2015_v50  ;;  %v2101_v59 = vsel %vm2100_vm8, %v2099_v63, 0 }
 0x1c7   : > { %v1900_v15 = vmul.f32 %v1899_v36, %v1897_v32  ;;  %v2022_v25 = vsel %vm2021_vm9, 1, %v6039_v1  ;;  %v7425_v3 = vadd.s32 %v2019_v2, %v2015_v50  ;;  %v2103_v22 = vand.u32 31, %v2101_v59 }
 0x1c8   : > { %v364_v29 = vmul.f32 %v6190_v4, %v325_v9  ;;  %v7428_v7 = vadd.s32 %v2003_v19, %v1994_v54  ;;  %v2016_v34 = vshrl.u32 %v2011_v61, 16  ;;  %v2024_v17 = vadd.s32 %v2022_v25, %v2020_v39 }
 0x1c9   : > { %v7431_v62 = vmul.f32 %v6192_v5, %v326_v8  ;;  %v1901_v47 = vxor.u32 2147483648, %v1900_v15  ;;  %v2096_v12 = vand.u32 8388607, %v2089_v27  ;;  %v7435_v23 = vsub.s32 32, %v2103_v22 }
 0x1ca   : > { %v1923_v24 = vadd.s32 3, %v1906_v35  ;;  %v2025_v30 = vadd.s32 %v2024_v17, %v2014_v53  ;;  %v2027_v60 = vmul.u32 %v7361_v38, %v1973_v41  ;;  %v7438_v56 = vshrl.u32 %v2101_v59, 5 }
 0x1cb   : > { %v1902_v18 = vsel %vm1781_vm1, %v1901_v47, %v1900_v15  ;;  %vm2029_vm10 = vc.u32 %v7428_v7, %v7425_v3  ;;  %v2106_v61 = vshll.u32 %v6033_v40, %v2103_v22  ;;  %v2109_v33 = vshll.u32 %v6034_v42, %v2103_v22 }
 0x1cc   : > { %v1905_v35 = vsel %vm7382_vm3, %v7120_v26, %v1902_v18  ;;  %v2026_v49 = vadd.s32 %v2025_v30, %v2016_v34  ;;  %v2110_v38 = vshrl.u32 %v6035_v44, %v7435_v23  ;;  %v2115_v21 = vshll.u32 %v6036_v46, %v2103_v22 }
 0x1cd   : > { %v1907_v45 = vmul.f32 %v1905_v35, %v1905_v35  ;;  %v2112_v10 = vshll.u32 %v6035_v44, %v2103_v22  ;;  %v2113_v63 = vshrl.u32 %v6036_v46, %v7435_v23  ;;  %v2116_v13 = vshrl.u32 %v6037_v48, %v7435_v23 }
 0x1ce   : > { %v2030_v58 = vadd.s32 1, %v2026_v49  ;;  %v2107_v11 = vshrl.u32 %v6034_v42, %v7435_v23  ;;  %v2118_v14 = vshll.u32 %v6037_v48, %v2103_v22  ;;  %v2119_v52 = vshrl.u32 %v6038_v57, %v7435_v23 }
 0x1cf   : > { %v7462_v37 = vadd.f32 %v364_v29, %v341_v20  ;;  %v1908_v28 = vmul.f32 -0.001358992, %v1907_v45  ;;  %v1915_v50 = vmul.f32 -0.00019511016, %v1907_v45  ;;  %v2097_v51 = vor.u32 8388608, %v2096_v12 }
 0x1d0   : > { %v2031_v36 = vsel %vm2029_vm10, %v2030_v58, %v2026_v49  ;;  %v7467_v6 = vor.u32 %v2110_v38, %v2109_v33  ;;  %v2117_v54 = vor.u32 %v2116_v13, %v2115_v21  ;;  %v2120_v16 = vor.u32 %v2119_v52, %v2118_v14 }
 0x1d1   : > { %v1909_v0 = vadd.f32 0.041655596, %v1908_v28  ;;  %v1916_v2 = vadd.f32 0.008332121, %v1915_v50  ;;  %v2032_v9 = vadd.s32 %v2031_v36, %v2027_v60  ;;  %v2114_v32 = vor.u32 %v2113_v63, %v2112_v10 }
 0x1d2   : > { %v1924_v41 = vand.u32 3, %v1923_v24  ;;  %v2108_v39 = vor.u32 %v2107_v11, %v2106_v61  ;;  %vm2121_vm11 = vcmp.lt.s32.totalorder %v7438_v56, 1  ;;  %vm2124_vm12 = vcmp.lt.s32.totalorder %v7438_v56, 4 }
 0x1d3   : > { %v1910_v8 = vmul.f32 %v1909_v0, %v1907_v45  ;;  %v1917_v19 = vmul.f32 %v1916_v2, %v1907_v45  ;;  %v2033_v53 = vadd.s32 536870912, %v2032_v9  ;;  %vm2123_vm13 = vcmp.lt.s32.totalorder %v7438_v56, 3 }
 0x1d4   : > { %vm2122_vm14 = vcmp.lt.s32.totalorder %v7438_v56, 2  ;;  %v2130_v59 = vsel %vm2124_vm12, %v2117_v54, 920167782  ;;  %v2134_v15 = vsel %vm2124_vm12, %v2120_v16, 1326507024  ;;  %v7477_v25 = vshll.u32 %v2097_v51, 8 }
 0x1d5   : > { %v1911_v22 = vadd.f32 -0.4999988, %v1910_v8  ;;  %v1918_v29 = vadd.f32 -0.16666654, %v1917_v19  ;;  %v7479_v34 = vshrl.u32 %v2033_v53, 30  ;;  %v2133_v17 = vsel %vm2121_vm11, %v7467_v6, %v2114_v32 }
 0x1d6   : > { %vm1922_vm15 = vweird.f32 %v7120_v26  ;;  %vm1925_vm0 = vcmp.lt.s32.totalorder %v1924_v41, 2  ;;  %v2129_v47 = vsel %vm2121_vm11, %v2108_v39, %v7467_v6  ;;  %v2135_v12 = vsel %vm2123_vm13, %v2117_v54, %v2134_v15 }
 0x1d7   : > { %v1912_v24 = vmul.f32 %v1911_v22, %v1907_v45  ;;  %v1919_v30 = vmul.f32 %v1918_v29, %v1907_v45  ;;  %v2035_v60 = vshll.u32 %v7479_v34, 30  ;;  %v2131_v18 = vsel %vm2123_vm13, %v2114_v32, %v2130_v59 }
 0x1d8   : > { %vm1926_vm1 = vcmp.eq.s32.totalorder %v1924_v41, 0  ;;  %v2136_v61 = vsel %vm2122_vm14, %v2133_v17, %v2135_v12  ;;  %v2138_v33 = vand.u32 65535, %v7477_v25  ;;  %v2139_v20 = vshrl.u32 %v7477_v25, 16 }
 0x1d9   : > { %v1913_v49 = vadd.f32 1.0, %v1912_v24  ;;  %v1920_v38 = vadd.f32 1.0, %v1919_v30  ;;  %vm1929_vm2 = vcmp.eq.s32.totalorder %v1924_v41, 2  ;;  %v2036_v21 = vsub.s32 %v2032_v9, %v2035_v60 }
 0x1da   : > { %v2105_v45 = vshrl.u32 %v6033_v40, %v7435_v23  ;;  %v2132_v10 = vsel %vm2122_vm14, %v2129_v47, %v2131_v18  ;;  %v2140_v63 = vand.u32 65535, %v2136_v61  ;;  %v2141_v13 = vshrl.u32 %v2136_v61, 16 }
 0x1db   : > { %v1921_v58 = vmul.f32 %v1920_v38, %v1905_v35  ;;  %v1930_v11 = vxor.u32 2147483648, %v1913_v49  ;;  %vm2037_vm3 = vcmp.lt.s32.totalorder %v2036_v21, 0  ;;  %v2038_v14 = vsub.s32 0, %v2036_v21 }
 0x1dc   : > { %v2028_v52 = vadd.s32 %v7425_v3, %v7428_v7  ;;  %v2142_v28 = vmul.u32 %v2140_v63, %v2138_v33  ;;  %v2143_v50 = vmul.u32 %v2141_v13, %v2138_v33  ;;  %v7503_v51 = vmul.u32 %v2140_v63, %v2139_v20 }
 0x1dd   : > { %v1927_v36 = vxor.u32 2147483648, %v1921_v58  ;;  %v1931_v54 = vsel %vm1929_vm2, %v1930_v11, %v1921_v58  ;;  %v2039_v16 = vsel %vm2037_vm3, %v2038_v14, %v2036_v21  ;;  %v2163_v23 = vshrl.u32 %v2132_v10, 16 }
 0x1de   : > { %v2040_v0 = vclz %v2039_v16  ;;  %v2145_v2 = vmul.u32 %v2141_v13, %v2139_v20  ;;  %v2146_v9 = vshll.u32 %v2143_v50, 16  ;;  %v2148_v8 = vshll.u32 %v7503_v51, 16 }
 0x1df   : > { %v1928_v35 = vsel %vm1926_vm1, %v1913_v49, %v1927_v36  ;;  %v2125_v19 = vsel %vm2121_vm11, %v2105_v45, %v2108_v39  ;;  %v2126_v3 = vsel %vm2124_vm12, %v2114_v32, 2102212464  ;;  %v2162_v7 = vand.u32 65535, %v2132_v10 }
 0x1e0   : > { %v1932_v53 = vsel %vm1925_vm0, %v1928_v35, %v1931_v54  ;;  %v5609_v59 = vadd.s32 4294967294, %v2040_v0  ;;  %vm2150_vm4 = vc.u32 %v2142_v28, %v2146_v9  ;;  %v2152_v15 = vadd.s32 %v2146_v9, %v2142_v28 }
 0x1e1   : > { %v1933_v22 = vsel %vm1922_vm15, nan, %v1932_v53  ;;  %vm1936_vm5 = vcmp.lt.s32.totalorder %v7258_v43, 0  ;;  %v2151_v29 = vsel %vm2150_vm4, 1, %v6039_v1  ;;  %v2165_v17 = vmul.u32 %v2163_v23, %v2138_v33 }
 0x1e2   : > { %v2244_v39 = vand.u32 2147483647, %v7462_v37  ;;  %vm5610_vm6 = vcmp.lt.s32.totalorder %v5609_v59, 0  ;;  %v2147_v47 = vshrl.u32 %v2143_v50, 16  ;;  %v2153_v12 = vadd.s32 %v2151_v29, %v2145_v2  ;;  %2873 = vst [vmem:[%s6516_s25 + $0x48] sm:$0xff] %v1933_v22  ;;  %v342_v29 = vld [vmem:[#allocation8 + $0x68] sm:$0xff] }
 0x1e3   : > { %vm2154_vm7 = vc.u32 %v2152_v15, %v2148_v8  ;;  %v2043_v32 = vsel %vm5610_vm6, 0, %v5609_v59  ;;  %v2164_v24 = vmul.u32 %v2162_v7, %v2138_v33  ;;  %v2166_v30 = vmul.u32 %v2162_v7, %v2139_v20 }
 0x1e4   : > { %v2155_v41 = vsel %vm2154_vm7, 1, %v6039_v1  ;;  %v2044_v60 = vsub.s32 32, %v2043_v32  ;;  %v2045_v26 = vshll.u32 %v2036_v21, %v2043_v32  ;;  %v2048_v18 = vsub.s32 4294967266, %v2043_v32 }
 0x1e5   : > { %v2157_v61 = vadd.s32 %v2155_v41, %v2153_v12  ;;  %v2127_v49 = vsel %vm2123_vm13, %v7467_v6, %v2126_v3  ;;  %v2167_v38 = vmul.u32 %v2163_v23, %v2139_v20  ;;  %v2168_v45 = vshll.u32 %v2165_v17, 16 }
 0x1e6   : > { %v2247_v10 = vand.u32 2139095040, %v7462_v37  ;;  %v2046_v63 = vshrl.u32 %v2028_v52, %v2044_v60  ;;  %v2049_v13 = vadd.s32 127, %v2048_v18  ;;  %v2058_v58 = vsub.s32 4, %v7479_v34 }
 0x1e7   : > { %v2251_v33 = vand.u32 8388607, %v2244_v39  ;;  %v2149_v11 = vshrl.u32 %v7503_v51, 16  ;;  %v2170_v21 = vshll.u32 %v2166_v30, 16  ;;  %vm2172_vm8 = vc.u32 %v2164_v24, %v2168_v45 }
 0x1e8   : > { %v2174_v14 = vadd.s32 %v2168_v45, %v2164_v24  ;;  %v2047_v28 = vor.u32 %v2046_v63, %v2045_v26  ;;  %v2050_v50 = vshll.u32 %v2049_v13, 23  ;;  %v2158_v36 = vadd.s32 %v2157_v61, %v2147_v47 }
 0x1e9   : > { %v2173_v6 = vsel %vm2172_vm8, 1, %v6039_v1  ;;  %v2169_v20 = vshrl.u32 %v2165_v17, 16  ;;  %v2248_v52 = vshrl.u32 %v2247_v10, 23  ;;  %v2059_v0 = vsel %vm1936_vm5, %v2058_v58, %v7479_v34 }
 0x1ea   : > { %v2175_v54 = vadd.s32 %v2173_v6, %v2167_v38  ;;  %vm2176_vm9 = vc.u32 %v2174_v14, %v2170_v21  ;;  %v2051_v16 = vor.u32 4788187, %v2050_v50  ;;  %v2054_v23 = vcvt.s32.f32 %v2047_v28 }
 0x1eb   : > { %v2177_v51 = vsel %vm2176_vm9, 1, %v6039_v1  ;;  %vm7534_vm10 = vcmp.le.f32.partialorder %v1934_v31, 0.7853982  ;;  %v2171_v9 = vshrl.u32 %v2166_v30, 16  ;;  %v5614_v35 = vadd.s32 4294967169, %v2248_v52 }
 0x1ec   : > { %v2179_v8 = vadd.s32 %v2177_v51, %v2175_v54  ;;  %v2052_v3 = vand.u32 2147483647, %v2051_v16  ;;  %v2128_v7 = vsel %vm2122_vm14, %v2125_v19, %v2127_v49  ;;  %v7540_v53 = vadd.s32 %v2158_v36, %v2149_v11 }
 0x1ed   : > { %v7542_v59 = vadd.s32 %v2174_v14, %v2170_v21  ;;  %v2061_v34 = vsel %vm7534_vm10, 0, %v2059_v0  ;;  %v2252_v22 = vor.u32 8388608, %v2251_v33  ;;  %v2254_v31 = vadd.s32 1, %v5614_v35 }
 0x1ee   : > { %v2180_v15 = vadd.s32 %v2179_v8, %v2169_v20  ;;  %v2055_v17 = vmul.f32 %v2054_v23, %v2052_v3  ;;  %v2182_v12 = vmul.u32 %v7477_v25, %v2128_v7  ;;  %v2078_v41 = vadd.s32 3, %v2061_v34 }
 0x1ef   : > { %vm2255_vm11 = vcmp.gt.s32.totalorder %v2254_v31, 0  ;;  %vm2184_vm12 = vc.u32 %v7540_v53, %v7542_v59  ;;  %v7550_v19 = vadd.f32 %v7431_v62, %v342_v29  ;;  %v7552_v60 = vshll.u32 %v2252_v22, 8 }
 0x1f0   : > { %v2181_v47 = vadd.s32 %v2180_v15, %v2171_v9  ;;  %v2056_v32 = vxor.u32 2147483648, %v2055_v17  ;;  %v2256_v56 = vsel %vm2255_vm11, %v2254_v31, 0  ;;  %v7565_v62 = vand.u32 3, %v2078_v41 }
 0x1f1   : > { %v2258_v30 = vand.u32 31, %v2256_v56  ;;  %v7567_v45 = vshrl.u32 %v2256_v56, 5  ;;  %v7570_v10 = vand.u32 65535, %v7552_v60  ;;  %v2399_v63 = vand.u32 2147483647, %v7550_v19 }
 0x1f2   : > { %v2185_v24 = vadd.s32 1, %v2181_v47  ;;  %v2057_v26 = vsel %vm1936_vm5, %v2056_v32, %v2055_v17  ;;  %v2402_v13 = vand.u32 2139095040, %v7550_v19  ;;  %vm2084_vm13 = vcmp.eq.s32.totalorder %v7565_v62, 2 }
 0x1f3   : > { %v7559_v25 = vsel %vm7534_vm10, %v7258_v43, %v2057_v26  ;;  %v7561_v61 = vsub.s32 32, %v2258_v30  ;;  %v2264_v21 = vshll.u32 %v6034_v42, %v2258_v30  ;;  %v2267_v28 = vshll.u32 %v6035_v44, %v2258_v30 }
 0x1f4   : > { %v2186_v18 = vsel %vm2184_vm12, %v2185_v24, %v2181_v47  ;;  %v2062_v49 = vmul.f32 %v7559_v25, %v7559_v25  ;;  %v2270_v36 = vshll.u32 %v6036_v46, %v2258_v30  ;;  %v2261_v16 = vshll.u32 %v6033_v40, %v2258_v30 }
 0x1f5   : > { %v2187_v38 = vadd.s32 %v2186_v18, %v2182_v12  ;;  %v2265_v14 = vshrl.u32 %v6035_v44, %v7561_v61  ;;  %v2268_v50 = vshrl.u32 %v6036_v46, %v7561_v61  ;;  %v2271_v52 = vshrl.u32 %v6037_v48, %v7561_v61 }
 0x1f6   : > { %v2063_v58 = vmul.f32 -0.001358992, %v2062_v49  ;;  %v2070_v33 = vmul.f32 -0.00019511016, %v2062_v49  ;;  %v2262_v23 = vshrl.u32 %v6034_v42, %v7561_v61  ;;  %v2273_v0 = vshll.u32 %v6037_v48, %v2258_v30 }
 0x1f7   : > { %v2188_v11 = vadd.s32 536870912, %v2187_v38  ;;  %v2274_v51 = vshrl.u32 %v6038_v57, %v7561_v61  ;;  %v2403_v35 = vshrl.u32 %v2402_v13, 23  ;;  %vm2081_vm14 = vcmp.eq.s32.totalorder %v7565_v62, 0 }
 0x1f8   : > { %v2064_v6 = vadd.f32 0.041655596, %v2063_v58  ;;  %v2071_v20 = vadd.f32 0.008332121, %v2070_v33  ;;  %v7591_v3 = vor.u32 %v2265_v14, %v2264_v21  ;;  %v7593_v7 = vor.u32 %v2268_v50, %v2267_v28 }
 0x1f9   : > { %v2189_v54 = vshrl.u32 %v2188_v11, 30  ;;  %v2272_v34 = vor.u32 %v2271_v52, %v2270_v36  ;;  %v2275_v15 = vor.u32 %v2274_v51, %v2273_v0  ;;  %vm2080_vm15 = vcmp.lt.s32.totalorder %v7565_v62, 2 }
 0x1fa   : > { %v2065_v2 = vmul.f32 %v2064_v6, %v2062_v49  ;;  %v2072_v9 = vmul.f32 %v2071_v20, %v2062_v49  ;;  %vm2091_vm0 = vcmp.lt.s32.totalorder %v7331_v55, 0  ;;  %vm2276_vm1 = vcmp.lt.s32.totalorder %v7567_v45, 1 }
 0x1fb   : > { %v2190_v8 = vshll.u32 %v2189_v54, 30  ;;  %vm2077_vm2 = vweird.f32 %v7258_v43  ;;  %v7599_v17 = vor.u32 %v2262_v23, %v2261_v16  ;;  %vm2278_vm3 = vcmp.lt.s32.totalorder %v7567_v45, 3 }
 0x1fc   : > { %v2066_v22 = vadd.f32 -0.4999988, %v2065_v2  ;;  %v2073_v31 = vadd.f32 -0.16666654, %v2072_v9  ;;  %vm2279_vm4 = vcmp.lt.s32.totalorder %v7567_v45, 4  ;;  %v7604_v47 = vshrl.u32 %v7552_v60, 16 }
 0x1fd   : > { %v2191_v29 = vsub.s32 %v2187_v38, %v2190_v8  ;;  %vm2277_vm6 = vcmp.lt.s32.totalorder %v7567_v45, 2  ;;  %v2285_v56 = vsel %vm2279_vm4, %v2272_v34, 920167782  ;;  %v2288_v24 = vsel %vm2276_vm1, %v7591_v3, %v7593_v7 }
 0x1fe   : > { %v2067_v12 = vmul.f32 %v2066_v22, %v2062_v49  ;;  %v2074_v32 = vmul.f32 %v2073_v31, %v2062_v49  ;;  %v2289_v30 = vsel %vm2279_vm4, %v2275_v15, 1326507024  ;;  %v5617_v13 = vadd.s32 4294967169, %v2403_v35 }
 0x1ff   : > { %vm2192_vm5 = vcmp.lt.s32.totalorder %v2191_v29, 0  ;;  %v2193_v41 = vsub.s32 0, %v2191_v29  ;;  %vm7617_vm7 = vcmp.le.f32.partialorder %v2089_v27, 0.7853982  ;;  %v2213_v33 = vsub.s32 4, %v2189_v54 }
 0x200   : > { %v2068_v26 = vadd.f32 1.0, %v2067_v12  ;;  %v2075_v18 = vadd.f32 1.0, %v2074_v32  ;;  %v2284_v11 = vsel %vm2276_vm1, %v7599_v17, %v7591_v3  ;;  %v2290_v21 = vsel %vm2278_vm3, %v2272_v34, %v2289_v30 }
 0x201   : > { %v2194_v38 = vsel %vm2192_vm5, %v2193_v41, %v2191_v29  ;;  %v2286_v27 = vsel %vm2278_vm3, %v7593_v7, %v2285_v56  ;;  %v2291_v50 = vsel %vm2277_vm6, %v2288_v24, %v2290_v21  ;;  %v2183_v36 = vadd.s32 %v7542_v59, %v7540_v53 }
 0x202   : > { %v2195_v58 = vclz %v2194_v38  ;;  %v2076_v14 = vmul.f32 %v2075_v18, %v7559_v25  ;;  %v2085_v28 = vxor.u32 2147483648, %v2068_v26  ;;  %v2295_v20 = vand.u32 65535, %v2291_v50 }
 0x203   : > { %v2296_v52 = vshrl.u32 %v2291_v50, 16  ;;  %v7639_v25 = vand.u32 8388607, %v2399_v63  ;;  %v2409_v0 = vadd.s32 1, %v5617_v13  ;;  %v2214_v51 = vsel %vm2091_vm0, %v2213_v33, %v2189_v54 }
 0x204   : > { %v5612_v6 = vadd.s32 4294967294, %v2195_v58  ;;  %v2082_v16 = vxor.u32 2147483648, %v2076_v14  ;;  %v2086_v23 = vsel %vm2084_vm13, %v2085_v28, %v2076_v14  ;;  %v2287_v2 = vsel %vm2277_vm6, %v2284_v11, %v2286_v27 }
 0x205   : > { %v2298_v53 = vmul.u32 %v2296_v52, %v7570_v10  ;;  %v2297_v8 = vmul.u32 %v2295_v20, %v7570_v10  ;;  %v2299_v35 = vmul.u32 %v2295_v20, %v7604_v47  ;;  %v2260_v12 = vshrl.u32 %v6033_v40, %v7561_v61  ;;  %v327_v20 = vld [vmem:[#allocation7 + $0x70] sm:$0xff] }
 0x206   : > { %vm5613_vm8 = vcmp.lt.s32.totalorder %v5612_v6, 0  ;;  %v2083_v59 = vsel %vm2081_vm14, %v2068_v26, %v2082_v16  ;;  %v2317_v32 = vand.u32 65535, %v2287_v2  ;;  %v2318_v41 = vshrl.u32 %v2287_v2, 16 }
 0x207   : > { %v2198_v9 = vsel %vm5613_vm8, 0, %v5612_v6  ;;  %v2087_v34 = vsel %vm2080_vm15, %v2083_v59, %v2086_v23  ;;  %v2300_v30 = vmul.u32 %v2296_v52, %v7604_v47  ;;  %v2301_v26 = vshll.u32 %v2298_v53, 16 }
 0x208   : > { %v2199_v15 = vsub.s32 32, %v2198_v9  ;;  %v2200_v22 = vshll.u32 %v2191_v29, %v2198_v9  ;;  %v2203_v54 = vsub.s32 4294967266, %v2198_v9  ;;  %v2088_v31 = vsel %vm2077_vm2, nan, %v2087_v34 }
 0x209   : > { %2874 = vst [vmem:[%s6516_s25 + $0x50] sm:$0xff] %v2088_v31  ;;  %v2216_v62 = vsel %vm7617_vm7, 0, %v2214_v51  ;;  %v2281_v29 = vsel %vm2279_vm4, %v7593_v7, 2102212464  ;;  %v2302_v43 = vshrl.u32 %v2298_v53, 16  ;;  %v2303_v18 = vshll.u32 %v2299_v35, 16 }
 0x20a   : > { %v2201_v56 = vshrl.u32 %v2183_v36, %v2199_v15  ;;  %v2204_v24 = vadd.s32 127, %v2203_v54  ;;  %vm2305_vm9 = vc.u32 %v2297_v8, %v2301_v26  ;;  %v2307_v61 = vadd.s32 %v2301_v26, %v2297_v8 }
 0x20b   : > { %v2306_v58 = vsel %vm2305_vm9, 1, %v6039_v1  ;;  %v2319_v33 = vmul.u32 %v2317_v32, %v7570_v10  ;;  %v2320_v11 = vmul.u32 %v2318_v41, %v7570_v10  ;;  %v2321_v21 = vmul.u32 %v2317_v32, %v7604_v47 }
 0x20c   : > { %v2202_v38 = vor.u32 %v2201_v56, %v2200_v22  ;;  %v2205_v13 = vshll.u32 %v2204_v24, 23  ;;  %v2308_v27 = vadd.s32 %v2306_v58, %v2300_v30  ;;  %vm2309_vm10 = vc.u32 %v2307_v61, %v2303_v18 }
 0x20d   : > { %v2310_v7 = vsel %vm2309_vm10, 1, %v6039_v1  ;;  %v2322_v50 = vmul.u32 %v2318_v41, %v7604_v47  ;;  %v2323_v36 = vshll.u32 %v2320_v11, 16  ;;  %v2325_v6 = vshll.u32 %v2321_v21, 16 }
 0x20e   : > { %v2206_v14 = vor.u32 4788187, %v2205_v13  ;;  %v2209_v28 = vcvt.s32.f32 %v2202_v38  ;;  %v2280_v16 = vsel %vm2276_vm1, %v2260_v12, %v7599_v17  ;;  %v2282_v10 = vsel %vm2278_vm3, %v7591_v3, %v2281_v29 }
 0x20f   : > { %v2312_v23 = vadd.s32 %v2310_v7, %v2308_v27  ;;  %v2304_v51 = vshrl.u32 %v2299_v35, 16  ;;  %vm2327_vm11 = vc.u32 %v2319_v33, %v2323_v36  ;;  %v2329_v2 = vadd.s32 %v2323_v36, %v2319_v33 }
 0x210   : > { %v2207_v52 = vand.u32 2147483647, %v2206_v14  ;;  %vm2410_vm12 = vcmp.gt.s32.totalorder %v2409_v0, 0  ;;  %v2328_v47 = vsel %vm2327_vm11, 1, %v6039_v1  ;;  %v7677_v8 = vmul.f32 %v6190_v4, %v327_v20 }
 0x211   : > { %v2313_v59 = vadd.s32 %v2312_v23, %v2302_v43  ;;  %v2411_v9 = vsel %vm2410_vm12, %v2409_v0, 0  ;;  %v2324_v34 = vshrl.u32 %v2320_v11, 16  ;;  %v2330_v15 = vadd.s32 %v2328_v47, %v2322_v50 }
 0x212   : > { %v2210_v53 = vmul.f32 %v2209_v28, %v2207_v52  ;;  %vm2331_vm13 = vc.u32 %v2329_v2, %v2325_v6  ;;  %v2407_v3 = vor.u32 8388608, %v7639_v25  ;;  %v2413_v35 = vand.u32 31, %v2411_v9 }
 0x213   : > { %v2332_v22 = vsel %vm2331_vm13, 1, %v6039_v1  ;;  %v2233_v54 = vadd.s32 3, %v2216_v62  ;;  %v2283_v31 = vsel %vm2277_vm6, %v2280_v16, %v2282_v10  ;;  %v2326_v12 = vshrl.u32 %v2321_v21, 16 }
 0x214   : > { %v2211_v17 = vxor.u32 2147483648, %v2210_v53  ;;  %v2334_v32 = vadd.s32 %v2332_v22, %v2330_v15  ;;  %v7685_v4 = vadd.s32 %v2313_v59, %v2304_v51  ;;  %v7687_v41 = vadd.s32 %v2329_v2, %v2325_v6  ;;  %v328_v2 = vld [vmem:[#allocation7 + $0x78] sm:$0xff] }
 0x215   : > { %v7689_v56 = vsub.s32 32, %v2413_v35  ;;  %v7694_v30 = vshrl.u32 %v2411_v9, 5  ;;  %v2416_v45 = vshll.u32 %v6033_v40, %v2413_v35  ;;  %v2419_v29 = vshll.u32 %v6034_v42, %v2413_v35 }
 0x216   : > { %v2212_v0 = vsel %vm2091_vm0, %v2211_v17, %v2210_v53  ;;  %v2335_v24 = vadd.s32 %v2334_v32, %v2324_v34  ;;  %v2422_v38 = vshll.u32 %v6035_v44, %v2413_v35  ;;  %v2425_v13 = vshll.u32 %v6036_v46, %v2413_v35  ;;  %v343_v34 = vld [vmem:[#allocation8 + $0x70] sm:$0xff] }
 0x217   : > { %v2215_v25 = vsel %vm7617_vm7, %v7331_v55, %v2212_v0  ;;  %v2417_v62 = vshrl.u32 %v6034_v42, %v7689_v56  ;;  %v2420_v43 = vshrl.u32 %v6035_v44, %v7689_v56  ;;  %v2423_v49 = vshrl.u32 %v6036_v46, %v7689_v56 }
 0x218   : > { %v2217_v26 = vmul.f32 %v2215_v25, %v2215_v25  ;;  %v2336_v18 = vadd.s32 %v2335_v24, %v2326_v12  ;;  %v2337_v33 = vmul.u32 %v7552_v60, %v2283_v31  ;;  %vm2339_vm14 = vc.u32 %v7685_v4, %v7687_v41 }
 0x219   : > { %v7709_v21 = vor.u32 %v2417_v62, %v2416_v45  ;;  %v2426_v14 = vshrl.u32 %v6037_v48, %v7689_v56  ;;  %v2428_v28 = vshll.u32 %v6037_v48, %v2413_v35  ;;  %v7714_v50 = vor.u32 %v2420_v43, %v2419_v29 }
 0x21a   : > { %v2218_v61 = vmul.f32 -0.001358992, %v2217_v26  ;;  %v2225_v58 = vmul.f32 -0.00019511016, %v2217_v26  ;;  %v2340_v11 = vadd.s32 1, %v2336_v18  ;;  %v2429_v36 = vshrl.u32 %v6038_v57, %v7689_v56 }
 0x21b   : > { %v7718_v60 = vor.u32 %v2423_v49, %v2422_v38  ;;  %v2427_v20 = vor.u32 %v2426_v14, %v2425_v13  ;;  %vm2431_vm15 = vcmp.lt.s32.totalorder %v7694_v30, 1  ;;  %vm2434_vm0 = vcmp.lt.s32.totalorder %v7694_v30, 4 }
 0x21c   : > { %v2219_v27 = vadd.f32 0.041655596, %v2218_v61  ;;  %v2226_v7 = vadd.f32 0.008332121, %v2225_v58  ;;  %v2341_v6 = vsel %vm2339_vm14, %v2340_v11, %v2336_v18  ;;  %v2234_v23 = vand.u32 3, %v2233_v54 }
 0x21d   : > { %v2342_v10 = vadd.s32 %v2341_v6, %v2337_v33  ;;  %v2430_v51 = vor.u32 %v2429_v36, %v2428_v28  ;;  %vm2432_vm1 = vcmp.lt.s32.totalorder %v7694_v30, 2  ;;  %vm2433_vm2 = vcmp.lt.s32.totalorder %v7694_v30, 3  ;;  %v344_v28 = vld [vmem:[#allocation8 + $0x78] sm:$0xff] }
 0x21e   : > { %v2220_v52 = vmul.f32 %v2219_v27, %v2217_v26  ;;  %v2227_v16 = vmul.f32 %v2226_v7, %v2217_v26  ;;  %v2439_v9 = vsel %vm2431_vm15, %v7709_v21, %v7714_v50  ;;  %v2440_v15 = vsel %vm2434_vm0, %v2427_v20, 920167782 }
 0x21f   : > { %v2343_v47 = vadd.s32 536870912, %v2342_v10  ;;  %v2443_v17 = vsel %vm2431_vm15, %v7714_v50, %v7718_v60  ;;  %v2444_v22 = vsel %vm2434_vm0, %v2430_v51, 1326507024  ;;  %v7736_v35 = vshll.u32 %v2407_v3, 8 }
 0x220   : > { %v2221_v53 = vadd.f32 -0.4999988, %v2220_v52  ;;  %v2228_v59 = vadd.f32 -0.16666654, %v2227_v16  ;;  %v2441_v32 = vsel %vm2433_vm2, %v7718_v60, %v2440_v15  ;;  %v367_v0 = vmul.f32 %v6192_v5, %v328_v2 }
 0x221   : > { %v7738_v12 = vshrl.u32 %v2343_v47, 30  ;;  %v2442_v24 = vsel %vm2432_vm1, %v2439_v9, %v2441_v32  ;;  %v2445_v45 = vsel %vm2433_vm2, %v2427_v20, %v2444_v22  ;;  %v7749_v62 = vadd.f32 %v7677_v8, %v343_v34 }
 0x222   : > { %v2222_v54 = vmul.f32 %v2221_v53, %v2217_v26  ;;  %v2229_v31 = vmul.f32 %v2228_v59, %v2217_v26  ;;  %vm2239_vm3 = vcmp.eq.s32.totalorder %v2234_v23, 2  ;;  %v2446_v43 = vsel %vm2432_vm1, %v2443_v17, %v2445_v45 }
 0x223   : > { %v2345_v26 = vshll.u32 %v7738_v12, 30  ;;  %v2448_v18 = vand.u32 65535, %v7736_v35  ;;  %v2449_v5 = vshrl.u32 %v7736_v35, 16  ;;  %v2473_v61 = vshrl.u32 %v2442_v24, 16 }
 0x224   : > { %v2223_v3 = vadd.f32 1.0, %v2222_v54  ;;  %v2230_v29 = vadd.f32 1.0, %v2229_v31  ;;  %vm2235_vm4 = vcmp.lt.s32.totalorder %v2234_v23, 2  ;;  %vm2236_vm5 = vcmp.eq.s32.totalorder %v2234_v23, 0 }
 0x225   : > { %v2346_v13 = vsub.s32 %v2342_v10, %v2345_v26  ;;  %v2450_v8 = vand.u32 65535, %v2446_v43  ;;  %v2451_v58 = vshrl.u32 %v2446_v43, 16  ;;  %vm2232_vm7 = vweird.f32 %v7331_v55 }
 0x226   : > { %v2231_v38 = vmul.f32 %v2230_v29, %v2215_v25  ;;  %v2240_v49 = vxor.u32 2147483648, %v2223_v3  ;;  %v2472_v20 = vand.u32 65535, %v2442_v24  ;;  %v7759_v52 = vmul.u32 %v2473_v61, %v2448_v18 }
 0x227   : > { %vm2347_vm6 = vcmp.lt.s32.totalorder %v2346_v13, 0  ;;  %v2348_v14 = vsub.s32 0, %v2346_v13  ;;  %v2452_v27 = vmul.u32 %v2450_v8, %v2448_v18  ;;  %v2453_v7 = vmul.u32 %v2451_v58, %v2448_v18 }
 0x228   : > { %v2237_v33 = vxor.u32 2147483648, %v2231_v38  ;;  %v2241_v11 = vsel %vm2239_vm3, %v2240_v49, %v2231_v38  ;;  %v7757_v36 = vmul.u32 %v2450_v8, %v2449_v5  ;;  %v2455_v51 = vmul.u32 %v2451_v58, %v2449_v5 }
 0x229   : > { %v2349_v25 = vsel %vm2347_vm6, %v2348_v14, %v2346_v13  ;;  %v2456_v2 = vshll.u32 %v2453_v7, 16  ;;  %v7762_v53 = vadd.f32 %v367_v0, %v344_v28  ;;  %v2338_v55 = vadd.s32 %v7687_v41, %v7685_v4 }
 0x22a   : > { %v2238_v6 = vsel %vm2236_vm5, %v2223_v3, %v2237_v33  ;;  %v2350_v10 = vclz %v2349_v25  ;;  %v2458_v47 = vshll.u32 %v7757_v36, 16  ;;  %v2415_v34 = vshrl.u32 %v6033_v40, %v7689_v56 }
 0x22b   : > { %v2242_v16 = vsel %vm2235_vm4, %v2238_v6, %v2241_v11  ;;  %vm2460_vm8 = vc.u32 %v2452_v27, %v2456_v2  ;;  %v2462_v15 = vadd.s32 %v2456_v2, %v2452_v27  ;;  %v2474_v17 = vmul.u32 %v2472_v20, %v2448_v18 }
 0x22c   : > { %v2243_v59 = vsel %vm2232_vm7, nan, %v2242_v16  ;;  %v5615_v9 = vadd.s32 4294967294, %v2350_v10  ;;  %v2461_v23 = vsel %vm2460_vm8, 1, %v6039_v1  ;;  %v2476_v22 = vmul.u32 %v2472_v20, %v2449_v5 }
 0x22d   : > { %2875 = vst [vmem:[%s6516_s25 + $0x58] sm:$0xff] %v2243_v59  ;;  %v2478_v54 = vshll.u32 %v7759_v52, 16  ;;  %v2436_v4 = vsel %vm2434_vm0, %v7718_v60, 2102212464  ;;  %v2463_v41 = vadd.s32 %v2461_v23, %v2455_v51  ;;  %vm2464_vm10 = vc.u32 %v2462_v15, %v2458_v47 }
 0x22e   : > { %vm5616_vm9 = vcmp.lt.s32.totalorder %v5615_v9, 0  ;;  %v2457_v32 = vshrl.u32 %v2453_v7, 16  ;;  %v2465_v56 = vsel %vm2464_vm10, 1, %v6039_v1  ;;  %v2477_v0 = vmul.u32 %v2473_v61, %v2449_v5 }
 0x22f   : > { %v2353_v31 = vsel %vm5616_vm9, 0, %v5615_v9  ;;  %v2467_v29 = vadd.s32 %v2465_v56, %v2463_v41  ;;  %vm2246_vm11 = vcmp.lt.s32.totalorder %v7462_v37, 0  ;;  %v2435_v26 = vsel %vm2431_vm15, %v2415_v34, %v7709_v21 }
 0x230   : > { %v2354_v24 = vsub.s32 32, %v2353_v31  ;;  %v2355_v45 = vshll.u32 %v2346_v13, %v2353_v31  ;;  %v2358_v3 = vsub.s32 4294967266, %v2353_v31  ;;  %v2480_v43 = vshll.u32 %v2476_v22, 16 }
 0x231   : > { %vm2482_vm12 = vc.u32 %v2474_v17, %v2478_v54  ;;  %v2368_v38 = vsub.s32 4, %v7738_v12  ;;  %v2437_v5 = vsel %vm2433_vm2, %v7714_v50, %v2436_v4  ;;  %v2484_v13 = vadd.s32 %v2478_v54, %v2474_v17 }
 0x232   : > { %v2356_v60 = vshrl.u32 %v2338_v55, %v2354_v24  ;;  %v2359_v18 = vadd.s32 127, %v2358_v3  ;;  %v2483_v49 = vsel %vm2482_vm12, 1, %v6039_v1  ;;  %v2557_v8 = vand.u32 2139095040, %v7749_v62 }
 0x233   : > { %v2485_v61 = vadd.s32 %v2483_v49, %v2477_v0  ;;  %v2459_v21 = vshrl.u32 %v7757_v36, 16  ;;  %v2468_v11 = vadd.s32 %v2467_v29, %v2457_v32  ;;  %v2479_v14 = vshrl.u32 %v7759_v52, 16 }
 0x234   : > { %v2357_v58 = vor.u32 %v2356_v60, %v2355_v45  ;;  %v2360_v33 = vshll.u32 %v2359_v18, 23  ;;  %vm2486_vm13 = vc.u32 %v2484_v13, %v2480_v43  ;;  %v2554_v28 = vand.u32 2147483647, %v7749_v62 }
 0x235   : > { %v2558_v27 = vshrl.u32 %v2557_v8, 23  ;;  %v2369_v50 = vsel %vm2246_vm11, %v2368_v38, %v7738_v12  ;;  %v2487_v25 = vsel %vm2486_vm13, 1, %v6039_v1  ;;  %vm7795_vm14 = vcmp.le.f32.partialorder %v2244_v39, 0.7853982 }
 0x236   : > { %v2361_v7 = vor.u32 4788187, %v2360_v33  ;;  %v2364_v6 = vcvt.s32.f32 %v2357_v58  ;;  %v2481_v36 = vshrl.u32 %v2476_v22, 16  ;;  %v2489_v52 = vadd.s32 %v2487_v25, %v2485_v61 }
 0x237   : > { %v5620_v16 = vadd.s32 4294967169, %v2558_v27  ;;  %v2438_v51 = vsel %vm2432_vm1, %v2435_v26, %v2437_v5  ;;  %v2469_v2 = vadd.s32 %v2468_v11, %v2459_v21  ;;  %v2488_v59 = vadd.s32 %v2484_v13, %v2480_v43 }
 0x238   : > { %v2362_v10 = vand.u32 2147483647, %v2361_v7  ;;  %v2371_v12 = vsel %vm7795_vm14, 0, %v2369_v50  ;;  %v2490_v55 = vadd.s32 %v2489_v52, %v2479_v14  ;;  %v2561_v47 = vand.u32 8388607, %v2554_v28 }
 0x239   : > { %v2564_v39 = vadd.s32 1, %v5620_v16  ;;  %v2492_v15 = vmul.u32 %v7736_v35, %v2438_v51  ;;  %v2388_v17 = vadd.s32 3, %v2371_v12  ;;  %vm2494_vm0 = vc.u32 %v2469_v2, %v2488_v59 }
 0x23a   : > { %v2365_v9 = vmul.f32 %v2364_v6, %v2362_v10  ;;  %v2491_v34 = vadd.s32 %v2490_v55, %v2481_v36  ;;  %v2562_v54 = vor.u32 8388608, %v2561_v47  ;;  %v2712_v41 = vand.u32 2139095040, %v7762_v53 }
 0x23b   : > { %vm2565_vm15 = vcmp.gt.s32.totalorder %v2564_v39, 0  ;;  %v7818_v24 = vand.u32 3, %v2388_v17  ;;  %v2709_v3 = vand.u32 2147483647, %v7762_v53  ;;  %v7821_v29 = vadd.s32 %v2488_v59, %v2469_v2 }
 0x23c   : > { %v2366_v23 = vxor.u32 2147483648, %v2365_v9  ;;  %v2566_v30 = vsel %vm2565_vm15, %v2564_v39, 0  ;;  %v2495_v22 = vadd.s32 1, %v2491_v34  ;;  %v7825_v43 = vshll.u32 %v2562_v54, 8 }
 0x23d   : > { %v2568_v4 = vand.u32 31, %v2566_v30  ;;  %v7823_v26 = vshrl.u32 %v2566_v30, 5  ;;  %v2713_v60 = vshrl.u32 %v2712_v41, 23  ;;  %vm2394_vm1 = vcmp.eq.s32.totalorder %v7818_v24, 2 }
 0x23e   : > { %v2367_v31 = vsel %vm2246_vm11, %v2366_v23, %v2365_v9  ;;  %v2496_v56 = vsel %vm2494_vm0, %v2495_v22, %v2491_v34  ;;  %v7847_v52 = vand.u32 65535, %v7825_v43  ;;  %vm2391_vm2 = vcmp.eq.s32.totalorder %v7818_v24, 0 }
 0x23f   : > { %v7812_v32 = vsel %vm7795_vm14, %v7462_v37, %v2367_v31  ;;  %v7814_v35 = vsub.s32 32, %v2568_v4  ;;  %v2497_v45 = vadd.s32 %v2496_v56, %v2492_v15  ;;  %v2574_v5 = vshll.u32 %v6034_v42, %v2568_v4 }
 0x240   : > { %v2372_v0 = vmul.f32 %v7812_v32, %v7812_v32  ;;  %v2577_v61 = vshll.u32 %v6035_v44, %v2568_v4  ;;  %v2580_v58 = vshll.u32 %v6036_v46, %v2568_v4  ;;  %v2571_v27 = vshll.u32 %v6033_v40, %v2568_v4 }
 0x241   : > { %v2498_v49 = vadd.s32 536870912, %v2497_v45  ;;  %v2575_v13 = vshrl.u32 %v6035_v44, %v7814_v35  ;;  %v2578_v8 = vshrl.u32 %v6036_v46, %v7814_v35  ;;  %v2581_v14 = vshrl.u32 %v6037_v48, %v7814_v35 }
 0x242   : > { %v2373_v18 = vmul.f32 -0.001358992, %v2372_v0  ;;  %v2380_v38 = vmul.f32 -0.00019511016, %v2372_v0  ;;  %v2572_v7 = vshrl.u32 %v6034_v42, %v7814_v35  ;;  %v2583_v6 = vshll.u32 %v6037_v48, %v2568_v4 }
 0x243   : > { %v7834_v11 = vshrl.u32 %v2498_v49, 30  ;;  %v2584_v50 = vshrl.u32 %v6038_v57, %v7814_v35  ;;  %v7850_v16 = vor.u32 %v2575_v13, %v2574_v5  ;;  %v2579_v10 = vor.u32 %v2578_v8, %v2577_v61 }
 0x244   : > { %v2374_v33 = vadd.f32 0.041655596, %v2373_v18  ;;  %v2381_v21 = vadd.f32 0.008332121, %v2380_v38  ;;  %v2582_v51 = vor.u32 %v2581_v14, %v2580_v58  ;;  %vm2390_vm3 = vcmp.lt.s32.totalorder %v7818_v24, 2 }
 0x245   : > { %v2500_v36 = vshll.u32 %v7834_v11, 30  ;;  %v2585_v2 = vor.u32 %v2584_v50, %v2583_v6  ;;  %vm2586_vm4 = vcmp.lt.s32.totalorder %v7823_v26, 1  ;;  %vm2387_vm5 = vweird.f32 %v7462_v37 }
 0x246   : > { %v2375_v25 = vmul.f32 %v2374_v33, %v2372_v0  ;;  %v2382_v20 = vmul.f32 %v2381_v21, %v2372_v0  ;;  %v2573_v47 = vor.u32 %v2572_v7, %v2571_v27  ;;  %vm2588_vm6 = vcmp.lt.s32.totalorder %v7823_v26, 3 }
 0x247   : > { %v7853_v55 = vsub.s32 %v2497_v45, %v2500_v36  ;;  %vm2589_vm7 = vcmp.lt.s32.totalorder %v7823_v26, 4  ;;  %v5623_v39 = vadd.s32 4294967169, %v2713_v60  ;;  %vm2401_vm9 = vcmp.lt.s32.totalorder %v7550_v19, 0 }
 0x248   : > { %v2376_v59 = vadd.f32 -0.4999988, %v2375_v25  ;;  %v2383_v12 = vadd.f32 -0.16666654, %v2382_v20  ;;  %vm2587_vm10 = vcmp.lt.s32.totalorder %v7823_v26, 2  ;;  %v2598_v17 = vsel %vm2586_vm4, %v7850_v16, %v2579_v10 }
 0x249   : > { %vm2502_vm8 = vcmp.lt.s32.totalorder %v7853_v55, 0  ;;  %v2503_v15 = vsub.s32 0, %v7853_v55  ;;  %v2595_v23 = vsel %vm2589_vm7, %v2582_v51, 920167782  ;;  %v2599_v30 = vsel %vm2589_vm7, %v2585_v2, 1326507024 }
 0x24a   : > { %v2377_v9 = vmul.f32 %v2376_v59, %v2372_v0  ;;  %v2384_v34 = vmul.f32 %v2383_v12, %v2372_v0  ;;  %v2604_v41 = vshrl.u32 %v7825_v43, 16  ;;  %v2594_v56 = vsel %vm2586_vm4, %v2573_v47, %v7850_v16 }
 0x24b   : > { %v2504_v4 = vsel %vm2502_vm8, %v2503_v15, %v7853_v55  ;;  %v2600_v0 = vsel %vm2588_vm6, %v2582_v51, %v2599_v30  ;;  %v7877_v45 = vadd.s32 1, %v5623_v39  ;;  %v2596_v38 = vsel %vm2588_vm6, %v2579_v10, %v2595_v23 }
 0x24c   : > { %v2378_v22 = vadd.f32 1.0, %v2377_v9  ;;  %v2385_v54 = vadd.f32 1.0, %v2384_v34  ;;  %v2505_v31 = vclz %v2504_v4  ;;  %v2601_v49 = vsel %vm2587_vm10, %v2598_v17, %v2600_v0 }
 0x24d   : > { %v2605_v13 = vand.u32 65535, %v2601_v49  ;;  %v2606_v61 = vshrl.u32 %v2601_v49, 16  ;;  %v7886_v8 = vand.u32 8388607, %v2709_v3  ;;  %v2570_v21 = vshrl.u32 %v6033_v40, %v7814_v35 }
 0x24e   : > { %v2386_v60 = vmul.f32 %v2385_v54, %v7812_v32  ;;  %v2395_v18 = vxor.u32 2147483648, %v2378_v22  ;;  %v5618_v5 = vadd.s32 4294967294, %v2505_v31  ;;  %v2523_v32 = vsub.s32 4, %v7834_v11 }
 0x24f   : > { %v2591_v14 = vsel %vm2589_vm7, %v2579_v10, 2102212464  ;;  %v2597_v27 = vsel %vm2587_vm10, %v2594_v56, %v2596_v38  ;;  %v2608_v7 = vmul.u32 %v2606_v61, %v7847_v52  ;;  %vm2720_vm12 = vcmp.gt.s32.totalorder %v7877_v45, 0 }
 0x250   : > { %v2392_v58 = vxor.u32 2147483648, %v2386_v60  ;;  %v2396_v33 = vsel %vm2394_vm1, %v2395_v18, %v2386_v60  ;;  %vm5619_vm11 = vcmp.lt.s32.totalorder %v5618_v5, 0  ;;  %vm7903_vm13 = vcmp.le.f32.partialorder %v2399_v63, 0.7853982 }
 0x251   : > { %v2508_v35 = vsel %vm5619_vm11, 0, %v5618_v5  ;;  %v2607_v25 = vmul.u32 %v2605_v13, %v7847_v52  ;;  %v2609_v20 = vmul.u32 %v2605_v13, %v2604_v41  ;;  %v2524_v63 = vsel %vm2401_vm9, %v2523_v32, %v7834_v11 }
 0x252   : > { %v2393_v6 = vsel %vm2391_vm2, %v2378_v22, %v2392_v58  ;;  %v2509_v10 = vsub.s32 32, %v2508_v35  ;;  %v2510_v51 = vshll.u32 %v7853_v55, %v2508_v35  ;;  %v2513_v2 = vsub.s32 4294967266, %v2508_v35 }
 0x253   : > { %v2397_v36 = vsel %vm2390_vm3, %v2393_v6, %v2396_v33  ;;  %v2627_v12 = vand.u32 65535, %v2597_v27  ;;  %v2628_v39 = vshrl.u32 %v2597_v27, 16  ;;  %v2610_v15 = vmul.u32 %v2606_v61, %v2604_v41 }
 0x254   : > { %v2398_v59 = vsel %vm2387_vm5, nan, %v2397_v36  ;;  %v2511_v9 = vshrl.u32 %v7821_v29, %v2509_v10  ;;  %v2514_v34 = vadd.s32 127, %v2513_v2  ;;  %v2611_v23 = vshll.u32 %v2608_v7, 16 }
 0x255   : > { %2876 = vst [vmem:[%s6516_s25 + $0x60] sm:$0xff] %v2398_v59  ;;  %v2590_v24 = vsel %vm2586_vm4, %v2570_v21, %v2573_v47  ;;  %v2592_v37 = vsel %vm2588_vm6, %v7850_v16, %v2591_v14  ;;  %v2612_v55 = vshrl.u32 %v2608_v7, 16  ;;  %v2613_v17 = vshll.u32 %v2609_v20, 16 }
 0x256   : > { %v2512_v30 = vor.u32 %v2511_v9, %v2510_v51  ;;  %v2515_v22 = vshll.u32 %v2514_v34, 23  ;;  %vm2615_vm14 = vc.u32 %v2607_v25, %v2611_v23  ;;  %v2617_v11 = vadd.s32 %v2611_v23, %v2607_v25 }
 0x257   : > { %v2616_v54 = vsel %vm2615_vm14, 1, %v6039_v1  ;;  %v2629_v29 = vmul.u32 %v2627_v12, %v7847_v52  ;;  %v2630_v4 = vmul.u32 %v2628_v39, %v7847_v52  ;;  %v2631_v31 = vmul.u32 %v2627_v12, %v2604_v41 }
 0x258   : > { %v2516_v56 = vor.u32 4788187, %v2515_v22  ;;  %v2519_v0 = vcvt.s32.f32 %v2512_v30  ;;  %v2618_v47 = vadd.s32 %v2616_v54, %v2610_v15  ;;  %vm2619_vm15 = vc.u32 %v2617_v11, %v2613_v17 }
 0x259   : > { %v2620_v60 = vsel %vm2619_vm15, 1, %v6039_v1  ;;  %v2632_v16 = vmul.u32 %v2628_v39, %v2604_v41  ;;  %v2633_v18 = vshll.u32 %v2630_v4, 16  ;;  %v2635_v38 = vshll.u32 %v2631_v31, 16 }
 0x25a   : > { %v2517_v49 = vand.u32 2147483647, %v2516_v56  ;;  %v2526_v5 = vsel %vm7903_vm13, 0, %v2524_v63  ;;  %v2622_v13 = vadd.s32 %v2620_v60, %v2618_v47  ;;  %v2717_v61 = vor.u32 8388608, %v7886_v8 }
 0x25b   : > { %v2593_v52 = vsel %vm2587_vm10, %v2590_v24, %v2592_v37  ;;  %vm2637_vm0 = vc.u32 %v2629_v29, %v2633_v18  ;;  %v2639_v58 = vadd.s32 %v2633_v18, %v2629_v29  ;;  %v2721_v33 = vsel %vm2720_vm12, %v7877_v45, 0 }
 0x25c   : > { %v2520_v32 = vmul.f32 %v2519_v0, %v2517_v49  ;;  %v2614_v41 = vshrl.u32 %v2609_v20, 16  ;;  %v2623_v21 = vadd.s32 %v2622_v13, %v2612_v55  ;;  %v2638_v14 = vsel %vm2637_vm0, 1, %v6039_v1 }
 0x25d   : > { %v2634_v27 = vshrl.u32 %v2630_v4, 16  ;;  %v2640_v7 = vadd.s32 %v2638_v14, %v2632_v16  ;;  %vm2641_vm1 = vc.u32 %v2639_v58, %v2635_v38  ;;  %v2723_v6 = vand.u32 31, %v2721_v33 }
 0x25e   : > { %v2521_v35 = vxor.u32 2147483648, %v2520_v32  ;;  %v2543_v8 = vadd.s32 3, %v2526_v5  ;;  %v2636_v25 = vshrl.u32 %v2631_v31, 16  ;;  %v2642_v26 = vsel %vm2641_vm1, 1, %v6039_v1 }
 0x25f   : > { %v2644_v36 = vadd.s32 %v2642_v26, %v2640_v7  ;;  %v2647_v10 = vmul.u32 %v7825_v43, %v2593_v52  ;;  %v7938_v51 = vshrl.u32 %v2721_v33, 5  ;;  %v7940_v45 = vsub.s32 32, %v2723_v6 }
 0x260   : > { %v2522_v20 = vsel %vm2401_vm9, %v2521_v35, %v2520_v32  ;;  %v7944_v2 = vadd.s32 %v2623_v21, %v2614_v41  ;;  %v7946_v59 = vadd.s32 %v2639_v58, %v2635_v38  ;;  %v2726_v63 = vshll.u32 %v6033_v40, %v2723_v6 }
 0x261   : > { %v2525_v12 = vsel %vm7903_vm13, %v7550_v19, %v2522_v20  ;;  %v2645_v39 = vadd.s32 %v2644_v36, %v2634_v27  ;;  %v2727_v43 = vshrl.u32 %v6034_v42, %v7940_v45  ;;  %v2729_v9 = vshll.u32 %v6034_v42, %v2723_v6 }
 0x262   : > { %v2527_v34 = vmul.f32 %v2525_v12, %v2525_v12  ;;  %v2730_v15 = vshrl.u32 %v6035_v44, %v7940_v45  ;;  %v2732_v23 = vshll.u32 %v6035_v44, %v2723_v6  ;;  %v2735_v24 = vshll.u32 %v6036_v46, %v2723_v6 }
 0x263   : > { %v2646_v37 = vadd.s32 %v2645_v39, %v2636_v25  ;;  %v2733_v55 = vshrl.u32 %v6036_v46, %v7940_v45  ;;  %v2736_v50 = vshrl.u32 %v6037_v48, %v7940_v45  ;;  %v2738_v17 = vshll.u32 %v6037_v48, %v2723_v6 }
 0x264   : > { %v2528_v30 = vmul.f32 -0.001358992, %v2527_v34  ;;  %v2535_v22 = vmul.f32 -0.00019511016, %v2527_v34  ;;  %vm2649_vm2 = vc.u32 %v7944_v2, %v7946_v59  ;;  %v7966_v11 = vor.u32 %v2727_v43, %v2726_v63 }
 0x265   : > { %v2650_v54 = vadd.s32 1, %v2646_v37  ;;  %v7968_v29 = vor.u32 %v2730_v15, %v2729_v9  ;;  %v2737_v4 = vor.u32 %v2736_v50, %v2735_v24  ;;  %v2739_v31 = vshrl.u32 %v6038_v57, %v7940_v45 }
 0x266   : > { %v2529_v56 = vadd.f32 0.041655596, %v2528_v30  ;;  %v2536_v0 = vadd.f32 0.008332121, %v2535_v22  ;;  %vm2741_vm3 = vcmp.lt.s32.totalorder %v7938_v51, 1  ;;  %vm2744_vm4 = vcmp.lt.s32.totalorder %v7938_v51, 4 }
 0x267   : > { %v2651_v47 = vsel %vm2649_vm2, %v2650_v54, %v2646_v37  ;;  %v7974_v60 = vor.u32 %v2733_v55, %v2732_v23  ;;  %v2740_v16 = vor.u32 %v2739_v31, %v2738_v17  ;;  %v7976_v18 = vshll.u32 %v2717_v61, 8 }
 0x268   : > { %v2530_v38 = vmul.f32 %v2529_v56, %v2527_v34  ;;  %v2537_v49 = vmul.f32 %v2536_v0, %v2527_v34  ;;  %v2652_v5 = vadd.s32 %v2651_v47, %v2647_v10  ;;  %vm2743_vm5 = vcmp.lt.s32.totalorder %v7938_v51, 3 }
 0x269   : > { %vm2742_vm6 = vcmp.lt.s32.totalorder %v7938_v51, 2  ;;  %v2749_v13 = vsel %vm2741_vm3, %v7966_v11, %v7968_v29  ;;  %v2750_v52 = vsel %vm2744_vm4, %v2737_v4, 920167782  ;;  %v2544_v32 = vand.u32 3, %v2543_v8 }
 0x26a   : > { %v2531_v58 = vadd.f32 -0.4999988, %v2530_v38  ;;  %v2538_v33 = vadd.f32 -0.16666654, %v2537_v49  ;;  %v2653_v61 = vadd.s32 536870912, %v2652_v5  ;;  %v2751_v41 = vsel %vm2743_vm5, %v7974_v60, %v2750_v52 }
 0x26b   : > { %v2753_v21 = vsel %vm2741_vm3, %v7968_v29, %v7974_v60  ;;  %v2754_v14 = vsel %vm2744_vm4, %v2740_v16, 1326507024  ;;  %v2758_v27 = vand.u32 65535, %v7976_v18  ;;  %v2752_v8 = vsel %vm2742_vm6, %v2749_v13, %v2751_v41 }
 0x26c   : > { %v2532_v7 = vmul.f32 %v2531_v58, %v2527_v34  ;;  %v2539_v6 = vmul.f32 %v2538_v33, %v2527_v34  ;;  %v7996_v35 = vshrl.u32 %v2653_v61, 30  ;;  %v2755_v25 = vsel %vm2743_vm5, %v2737_v4, %v2754_v14 }
 0x26d   : > { %v2783_v26 = vshrl.u32 %v2752_v8, 16  ;;  %vm2542_vm7 = vweird.f32 %v7550_v19  ;;  %vm2549_vm8 = vcmp.eq.s32.totalorder %v2544_v32, 2  ;;  %v2756_v63 = vsel %vm2742_vm6, %v2753_v21, %v2755_v25 }
 0x26e   : > { %v2533_v36 = vadd.f32 1.0, %v2532_v7  ;;  %v2540_v10 = vadd.f32 1.0, %v2539_v6  ;;  %v2655_v20 = vshll.u32 %v7996_v35, 30  ;;  %v2759_v39 = vshrl.u32 %v7976_v18, 16 }
 0x26f   : > { %v2782_v43 = vand.u32 65535, %v2752_v8  ;;  %v8007_v23 = vmul.u32 %v2783_v26, %v2758_v27  ;;  %vm2545_vm9 = vcmp.lt.s32.totalorder %v2544_v32, 2  ;;  %vm2546_vm10 = vcmp.eq.s32.totalorder %v2544_v32, 0 }
 0x270   : > { %v2541_v9 = vmul.f32 %v2540_v10, %v2525_v12  ;;  %v2550_v34 = vxor.u32 2147483648, %v2533_v36  ;;  %v2656_v15 = vsub.s32 %v2652_v5, %v2655_v20  ;;  %v2760_v24 = vand.u32 65535, %v2756_v63 }
 0x271   : > { %v2761_v37 = vshrl.u32 %v2756_v63, 16  ;;  %v2784_v4 = vmul.u32 %v2782_v43, %v2758_v27  ;;  %v2786_v12 = vmul.u32 %v2782_v43, %v2759_v39  ;;  %v2788_v0 = vshll.u32 %v8007_v23, 16 }
 0x272   : > { %v2547_v55 = vxor.u32 2147483648, %v2541_v9  ;;  %v2551_v50 = vsel %vm2549_vm8, %v2550_v34, %v2541_v9  ;;  %vm2657_vm11 = vcmp.lt.s32.totalorder %v2656_v15, 0  ;;  %v2658_v17 = vsub.s32 0, %v2656_v15 }
 0x273   : > { %v2762_v30 = vmul.u32 %v2760_v24, %v2758_v27  ;;  %v2763_v22 = vmul.u32 %v2761_v37, %v2758_v27  ;;  %v2764_v54 = vmul.u32 %v2760_v24, %v2759_v39  ;;  %v2765_v38 = vmul.u32 %v2761_v37, %v2759_v39  ;;  %v346_v27 = vld [vmem:[%s6176_s19] sm:$0x3] }
 0x274   : > { %v2548_v31 = vsel %vm2546_vm10, %v2533_v36, %v2547_v55  ;;  %v2659_v56 = vsel %vm2657_vm11, %v2658_v17, %v2656_v15  ;;  %v2648_v13 = vadd.s32 %v7946_v59, %v7944_v2  ;;  %v2725_v52 = vshrl.u32 %v6033_v40, %v7940_v45 }
 0x275   : > { %v2552_v47 = vsel %vm2545_vm9, %v2548_v31, %v2551_v50  ;;  %v2660_v16 = vclz %v2659_v56  ;;  %v2766_v49 = vshll.u32 %v2763_v22, 16  ;;  %v2768_v58 = vshll.u32 %v2764_v54, 16 }
 0x276   : > { %v2553_v5 = vsel %vm2542_vm7, nan, %v2552_v47  ;;  %v2787_v41 = vmul.u32 %v2783_v26, %v2759_v39  ;;  %v2767_v32 = vshrl.u32 %v2763_v22, 16  ;;  %v2790_v14 = vshll.u32 %v2786_v12, 16  ;;  %v5781_v47 = vld [vmem:[#allocation7] sm:$0xff] }
 0x277   : > { %v5621_v33 = vadd.s32 4294967294, %v2660_v16  ;;  %vm2770_vm12 = vc.u32 %v2762_v30, %v2766_v49  ;;  %v2772_v61 = vadd.s32 %v2766_v49, %v2762_v30  ;;  %2877 = vst [vmem:[%s6516_s25 + $0x68] sm:$0xff] %v2553_v5  ;;  %vm2792_vm13 = vc.u32 %v2784_v4, %v2788_v0 }
 0x278   : > { %v2771_v21 = vsel %vm2770_vm12, 1, %v6039_v1  ;;  %v2794_v7 = vadd.s32 %v2788_v0, %v2784_v4  ;;  %v2746_v45 = vsel %vm2744_vm4, %v7974_v60, 2102212464  ;;  %v2793_v6 = vsel %vm2792_vm13, 1, %v6039_v1 }
 0x279   : > { %vm5622_vm14 = vcmp.lt.s32.totalorder %v5621_v33, 0  ;;  %v2773_v19 = vadd.s32 %v2771_v21, %v2765_v38  ;;  %vm2774_vm15 = vc.u32 %v2772_v61, %v2768_v58  ;;  %v2769_v10 = vshrl.u32 %v2764_v54, 16  ;;  %v5782_v58 = vld [vmem:[#allocation7 + $0x8] sm:$0xff] }
 0x27a   : > { %v2663_v2 = vsel %vm5622_vm14, 0, %v5621_v33  ;;  %v2775_v59 = vsel %vm2774_vm15, 1, %v6039_v1  ;;  %v2789_v20 = vshrl.u32 %v8007_v23, 16  ;;  %v2795_v63 = vadd.s32 %v2793_v6, %v2787_v41  ;;  %v5783_v33 = vld [vmem:[#allocation8] sm:$0xff] }
 0x27b   : > { %v2664_v8 = vsub.s32 32, %v2663_v2  ;;  %v2665_v25 = vshll.u32 %v2656_v15, %v2663_v2  ;;  %v2668_v26 = vsub.s32 4294967266, %v2663_v2  ;;  %v2777_v36 = vadd.s32 %v2775_v59, %v2773_v19 }
 0x27c   : > { %v8026_v39 = vperm.slane %v346_v27, 0  ;;  %vm2796_vm0 = vc.u32 %v2794_v7, %v2790_v14  ;;  %v2678_v60 = vsub.s32 4, %v7996_v35  ;;  %v2745_v24 = vsel %vm2741_vm3, %v2725_v52, %v7966_v11 }
 0x27d   : > { %v2666_v43 = vshrl.u32 %v2648_v13, %v2664_v8  ;;  %v2669_v9 = vadd.s32 127, %v2668_v26  ;;  %v2778_v34 = vadd.s32 %v2777_v36, %v2767_v32  ;;  %v2747_v15 = vsel %vm2743_vm5, %v7968_v29, %v2746_v45 }
 0x27e   : > { %v2797_v37 = vsel %vm2796_vm0, 1, %v6039_v1  ;;  %v2791_v50 = vshrl.u32 %v2786_v12, 16  ;;  %v8038_v22 = vadd.s32 %v2794_v7, %v2790_v14  ;;  %v2748_v31 = vsel %vm2742_vm6, %v2745_v24, %v2747_v15 }
 0x27f   : > { %v2667_v23 = vor.u32 %v2666_v43, %v2665_v25  ;;  %v2670_v55 = vshll.u32 %v2669_v9, 23  ;;  %v2799_v17 = vadd.s32 %v2797_v37, %v2795_v63  ;;  %v8036_v30 = vadd.s32 %v2778_v34, %v2769_v10 }
 0x280   : > { %vm2556_vm1 = vcmp.lt.s32.totalorder %v7749_v62, 0  ;;  %v8043_v56 = vperm.slane %v346_v27, 1  ;;  %v2885_v16 = vmul.f32 %v5781_v47, %v8026_v39  ;;  %v2802_v38 = vmul.u32 %v7976_v18, %v2748_v31  ;;  %v5784_v27 = vld [vmem:[#allocation8 + $0x8] sm:$0xff] }
 0x281   : > { %v2671_v54 = vor.u32 4788187, %v2670_v55  ;;  %v2674_v4 = vcvt.s32.f32 %v2667_v23  ;;  %v2800_v11 = vadd.s32 %v2799_v17, %v2789_v20  ;;  %v2679_v12 = vsel %vm2556_vm1, %v2678_v60, %v7996_v35 }
 0x282   : > { %vm2804_vm2 = vc.u32 %v8036_v30, %v8038_v22  ;;  %vm2555_vm3 = vcmp.le.f32.partialorder %v2554_v28, 0.7853982  ;;  %v2886_v35 = vmul.f32 %v5782_v58, %v8043_v56  ;;  %v8055_v61 = vadd.f32 %v5783_v33, %v2885_v16  ;;  %v5785_v16 = vld [vmem:[#allocation7 + $0x10] sm:$0xff] }
 0x283   : > { %v2672_v29 = vand.u32 2147483647, %v2671_v54  ;;  %v2801_v0 = vadd.s32 %v2800_v11, %v2791_v50  ;;  %v2681_v5 = vsel %vm2555_vm3, 0, %v2679_v12  ;;  %vm2711_vm4 = vcmp.lt.s32.totalorder %v7762_v53, 0 }
 0x284   : > { %v2698_v21 = vadd.s32 3, %v2681_v5  ;;  %v8060_v19 = vadd.f32 %v5784_v27, %v2886_v35  ;;  %v2920_v7 = vand.u32 2139095040, %v8055_v61  ;;  %v2917_v45 = vand.u32 2147483647, %v8055_v61 }
 0x285   : > { %v2675_v51 = vmul.f32 %v2674_v4, %v2672_v29  ;;  %v2805_v49 = vadd.s32 1, %v2801_v0  ;;  %vm8075_vm6 = vcmp.le.f32.partialorder %v2709_v3, 0.7853982  ;;  %vm2697_vm10 = vweird.f32 %v7749_v62 }
 0x286   : > { %v2921_v8 = vshrl.u32 %v2920_v7, 23  ;;  %v8064_v25 = vand.u32 3, %v2698_v21  ;;  %v3075_v63 = vand.u32 2139095040, %v8060_v19  ;;  %v2924_v9 = vand.u32 8388607, %v2917_v45 }
 0x287   : > { %v2676_v13 = vxor.u32 2147483648, %v2675_v51  ;;  %v2806_v52 = vsel %vm2804_vm2, %v2805_v49, %v2801_v0  ;;  %v3072_v3 = vand.u32 2147483647, %v8060_v19  ;;  %v2803_v47 = vadd.s32 %v8038_v22, %v8036_v30 }
 0x288   : > { %v2807_v41 = vadd.s32 %v2806_v52, %v2802_v38  ;;  %v5626_v20 = vadd.s32 4294967169, %v2921_v8  ;;  %vm2701_vm5 = vcmp.eq.s32.totalorder %v8064_v25, 0  ;;  %vm2700_vm8 = vcmp.lt.s32.totalorder %v8064_v25, 2 }
 0x289   : > { %v2677_v18 = vsel %vm2556_vm1, %v2676_v13, %v2675_v51  ;;  %v3076_v17 = vshrl.u32 %v3075_v63, 23  ;;  %v2925_v4 = vor.u32 8388608, %v2924_v9  ;;  %vm2704_vm11 = vcmp.eq.s32.totalorder %v8064_v25, 2 }
 0x28a   : > { %v2680_v32 = vsel %vm2555_vm3, %v7749_v62, %v2677_v18  ;;  %v2808_v14 = vadd.s32 536870912, %v2807_v41  ;;  %v2927_v15 = vadd.s32 1, %v5626_v20  ;;  %v8091_v38 = vmul.f32 %v5785_v16, %v8026_v39 }
 0x28b   : > { %v2682_v28 = vmul.f32 %v2680_v32, %v2680_v32  ;;  %v5629_v52 = vadd.s32 4294967169, %v3076_v17  ;;  %v8095_v33 = vshll.u32 %v2925_v4, 8 }
 0x28c   : > { %v2809_v2 = vshrl.u32 %v2808_v14, 30  ;;  %vm2928_vm9 = vcmp.gt.s32.totalorder %v2927_v15, 0 }
 0x28d   : > { %v2683_v59 = vmul.f32 -0.001358992, %v2682_v28  ;;  %v2690_v6 = vmul.f32 -0.00019511016, %v2682_v28  ;;  %v2929_v31 = vsel %vm2928_vm9, %v2927_v15, 0  ;;  %v2966_v9 = vand.u32 65535, %v8095_v33 }
 0x28e   : > { %v2810_v26 = vshll.u32 %v2809_v2, 30  ;;  %v2833_v24 = vsub.s32 4, %v2809_v2  ;;  %v2931_v51 = vand.u32 31, %v2929_v31  ;;  %v8101_v18 = vshrl.u32 %v2929_v31, 5 }
 0x28f   : > { %v2684_v36 = vadd.f32 0.041655596, %v2683_v59  ;;  %v2691_v10 = vadd.f32 0.008332121, %v2690_v6 }
 0x290   : > { %v8068_v43 = vsub.s32 %v2807_v41, %v2810_v26  ;;  %v2834_v0 = vsel %vm2711_vm4, %v2833_v24, %v2809_v2  ;;  %v2932_v35 = vsub.s32 32, %v2931_v51  ;;  %v8099_v41 = vand.u32 8388607, %v3072_v3 }
 0x291   : > { %v2685_v34 = vmul.f32 %v2684_v36, %v2682_v28  ;;  %v2692_v60 = vmul.f32 %v2691_v10, %v2682_v28  ;;  %v2836_v58 = vsel %vm8075_vm6, 0, %v2834_v0  ;;  %v2934_v14 = vshll.u32 %v6033_v40, %v2931_v51 }
 0x292   : > { %vm2812_vm7 = vcmp.lt.s32.totalorder %v8068_v43, 0  ;;  %v2813_v23 = vsub.s32 0, %v8068_v43  ;;  %v2937_v27 = vshll.u32 %v6034_v42, %v2931_v51  ;;  %v2940_v26 = vshll.u32 %v6035_v44, %v2931_v51 }
 0x293   : > { %v2686_v55 = vadd.f32 -0.4999988, %v2685_v34  ;;  %v2693_v50 = vadd.f32 -0.16666654, %v2692_v60  ;;  %v3082_v36 = vadd.s32 1, %v5629_v52  ;;  %v2941_v63 = vshrl.u32 %v6036_v46, %v2932_v35 }
 0x294   : > { %v2814_v54 = vsel %vm2812_vm7, %v2813_v23, %v8068_v43  ;;  %vm2949_vm13 = vcmp.lt.s32.totalorder %v8101_v18, 1  ;;  %v2946_v4 = vshll.u32 %v6037_v48, %v2931_v51  ;;  %v2853_v25 = vadd.s32 3, %v2836_v58 }
 0x295   : > { %v2687_v11 = vmul.f32 %v2686_v55, %v2682_v28  ;;  %v2694_v29 = vmul.f32 %v2693_v50, %v2682_v28  ;;  %v2815_v12 = vclz %v2814_v54  ;;  %v2935_v28 = vshrl.u32 %v6034_v42, %v2932_v35 }
 0x296   : > { %v2942_v17 = vor.u32 %v2941_v63, %v2940_v26  ;;  %v2944_v54 = vshrl.u32 %v6037_v48, %v2932_v35  ;;  %v2933_v31 = vshrl.u32 %v6033_v40, %v2932_v35  ;;  %vm2951_vm14 = vcmp.lt.s32.totalorder %v8101_v18, 3 }
 0x297   : > { %v2688_v49 = vadd.f32 1.0, %v2687_v11  ;;  %v2695_v5 = vadd.f32 1.0, %v2694_v29  ;;  %v5624_v13 = vadd.s32 4294967294, %v2815_v12  ;;  %v2936_v23 = vor.u32 %v2935_v28, %v2934_v14 }
 0x298   : > { %v2947_v11 = vshrl.u32 %v6038_v57, %v2932_v35  ;;  %v2967_v29 = vshrl.u32 %v8095_v33, 16  ;;  %vm2950_vm15 = vcmp.lt.s32.totalorder %v8101_v18, 2  ;;  %vm2952_vm0 = vcmp.lt.s32.totalorder %v8101_v18, 4 }
 0x299   : > { %v2696_v30 = vmul.f32 %v2695_v5, %v2680_v32  ;;  %v2705_v22 = vxor.u32 2147483648, %v2688_v49  ;;  %vm5625_vm12 = vcmp.lt.s32.totalorder %v5624_v13, 0  ;;  %v2938_v32 = vshrl.u32 %v6035_v44, %v2932_v35 }
 0x29a   : > { %v2818_v21 = vsel %vm5625_vm12, 0, %v5624_v13  ;;  %v3080_v13 = vor.u32 8388608, %v8099_v41  ;;  %v2954_v52 = vsel %vm2952_vm0, %v2942_v17, 2102212464  ;;  %vm3083_vm1 = vcmp.gt.s32.totalorder %v3082_v36, 0 }
 0x29b   : > { %v2702_v7 = vxor.u32 2147483648, %v2696_v30  ;;  %v2706_v2 = vsel %vm2704_vm11, %v2705_v22, %v2696_v30  ;;  %v2819_v59 = vsub.s32 32, %v2818_v21  ;;  %v2820_v6 = vshll.u32 %v8068_v43, %v2818_v21 }
 0x29c   : > { %v2823_v8 = vsub.s32 4294967266, %v2818_v21  ;;  %v2943_v43 = vshll.u32 %v6036_v46, %v2931_v51  ;;  %v2939_v55 = vor.u32 %v2938_v32, %v2937_v27  ;;  %v8137_v22 = vand.u32 3, %v2853_v25 }
 0x29d   : > { %v2703_v10 = vsel %vm2701_vm5, %v2688_v49, %v2702_v7  ;;  %v2821_v20 = vshrl.u32 %v2803_v47, %v2819_v59  ;;  %v2948_v47 = vor.u32 %v2947_v11, %v2946_v4  ;;  %v2953_v28 = vsel %vm2949_vm13, %v2933_v31, %v2936_v23 }
 0x29e   : > { %v2707_v34 = vsel %vm2700_vm8, %v2703_v10, %v2706_v2  ;;  %v2824_v60 = vadd.s32 127, %v2823_v8  ;;  %v2945_v0 = vor.u32 %v2944_v54, %v2943_v43  ;;  %v2957_v16 = vsel %vm2949_vm13, %v2936_v23, %v2939_v55 }
 0x29f   : > { %v2708_v24 = vsel %vm2697_vm10, nan, %v2707_v34  ;;  %v2822_v15 = vor.u32 %v2821_v20, %v2820_v6  ;;  %v2961_v5 = vsel %vm2949_vm13, %v2939_v55, %v2942_v17  ;;  %v2962_v35 = vsel %vm2952_vm0, %v2948_v47, 1326507024 }
 0x2a0   : > { %v2825_v50 = vshll.u32 %v2824_v60, 23  ;;  %2878 = vst [vmem:[%s6516_s25 + $0x70] sm:$0xff] %v2708_v24  ;;  %v2958_v49 = vsel %vm2952_vm0, %v2945_v0, 920167782  ;;  %v2963_v14 = vsel %vm2951_vm14, %v2945_v0, %v2962_v35  ;;  %v2955_v6 = vsel %vm2951_vm14, %v2939_v55, %v2954_v52 }
 0x2a1   : > { %v2829_v62 = vcvt.s32.f32 %v2822_v15  ;;  %v2959_v58 = vsel %vm2951_vm14, %v2942_v17, %v2958_v49  ;;  %v2964_v27 = vsel %vm2950_vm15, %v2961_v5, %v2963_v14  ;;  %v3084_v63 = vsel %vm3083_vm1, %v3082_v36, 0 }
 0x2a2   : > { %v2826_v12 = vor.u32 4788187, %v2825_v50  ;;  %v2960_v21 = vsel %vm2950_vm15, %v2957_v16, %v2959_v58  ;;  %v2968_v8 = vand.u32 65535, %v2964_v27  ;;  %v2969_v32 = vshrl.u32 %v2964_v27, 16 }
 0x2a3   : > { %v2990_v7 = vand.u32 65535, %v2960_v21  ;;  %v2991_v2 = vshrl.u32 %v2960_v21, 16  ;;  %v8157_v23 = vsel %vm2950_vm15, %v2953_v28, %v2955_v6  ;;  %v3086_v47 = vand.u32 31, %v3084_v63 }
 0x2a4   : > { %v2827_v51 = vand.u32 2147483647, %v2826_v12  ;;  %v2970_v60 = vmul.u32 %v2968_v8, %v2966_v9  ;;  %v2971_v43 = vmul.u32 %v2969_v32, %v2966_v9  ;;  %v2972_v24 = vmul.u32 %v2968_v8, %v2967_v29 }
 0x2a5   : > { %v2992_v26 = vmul.u32 %v2990_v7, %v2966_v9  ;;  %v2993_v10 = vmul.u32 %v2991_v2, %v2966_v9  ;;  %v2994_v20 = vmul.u32 %v2990_v7, %v2967_v29  ;;  %v2995_v55 = vmul.u32 %v2991_v2, %v2967_v29 }
 0x2a6   : > { %v2830_v30 = vmul.f32 %v2829_v62, %v2827_v51  ;;  %v2973_v54 = vmul.u32 %v2969_v32, %v2967_v29  ;;  %v2974_v4 = vshll.u32 %v2971_v43, 16  ;;  %v2976_v36 = vshll.u32 %v2972_v24, 16 }
 0x2a7   : > { %v2996_v50 = vshll.u32 %v2993_v10, 16  ;;  %v2975_v25 = vshrl.u32 %v2971_v43, 16  ;;  %v2997_v31 = vshrl.u32 %v2993_v10, 16  ;;  %v2998_v11 = vshll.u32 %v2994_v20, 16 }
 0x2a8   : > { %v2831_v59 = vxor.u32 2147483648, %v2830_v30  ;;  %vm2978_vm3 = vc.u32 %v2970_v60, %v2974_v4  ;;  %v2980_v62 = vadd.s32 %v2974_v4, %v2970_v60  ;;  %vm2859_vm5 = vcmp.eq.s32.totalorder %v8137_v22, 2 }
 0x2a9   : > { %vm3000_vm2 = vc.u32 %v2992_v26, %v2996_v50  ;;  %v2979_v37 = vsel %vm2978_vm3, 1, %v6039_v1  ;;  %v3002_v0 = vadd.s32 %v2996_v50, %v2992_v26  ;;  %v2977_v29 = vshrl.u32 %v2972_v24, 16 }
 0x2aa   : > { %v2832_v34 = vsel %vm2711_vm4, %v2831_v59, %v2830_v30  ;;  %v3001_v18 = vsel %vm3000_vm2, 1, %v6039_v1  ;;  %v2981_v49 = vadd.s32 %v2979_v37, %v2973_v54  ;;  %vm2982_vm4 = vc.u32 %v2980_v62, %v2976_v36 }
 0x2ab   : > { %v2835_v15 = vsel %vm8075_vm6, %v7762_v53, %v2832_v34  ;;  %v2983_v5 = vsel %vm2982_vm4, 1, %v6039_v1  ;;  %v3003_v52 = vadd.s32 %v3001_v18, %v2995_v55  ;;  %vm3004_vm6 = vc.u32 %v3002_v0, %v2998_v11 }
 0x2ac   : > { %v2837_v17 = vmul.f32 %v2835_v15, %v2835_v15  ;;  %v2985_v30 = vadd.s32 %v2983_v5, %v2981_v49  ;;  %v3005_v21 = vsel %vm3004_vm6, 1, %v6039_v1  ;;  %v2999_v14 = vshrl.u32 %v2994_v20, 16 }
 0x2ad   : > { %v3007_v28 = vadd.s32 %v3005_v21, %v3003_v52  ;;  %v3010_v27 = vmul.u32 %v8095_v33, %v8157_v23  ;;  %v8166_v7 = vsub.s32 32, %v3086_v47  ;;  %vm2855_vm7 = vcmp.lt.s32.totalorder %v8137_v22, 2 }
 0x2ae   : > { %v2838_v9 = vmul.f32 -0.001358992, %v2837_v17  ;;  %v2845_v12 = vmul.f32 -0.00019511016, %v2837_v17  ;;  %v2986_v6 = vadd.s32 %v2985_v30, %v2975_v25  ;;  %v8169_v8 = vadd.s32 %v3002_v0, %v2998_v11 }
 0x2af   : > { %v3008_v32 = vadd.s32 %v3007_v28, %v2997_v31  ;;  %v3089_v26 = vshll.u32 %v6033_v40, %v3086_v47  ;;  %v3090_v10 = vshrl.u32 %v6034_v42, %v8166_v7  ;;  %v3092_v20 = vshll.u32 %v6034_v42, %v3086_v47 }
 0x2b0   : > { %v2839_v16 = vadd.f32 0.041655596, %v2838_v9  ;;  %v2846_v51 = vadd.f32 0.008332121, %v2845_v12  ;;  %v8175_v33 = vadd.s32 %v2986_v6, %v2977_v29  ;;  %v3093_v43 = vshrl.u32 %v6035_v44, %v8166_v7 }
 0x2b1   : > { %v3009_v24 = vadd.s32 %v3008_v32, %v2999_v14  ;;  %v8179_v23 = vshrl.u32 %v3084_v63, 5  ;;  %v3095_v55 = vshll.u32 %v6035_v44, %v3086_v47  ;;  %v3098_v50 = vshll.u32 %v6036_v46, %v3086_v47  ;;  %v5786_v14 = vld [vmem:[#allocation7 + $0x18] sm:$0xff] }
 0x2b2   : > { %v2840_v58 = vmul.f32 %v2839_v16, %v2837_v17  ;;  %v2847_v35 = vmul.f32 %v2846_v51, %v2837_v17  ;;  %vm3012_vm8 = vc.u32 %v8175_v33, %v8169_v8  ;;  %v8187_v25 = vor.u32 %v3090_v10, %v3089_v26 }
 0x2b3   : > { %v3013_v36 = vadd.s32 1, %v3009_v24  ;;  %v3099_v31 = vshrl.u32 %v6037_v48, %v8166_v7  ;;  %v3101_v63 = vshll.u32 %v6037_v48, %v3086_v47  ;;  %v8192_v12 = vor.u32 %v3093_v43, %v3092_v20 }
 0x2b4   : > { %v2841_v2 = vadd.f32 -0.4999988, %v2840_v58  ;;  %v2848_v59 = vadd.f32 -0.16666654, %v2847_v35  ;;  %v3102_v62 = vshrl.u32 %v6038_v57, %v8166_v7  ;;  %vm2856_vm9 = vcmp.eq.s32.totalorder %v8137_v22, 0 }
 0x2b5   : > { %v3014_v37 = vsel %vm3012_vm8, %v3013_v36, %v3009_v24  ;;  %v3100_v18 = vor.u32 %v3099_v31, %v3098_v50  ;;  %vm3104_vm10 = vcmp.lt.s32.totalorder %v8179_v23, 1  ;;  %vm2852_vm11 = vweird.f32 %v7762_v53 }
 0x2b6   : > { %v2842_v34 = vmul.f32 %v2841_v2, %v2837_v17  ;;  %v2849_v60 = vmul.f32 %v2848_v59, %v2837_v17  ;;  %v3096_v17 = vshrl.u32 %v6036_v46, %v8166_v7  ;;  %v3015_v51 = vadd.s32 %v3014_v37, %v3010_v27  ;;  %v5787_v59 = vld [vmem:[#allocation8 + $0x10] sm:$0xff] }
 0x2b7   : > { %vm3106_vm12 = vcmp.lt.s32.totalorder %v8179_v23, 3  ;;  %vm3107_vm13 = vcmp.lt.s32.totalorder %v8179_v23, 4  ;;  %vm3105_vm14 = vcmp.lt.s32.totalorder %v8179_v23, 2  ;;  %v3112_v5 = vsel %vm3104_vm10, %v8187_v25, %v8192_v12 }
 0x2b8   : > { %v2843_v54 = vadd.f32 1.0, %v2842_v34  ;;  %v2850_v4 = vadd.f32 1.0, %v2849_v60  ;;  %v3097_v47 = vor.u32 %v3096_v17, %v3095_v55  ;;  %v3016_v29 = vadd.s32 536870912, %v3015_v51  ;;  %v5788_v55 = vld [vmem:[#allocation8 + $0x18] sm:$0xff] }
 0x2b9   : > { %v3113_v53 = vsel %vm3107_vm13, %v3100_v18, 920167782  ;;  %v2888_v28 = vmul.f32 %v5786_v14, %v8043_v56  ;;  %v8227_v2 = vshll.u32 %v3080_v13, 8  ;;  %v8230_v6 = vadd.f32 %v5787_v59, %v8091_v38 }
 0x2ba   : > { %v2851_v11 = vmul.f32 %v2850_v4, %v2835_v15  ;;  %v2860_v9 = vxor.u32 2147483648, %v2843_v54  ;;  %v3103_v15 = vor.u32 %v3102_v62, %v3101_v63  ;;  %v8212_v35 = vshrl.u32 %v3016_v29, 30 }
 0x2bb   : > { %v3114_v30 = vsel %vm3106_vm12, %v3097_v47, %v3113_v53  ;;  %v3116_v21 = vsel %vm3104_vm10, %v8192_v12, %v3097_v47  ;;  %v3121_v34 = vand.u32 65535, %v8227_v2  ;;  %v3122_v60 = vshrl.u32 %v8227_v2, 16 }
 0x2bc   : > { %v2857_v0 = vxor.u32 2147483648, %v2851_v11  ;;  %v2861_v16 = vsel %vm2859_vm5, %v2860_v9, %v2851_v11  ;;  %v3115_v22 = vsel %vm3105_vm14, %v3112_v5, %v3114_v30  ;;  %v3117_v27 = vsel %vm3107_vm13, %v3103_v15, 1326507024 }
 0x2bd   : > { %v3018_v32 = vshll.u32 %v8212_v35, 30  ;;  %v3118_v26 = vsel %vm3106_vm12, %v3100_v18, %v3117_v27  ;;  %v3145_v10 = vand.u32 65535, %v3115_v22  ;;  %v3146_v41 = vshrl.u32 %v3115_v22, 16 }
 0x2be   : > { %v2858_v49 = vsel %vm2856_vm9, %v2843_v54, %v2857_v0  ;;  %v3119_v20 = vsel %vm3105_vm14, %v3116_v21, %v3118_v26  ;;  %v8239_v38 = vadd.f32 %v5788_v55, %v2888_v28  ;;  %v3088_v63 = vshrl.u32 %v6033_v40, %v8166_v7 }
 0x2bf   : > { %v2862_v52 = vsel %vm2855_vm7, %v2858_v49, %v2861_v16  ;;  %v3019_v13 = vsub.s32 %v3015_v51, %v3018_v32  ;;  %v3123_v43 = vand.u32 65535, %v3119_v20  ;;  %v3124_v24 = vshrl.u32 %v3119_v20, 16 }
 0x2c0   : > { %v2863_v58 = vsel %vm2852_vm11, nan, %v2862_v52  ;;  %v3147_v50 = vmul.u32 %v3145_v10, %v3121_v34  ;;  %v3148_v54 = vmul.u32 %v3146_v41, %v3121_v34  ;;  %v8241_v4 = vmul.u32 %v3145_v10, %v3122_v60 }
 0x2c1   : > { %2879 = vst [vmem:[%s6516_s25 + $0x78] sm:$0xff] %v2863_v58  ;;  %vm3020_vm15 = vcmp.lt.s32.totalorder %v3019_v13, 0  ;;  %v3021_v17 = vsub.s32 0, %v3019_v13  ;;  %v3125_v36 = vmul.u32 %v3123_v43, %v3121_v34  ;;  %v3126_v31 = vmul.u32 %v3124_v24, %v3121_v34 }
 0x2c2   : > { %v3127_v11 = vmul.u32 %v3123_v43, %v3122_v60  ;;  %v3151_v9 = vshll.u32 %v3148_v54, 16  ;;  %v3230_v62 = vand.u32 2139095040, %v8230_v6  ;;  %v3011_v37 = vadd.s32 %v8169_v8, %v8175_v33 }
 0x2c3   : > { %v3022_v18 = vsel %vm3020_vm15, %v3021_v17, %v3019_v13  ;;  %v3128_v0 = vmul.u32 %v3124_v24, %v3122_v60  ;;  %v3129_v16 = vshll.u32 %v3126_v31, 16  ;;  %vm2919_vm0 = vcmp.lt.s32.totalorder %v8055_v61, 0 }
 0x2c4   : > { %v3023_v51 = vclz %v3022_v18  ;;  %v3131_v15 = vshll.u32 %v3127_v11, 16  ;;  %v3150_v49 = vmul.u32 %v3146_v41, %v3122_v60  ;;  %v3153_v29 = vshll.u32 %v8241_v4, 16 }
 0x2c5   : > { %v3109_v7 = vsel %vm3107_vm13, %v3097_v47, 2102212464  ;;  %vm3133_vm1 = vc.u32 %v3125_v36, %v3129_v16  ;;  %v3135_v5 = vadd.s32 %v3129_v16, %v3125_v36  ;;  %vm3155_vm2 = vc.u32 %v3147_v50, %v3151_v9 }
 0x2c6   : > { %v5627_v52 = vadd.s32 4294967294, %v3023_v51  ;;  %v3134_v53 = vsel %vm3133_vm1, 1, %v6039_v1  ;;  %v3156_v8 = vsel %vm3155_vm2, 1, %v6039_v1  ;;  %v3157_v33 = vadd.s32 %v3151_v9, %v3147_v50 }
 0x2c7   : > { %v3041_v58 = vsub.s32 4, %v8212_v35  ;;  %v3130_v30 = vshrl.u32 %v3126_v31, 16  ;;  %v3136_v21 = vadd.s32 %v3134_v53, %v3128_v0  ;;  %vm3137_vm3 = vc.u32 %v3135_v5, %v3131_v15 }
 0x2c8   : > { %vm5628_vm4 = vcmp.lt.s32.totalorder %v5627_v52, 0  ;;  %v3138_v14 = vsel %vm3137_vm3, 1, %v6039_v1  ;;  %v3158_v28 = vadd.s32 %v3156_v8, %v3150_v49  ;;  %vm3159_vm5 = vc.u32 %v3157_v33, %v3153_v29 }
 0x2c9   : > { %v3026_v47 = vsel %vm5628_vm4, 0, %v5627_v52  ;;  %v3132_v22 = vshrl.u32 %v3127_v11, 16  ;;  %v3140_v27 = vadd.s32 %v3138_v14, %v3136_v21  ;;  %v3160_v59 = vsel %vm3159_vm5, 1, %v6039_v1  ;;  %v5789_v14 = vld [vmem:[#allocation7 + $0x20] sm:$0xff] }
 0x2ca   : > { %v3027_v32 = vsub.s32 32, %v3026_v47  ;;  %v3028_v26 = vshll.u32 %v3019_v13, %v3026_v47  ;;  %v3031_v10 = vsub.s32 4294967266, %v3026_v47  ;;  %v3152_v20 = vshrl.u32 %v3148_v54, 16 }
 0x2cb   : > { %v3108_v34 = vsel %vm3104_vm10, %v3088_v63, %v8187_v25  ;;  %v3110_v60 = vsel %vm3106_vm12, %v8192_v12, %v3109_v7  ;;  %v3141_v41 = vadd.s32 %v3140_v27, %v3130_v30  ;;  %v3227_v43 = vand.u32 2147483647, %v8230_v6 }
 0x2cc   : > { %v3029_v24 = vshrl.u32 %v3011_v37, %v3027_v32  ;;  %v3032_v55 = vadd.s32 127, %v3031_v10  ;;  %v3154_v50 = vshrl.u32 %v8241_v4, 16  ;;  %v3162_v17 = vadd.s32 %v3160_v59, %v3158_v28 }
 0x2cd   : > { %v3042_v13 = vsel %vm2919_vm0, %v3041_v58, %v8212_v35  ;;  %v3142_v54 = vadd.s32 %v3141_v41, %v3132_v22  ;;  %v3161_v36 = vadd.s32 %v3157_v33, %v3153_v29  ;;  %v3231_v31 = vshrl.u32 %v3230_v62, 23 }
 0x2ce   : > { %v3030_v25 = vor.u32 %v3029_v24, %v3028_v26  ;;  %v3033_v63 = vshll.u32 %v3032_v55, 23  ;;  %v3111_v12 = vsel %vm3105_vm14, %v3108_v34, %v3110_v60  ;;  %v3163_v11 = vadd.s32 %v3162_v17, %v3152_v20 }
 0x2cf   : > { %vm8272_vm6 = vcmp.le.f32.partialorder %v2917_v45, 0.7853982  ;;  %v5632_v4 = vadd.s32 4294967169, %v3231_v31  ;;  %v3165_v62 = vmul.u32 %v8227_v2, %v3111_v12  ;;  %vm3167_vm7 = vc.u32 %v3142_v54, %v3161_v36 }
 0x2d0   : > { %v3034_v37 = vor.u32 4788187, %v3033_v63  ;;  %v3037_v18 = vcvt.s32.f32 %v3030_v25  ;;  %v3044_v35 = vsel %vm8272_vm6, 0, %v3042_v13  ;;  %v3164_v0 = vadd.s32 %v3163_v11, %v3154_v50 }
 0x2d1   : > { %v3234_v23 = vand.u32 8388607, %v3227_v43  ;;  %v3237_v16 = vadd.s32 1, %v5632_v4  ;;  %v3385_v45 = vand.u32 2139095040, %v8239_v38  ;;  %v3061_v29 = vadd.s32 3, %v3044_v35 }
 0x2d2   : > { %v3035_v51 = vand.u32 2147483647, %v3034_v37  ;;  %v3168_v15 = vadd.s32 1, %v3164_v0  ;;  %v3382_v33 = vand.u32 2147483647, %v8239_v38  ;;  %v8284_v28 = vmul.f32 %v5789_v14, %v8026_v39 }
 0x2d3   : > { %vm3238_vm8 = vcmp.gt.s32.totalorder %v3237_v16, 0  ;;  %v3235_v53 = vor.u32 8388608, %v3234_v23  ;;  %v3386_v58 = vshrl.u32 %v3385_v45, 23  ;;  %v8288_v22 = vand.u32 3, %v3061_v29 }
 0x2d4   : > { %v3038_v49 = vmul.f32 %v3037_v18, %v3035_v51  ;;  %v3169_v7 = vsel %vm3167_vm7, %v3168_v15, %v3164_v0  ;;  %v3239_v5 = vsel %vm3238_vm8, %v3237_v16, 0  ;;  %v8290_v27 = vadd.s32 %v3161_v36, %v3142_v54 }
 0x2d5   : > { %v3170_v52 = vadd.s32 %v3169_v7, %v3165_v62  ;;  %v3241_v8 = vand.u32 31, %v3239_v5  ;;  %v8299_v26 = vshll.u32 %v3235_v53, 8  ;;  %v8303_v10 = vand.u32 8388607, %v3382_v33 }
 0x2d6   : > { %v3039_v2 = vxor.u32 2147483648, %v3038_v49  ;;  %v8307_v34 = vshrl.u32 %v3239_v5, 5  ;;  %v5635_v41 = vadd.s32 4294967169, %v3386_v58  ;;  %vm3067_vm9 = vcmp.eq.s32.totalorder %v8288_v22, 2 }
 0x2d7   : > { %v3171_v30 = vadd.s32 536870912, %v3170_v52  ;;  %v3242_v21 = vsub.s32 32, %v3241_v8  ;;  %v3247_v60 = vshll.u32 %v6034_v42, %v3241_v8  ;;  %v3253_v50 = vshll.u32 %v6036_v46, %v3241_v8 }
 0x2d8   : > { %v3040_v47 = vsel %vm2919_vm0, %v3039_v2, %v3038_v49  ;;  %v3250_v36 = vshll.u32 %v6035_v44, %v3241_v8  ;;  %v3244_v63 = vshll.u32 %v6033_v40, %v3241_v8  ;;  %v3256_v11 = vshll.u32 %v6037_v48, %v3241_v8 }
 0x2d9   : > { %v8295_v59 = vsel %vm8272_vm6, %v8055_v61, %v3040_v47  ;;  %v8297_v32 = vshrl.u32 %v3171_v30, 30  ;;  %v3248_v55 = vshrl.u32 %v6035_v44, %v3242_v21  ;;  %v3254_v17 = vshrl.u32 %v6037_v48, %v3242_v21 }
 0x2da   : > { %v3045_v20 = vmul.f32 %v8295_v59, %v8295_v59  ;;  %v3251_v31 = vshrl.u32 %v6036_v46, %v3242_v21  ;;  %v3245_v12 = vshrl.u32 %v6034_v42, %v3242_v21  ;;  %v3257_v37 = vshrl.u32 %v6038_v57, %v3242_v21 }
 0x2db   : > { %v3173_v24 = vshll.u32 %v8297_v32, 30  ;;  %v8322_v18 = vadd.s32 1, %v5635_v41  ;;  %v3249_v0 = vor.u32 %v3248_v55, %v3247_v60  ;;  %v3255_v62 = vor.u32 %v3254_v17, %v3253_v50 }
 0x2dc   : > { %v3046_v13 = vmul.f32 -0.001358992, %v3045_v20  ;;  %v3053_v54 = vmul.f32 -0.00019511016, %v3045_v20  ;;  %v3252_v51 = vor.u32 %v3251_v31, %v3250_v36  ;;  %v3258_v15 = vor.u32 %v3257_v37, %v3256_v11 }
 0x2dd   : > { %v8316_v25 = vsub.s32 %v3170_v52, %v3173_v24  ;;  %vm3064_vm11 = vcmp.eq.s32.totalorder %v8288_v22, 0  ;;  %v3246_v49 = vor.u32 %v3245_v12, %v3244_v63  ;;  %vm3259_vm12 = vcmp.lt.s32.totalorder %v8307_v34, 1 }
 0x2de   : > { %v3047_v9 = vadd.f32 0.041655596, %v3046_v13  ;;  %v3054_v4 = vadd.f32 0.008332121, %v3053_v54  ;;  %vm3262_vm13 = vcmp.lt.s32.totalorder %v8307_v34, 4  ;;  %vm3063_vm14 = vcmp.lt.s32.totalorder %v8288_v22, 2 }
 0x2df   : > { %vm3175_vm10 = vcmp.lt.s32.totalorder %v8316_v25, 0  ;;  %v3176_v35 = vsub.s32 0, %v8316_v25  ;;  %vm3261_vm15 = vcmp.lt.s32.totalorder %v8307_v34, 3  ;;  %vm3060_vm0 = vweird.f32 %v8055_v61 }
 0x2e0   : > { %v3048_v23 = vmul.f32 %v3047_v9, %v3045_v20  ;;  %v3055_v16 = vmul.f32 %v3054_v4, %v3045_v20  ;;  %vm3260_vm1 = vcmp.lt.s32.totalorder %v8307_v34, 2  ;;  %v3268_v52 = vsel %vm3262_vm13, %v3255_v62, 920167782 }
 0x2e1   : > { %v3177_v45 = vsel %vm3175_vm10, %v3176_v35, %v8316_v25  ;;  %v3272_v53 = vsel %vm3262_vm13, %v3258_v15, 1326507024  ;;  %v3276_v8 = vand.u32 65535, %v8299_v26  ;;  %vm3074_vm2 = vcmp.lt.s32.totalorder %v8060_v19, 0 }
 0x2e2   : > { %v3049_v29 = vadd.f32 -0.4999988, %v3048_v23  ;;  %v3056_v7 = vadd.f32 -0.16666654, %v3055_v16  ;;  %v3178_v5 = vclz %v3177_v45  ;;  %v3271_v14 = vsel %vm3259_vm12, %v3249_v0, %v3252_v51 }
 0x2e3   : > { %v3243_v47 = vshrl.u32 %v6033_v40, %v3242_v21  ;;  %v3273_v60 = vsel %vm3261_vm15, %v3255_v62, %v3272_v53  ;;  %v3277_v41 = vshrl.u32 %v8299_v26, 16  ;;  %vm3393_vm3 = vcmp.gt.s32.totalorder %v8322_v18, 0 }
 0x2e4   : > { %v3050_v2 = vmul.f32 %v3049_v29, %v3045_v20  ;;  %v3057_v58 = vmul.f32 %v3056_v7, %v3045_v20  ;;  %v5630_v30 = vadd.s32 4294967294, %v3178_v5  ;;  %v3267_v20 = vsel %vm3259_vm12, %v3246_v49, %v3249_v0 }
 0x2e5   : > { %v3264_v17 = vsel %vm3262_vm13, %v3252_v51, 2102212464  ;;  %v3269_v21 = vsel %vm3261_vm15, %v3252_v51, %v3268_v52  ;;  %v3274_v13 = vsel %vm3260_vm1, %v3271_v14, %v3273_v60  ;;  %v3196_v11 = vsub.s32 4, %v8297_v32 }
 0x2e6   : > { %v3051_v24 = vadd.f32 1.0, %v3050_v2  ;;  %v3058_v55 = vadd.f32 1.0, %v3057_v58  ;;  %vm5631_vm4 = vcmp.lt.s32.totalorder %v5630_v30, 0  ;;  %v3278_v9 = vand.u32 65535, %v3274_v13 }
 0x2e7   : > { %v3181_v50 = vsel %vm5631_vm4, 0, %v5630_v30  ;;  %v3279_v4 = vshrl.u32 %v3274_v13, 16  ;;  %v3270_v23 = vsel %vm3260_vm1, %v3267_v20, %v3269_v21  ;;  %vm8366_vm5 = vcmp.le.f32.partialorder %v3072_v3, 0.7853982 }
 0x2e8   : > { %v3059_v54 = vmul.f32 %v3058_v55, %v8295_v59  ;;  %v3068_v36 = vxor.u32 2147483648, %v3051_v24  ;;  %v3182_v31 = vsub.s32 32, %v3181_v50  ;;  %v3183_v63 = vshll.u32 %v8316_v25, %v3181_v50 }
 0x2e9   : > { %v3186_v12 = vsub.s32 4294967266, %v3181_v50  ;;  %v3263_v16 = vsel %vm3259_vm12, %v3243_v47, %v3246_v49  ;;  %v3265_v51 = vsel %vm3261_vm15, %v3249_v0, %v3264_v17  ;;  %v3300_v15 = vand.u32 65535, %v3270_v23 }
 0x2ea   : > { %v3065_v37 = vxor.u32 2147483648, %v3059_v54  ;;  %v3069_v35 = vsel %vm3067_vm9, %v3068_v36, %v3059_v54  ;;  %v3184_v62 = vshrl.u32 %v8290_v27, %v3182_v31  ;;  %v3280_v29 = vmul.u32 %v3278_v9, %v3276_v8 }
 0x2eb   : > { %v3187_v25 = vadd.s32 127, %v3186_v12  ;;  %v3281_v7 = vmul.u32 %v3279_v4, %v3276_v8  ;;  %v3197_v52 = vsel %vm3074_vm2, %v3196_v11, %v8297_v32  ;;  %v3282_v49 = vmul.u32 %v3278_v9, %v3277_v41 }
 0x2ec   : > { %v3066_v27 = vsel %vm3064_vm11, %v3051_v24, %v3065_v37  ;;  %v3185_v45 = vor.u32 %v3184_v62, %v3183_v63  ;;  %v8385_v53 = vsel %vm3260_vm1, %v3263_v16, %v3265_v51  ;;  %v3283_v2 = vmul.u32 %v3279_v4, %v3277_v41 }
 0x2ed   : > { %v3070_v3 = vsel %vm3063_vm14, %v3066_v27, %v3069_v35  ;;  %v3188_v5 = vshll.u32 %v3187_v25, 23  ;;  %v3284_v58 = vshll.u32 %v3281_v7, 16  ;;  %v3286_v47 = vshll.u32 %v3282_v49, 16 }
 0x2ee   : > { %v3071_v0 = vsel %vm3060_vm0, nan, %v3070_v3  ;;  %v3192_v14 = vcvt.s32.f32 %v3185_v45  ;;  %v3301_v22 = vshrl.u32 %v3270_v23, 16  ;;  %v3304_v24 = vmul.u32 %v3300_v15, %v3277_v41 }
 0x2ef   : > { %v3189_v30 = vor.u32 4788187, %v3188_v5  ;;  %5397 = vst [vmem:[%s6516_s25 + $0x80] sm:$0xff] %v3071_v0  ;;  %vm3288_vm6 = vc.u32 %v3280_v29, %v3284_v58  ;;  %v3290_v60 = vadd.s32 %v3284_v58, %v3280_v29  ;;  %v3394_v32 = vsel %vm3393_vm3, %v8322_v18, 0 }
 0x2f0   : > { %v3289_v55 = vsel %vm3288_vm6, 1, %v6039_v1  ;;  %v3302_v34 = vmul.u32 %v3300_v15, %v3276_v8  ;;  %v3303_v20 = vmul.u32 %v3301_v22, %v3276_v8  ;;  %v3285_v50 = vshrl.u32 %v3281_v7, 16 }
 0x2f1   : > { %v3190_v61 = vand.u32 2147483647, %v3189_v30  ;;  %v3291_v17 = vadd.s32 %v3289_v55, %v3283_v2  ;;  %vm3292_vm7 = vc.u32 %v3290_v60, %v3286_v47  ;;  %v3305_v21 = vmul.u32 %v3301_v22, %v3277_v41 }
 0x2f2   : > { %v3293_v54 = vsel %vm3292_vm7, 1, %v6039_v1  ;;  %v3306_v36 = vshll.u32 %v3303_v20, 16  ;;  %v3308_v31 = vshll.u32 %v3304_v24, 16  ;;  %v3199_v63 = vsel %vm8366_vm5, 0, %v3197_v52 }
 0x2f3   : > { %v3193_v13 = vmul.f32 %v3192_v14, %v3190_v61  ;;  %v3295_v12 = vadd.s32 %v3293_v54, %v3291_v17  ;;  %v3390_v18 = vor.u32 8388608, %v8303_v10  ;;  %v3396_v11 = vand.u32 31, %v3394_v32 }
 0x2f4   : > { %vm3310_vm8 = vc.u32 %v3302_v34, %v3306_v36  ;;  %v3312_v4 = vadd.s32 %v3306_v36, %v3302_v34  ;;  %v3320_v8 = vmul.u32 %v8299_v26, %v8385_v53  ;;  %v3287_v37 = vshrl.u32 %v3282_v49, 16 }
 0x2f5   : > { %v3194_v9 = vxor.u32 2147483648, %v3193_v13  ;;  %v3296_v41 = vadd.s32 %v3295_v12, %v3285_v50  ;;  %v3311_v35 = vsel %vm3310_vm8, 1, %v6039_v1  ;;  %v8399_v62 = vsub.s32 32, %v3396_v11 }
 0x2f6   : > { %v3307_v25 = vshrl.u32 %v3303_v20, 16  ;;  %v3313_v16 = vadd.s32 %v3311_v35, %v3305_v21  ;;  %vm3314_vm9 = vc.u32 %v3312_v4, %v3308_v31  ;;  %v3216_v51 = vadd.s32 3, %v3199_v63 }
 0x2f7   : > { %v3195_v23 = vsel %vm3074_vm2, %v3194_v9, %v3193_v13  ;;  %v3309_v15 = vshrl.u32 %v3304_v24, 16  ;;  %v3315_v26 = vsel %vm3314_vm9, 1, %v6039_v1  ;;  %v8407_v29 = vshrl.u32 %v3394_v32, 5 }
 0x2f8   : > { %v3198_v10 = vsel %vm8366_vm5, %v8060_v19, %v3195_v23  ;;  %v3317_v45 = vadd.s32 %v3315_v26, %v3313_v16  ;;  %v3399_v7 = vshll.u32 %v6033_v40, %v3396_v11  ;;  %v8410_v3 = vadd.s32 %v3296_v41, %v3287_v37 }
 0x2f9   : > { %v3200_v27 = vmul.f32 %v3198_v10, %v3198_v10  ;;  %v8412_v5 = vadd.s32 %v3312_v4, %v3308_v31  ;;  %v3400_v52 = vshrl.u32 %v6034_v42, %v8399_v62  ;;  %v3402_v59 = vshll.u32 %v6034_v42, %v3396_v11 }
 0x2fa   : > { %v3318_v53 = vadd.s32 %v3317_v45, %v3307_v25  ;;  %v3403_v2 = vshrl.u32 %v6035_v44, %v8399_v62  ;;  %v3405_v58 = vshll.u32 %v6035_v44, %v3396_v11  ;;  %v3406_v30 = vshrl.u32 %v6036_v46, %v8399_v62 }
 0x2fb   : > { %v3201_v49 = vmul.f32 -0.001358992, %v3200_v27  ;;  %v3208_v0 = vmul.f32 -0.00019511016, %v3200_v27  ;;  %v3408_v14 = vshll.u32 %v6036_v46, %v3396_v11  ;;  %v3409_v47 = vshrl.u32 %v6037_v48, %v8399_v62 }
 0x2fc   : > { %v3319_v24 = vadd.s32 %v3318_v53, %v3309_v15  ;;  %v3411_v32 = vshll.u32 %v6037_v48, %v3396_v11  ;;  %v3217_v61 = vand.u32 3, %v3216_v51  ;;  %vm3322_vm10 = vc.u32 %v8410_v3, %v8412_v5 }
 0x2fd   : > { %v3202_v22 = vadd.f32 0.041655596, %v3201_v49  ;;  %v3209_v60 = vadd.f32 0.008332121, %v3208_v0  ;;  %v8428_v55 = vor.u32 %v3400_v52, %v3399_v7  ;;  %v3412_v34 = vshrl.u32 %v6038_v57, %v8399_v62 }
 0x2fe   : > { %v3323_v17 = vadd.s32 1, %v3319_v24  ;;  %v8432_v21 = vor.u32 %v3403_v2, %v3402_v59  ;;  %v8434_v13 = vor.u32 %v3406_v30, %v3405_v58  ;;  %v3410_v54 = vor.u32 %v3409_v47, %v3408_v14 }
 0x2ff   : > { %v3203_v20 = vmul.f32 %v3202_v22, %v3200_v27  ;;  %v3210_v50 = vmul.f32 %v3209_v60, %v3200_v27  ;;  %v3413_v36 = vor.u32 %v3412_v34, %v3411_v32  ;;  %vm3414_vm11 = vcmp.lt.s32.totalorder %v8407_v29, 1 }
 0x300   : > { %v3324_v12 = vsel %vm3322_vm10, %v3323_v17, %v3319_v24  ;;  %vm3417_vm12 = vcmp.lt.s32.totalorder %v8407_v29, 4  ;;  %vm3215_vm13 = vweird.f32 %v8060_v19  ;;  %vm3416_vm14 = vcmp.lt.s32.totalorder %v8407_v29, 3  ;;  %v5790_v17 = vld [vmem:[#allocation7 + $0x28] sm:$0xff] }
 0x301   : > { %v3204_v31 = vadd.f32 -0.4999988, %v3203_v20  ;;  %v3211_v63 = vadd.f32 -0.16666654, %v3210_v50  ;;  %v3325_v11 = vadd.s32 %v3324_v12, %v3320_v8  ;;  %v8440_v9 = vshll.u32 %v3390_v18, 8 }
 0x302   : > { %vm3222_vm15 = vcmp.eq.s32.totalorder %v3217_v61, 2  ;;  %vm3415_vm0 = vcmp.lt.s32.totalorder %v8407_v29, 2  ;;  %v3423_v35 = vsel %vm3417_vm12, %v3410_v54, 920167782  ;;  %v3426_v23 = vsel %vm3414_vm11, %v8432_v21, %v8434_v13 }
 0x303   : > { %v3205_v4 = vmul.f32 %v3204_v31, %v3200_v27  ;;  %v3212_v37 = vmul.f32 %v3211_v63, %v3200_v27  ;;  %v3326_v41 = vadd.s32 536870912, %v3325_v11  ;;  %v3427_v8 = vsel %vm3417_vm12, %v3413_v36, 1326507024  ;;  %v5791_v36 = vld [vmem:[#allocation8 + $0x20] sm:$0xff] }
 0x304   : > { %v3422_v16 = vsel %vm3414_vm11, %v8428_v55, %v8432_v21  ;;  %v3428_v51 = vsel %vm3416_vm14, %v3410_v54, %v3427_v8  ;;  %v3424_v26 = vsel %vm3416_vm14, %v8434_v13, %v3423_v35  ;;  %v3431_v45 = vand.u32 65535, %v8440_v9 }
 0x305   : > { %v3206_v25 = vadd.f32 1.0, %v3205_v4  ;;  %v3213_v18 = vadd.f32 1.0, %v3212_v37  ;;  %v8457_v15 = vshrl.u32 %v3326_v41, 30  ;;  %v3429_v27 = vsel %vm3415_vm0, %v3426_v23, %v3428_v51 }
 0x306   : > { %v3432_v59 = vshrl.u32 %v8440_v9, 16  ;;  %v3433_v49 = vand.u32 65535, %v3429_v27  ;;  %vm3218_vm1 = vcmp.lt.s32.totalorder %v3217_v61, 2  ;;  %vm3219_vm2 = vcmp.eq.s32.totalorder %v3217_v61, 0 }
 0x307   : > { %v3214_v7 = vmul.f32 %v3213_v18, %v3198_v10  ;;  %v3223_v52 = vxor.u32 2147483648, %v3206_v25  ;;  %v3328_v0 = vshll.u32 %v8457_v15, 30  ;;  %v3434_v53 = vshrl.u32 %v3429_v27, 16 }
 0x308   : > { %v3425_v30 = vsel %vm3415_vm0, %v3422_v16, %v3424_v26  ;;  %v8470_v14 = vmul.u32 %v3433_v49, %v3432_v59  ;;  %v3435_v10 = vmul.u32 %v3433_v49, %v3431_v45  ;;  %v8478_v54 = vmul.f32 %v5790_v17, %v8043_v56 }
 0x309   : > { %v3220_v2 = vxor.u32 2147483648, %v3214_v7  ;;  %v3224_v58 = vsel %vm3222_vm15, %v3223_v52, %v3214_v7  ;;  %v8472_v47 = vsub.s32 %v3325_v11, %v3328_v0  ;;  %v3436_v22 = vmul.u32 %v3434_v53, %v3431_v45 }
 0x30a   : > { %v3455_v60 = vand.u32 65535, %v3425_v30  ;;  %v3438_v32 = vmul.u32 %v3434_v53, %v3432_v59  ;;  %v3441_v34 = vshll.u32 %v8470_v14, 16  ;;  %v8481_v31 = vadd.f32 %v5791_v36, %v8284_v28 }
 0x30b   : > { %v3221_v24 = vsel %vm3219_vm2, %v3206_v25, %v3220_v2  ;;  %vm3330_vm3 = vcmp.lt.s32.totalorder %v8472_v47, 0  ;;  %v3331_v61 = vsub.s32 0, %v8472_v47  ;;  %v3439_v50 = vshll.u32 %v3436_v22, 16 }
 0x30c   : > { %v3225_v20 = vsel %vm3218_vm1, %v3221_v24, %v3224_v58  ;;  %v3456_v12 = vshrl.u32 %v3425_v30, 16  ;;  %v3457_v37 = vmul.u32 %v3455_v60, %v3431_v45  ;;  %v3459_v8 = vmul.u32 %v3455_v60, %v3432_v59 }
 0x30d   : > { %v3226_v63 = vsel %vm3215_vm13, nan, %v3225_v20  ;;  %v3332_v11 = vsel %vm3330_vm3, %v3331_v61, %v8472_v47  ;;  %vm3443_vm4 = vc.u32 %v3435_v10, %v3439_v50  ;;  %v3445_v4 = vadd.s32 %v3439_v50, %v3435_v10 }
 0x30e   : > { %5398 = vst [vmem:[%s6516_s25 + $0x88] sm:$0xff] %v3226_v63  ;;  %v3333_v41 = vclz %v3332_v11  ;;  %v3444_v35 = vsel %vm3443_vm4, 1, %v6039_v1  ;;  %v3458_v23 = vmul.u32 %v3456_v12, %v3431_v45  ;;  %vm3229_vm5 = vcmp.lt.s32.totalorder %v8230_v6, 0 }
 0x30f   : > { %v3398_v28 = vshrl.u32 %v6033_v40, %v8399_v62  ;;  %v3446_v25 = vadd.s32 %v3444_v35, %v3438_v32  ;;  %vm3447_vm6 = vc.u32 %v3445_v4, %v3441_v34  ;;  %v3460_v16 = vmul.u32 %v3456_v12, %v3432_v59  ;;  %v5792_v35 = vld [vmem:[#allocation8 + $0x28] sm:$0xff] }
 0x310   : > { %v5633_v19 = vadd.s32 4294967294, %v3333_v41  ;;  %v3448_v18 = vsel %vm3447_vm6, 1, %v6039_v1  ;;  %v3461_v51 = vshll.u32 %v3458_v23, 16  ;;  %vm8494_vm7 = vcmp.le.f32.partialorder %v3227_v43, 0.7853982 }
 0x311   : > { %v3321_v27 = vadd.s32 %v8412_v5, %v8410_v3  ;;  %v3419_v62 = vsel %vm3417_vm12, %v8434_v13, 2102212464  ;;  %v3440_v45 = vshrl.u32 %v3436_v22, 16  ;;  %v3450_v7 = vadd.s32 %v3448_v18, %v3446_v25 }
 0x312   : > { %vm5634_vm8 = vcmp.lt.s32.totalorder %v5633_v19, 0  ;;  %v3463_v52 = vshll.u32 %v3459_v8, 16  ;;  %vm3465_vm9 = vc.u32 %v3457_v37, %v3461_v51  ;;  %v3467_v59 = vadd.s32 %v3461_v51, %v3457_v37 }
 0x313   : > { %v3336_v49 = vsel %vm5634_vm8, 0, %v5633_v19  ;;  %v3351_v0 = vsub.s32 4, %v8457_v15  ;;  %v3466_v43 = vsel %vm3465_vm9, 1, %v6039_v1  ;;  %v3540_v53 = vand.u32 2139095040, %v8481_v31 }
 0x314   : > { %v3337_v2 = vsub.s32 32, %v3336_v49  ;;  %v3338_v3 = vshll.u32 %v8472_v47, %v3336_v49  ;;  %v3341_v5 = vsub.s32 4294967266, %v3336_v49  ;;  %v3468_v58 = vadd.s32 %v3466_v43, %v3460_v16 }
 0x315   : > { %v3418_v13 = vsel %vm3414_vm11, %v3398_v28, %v8428_v55  ;;  %v3420_v30 = vsel %vm3416_vm14, %v8432_v21, %v3419_v62  ;;  %v3442_v10 = vshrl.u32 %v8470_v14, 16  ;;  %v3451_v22 = vadd.s32 %v3450_v7, %v3440_v45 }
 0x316   : > { %v3339_v60 = vshrl.u32 %v3321_v27, %v3337_v2  ;;  %v3342_v24 = vadd.s32 127, %v3341_v5  ;;  %v3462_v32 = vshrl.u32 %v3458_v23, 16  ;;  %vm3469_vm10 = vc.u32 %v3467_v59, %v3463_v52 }
 0x317   : > { %v3352_v47 = vsel %vm3229_vm5, %v3351_v0, %v8457_v15  ;;  %v3470_v34 = vsel %vm3469_vm10, 1, %v6039_v1  ;;  %v3537_v20 = vand.u32 2147483647, %v8481_v31  ;;  %v3541_v55 = vshrl.u32 %v3540_v53, 23 }
 0x318   : > { %v3340_v61 = vor.u32 %v3339_v60, %v3338_v3  ;;  %v3343_v50 = vshll.u32 %v3342_v24, 23  ;;  %v3464_v17 = vshrl.u32 %v3459_v8, 16  ;;  %v3472_v21 = vadd.s32 %v3470_v34, %v3468_v58 }
 0x319   : > { %v3421_v14 = vsel %vm3415_vm0, %v3418_v13, %v3420_v30  ;;  %v3452_v36 = vadd.s32 %v3451_v22, %v3442_v10  ;;  %v3471_v63 = vadd.s32 %v3467_v59, %v3463_v52  ;;  %v5638_v12 = vadd.s32 4294967169, %v3541_v55 }
 0x31a   : > { %v3344_v11 = vor.u32 4788187, %v3343_v50  ;;  %v3347_v4 = vcvt.s32.f32 %v3340_v61  ;;  %v3354_v15 = vsel %vm8494_vm7, 0, %v3352_v47  ;;  %v3473_v37 = vadd.s32 %v3472_v21, %v3462_v32 }
 0x31b   : > { %v3547_v41 = vadd.s32 1, %v5638_v12  ;;  %v8524_v23 = vadd.f32 %v5792_v35, %v8478_v54  ;;  %v3371_v25 = vadd.s32 3, %v3354_v15  ;;  %v3475_v29 = vmul.u32 %v8440_v9, %v3421_v14 }
 0x31c   : > { %v3345_v28 = vand.u32 2147483647, %v3344_v11  ;;  %v3474_v8 = vadd.s32 %v3473_v37, %v3464_v17  ;;  %vm3477_vm11 = vc.u32 %v3452_v36, %v3471_v63  ;;  %v3544_v16 = vand.u32 8388607, %v3537_v20 }
 0x31d   : > { %vm3548_vm12 = vcmp.gt.s32.totalorder %v3547_v41, 0  ;;  %v3692_v62 = vand.u32 2147483647, %v8524_v23  ;;  %v8530_v54 = vand.u32 3, %v3371_v25  ;;  %v8536_v49 = vadd.s32 %v3471_v63, %v3452_v36 }
 0x31e   : > { %v3348_v19 = vmul.f32 %v3347_v4, %v3345_v28  ;;  %v3478_v18 = vadd.s32 1, %v3474_v8  ;;  %v3549_v51 = vsel %vm3548_vm12, %v3547_v41, 0  ;;  %v3545_v0 = vor.u32 8388608, %v3544_v16 }
 0x31f   : > { %v3551_v27 = vand.u32 31, %v3549_v51  ;;  %v3695_v43 = vand.u32 2139095040, %v8524_v23  ;;  %v8544_v3 = vshrl.u32 %v3549_v51, 5  ;;  %v8548_v5 = vand.u32 8388607, %v3692_v62 }
 0x320   : > { %v3349_v45 = vxor.u32 2147483648, %v3348_v19  ;;  %v3479_v7 = vsel %vm3477_vm11, %v3478_v18, %v3474_v8  ;;  %v8567_v21 = vshll.u32 %v3545_v0, 8  ;;  %vm3377_vm13 = vcmp.eq.s32.totalorder %v8530_v54, 2 }
 0x321   : > { %v3480_v52 = vadd.s32 %v3479_v7, %v3475_v29  ;;  %v8532_v59 = vsub.s32 32, %v3551_v27  ;;  %v3554_v13 = vshll.u32 %v6033_v40, %v3551_v27  ;;  %v3557_v30 = vshll.u32 %v6034_v42, %v3551_v27 }
 0x322   : > { %v3350_v9 = vsel %vm3229_vm5, %v3349_v45, %v3348_v19  ;;  %v3563_v10 = vshll.u32 %v6036_v46, %v3551_v27  ;;  %v3560_v34 = vshll.u32 %v6035_v44, %v3551_v27  ;;  %v3566_v50 = vshll.u32 %v6037_v48, %v3551_v27 }
 0x323   : > { %v8542_v53 = vsel %vm8494_vm7, %v8230_v6, %v3350_v9  ;;  %v3481_v2 = vadd.s32 536870912, %v3480_v52  ;;  %v3555_v26 = vshrl.u32 %v6034_v42, %v8532_v59  ;;  %v3558_v60 = vshrl.u32 %v6035_v44, %v8532_v59 }
 0x324   : > { %v3355_v58 = vmul.f32 %v8542_v53, %v8542_v53  ;;  %v3564_v24 = vshrl.u32 %v6037_v48, %v8532_v59  ;;  %v3561_v55 = vshrl.u32 %v6036_v46, %v8532_v59  ;;  %v3567_v17 = vshrl.u32 %v6038_v57, %v8532_v59 }
 0x325   : > { %v3482_v22 = vshrl.u32 %v3481_v2, 30  ;;  %v3696_v63 = vshrl.u32 %v3695_v43, 23  ;;  %v3700_v12 = vor.u32 8388608, %v8548_v5  ;;  %vm3384_vm14 = vcmp.lt.s32.totalorder %v8239_v38, 0 }
 0x326   : > { %v3356_v32 = vmul.f32 -0.001358992, %v3355_v58  ;;  %v3363_v47 = vmul.f32 -0.00019511016, %v3355_v58  ;;  %v3556_v4 = vor.u32 %v3555_v26, %v3554_v13  ;;  %v8574_v15 = vor.u32 %v3558_v60, %v3557_v30 }
 0x327   : > { %v3483_v61 = vshll.u32 %v3482_v22, 30  ;;  %v3565_v37 = vor.u32 %v3564_v24, %v3563_v10  ;;  %v8576_v28 = vor.u32 %v3561_v55, %v3560_v34  ;;  %vm3572_vm15 = vcmp.lt.s32.totalorder %v8544_v3, 4 }
 0x328   : > { %v3357_v14 = vadd.f32 0.041655596, %v3356_v32  ;;  %v3364_v36 = vadd.f32 0.008332121, %v3363_v47  ;;  %vm3374_vm0 = vcmp.eq.s32.totalorder %v8530_v54, 0  ;;  %v3568_v25 = vor.u32 %v3567_v17, %v3566_v50 }
 0x329   : > { %v8572_v11 = vsub.s32 %v3480_v52, %v3483_v61  ;;  %vm3569_vm2 = vcmp.lt.s32.totalorder %v8544_v3, 1  ;;  %vm3373_vm3 = vcmp.lt.s32.totalorder %v8530_v54, 2  ;;  %vm3571_vm4 = vcmp.lt.s32.totalorder %v8544_v3, 3 }
 0x32a   : > { %v3358_v41 = vmul.f32 %v3357_v14, %v3355_v58  ;;  %v3365_v35 = vmul.f32 %v3364_v36, %v3355_v58  ;;  %v5641_v18 = vadd.s32 4294967169, %v3696_v63  ;;  %vm3370_vm5 = vweird.f32 %v8230_v6 }
 0x32b   : > { %vm3485_vm1 = vcmp.lt.s32.totalorder %v8572_v11, 0  ;;  %v3486_v8 = vsub.s32 0, %v8572_v11  ;;  %v3506_v51 = vsub.s32 4, %v3482_v22  ;;  %vm3570_vm6 = vcmp.lt.s32.totalorder %v8544_v3, 2 }
 0x32c   : > { %v3359_v29 = vadd.f32 -0.4999988, %v3358_v41  ;;  %v3366_v19 = vadd.f32 -0.16666654, %v3365_v35  ;;  %v3578_v27 = vsel %vm3572_vm15, %v3565_v37, 920167782  ;;  %v3581_v9 = vsel %vm3569_vm2, %v8574_v15, %v8576_v28 }
 0x32d   : > { %v3487_v16 = vsel %vm3485_vm1, %v3486_v8, %v8572_v11  ;;  %v3577_v0 = vsel %vm3569_vm2, %v3556_v4, %v8574_v15  ;;  %v3579_v43 = vsel %vm3571_vm4, %v8576_v28, %v3578_v27  ;;  %v3582_v2 = vsel %vm3572_vm15, %v3568_v25, 1326507024 }
 0x32e   : > { %v3360_v45 = vmul.f32 %v3359_v29, %v3355_v58  ;;  %v3367_v7 = vmul.f32 %v3366_v19, %v3355_v58  ;;  %v3488_v52 = vclz %v3487_v16  ;;  %v3586_v13 = vand.u32 65535, %v8567_v21 }
 0x32f   : > { %v3583_v26 = vsel %vm3571_vm4, %v3565_v37, %v3582_v2  ;;  %v3553_v60 = vshrl.u32 %v6033_v40, %v8532_v59  ;;  %v3587_v32 = vshrl.u32 %v8567_v21, 16  ;;  %v3702_v47 = vadd.s32 1, %v5641_v18 }
 0x330   : > { %v3361_v58 = vadd.f32 1.0, %v3360_v45  ;;  %v3368_v30 = vadd.f32 1.0, %v3367_v7  ;;  %v5636_v10 = vadd.s32 4294967294, %v3488_v52  ;;  %v3584_v24 = vsel %vm3570_vm6, %v3581_v9, %v3583_v26 }
 0x331   : > { %v8613_v61 = vsel %vm3384_vm14, %v3506_v51, %v3482_v22  ;;  %v3580_v17 = vsel %vm3570_vm6, %v3577_v0, %v3579_v43  ;;  %v3588_v14 = vand.u32 65535, %v3584_v24  ;;  %v3589_v59 = vshrl.u32 %v3584_v24, 16 }
 0x332   : > { %v3369_v34 = vmul.f32 %v3368_v30, %v8542_v53  ;;  %v3378_v55 = vxor.u32 2147483648, %v3361_v58  ;;  %vm5637_vm7 = vcmp.lt.s32.totalorder %v5636_v10, 0  ;;  %vm8622_vm8 = vcmp.le.f32.partialorder %v3382_v33, 0.7853982 }
 0x333   : > { %v3491_v50 = vsel %vm5637_vm7, 0, %v5636_v10  ;;  %v3591_v35 = vmul.u32 %v3589_v59, %v3586_v13  ;;  %v3610_v8 = vand.u32 65535, %v3580_v17  ;;  %vm3703_vm9 = vcmp.gt.s32.totalorder %v3702_v47, 0 }
 0x334   : > { %v3375_v36 = vxor.u32 2147483648, %v3369_v34  ;;  %v3379_v63 = vsel %vm3377_vm13, %v3378_v55, %v3369_v34  ;;  %v3492_v37 = vsub.s32 32, %v3491_v50  ;;  %v3493_v41 = vshll.u32 %v8572_v11, %v3491_v50 }
 0x335   : > { %v3496_v22 = vsub.s32 4294967266, %v3491_v50  ;;  %v3590_v19 = vmul.u32 %v3588_v14, %v3586_v13  ;;  %v3592_v18 = vmul.u32 %v3588_v14, %v3587_v32  ;;  %v3573_v33 = vsel %vm3569_vm2, %v3553_v60, %v3556_v4 }
 0x336   : > { %v3376_v25 = vsel %vm3374_vm0, %v3361_v58, %v3375_v36  ;;  %v3494_v29 = vshrl.u32 %v8536_v49, %v3492_v37  ;;  %v3611_v51 = vshrl.u32 %v3580_v17, 16  ;;  %v3593_v7 = vmul.u32 %v3589_v59, %v3587_v32 }
 0x337   : > { %v3380_v11 = vsel %vm3373_vm3, %v3376_v25, %v3379_v63  ;;  %v3497_v16 = vadd.s32 127, %v3496_v22  ;;  %v3594_v52 = vshll.u32 %v3591_v35, 16  ;;  %v3574_v49 = vsel %vm3572_vm15, %v8576_v28, 2102212464 }
 0x338   : > { %v3381_v27 = vsel %vm3370_vm5, nan, %v3380_v11  ;;  %v3495_v45 = vor.u32 %v3494_v29, %v3493_v41  ;;  %v3596_v0 = vshll.u32 %v3592_v18, 16  ;;  %v3704_v54 = vsel %vm3703_vm9, %v3702_v47, 0 }
 0x339   : > { %v3498_v9 = vshll.u32 %v3497_v16, 23  ;;  %5399 = vst [vmem:[%s6516_s25 + $0x90] sm:$0xff] %v3381_v27  ;;  %vm3598_vm10 = vc.u32 %v3590_v19, %v3594_v52  ;;  %v3600_v2 = vadd.s32 %v3594_v52, %v3590_v19  ;;  %v3612_v4 = vmul.u32 %v3610_v8, %v3586_v13 }
 0x33a   : > { %v3502_v43 = vcvt.s32.f32 %v3495_v45  ;;  %v3599_v6 = vsel %vm3598_vm10, 1, %v6039_v1  ;;  %v3613_v30 = vmul.u32 %v3611_v51, %v3586_v13  ;;  %v3614_v10 = vmul.u32 %v3610_v8, %v3587_v32 }
 0x33b   : > { %v3499_v58 = vor.u32 4788187, %v3498_v9  ;;  %v3575_v26 = vsel %vm3571_vm4, %v8574_v15, %v3574_v49  ;;  %v3595_v60 = vshrl.u32 %v3591_v35, 16  ;;  %v3601_v24 = vadd.s32 %v3599_v6, %v3593_v7 }
 0x33c   : > { %vm3602_vm11 = vc.u32 %v3600_v2, %v3596_v0  ;;  %v3615_v34 = vmul.u32 %v3611_v51, %v3587_v32  ;;  %v3616_v55 = vshll.u32 %v3613_v30, 16  ;;  %v3509_v50 = vsel %vm8622_vm8, 0, %v8613_v61 }
 0x33d   : > { %v3500_v28 = vand.u32 2147483647, %v3499_v58  ;;  %v3603_v47 = vsel %vm3602_vm11, 1, %v6039_v1  ;;  %v3618_v14 = vshll.u32 %v3614_v10, 16  ;;  %v3706_v13 = vand.u32 31, %v3704_v54 }
 0x33e   : > { %v3605_v17 = vadd.s32 %v3603_v47, %v3601_v24  ;;  %v3576_v36 = vsel %vm3570_vm6, %v3573_v33, %v3575_v26  ;;  %vm3620_vm12 = vc.u32 %v3612_v4, %v3616_v55  ;;  %v3622_v15 = vadd.s32 %v3616_v55, %v3612_v4 }
 0x33f   : > { %v3503_v59 = vmul.f32 %v3502_v43, %v3500_v28  ;;  %v3597_v63 = vshrl.u32 %v3592_v18, 16  ;;  %v3621_v41 = vsel %vm3620_vm12, 1, %v6039_v1  ;;  %v8651_v22 = vsub.s32 32, %v3706_v13 }
 0x340   : > { %v3606_v37 = vadd.s32 %v3605_v17, %v3595_v60  ;;  %v3617_v35 = vshrl.u32 %v3613_v30, 16  ;;  %v3623_v8 = vadd.s32 %v3621_v41, %v3615_v34  ;;  %vm3624_vm13 = vc.u32 %v3622_v15, %v3618_v14 }
 0x341   : > { %v3504_v32 = vxor.u32 2147483648, %v3503_v59  ;;  %v3619_v61 = vshrl.u32 %v3614_v10, 16  ;;  %v3625_v25 = vsel %vm3624_vm13, 1, %v6039_v1  ;;  %v3630_v29 = vmul.u32 %v8567_v21, %v3576_v36 }
 0x342   : > { %v8655_v19 = vshrl.u32 %v3704_v54, 5  ;;  %v8659_v18 = vadd.s32 %v3622_v15, %v3618_v14  ;;  %v3627_v11 = vadd.s32 %v3625_v25, %v3623_v8  ;;  %v3709_v16 = vshll.u32 %v6033_v40, %v3706_v13 }
 0x343   : > { %v3505_v3 = vsel %vm3384_vm14, %v3504_v32, %v3503_v59  ;;  %v8665_v51 = vadd.s32 %v3606_v37, %v3597_v63  ;;  %v3712_v27 = vshll.u32 %v6034_v42, %v3706_v13  ;;  %v3713_v21 = vshrl.u32 %v6035_v44, %v8651_v22 }
 0x344   : > { %v3508_v33 = vsel %vm8622_vm8, %v8239_v38, %v3505_v3  ;;  %v3628_v7 = vadd.s32 %v3627_v11, %v3617_v35  ;;  %v3710_v52 = vshrl.u32 %v6034_v42, %v8651_v22  ;;  %v3715_v9 = vshll.u32 %v6035_v44, %v3706_v13 }
 0x345   : > { %v3510_v45 = vmul.f32 %v3508_v33, %v3508_v33  ;;  %v3716_v49 = vshrl.u32 %v6036_v46, %v8651_v22  ;;  %v3718_v53 = vshll.u32 %v6036_v46, %v3706_v13  ;;  %v3719_v0 = vshrl.u32 %v6037_v48, %v8651_v22 }
 0x346   : > { %v3721_v54 = vshll.u32 %v6037_v48, %v3706_v13  ;;  %v3629_v4 = vadd.s32 %v3628_v7, %v3619_v61  ;;  %v3722_v58 = vshrl.u32 %v6038_v57, %v8651_v22  ;;  %v3526_v6 = vadd.s32 3, %v3509_v50 }
 0x347   : > { %v3511_v43 = vmul.f32 -0.001358992, %v3510_v45  ;;  %v3518_v2 = vmul.f32 -0.00019511016, %v3510_v45  ;;  %vm3632_vm14 = vc.u32 %v8665_v51, %v8659_v18  ;;  %v8683_v30 = vor.u32 %v3713_v21, %v3712_v27 }
 0x348   : > { %v3720_v10 = vor.u32 %v3719_v0, %v3718_v53  ;;  %v3633_v24 = vadd.s32 1, %v3629_v4  ;;  %v8685_v28 = vor.u32 %v3716_v49, %v3715_v9  ;;  %v8687_v47 = vor.u32 %v3710_v52, %v3709_v16 }
 0x349   : > { %v3512_v26 = vadd.f32 0.041655596, %v3511_v43  ;;  %v3519_v60 = vadd.f32 0.008332121, %v3518_v2  ;;  %v3723_v34 = vor.u32 %v3722_v58, %v3721_v54  ;;  %vm3724_vm15 = vcmp.lt.s32.totalorder %v8655_v19, 1 }
 0x34a   : > { %vm3727_vm0 = vcmp.lt.s32.totalorder %v8655_v19, 4  ;;  %v3634_v17 = vsel %vm3632_vm14, %v3633_v24, %v3629_v4  ;;  %v3527_v14 = vand.u32 3, %v3526_v6  ;;  %vm3726_vm1 = vcmp.lt.s32.totalorder %v8655_v19, 3  ;;  %v5793_v24 = vld [vmem:[#allocation7 + $0x30] sm:$0xff] }
 0x34b   : > { %v3513_v55 = vmul.f32 %v3512_v26, %v3510_v45  ;;  %v3520_v50 = vmul.f32 %v3519_v60, %v3510_v45  ;;  %v3635_v13 = vadd.s32 %v3634_v17, %v3630_v29  ;;  %v3733_v59 = vsel %vm3727_vm0, %v3720_v10, 920167782 }
 0x34c   : > { %vm3725_vm2 = vcmp.lt.s32.totalorder %v8655_v19, 2  ;;  %v3736_v63 = vsel %vm3724_vm15, %v8683_v30, %v8685_v28  ;;  %vm3525_vm3 = vweird.f32 %v8239_v38  ;;  %v3732_v41 = vsel %vm3724_vm15, %v8687_v47, %v8683_v30 }
 0x34d   : > { %v3514_v36 = vadd.f32 -0.4999988, %v3513_v55  ;;  %v3521_v15 = vadd.f32 -0.16666654, %v3520_v50  ;;  %v3636_v37 = vadd.s32 536870912, %v3635_v13  ;;  %v8708_v35 = vshll.u32 %v3700_v12, 8 }
 0x34e   : > { %v3737_v32 = vsel %vm3727_vm0, %v3723_v34, 1326507024  ;;  %v3734_v25 = vsel %vm3726_vm1, %v8685_v28, %v3733_v59  ;;  %vm3528_vm4 = vcmp.lt.s32.totalorder %v3527_v14, 2  ;;  %vm3532_vm5 = vcmp.eq.s32.totalorder %v3527_v14, 2 }
 0x34f   : > { %v3515_v8 = vmul.f32 %v3514_v36, %v3510_v45  ;;  %v3522_v61 = vmul.f32 %v3521_v15, %v3510_v45  ;;  %v3738_v29 = vsel %vm3726_vm1, %v3720_v10, %v3737_v32  ;;  %v8715_v3 = vshrl.u32 %v3636_v37, 30 }
 0x350   : > { %v3739_v11 = vsel %vm3725_vm2, %v3736_v63, %v3738_v29  ;;  %v3741_v16 = vand.u32 65535, %v8708_v35  ;;  %v3742_v5 = vshrl.u32 %v8708_v35, 16  ;;  %v3735_v52 = vsel %vm3725_vm2, %v3732_v41, %v3734_v25  ;;  %v5795_v29 = vld [vmem:[#allocation8 + $0x30] sm:$0xff] }
 0x351   : > { %v3516_v12 = vadd.f32 1.0, %v3515_v8  ;;  %v3523_v27 = vadd.f32 1.0, %v3522_v61  ;;  %v3743_v21 = vand.u32 65535, %v3739_v11  ;;  %v3744_v45 = vshrl.u32 %v3739_v11, 16 }
 0x352   : > { %v3638_v7 = vshll.u32 %v8715_v3, 30  ;;  %vm3529_vm6 = vcmp.eq.s32.totalorder %v3527_v14, 0  ;;  %v3765_v2 = vand.u32 65535, %v3735_v52  ;;  %v2891_v34 = vmul.f32 %v5793_v24, %v8026_v39  ;;  %v5794_v14 = vld [vmem:[#allocation7 + $0x38] sm:$0xff] }
 0x353   : > { %v3524_v9 = vmul.f32 %v3523_v27, %v3508_v33  ;;  %v3533_v49 = vxor.u32 2147483648, %v3516_v12  ;;  %v3745_v53 = vmul.u32 %v3743_v21, %v3741_v16  ;;  %v3746_v0 = vmul.u32 %v3744_v45, %v3741_v16 }
 0x354   : > { %v8724_v54 = vsub.s32 %v3635_v13, %v3638_v7  ;;  %v8726_v43 = vmul.u32 %v3743_v21, %v3742_v5  ;;  %v3748_v6 = vmul.u32 %v3744_v45, %v3742_v5  ;;  %v3766_v33 = vshrl.u32 %v3735_v52, 16 }
 0x355   : > { %v3530_v4 = vxor.u32 2147483648, %v3524_v9  ;;  %v3534_v58 = vsel %vm3532_vm5, %v3533_v49, %v3524_v9  ;;  %v3749_v10 = vshll.u32 %v3746_v0, 16  ;;  %v3708_v59 = vshrl.u32 %v6033_v40, %v8651_v22 }
 0x356   : > { %vm3640_vm7 = vcmp.lt.s32.totalorder %v8724_v54, 0  ;;  %v3641_v26 = vsub.s32 0, %v8724_v54  ;;  %v3751_v60 = vshll.u32 %v8726_v43, 16  ;;  %v3767_v32 = vmul.u32 %v3765_v2, %v3741_v16 }
 0x357   : > { %v3531_v55 = vsel %vm3529_vm6, %v3516_v12, %v3530_v4  ;;  %vm3753_vm8 = vc.u32 %v3745_v53, %v3749_v10  ;;  %v3755_v50 = vadd.s32 %v3749_v10, %v3745_v53  ;;  %v3768_v8 = vmul.u32 %v3766_v33, %v3741_v16 }
 0x358   : > { %v3535_v17 = vsel %vm3528_vm4, %v3531_v55, %v3534_v58  ;;  %v3642_v13 = vsel %vm3640_vm7, %v3641_v26, %v8724_v54  ;;  %v3754_v36 = vsel %vm3753_vm8, 1, %v6039_v1  ;;  %v3769_v61 = vmul.u32 %v3765_v2, %v3742_v5 }
 0x359   : > { %v3536_v15 = vsel %vm3525_vm3, nan, %v3535_v17  ;;  %v3643_v63 = vclz %v3642_v13  ;;  %v3756_v37 = vadd.s32 %v3754_v36, %v3748_v6  ;;  %vm3757_vm9 = vc.u32 %v3755_v50, %v3751_v60 }
 0x35a   : > { %v3758_v41 = vsel %vm3757_vm9, 1, %v6039_v1  ;;  %5400 = vst [vmem:[%s6516_s25 + $0x98] sm:$0xff] %v3536_v15  ;;  %v2892_v25 = vmul.f32 %v5794_v14, %v8043_v56  ;;  %v8742_v11 = vadd.f32 %v5795_v29, %v2891_v34  ;;  %vm3539_vm10 = vcmp.lt.s32.totalorder %v8481_v31, 0 }
 0x35b   : > { %v5639_v22 = vadd.s32 4294967294, %v3643_v63  ;;  %v3631_v38 = vadd.s32 %v8659_v18, %v8665_v51  ;;  %v3750_v12 = vshrl.u32 %v3746_v0, 16  ;;  %v3760_v27 = vadd.s32 %v3758_v41, %v3756_v37  ;;  %v5796_v37 = vld [vmem:[#allocation8 + $0x38] sm:$0xff] }
 0x35c   : > { %v3771_v21 = vshll.u32 %v3768_v8, 16  ;;  %v3728_v16 = vsel %vm3724_vm15, %v3708_v59, %v8687_v47  ;;  %v3770_v45 = vmul.u32 %v3766_v33, %v3742_v5  ;;  %v3773_v7 = vshll.u32 %v3769_v61, 16 }
 0x35d   : > { %vm5640_vm11 = vcmp.lt.s32.totalorder %v5639_v22, 0  ;;  %v3661_v9 = vsub.s32 4, %v8715_v3  ;;  %v3729_v18 = vsel %vm3727_vm0, %v8685_v28, 2102212464  ;;  %v3752_v51 = vshrl.u32 %v8726_v43, 16 }
 0x35e   : > { %v3646_v52 = vsel %vm5640_vm11, 0, %v5639_v22  ;;  %vm3775_vm12 = vc.u32 %v3767_v32, %v3771_v21  ;;  %v3777_v49 = vadd.s32 %v3771_v21, %v3767_v32  ;;  %v3761_v0 = vadd.s32 %v3760_v27, %v3750_v12 }
 0x35f   : > { %v3647_v53 = vsub.s32 32, %v3646_v52  ;;  %v3648_v2 = vshll.u32 %v8724_v54, %v3646_v52  ;;  %v3651_v4 = vsub.s32 4294967266, %v3646_v52  ;;  %v3772_v58 = vshrl.u32 %v3768_v8, 16  ;;  %v5797_v52 = vld [vmem:[#allocation7 + $0x40] sm:$0xff] }
 0x360   : > { %v3776_v47 = vsel %vm3775_vm12, 1, %v6039_v1  ;;  %vm3779_vm13 = vc.u32 %v3777_v49, %v3773_v7  ;;  %v3662_v26 = vsel %vm3539_vm10, %v3661_v9, %v8715_v3  ;;  %v3730_v54 = vsel %vm3726_vm1, %v8683_v30, %v3729_v18 }
 0x361   : > { %v3649_v5 = vshrl.u32 %v3631_v38, %v3647_v53  ;;  %v3652_v6 = vadd.s32 127, %v3651_v4  ;;  %v3778_v10 = vadd.s32 %v3776_v47, %v3770_v45  ;;  %v3780_v28 = vsel %vm3779_vm13, 1, %v6039_v1 }
 0x362   : > { %v3850_v43 = vand.u32 2139095040, %v8742_v11  ;;  %v3774_v24 = vshrl.u32 %v3769_v61, 16  ;;  %v3762_v55 = vadd.s32 %v3761_v0, %v3752_v51  ;;  %v3781_v50 = vadd.s32 %v3777_v49, %v3773_v7  ;;  %v5798_v49 = vld [vmem:[#allocation7 + $0x48] sm:$0xff] }
 0x363   : > { %v3650_v60 = vor.u32 %v3649_v5, %v3648_v2  ;;  %v3653_v33 = vshll.u32 %v3652_v6, 23  ;;  %v3782_v34 = vadd.s32 %v3780_v28, %v3778_v10  ;;  %v3847_v17 = vand.u32 2147483647, %v8742_v11 }
 0x364   : > { %v3851_v13 = vshrl.u32 %v3850_v43, 23  ;;  %v3731_v3 = vsel %vm3725_vm2, %v3728_v16, %v3730_v54  ;;  %vm8770_vm14 = vcmp.le.f32.partialorder %v3537_v20, 0.7853982  ;;  %v8774_v41 = vadd.f32 %v5796_v37, %v2892_v25 }
 0x365   : > { %v3654_v59 = vor.u32 4788187, %v3653_v33  ;;  %v3657_v36 = vcvt.s32.f32 %v3650_v60  ;;  %v3783_v15 = vadd.s32 %v3782_v34, %v3772_v58  ;;  %v3664_v8 = vsel %vm8770_vm14, 0, %v3662_v26 }
 0x366   : > { %v5644_v63 = vadd.s32 4294967169, %v3851_v13  ;;  %v3785_v14 = vmul.u32 %v8708_v35, %v3731_v3  ;;  %vm3787_vm15 = vc.u32 %v3762_v55, %v3781_v50  ;;  %v3854_v19 = vand.u32 8388607, %v3847_v17 }
 0x367   : > { %v3655_v32 = vand.u32 2147483647, %v3654_v59  ;;  %v3784_v61 = vadd.s32 %v3783_v15, %v3774_v24  ;;  %v3681_v12 = vadd.s32 3, %v3664_v8  ;;  %v4005_v7 = vand.u32 2139095040, %v8774_v41 }
 0x368   : > { %v3857_v29 = vadd.s32 1, %v5644_v63  ;;  %v3855_v16 = vor.u32 8388608, %v3854_v19  ;;  %v8783_v35 = vmul.f32 %v5797_v52, %v8026_v39  ;;  %v8788_v53 = vmul.f32 %v5798_v49, %v8043_v56 }
 0x369   : > { %v3658_v20 = vmul.f32 %v3657_v36, %v3655_v32  ;;  %v3788_v22 = vadd.s32 1, %v3784_v61  ;;  %v8797_v0 = vand.u32 3, %v3681_v12  ;;  %v8799_v58 = vadd.s32 %v3781_v50, %v3762_v55 }
 0x36a   : > { %vm3858_vm0 = vcmp.gt.s32.totalorder %v3857_v29, 0  ;;  %v4002_v47 = vand.u32 2147483647, %v8774_v41  ;;  %v8805_v10 = vshll.u32 %v3855_v16, 8  ;;  %v4006_v26 = vshrl.u32 %v4005_v7, 23 }
 0x36b   : > { %v3659_v38 = vxor.u32 2147483648, %v3658_v20  ;;  %v3789_v27 = vsel %vm3787_vm15, %v3788_v22, %v3784_v61  ;;  %v3859_v25 = vsel %vm3858_vm0, %v3857_v29, 0  ;;  %vm3687_vm1 = vcmp.eq.s32.totalorder %v8797_v0, 2 }
 0x36c   : > { %v3790_v21 = vadd.s32 %v3789_v27, %v3785_v14  ;;  %v3861_v45 = vand.u32 31, %v3859_v25  ;;  %v8818_v15 = vshrl.u32 %v3859_v25, 5  ;;  %v5647_v8 = vadd.s32 4294967169, %v4006_v26 }
 0x36d   : > { %v3660_v9 = vsel %vm3539_vm10, %v3659_v38, %v3658_v20  ;;  %v8824_v61 = vand.u32 8388607, %v4002_v47  ;;  %vm3684_vm2 = vcmp.eq.s32.totalorder %v8797_v0, 0  ;;  %vm3683_vm4 = vcmp.lt.s32.totalorder %v8797_v0, 2 }
 0x36e   : > { %v8793_v2 = vsel %vm8770_vm14, %v8481_v31, %v3660_v9  ;;  %v3791_v4 = vadd.s32 536870912, %v3790_v21  ;;  %v3862_v18 = vsub.s32 32, %v3861_v45  ;;  %v3864_v6 = vshll.u32 %v6033_v40, %v3861_v45 }
 0x36f   : > { %v3665_v51 = vmul.f32 %v8793_v2, %v8793_v2  ;;  %v3867_v43 = vshll.u32 %v6034_v42, %v3861_v45  ;;  %v3870_v60 = vshll.u32 %v6035_v44, %v3861_v45  ;;  %v3873_v34 = vshll.u32 %v6036_v46, %v3861_v45 }
 0x370   : > { %v8802_v5 = vshrl.u32 %v3791_v4, 30  ;;  %v3865_v24 = vshrl.u32 %v6034_v42, %v3862_v18  ;;  %v3874_v55 = vshrl.u32 %v6037_v48, %v3862_v18  ;;  %v3868_v59 = vshrl.u32 %v6035_v44, %v3862_v18 }
 0x371   : > { %v3666_v54 = vmul.f32 -0.001358992, %v3665_v51  ;;  %v3673_v28 = vmul.f32 -0.00019511016, %v3665_v51  ;;  %v3871_v36 = vshrl.u32 %v6036_v46, %v3862_v18  ;;  %v3876_v30 = vshll.u32 %v6037_v48, %v3861_v45 }
 0x372   : > { %v3793_v33 = vshll.u32 %v8802_v5, 30  ;;  %v3877_v63 = vshrl.u32 %v6038_v57, %v3862_v18  ;;  %v3866_v19 = vor.u32 %v3865_v24, %v3864_v6  ;;  %v3875_v29 = vor.u32 %v3874_v55, %v3873_v34 }
 0x373   : > { %v3667_v50 = vadd.f32 0.041655596, %v3666_v54  ;;  %v3674_v13 = vadd.f32 0.008332121, %v3673_v28  ;;  %v3869_v38 = vor.u32 %v3868_v59, %v3867_v43  ;;  %v3872_v12 = vor.u32 %v3871_v36, %v3870_v60 }
 0x374   : > { %v8816_v3 = vsub.s32 %v3790_v21, %v3793_v33  ;;  %vm3680_vm5 = vweird.f32 %v8481_v31  ;;  %v3878_v25 = vor.u32 %v3877_v63, %v3876_v30  ;;  %vm3879_vm6 = vcmp.lt.s32.totalorder %v8818_v15, 1 }
 0x375   : > { %v3668_v37 = vmul.f32 %v3667_v50, %v3665_v51  ;;  %v3675_v32 = vmul.f32 %v3674_v13, %v3665_v51  ;;  %vm3882_vm7 = vcmp.lt.s32.totalorder %v8818_v15, 4  ;;  %vm3694_vm8 = vcmp.lt.s32.totalorder %v8524_v23, 0 }
 0x376   : > { %vm3795_vm3 = vcmp.lt.s32.totalorder %v8816_v3, 0  ;;  %v3796_v14 = vsub.s32 0, %v8816_v3  ;;  %vm3881_vm9 = vcmp.lt.s32.totalorder %v8818_v15, 3  ;;  %vm3880_vm10 = vcmp.lt.s32.totalorder %v8818_v15, 2 }
 0x377   : > { %v3669_v20 = vadd.f32 -0.4999988, %v3668_v37  ;;  %v3676_v22 = vadd.f32 -0.16666654, %v3675_v32  ;;  %v3888_v7 = vsel %vm3882_vm7, %v3875_v29, 920167782  ;;  %v3863_v54 = vshrl.u32 %v6033_v40, %v3862_v18 }
 0x378   : > { %v3797_v27 = vsel %vm3795_vm3, %v3796_v14, %v8816_v3  ;;  %v3896_v52 = vand.u32 65535, %v8805_v10  ;;  %v3897_v9 = vshrl.u32 %v8805_v10, 16  ;;  %vm8845_vm11 = vcmp.le.f32.partialorder %v3692_v62, 0.7853982 }
 0x379   : > { %v3670_v21 = vmul.f32 %v3669_v20, %v3665_v51  ;;  %v3677_v16 = vmul.f32 %v3676_v22, %v3665_v51  ;;  %v3798_v45 = vclz %v3797_v27  ;;  %v3887_v51 = vsel %vm3879_vm6, %v3866_v19, %v3869_v38 }
 0x37a   : > { %v3889_v28 = vsel %vm3881_vm9, %v3872_v12, %v3888_v7  ;;  %v3892_v43 = vsel %vm3882_vm7, %v3878_v25, 1326507024  ;;  %v4012_v60 = vadd.s32 1, %v5647_v8  ;;  %v3891_v34 = vsel %vm3879_vm6, %v3869_v38, %v3872_v12 }
 0x37b   : > { %v3671_v49 = vadd.f32 1.0, %v3670_v21  ;;  %v3678_v4 = vadd.f32 1.0, %v3677_v16  ;;  %v5642_v6 = vadd.s32 4294967294, %v3798_v45  ;;  %v3816_v55 = vsub.s32 4, %v8802_v5 }
 0x37c   : > { %v3890_v18 = vsel %vm3880_vm10, %v3887_v51, %v3889_v28  ;;  %v3893_v50 = vsel %vm3881_vm9, %v3875_v29, %v3892_v43  ;;  %v3884_v63 = vsel %vm3882_vm7, %v3872_v12, 2102212464  ;;  %vm4013_vm13 = vcmp.gt.s32.totalorder %v4012_v60, 0 }
 0x37d   : > { %v3679_v33 = vmul.f32 %v3678_v4, %v8793_v2  ;;  %v3688_v24 = vxor.u32 2147483648, %v3671_v49  ;;  %vm5643_vm12 = vcmp.lt.s32.totalorder %v5642_v6, 0  ;;  %v3894_v37 = vsel %vm3880_vm10, %v3891_v34, %v3893_v50 }
 0x37e   : > { %v3801_v62 = vsel %vm5643_vm12, 0, %v5642_v6  ;;  %v3920_v32 = vand.u32 65535, %v3890_v18  ;;  %v3898_v29 = vand.u32 65535, %v3894_v37  ;;  %v3899_v20 = vshrl.u32 %v3894_v37, 16 }
 0x37f   : > { %v3685_v13 = vxor.u32 2147483648, %v3679_v33  ;;  %v3689_v59 = vsel %vm3687_vm1, %v3688_v24, %v3679_v33  ;;  %v3802_v36 = vsub.s32 32, %v3801_v62  ;;  %v3803_v2 = vshll.u32 %v8816_v3, %v3801_v62 }
 0x380   : > { %v3806_v30 = vsub.s32 4294967266, %v3801_v62  ;;  %v3817_v12 = vsel %vm3694_vm8, %v3816_v55, %v8802_v5  ;;  %v3883_v21 = vsel %vm3879_vm6, %v3863_v54, %v3866_v19  ;;  %v3900_v45 = vmul.u32 %v3898_v29, %v3896_v52 }
 0x381   : > { %v3686_v8 = vsel %vm3684_vm2, %v3671_v49, %v3685_v13  ;;  %v3804_v14 = vshrl.u32 %v8799_v58, %v3802_v36  ;;  %v3885_v58 = vsel %vm3881_vm9, %v3869_v38, %v3884_v63  ;;  %v3901_v0 = vmul.u32 %v3899_v20, %v3896_v52 }
 0x382   : > { %v3690_v22 = vsel %vm3683_vm4, %v3686_v8, %v3689_v59  ;;  %v3807_v3 = vadd.s32 127, %v3806_v30  ;;  %v3902_v7 = vmul.u32 %v3898_v29, %v3897_v9  ;;  %v3819_v49 = vsel %vm8845_vm11, 0, %v3817_v12 }
 0x383   : > { %v3691_v27 = vsel %vm3680_vm5, nan, %v3690_v22  ;;  %v3805_v25 = vor.u32 %v3804_v14, %v3803_v2  ;;  %v3903_v5 = vmul.u32 %v3899_v20, %v3897_v9  ;;  %v3921_v4 = vshrl.u32 %v3890_v18, 16 }
 0x384   : > { %v3808_v16 = vshll.u32 %v3807_v3, 23  ;;  %5401 = vst [vmem:[%s6516_s25 + $0xa0] sm:$0xff] %v3691_v27  ;;  %v3924_v6 = vmul.u32 %v3920_v32, %v3897_v9  ;;  %v3904_v28 = vshll.u32 %v3901_v0, 16  ;;  %v3906_v43 = vshll.u32 %v3902_v7, 16 }
 0x385   : > { %v3812_v51 = vcvt.s32.f32 %v3805_v25  ;;  %v8888_v19 = vsel %vm3880_vm10, %v3883_v21, %v3885_v58  ;;  %v3922_v38 = vmul.u32 %v3920_v32, %v3896_v52  ;;  %v3923_v54 = vmul.u32 %v3921_v4, %v3896_v52 }
 0x386   : > { %v3809_v31 = vor.u32 4788187, %v3808_v16  ;;  %v4014_v33 = vsel %vm4013_vm13, %v4012_v60, 0  ;;  %v3905_v34 = vshrl.u32 %v3901_v0, 16  ;;  %vm3908_vm14 = vc.u32 %v3900_v45, %v3904_v28 }
 0x387   : > { %v3910_v62 = vadd.s32 %v3904_v28, %v3900_v45  ;;  %v3909_v55 = vsel %vm3908_vm14, 1, %v6039_v1  ;;  %v3925_v18 = vmul.u32 %v3921_v4, %v3897_v9  ;;  %v3926_v50 = vshll.u32 %v3923_v54, 16 }
 0x388   : > { %v3810_v24 = vand.u32 2147483647, %v3809_v31  ;;  %v3928_v13 = vshll.u32 %v3924_v6, 16  ;;  %v3911_v36 = vadd.s32 %v3909_v55, %v3903_v5  ;;  %v4016_v2 = vand.u32 31, %v4014_v33 }
 0x389   : > { %vm3912_vm15 = vc.u32 %v3910_v62, %v3906_v43  ;;  %v3907_v15 = vshrl.u32 %v3902_v7, 16  ;;  %vm3930_vm0 = vc.u32 %v3922_v38, %v3926_v50  ;;  %v3932_v52 = vadd.s32 %v3926_v50, %v3922_v38 }
 0x38a   : > { %v3813_v59 = vmul.f32 %v3812_v51, %v3810_v24  ;;  %v3913_v30 = vsel %vm3912_vm15, 1, %v6039_v1  ;;  %v3931_v37 = vsel %vm3930_vm0, 1, %v6039_v1  ;;  %v8894_v32 = vsub.s32 32, %v4016_v2 }
 0x38b   : > { %v3915_v60 = vadd.s32 %v3913_v30, %v3911_v36  ;;  %v3927_v8 = vshrl.u32 %v3923_v54, 16  ;;  %v3933_v14 = vadd.s32 %v3931_v37, %v3925_v18  ;;  %vm3934_vm1 = vc.u32 %v3932_v52, %v3928_v13 }
 0x38c   : > { %v3814_v63 = vxor.u32 2147483648, %v3813_v59  ;;  %v3940_v9 = vmul.u32 %v8805_v10, %v8888_v19  ;;  %v3836_v20 = vadd.s32 3, %v3819_v49  ;;  %v3935_v3 = vsel %vm3934_vm1, 1, %v6039_v1 }
 0x38d   : > { %v3916_v22 = vadd.s32 %v3915_v60, %v3905_v34  ;;  %v3929_v27 = vshrl.u32 %v3924_v6, 16  ;;  %v8904_v25 = vadd.s32 %v3932_v52, %v3928_v13  ;;  %v3937_v21 = vadd.s32 %v3935_v3, %v3933_v14 }
 0x38e   : > { %v3815_v29 = vsel %vm3694_vm8, %v3814_v63, %v3813_v59  ;;  %v4019_v10 = vshll.u32 %v6033_v40, %v4016_v2  ;;  %v4020_v45 = vshrl.u32 %v6034_v42, %v8894_v32  ;;  %v4022_v7 = vshll.u32 %v6034_v42, %v4016_v2 }
 0x38f   : > { %v3818_v12 = vsel %vm8845_vm11, %v8524_v23, %v3815_v29  ;;  %v8906_v16 = vadd.s32 %v3916_v22, %v3907_v15  ;;  %v3938_v0 = vadd.s32 %v3937_v21, %v3927_v8  ;;  %v4023_v49 = vshrl.u32 %v6035_v44, %v8894_v32 }
 0x390   : > { %v3820_v58 = vmul.f32 %v3818_v12, %v3818_v12  ;;  %v4028_v26 = vshll.u32 %v6036_v46, %v4016_v2  ;;  %v8915_v6 = vshrl.u32 %v4014_v33, 5  ;;  %v4025_v31 = vshll.u32 %v6035_v44, %v4016_v2 }
 0x391   : > { %v3939_v51 = vadd.s32 %v3938_v0, %v3929_v27  ;;  %vm3942_vm2 = vc.u32 %v8906_v16, %v8904_v25  ;;  %v4026_v28 = vshrl.u32 %v6036_v46, %v8894_v32  ;;  %v4029_v43 = vshrl.u32 %v6037_v48, %v8894_v32 }
 0x392   : > { %v3821_v5 = vmul.f32 -0.001358992, %v3820_v58  ;;  %v3828_v4 = vmul.f32 -0.00019511016, %v3820_v58  ;;  %v4031_v54 = vshll.u32 %v6037_v48, %v4016_v2  ;;  %v4032_v33 = vshrl.u32 %v6038_v57, %v8894_v32 }
 0x393   : > { %v3943_v24 = vadd.s32 1, %v3939_v51  ;;  %v8927_v34 = vor.u32 %v4020_v45, %v4019_v10  ;;  %v8929_v62 = vor.u32 %v4023_v49, %v4022_v7  ;;  %v4030_v55 = vor.u32 %v4029_v43, %v4028_v26 }
 0x394   : > { %v3822_v19 = vadd.f32 0.041655596, %v3821_v5  ;;  %v3829_v38 = vadd.f32 0.008332121, %v3828_v4  ;;  %vm4034_vm3 = vcmp.lt.s32.totalorder %v8915_v6, 1  ;;  %vm4037_vm4 = vcmp.lt.s32.totalorder %v8915_v6, 4 }
 0x395   : > { %v3944_v13 = vsel %vm3942_vm2, %v3943_v24, %v3939_v51  ;;  %v4010_v59 = vor.u32 8388608, %v8824_v61  ;;  %v8934_v36 = vor.u32 %v4026_v28, %v4025_v31  ;;  %v4033_v2 = vor.u32 %v4032_v33, %v4031_v54  ;;  %v5799_v61 = vld [vmem:[#allocation8 + $0x40] sm:$0xff] }
 0x396   : > { %v3823_v18 = vmul.f32 %v3822_v19, %v3820_v58  ;;  %v3830_v50 = vmul.f32 %v3829_v38, %v3820_v58  ;;  %v3945_v52 = vadd.s32 %v3944_v13, %v3940_v9  ;;  %vm4036_vm5 = vcmp.lt.s32.totalorder %v8915_v6, 3 }
 0x397   : > { %v3837_v63 = vand.u32 3, %v3836_v20  ;;  %vm4035_vm6 = vcmp.lt.s32.totalorder %v8915_v6, 2  ;;  %v4042_v60 = vsel %vm4034_vm3, %v8927_v34, %v8929_v62  ;;  %v4043_v37 = vsel %vm4037_vm4, %v4030_v55, 920167782 }
 0x398   : > { %v3824_v15 = vadd.f32 -0.4999988, %v3823_v18  ;;  %v3831_v30 = vadd.f32 -0.16666654, %v3830_v50  ;;  %v8945_v8 = vadd.f32 %v5799_v61, %v8783_v35  ;;  %v3946_v9 = vadd.s32 536870912, %v3945_v52 }
 0x399   : > { %v4044_v20 = vsel %vm4036_vm5, %v8934_v36, %v4043_v37  ;;  %v4046_v22 = vsel %vm4034_vm3, %v8929_v62, %v8934_v36  ;;  %v4047_v3 = vsel %vm4037_vm4, %v4033_v2, 1326507024  ;;  %v8956_v27 = vshll.u32 %v4010_v59, 8 }
 0x39a   : > { %v3825_v14 = vmul.f32 %v3824_v15, %v3820_v58  ;;  %v3832_v29 = vmul.f32 %v3831_v30, %v3820_v58  ;;  %v8958_v10 = vshrl.u32 %v3946_v9, 30  ;;  %v4045_v58 = vsel %vm4035_vm6, %v4042_v60, %v4044_v20 }
 0x39b   : > { %vm3835_vm7 = vweird.f32 %v8524_v23  ;;  %vm3842_vm8 = vcmp.eq.s32.totalorder %v3837_v63, 2  ;;  %v4048_v45 = vsel %vm4036_vm5, %v4030_v55, %v4047_v3  ;;  %v4051_v0 = vand.u32 65535, %v8956_v27 }
 0x39c   : > { %v3826_v21 = vadd.f32 1.0, %v3825_v14  ;;  %v3833_v35 = vadd.f32 1.0, %v3832_v29  ;;  %v3948_v26 = vshll.u32 %v8958_v10, 30  ;;  %v4075_v5 = vand.u32 65535, %v4045_v58 }
 0x39d   : > { %vm3839_vm9 = vcmp.eq.s32.totalorder %v3837_v63, 0  ;;  %v4049_v4 = vsel %vm4035_vm6, %v4046_v22, %v4048_v45  ;;  %v4052_v31 = vshrl.u32 %v8956_v27, 16  ;;  %v4076_v51 = vshrl.u32 %v4045_v58, 16 }
 0x39e   : > { %v3834_v7 = vmul.f32 %v3833_v35, %v3818_v12  ;;  %v3843_v49 = vxor.u32 2147483648, %v3826_v21  ;;  %vm3838_vm10 = vcmp.lt.s32.totalorder %v3837_v63, 2  ;;  %v3949_v19 = vsub.s32 %v3945_v52, %v3948_v26 }
 0x39f   : > { %v4018_v38 = vshrl.u32 %v6033_v40, %v8894_v32  ;;  %v4053_v54 = vand.u32 65535, %v4049_v4  ;;  %v4054_v12 = vshrl.u32 %v4049_v4, 16  ;;  %v4078_v33 = vmul.u32 %v4076_v51, %v4051_v0 }
 0x3a0   : > { %v3840_v28 = vxor.u32 2147483648, %v3834_v7  ;;  %v3844_v43 = vsel %vm3842_vm8, %v3843_v49, %v3834_v7  ;;  %vm3950_vm11 = vcmp.lt.s32.totalorder %v3949_v19, 0  ;;  %v3951_v55 = vsub.s32 0, %v3949_v19 }
 0x3a1   : > { %v4077_v18 = vmul.u32 %v4075_v5, %v4051_v0  ;;  %v4055_v13 = vmul.u32 %v4053_v54, %v4051_v0  ;;  %v4056_v59 = vmul.u32 %v4054_v12, %v4051_v0  ;;  %v4057_v2 = vmul.u32 %v4053_v54, %v4052_v31 }
 0x3a2   : > { %v3841_v24 = vsel %vm3839_vm9, %v3826_v21, %v3840_v28  ;;  %v3952_v30 = vsel %vm3950_vm11, %v3951_v55, %v3949_v19  ;;  %v4079_v52 = vmul.u32 %v4075_v5, %v4052_v31  ;;  %v4081_v63 = vshll.u32 %v4078_v33, 16 }
 0x3a3   : > { %v3845_v50 = vsel %vm3838_vm10, %v3841_v24, %v3844_v43  ;;  %vm3849_vm12 = vcmp.lt.s32.totalorder %v8742_v11, 0  ;;  %v3953_v32 = vclz %v3952_v30  ;;  %v4058_v60 = vmul.u32 %v4054_v12, %v4052_v31 }
 0x3a4   : > { %v3846_v15 = vsel %vm3835_vm7, nan, %v3845_v50  ;;  %v4059_v37 = vshll.u32 %v4056_v59, 16  ;;  %v4061_v61 = vshll.u32 %v4057_v2, 16  ;;  %v3941_v14 = vadd.s32 %v8904_v25, %v8906_v16 }
 0x3a5   : > { %5402 = vst [vmem:[%s6516_s25 + $0xa8] sm:$0xff] %v3846_v15  ;;  %v3971_v29 = vsub.s32 4, %v8958_v10  ;;  %v4039_v23 = vsel %vm4037_vm4, %v8934_v36, 2102212464  ;;  %v4080_v9 = vmul.u32 %v4076_v51, %v4052_v31  ;;  %v5645_v20 = vadd.s32 4294967294, %v3953_v32 }
 0x3a6   : > { %vm4063_vm13 = vc.u32 %v4055_v13, %v4059_v37  ;;  %v4065_v22 = vadd.s32 %v4059_v37, %v4055_v13  ;;  %vm4085_vm14 = vc.u32 %v4077_v18, %v4081_v63  ;;  %v4083_v21 = vshll.u32 %v4079_v52, 16  ;;  %v5800_v37 = vld [vmem:[#allocation8 + $0x48] sm:$0xff] }
 0x3a7   : > { %v4064_v3 = vsel %vm4063_vm13, 1, %v6039_v1  ;;  %v4086_v35 = vsel %vm4085_vm14, 1, %v6039_v1  ;;  %v4087_v58 = vadd.s32 %v4081_v63, %v4077_v18  ;;  %vm5646_vm15 = vcmp.lt.s32.totalorder %v5645_v20, 0 }
 0x3a8   : > { %v4060_v45 = vshrl.u32 %v4056_v59, 16  ;;  %v4066_v25 = vadd.s32 %v4064_v3, %v4058_v60  ;;  %vm4067_vm0 = vc.u32 %v4065_v22, %v4061_v61  ;;  %v3956_v16 = vsel %vm5646_vm15, 0, %v5645_v20 }
 0x3a9   : > { %v4062_v0 = vshrl.u32 %v4057_v2, 16  ;;  %v4068_v7 = vsel %vm4067_vm0, 1, %v6039_v1  ;;  %v4088_v36 = vadd.s32 %v4086_v35, %v4080_v9  ;;  %v3957_v49 = vsub.s32 32, %v3956_v16 }
 0x3aa   : > { %v3958_v26 = vshll.u32 %v3949_v19, %v3956_v16  ;;  %v3961_v5 = vsub.s32 4294967266, %v3956_v16  ;;  %v4070_v4 = vadd.s32 %v4068_v7, %v4066_v25  ;;  %v4038_v31 = vsel %vm4034_vm3, %v4018_v38, %v8927_v34 }
 0x3ab   : > { %v4040_v51 = vsel %vm4036_vm5, %v8929_v62, %v4039_v23  ;;  %v4082_v28 = vshrl.u32 %v4078_v33, 16  ;;  %vm4089_vm1 = vc.u32 %v4087_v58, %v4083_v21  ;;  %v3959_v43 = vshrl.u32 %v3941_v14, %v3957_v49 }
 0x3ac   : > { %v3962_v54 = vadd.s32 127, %v3961_v5  ;;  %v4071_v12 = vadd.s32 %v4070_v4, %v4060_v45  ;;  %v4090_v24 = vsel %vm4089_vm1, 1, %v6039_v1  ;;  %v3972_v19 = vsel %vm3849_vm12, %v3971_v29, %v8958_v10 }
 0x3ad   : > { %v4084_v55 = vshrl.u32 %v4079_v52, 16  ;;  %v4092_v18 = vadd.s32 %v4090_v24, %v4088_v36  ;;  %v4160_v50 = vand.u32 2139095040, %v8945_v8  ;;  %v3960_v34 = vor.u32 %v3959_v43, %v3958_v26 }
 0x3ae   : > { %v3963_v38 = vshll.u32 %v3962_v54, 23  ;;  %v4072_v13 = vadd.s32 %v4071_v12, %v4062_v0  ;;  %v4091_v59 = vadd.s32 %v4087_v58, %v4083_v21  ;;  %v4041_v62 = vsel %vm4035_vm6, %v4038_v31, %v4040_v51 }
 0x3af   : > { %v4093_v33 = vadd.s32 %v4092_v18, %v4082_v28  ;;  %v4161_v2 = vshrl.u32 %v4160_v50, 23  ;;  %vm9000_vm2 = vcmp.le.f32.partialorder %v3847_v17, 0.7853982  ;;  %v3967_v30 = vcvt.s32.f32 %v3960_v34 }
 0x3b0   : > { %v3964_v10 = vor.u32 4788187, %v3963_v38  ;;  %v3974_v52 = vsel %vm9000_vm2, 0, %v3972_v19  ;;  %v4157_v32 = vand.u32 2147483647, %v8945_v8  ;;  %v9008_v6 = vadd.f32 %v5800_v37, %v8788_v53 }
 0x3b1   : > { %v4094_v63 = vadd.s32 %v4093_v33, %v4084_v55  ;;  %v5650_v60 = vadd.s32 4294967169, %v4161_v2  ;;  %v4095_v14 = vmul.u32 %v8956_v27, %v4041_v62  ;;  %vm4097_vm3 = vc.u32 %v4072_v13, %v4091_v59 }
 0x3b2   : > { %v3965_v61 = vand.u32 2147483647, %v3964_v10  ;;  %v3991_v9 = vadd.s32 3, %v3974_v52  ;;  %v4164_v22 = vand.u32 8388607, %v4157_v32  ;;  %v4315_v58 = vand.u32 2139095040, %v9008_v6 }
 0x3b3   : > { %v4098_v17 = vadd.s32 1, %v4094_v63  ;;  %v4167_v29 = vadd.s32 1, %v5650_v60  ;;  %v9023_v0 = vadd.s32 %v4091_v59, %v4072_v13  ;;  %v4312_v36 = vand.u32 2147483647, %v9008_v6 }
 0x3b4   : > { %v3968_v23 = vmul.f32 %v3967_v30, %v3965_v61  ;;  %v9016_v27 = vand.u32 3, %v3991_v9  ;;  %v4165_v5 = vor.u32 8388608, %v4164_v22  ;;  %v4316_v4 = vshrl.u32 %v4315_v58, 23 }
 0x3b5   : > { %v4099_v20 = vsel %vm4097_vm3, %v4098_v17, %v4094_v63  ;;  %vm4168_vm4 = vcmp.gt.s32.totalorder %v4167_v29, 0  ;;  %vm4004_vm8 = vcmp.lt.s32.totalorder %v8774_v41, 0  ;;  %vm3990_vm13 = vweird.f32 %v8742_v11 }
 0x3b6   : > { %v3969_v3 = vxor.u32 2147483648, %v3968_v23  ;;  %v4100_v21 = vadd.s32 %v4099_v20, %v4095_v14  ;;  %v4169_v35 = vsel %vm4168_vm4, %v4167_v29, 0  ;;  %v9049_v62 = vshll.u32 %v4165_v5, 8 }
 0x3b7   : > { %v4171_v53 = vand.u32 31, %v4169_v35  ;;  %v9032_v31 = vshrl.u32 %v4169_v35, 5  ;;  %vm3997_vm5 = vcmp.eq.s32.totalorder %v9016_v27, 2  ;;  %vm3994_vm7 = vcmp.eq.s32.totalorder %v9016_v27, 0 }
 0x3b8   : > { %v3970_v45 = vsel %vm3849_vm12, %v3969_v3, %v3968_v23  ;;  %v4101_v25 = vadd.s32 536870912, %v4100_v21  ;;  %vm3993_vm11 = vcmp.lt.s32.totalorder %v9016_v27, 2  ;;  %v5653_v9 = vadd.s32 4294967169, %v4316_v4 }
 0x3b9   : > { %v9021_v16 = vsel %vm9000_vm2, %v8742_v11, %v3970_v45  ;;  %v9025_v7 = vsub.s32 32, %v4171_v53  ;;  %v4174_v51 = vshll.u32 %v6033_v40, %v4171_v53  ;;  %v4183_v43 = vshll.u32 %v6036_v46, %v4171_v53 }
 0x3ba   : > { %v3975_v49 = vmul.f32 %v9021_v16, %v9021_v16  ;;  %v9030_v26 = vshrl.u32 %v4101_v25, 30  ;;  %v4177_v19 = vshll.u32 %v6034_v42, %v4171_v53  ;;  %v4180_v18 = vshll.u32 %v6035_v44, %v4171_v53 }
 0x3bb   : > { %v4175_v28 = vshrl.u32 %v6034_v42, %v9025_v7  ;;  %v4178_v55 = vshrl.u32 %v6035_v44, %v9025_v7  ;;  %v4181_v50 = vshrl.u32 %v6036_v46, %v9025_v7  ;;  %v4184_v34 = vshrl.u32 %v6037_v48, %v9025_v7 }
 0x3bc   : > { %v3976_v54 = vmul.f32 -0.001358992, %v3975_v49  ;;  %v3983_v12 = vmul.f32 -0.00019511016, %v3975_v49  ;;  %v4103_v24 = vshll.u32 %v9030_v26, 30  ;;  %v4186_v15 = vshll.u32 %v6037_v48, %v4171_v53 }
 0x3bd   : > { %v9052_v33 = vor.u32 %v4175_v28, %v4174_v51  ;;  %v4185_v2 = vor.u32 %v4184_v34, %v4183_v43  ;;  %v4187_v10 = vshrl.u32 %v6038_v57, %v9025_v7  ;;  %v9061_v60 = vor.u32 %v4178_v55, %v4177_v19 }
 0x3be   : > { %v3977_v38 = vadd.f32 0.041655596, %v3976_v54  ;;  %v3984_v13 = vadd.f32 0.008332121, %v3983_v12  ;;  %v9047_v59 = vsub.s32 %v4100_v21, %v4103_v24  ;;  %v4182_v37 = vor.u32 %v4181_v50, %v4180_v18 }
 0x3bf   : > { %vm4189_vm9 = vcmp.lt.s32.totalorder %v9032_v31, 1  ;;  %vm4191_vm10 = vcmp.lt.s32.totalorder %v9032_v31, 3  ;;  %vm4192_vm12 = vcmp.lt.s32.totalorder %v9032_v31, 4  ;;  %v4188_v23 = vor.u32 %v4187_v10, %v4186_v15 }
 0x3c0   : > { %v3978_v30 = vmul.f32 %v3977_v38, %v3975_v49  ;;  %v3985_v52 = vmul.f32 %v3984_v13, %v3975_v49  ;;  %vm4105_vm6 = vcmp.lt.s32.totalorder %v9047_v59, 0  ;;  %v4106_v63 = vsub.s32 0, %v9047_v59 }
 0x3c1   : > { %v9071_v20 = vand.u32 8388607, %v4312_v36  ;;  %v4198_v21 = vsel %vm4192_vm12, %v4185_v2, 920167782  ;;  %v4206_v35 = vand.u32 65535, %v9049_v62  ;;  %vm4190_vm14 = vcmp.lt.s32.totalorder %v9032_v31, 2 }
 0x3c2   : > { %v3979_v61 = vadd.f32 -0.4999988, %v3978_v30  ;;  %v3986_v14 = vadd.f32 -0.16666654, %v3985_v52  ;;  %v4107_v17 = vsel %vm4105_vm6, %v4106_v63, %v9047_v59  ;;  %v4197_v53 = vsel %vm4189_vm9, %v9052_v33, %v9061_v60 }
 0x3c3   : > { %v4108_v29 = vclz %v4107_v17  ;;  %v4199_v45 = vsel %vm4191_vm10, %v4182_v37, %v4198_v21  ;;  %v4207_v4 = vshrl.u32 %v9049_v62, 16  ;;  %v4201_v51 = vsel %vm4189_vm9, %v9061_v60, %v4182_v37 }
 0x3c4   : > { %v3980_v22 = vmul.f32 %v3979_v61, %v3975_v49  ;;  %v3987_v3 = vmul.f32 %v3986_v14, %v3975_v49  ;;  %v4126_v49 = vsub.s32 4, %v9030_v26  ;;  %v4202_v28 = vsel %vm4192_vm12, %v4188_v23, 1326507024 }
 0x3c5   : > { %v5648_v58 = vadd.s32 4294967294, %v4108_v29  ;;  %v9090_v43 = vadd.s32 1, %v5653_v9  ;;  %v4200_v19 = vsel %vm4190_vm14, %v4197_v53, %v4199_v45  ;;  %v4203_v34 = vsel %vm4191_vm10, %v4185_v2, %v4202_v28 }
 0x3c6   : > { %v3981_v25 = vadd.f32 1.0, %v3980_v22  ;;  %v3988_v5 = vadd.f32 1.0, %v3987_v3  ;;  %v4173_v15 = vshrl.u32 %v6033_v40, %v9025_v7  ;;  %v4230_v52 = vand.u32 65535, %v4200_v19 }
 0x3c7   : > { %vm5649_vm15 = vcmp.lt.s32.totalorder %v5648_v58, 0  ;;  %v4231_v14 = vshrl.u32 %v4200_v19, 16  ;;  %vm9116_vm0 = vcmp.le.f32.partialorder %v4002_v47, 0.7853982  ;;  %v4194_v29 = vsel %vm4192_vm12, %v4182_v37, 2102212464 }
 0x3c8   : > { %v3989_v54 = vmul.f32 %v3988_v5, %v9021_v16  ;;  %v3998_v12 = vxor.u32 2147483648, %v3981_v25  ;;  %v4111_v24 = vsel %vm5649_vm15, 0, %v5648_v58  ;;  %v9103_v16 = vsel %vm4004_vm8, %v4126_v49, %v9030_v26 }
 0x3c9   : > { %v4112_v55 = vsub.s32 32, %v4111_v24  ;;  %v4113_v18 = vshll.u32 %v9047_v59, %v4111_v24  ;;  %v4116_v50 = vsub.s32 4294967266, %v4111_v24  ;;  %v4204_v59 = vsel %vm4190_vm14, %v4201_v51, %v4203_v34 }
 0x3ca   : > { %v3995_v38 = vxor.u32 2147483648, %v3989_v54  ;;  %v3999_v13 = vsel %vm3997_vm5, %v3998_v12, %v3989_v54  ;;  %v4208_v63 = vand.u32 65535, %v4204_v59  ;;  %v4209_v61 = vshrl.u32 %v4204_v59, 16 }
 0x3cb   : > { %v4114_v10 = vshrl.u32 %v9023_v0, %v4112_v55  ;;  %v4117_v30 = vadd.s32 127, %v4116_v50  ;;  %v4193_v47 = vsel %vm4189_vm9, %v4173_v15, %v9052_v33  ;;  %v4233_v58 = vmul.u32 %v4231_v14, %v4206_v35 }
 0x3cc   : > { %v3996_v2 = vsel %vm3994_vm7, %v3981_v25, %v3995_v38  ;;  %v4210_v9 = vmul.u32 %v4208_v63, %v4206_v35  ;;  %v4211_v22 = vmul.u32 %v4209_v61, %v4206_v35  ;;  %v4212_v3 = vmul.u32 %v4208_v63, %v4207_v4 }
 0x3cd   : > { %v4000_v26 = vsel %vm3993_vm11, %v3996_v2, %v3999_v13  ;;  %v4115_v0 = vor.u32 %v4114_v10, %v4113_v18  ;;  %v4118_v17 = vshll.u32 %v4117_v30, 23  ;;  %v4213_v53 = vmul.u32 %v4209_v61, %v4207_v4 }
 0x3ce   : > { %v4001_v23 = vsel %vm3990_vm13, nan, %v4000_v26  ;;  %v4214_v45 = vshll.u32 %v4211_v22, 16  ;;  %v4216_v25 = vshll.u32 %v4212_v3, 16  ;;  %v4232_v5 = vmul.u32 %v4230_v52, %v4206_v35 }
 0x3cf   : > { %v4119_v21 = vor.u32 4788187, %v4118_v17  ;;  %v4122_v27 = vcvt.s32.f32 %v4115_v0  ;;  %5403 = vst [vmem:[%s6516_s25 + $0xb0] sm:$0xff] %v4001_v23  ;;  %v4195_v11 = vsel %vm4191_vm10, %v9061_v60, %v4194_v29  ;;  %v4234_v37 = vmul.u32 %v4230_v52, %v4207_v4  ;;  %v5801_v29 = vld [vmem:[#allocation7 + $0x50] sm:$0xff] }
 0x3d0   : > { %v4236_v51 = vshll.u32 %v4233_v58, 16  ;;  %v4215_v28 = vshrl.u32 %v4211_v22, 16  ;;  %vm4218_vm1 = vc.u32 %v4210_v9, %v4214_v45  ;;  %v4220_v54 = vadd.s32 %v4214_v45, %v4210_v9 }
 0x3d1   : > { %v4120_v49 = vand.u32 2147483647, %v4119_v21  ;;  %v4235_v12 = vmul.u32 %v4231_v14, %v4207_v4  ;;  %v4217_v19 = vshrl.u32 %v4212_v3, 16  ;;  %v4219_v33 = vsel %vm4218_vm1, 1, %v6039_v1 }
 0x3d2   : > { %v4238_v55 = vshll.u32 %v4234_v37, 16  ;;  %v4221_v18 = vadd.s32 %v4219_v33, %v4213_v53  ;;  %vm4222_vm2 = vc.u32 %v4220_v54, %v4216_v25  ;;  %vm4240_vm3 = vc.u32 %v4232_v5, %v4236_v51 }
 0x3d3   : > { %v4123_v24 = vmul.f32 %v4122_v27, %v4120_v49  ;;  %v4242_v35 = vadd.s32 %v4236_v51, %v4232_v5  ;;  %v4223_v34 = vsel %vm4222_vm2, 1, %v6039_v1  ;;  %v4241_v60 = vsel %vm4240_vm3, 1, %v6039_v1 }
 0x3d4   : > { %vm4323_vm4 = vcmp.gt.s32.totalorder %v9090_v43, 0  ;;  %v4225_v38 = vadd.s32 %v4223_v34, %v4221_v18  ;;  %v4237_v13 = vshrl.u32 %v4233_v58, 16  ;;  %v4243_v15 = vadd.s32 %v4241_v60, %v4235_v12 }
 0x3d5   : > { %v4124_v50 = vxor.u32 2147483648, %v4123_v24  ;;  %vm4244_vm5 = vc.u32 %v4242_v35, %v4238_v55  ;;  %v4129_v10 = vsel %vm9116_vm0, 0, %v9103_v16  ;;  %v4324_v59 = vsel %vm4323_vm4, %v9090_v43, 0 }
 0x3d6   : > { %v4245_v30 = vsel %vm4244_vm5, 1, %v6039_v1  ;;  %v4226_v2 = vadd.s32 %v4225_v38, %v4215_v28  ;;  %v4239_v63 = vshrl.u32 %v4234_v37, 16  ;;  %v4196_v26 = vsel %vm4190_vm14, %v4193_v47, %v4195_v11 }
 0x3d7   : > { %v4125_v4 = vsel %vm4004_vm8, %v4124_v50, %v4123_v24  ;;  %v4247_v61 = vadd.s32 %v4245_v30, %v4243_v15  ;;  %v9147_v0 = vadd.s32 %v4242_v35, %v4238_v55  ;;  %v4326_v17 = vand.u32 31, %v4324_v59 }
 0x3d8   : > { %v4128_v52 = vsel %vm9116_vm0, %v8774_v41, %v4125_v4  ;;  %v9150_v16 = vmul.f32 %v5801_v29, %v8026_v39  ;;  %v9152_v23 = vadd.s32 %v4226_v2, %v4217_v19  ;;  %v4320_v7 = vor.u32 8388608, %v9071_v20 }
 0x3d9   : > { %v4130_v14 = vmul.f32 %v4128_v52, %v4128_v52  ;;  %v4248_v43 = vadd.s32 %v4247_v61, %v4237_v13  ;;  %v4146_v3 = vadd.s32 3, %v4129_v10  ;;  %v4327_v21 = vsub.s32 32, %v4326_v17 }
 0x3da   : > { %v4250_v31 = vmul.u32 %v9049_v62, %v4196_v26  ;;  %v9156_v47 = vshrl.u32 %v4324_v59, 5  ;;  %v4329_v58 = vshll.u32 %v6033_v40, %v4326_v17  ;;  %vm4252_vm6 = vc.u32 %v9152_v23, %v9147_v0 }
 0x3db   : > { %v4131_v9 = vmul.f32 -0.001358992, %v4130_v14  ;;  %v4138_v22 = vmul.f32 -0.00019511016, %v4130_v14  ;;  %v4249_v27 = vadd.s32 %v4248_v43, %v4239_v63  ;;  %v4330_v25 = vshrl.u32 %v6034_v42, %v4327_v21 }
 0x3dc   : > { %v4332_v20 = vshll.u32 %v6034_v42, %v4326_v17  ;;  %v4333_v49 = vshrl.u32 %v6035_v44, %v4327_v21  ;;  %v4335_v11 = vshll.u32 %v6035_v44, %v4326_v17  ;;  %v4336_v51 = vshrl.u32 %v6036_v46, %v4327_v21 }
 0x3dd   : > { %v4132_v53 = vadd.f32 0.041655596, %v4131_v9  ;;  %v4139_v45 = vadd.f32 0.008332121, %v4138_v22  ;;  %v4253_v5 = vadd.s32 1, %v4249_v27  ;;  %v4338_v28 = vshll.u32 %v6036_v46, %v4326_v17 }
 0x3de   : > { %v4147_v54 = vand.u32 3, %v4146_v3  ;;  %v4339_v24 = vshrl.u32 %v6037_v48, %v4327_v21  ;;  %vm4344_vm7 = vcmp.lt.s32.totalorder %v9156_v47, 1  ;;  %v4331_v18 = vor.u32 %v4330_v25, %v4329_v58 }
 0x3df   : > { %v4133_v37 = vmul.f32 %v4132_v53, %v4130_v14  ;;  %v4140_v62 = vmul.f32 %v4139_v45, %v4130_v14  ;;  %v4254_v12 = vsel %vm4252_vm6, %v4253_v5, %v4249_v27  ;;  %vm4145_vm8 = vweird.f32 %v8774_v41 }
 0x3e0   : > { %v4255_v55 = vadd.s32 %v4254_v12, %v4250_v31  ;;  %v4334_v35 = vor.u32 %v4333_v49, %v4332_v20  ;;  %v4340_v50 = vor.u32 %v4339_v24, %v4338_v28  ;;  %v4341_v34 = vshll.u32 %v6037_v48, %v4326_v17 }
 0x3e1   : > { %v4134_v19 = vadd.f32 -0.4999988, %v4133_v37  ;;  %v4141_v33 = vadd.f32 -0.16666654, %v4140_v62  ;;  %v4342_v60 = vshrl.u32 %v6038_v57, %v4327_v21  ;;  %v4337_v4 = vor.u32 %v4336_v51, %v4335_v11 }
 0x3e2   : > { %v4256_v15 = vadd.s32 536870912, %v4255_v55  ;;  %vm4152_vm9 = vcmp.eq.s32.totalorder %v4147_v54, 2  ;;  %vm4347_vm10 = vcmp.lt.s32.totalorder %v9156_v47, 4  ;;  %v9173_v30 = vshll.u32 %v4320_v7, 8 }
 0x3e3   : > { %v4135_v38 = vmul.f32 %v4134_v19, %v4130_v14  ;;  %v4142_v13 = vmul.f32 %v4141_v33, %v4130_v14  ;;  %v4343_v10 = vor.u32 %v4342_v60, %v4341_v34  ;;  %vm4346_vm11 = vcmp.lt.s32.totalorder %v9156_v47, 3  ;;  %v5802_v19 = vld [vmem:[#allocation7 + $0x58] sm:$0xff]  ;;  %v5803_v34 = vld [vmem:[#allocation8 + $0x50] sm:$0xff] }
 0x3e4   : > { %v9175_v63 = vshrl.u32 %v4256_v15, 30  ;;  %vm4345_vm12 = vcmp.lt.s32.totalorder %v9156_v47, 2  ;;  %v4352_v61 = vsel %vm4344_vm7, %v4331_v18, %v4334_v35  ;;  %v4353_v14 = vsel %vm4347_vm10, %v4340_v50, 920167782 }
 0x3e5   : > { %v4136_v59 = vadd.f32 1.0, %v4135_v38  ;;  %v4143_v2 = vadd.f32 1.0, %v4142_v13  ;;  %v4357_v26 = vsel %vm4347_vm10, %v4343_v10, 1326507024  ;;  %v4356_v7 = vsel %vm4344_vm7, %v4334_v35, %v4337_v4 }
 0x3e6   : > { %v4258_v43 = vshll.u32 %v9175_v63, 30  ;;  %vm4148_vm13 = vcmp.lt.s32.totalorder %v4147_v54, 2  ;;  %vm4149_vm14 = vcmp.eq.s32.totalorder %v4147_v54, 0  ;;  %v4354_v9 = vsel %vm4346_vm11, %v4337_v4, %v4353_v14 }
 0x3e7   : > { %v4144_v17 = vmul.f32 %v4143_v2, %v4128_v52  ;;  %v4153_v29 = vxor.u32 2147483648, %v4136_v59  ;;  %v4358_v22 = vsel %vm4346_vm11, %v4340_v50, %v4357_v26  ;;  %v4362_v52 = vshrl.u32 %v9173_v30, 16 }
 0x3e8   : > { %v9193_v31 = vsub.s32 %v4255_v55, %v4258_v43  ;;  %v4328_v58 = vshrl.u32 %v6033_v40, %v4327_v21  ;;  %v4355_v53 = vsel %vm4345_vm12, %v4352_v61, %v4354_v9  ;;  %v4359_v45 = vsel %vm4345_vm12, %v4356_v7, %v4358_v22 }
 0x3e9   : > { %v4150_v3 = vxor.u32 2147483648, %v4144_v17  ;;  %v4154_v27 = vsel %vm4152_vm9, %v4153_v29, %v4144_v17  ;;  %v4361_v25 = vand.u32 65535, %v9173_v30  ;;  %v4363_v49 = vand.u32 65535, %v4359_v45 }
 0x3ea   : > { %vm4260_vm15 = vcmp.lt.s32.totalorder %v9193_v31, 0  ;;  %v4261_v20 = vsub.s32 0, %v9193_v31  ;;  %v4349_v21 = vsel %vm4347_vm10, %v4337_v4, 2102212464  ;;  %v4364_v37 = vshrl.u32 %v4359_v45, 16 }
 0x3eb   : > { %v4151_v5 = vsel %vm4149_vm14, %v4136_v59, %v4150_v3  ;;  %v4386_v62 = vshrl.u32 %v4355_v53, 16  ;;  %v9210_v12 = vmul.u32 %v4363_v49, %v4362_v52  ;;  %v4385_v24 = vand.u32 65535, %v4355_v53 }
 0x3ec   : > { %v4155_v11 = vsel %vm4148_vm13, %v4151_v5, %v4154_v27  ;;  %v4262_v28 = vsel %vm4260_vm15, %v4261_v20, %v9193_v31  ;;  %v9213_v33 = vmul.f32 %v5802_v19, %v8043_v56  ;;  %v4365_v54 = vmul.u32 %v4363_v49, %v4361_v25 }
 0x3ed   : > { %v4156_v51 = vsel %vm4145_vm8, nan, %v4155_v11  ;;  %v4263_v55 = vclz %v4262_v28  ;;  %v4366_v50 = vmul.u32 %v4364_v37, %v4361_v25  ;;  %v9217_v60 = vadd.f32 %v5803_v34, %v9150_v16 }
 0x3ee   : > { %5404 = vst [vmem:[%s6516_s25 + $0xb8] sm:$0xff] %v4156_v51  ;;  %v4251_v41 = vadd.s32 %v9147_v0, %v9152_v23  ;;  %v4348_v38 = vsel %vm4344_vm7, %v4328_v58, %v4331_v18  ;;  %v4388_v13 = vmul.u32 %v4386_v62, %v4361_v25  ;;  %v4350_v4 = vsel %vm4346_vm11, %v4334_v35, %v4349_v21 }
 0x3ef   : > { %v5651_v15 = vadd.s32 4294967294, %v4263_v55  ;;  %v4368_v10 = vmul.u32 %v4364_v37, %v4362_v52  ;;  %v4369_v59 = vshll.u32 %v4366_v50, 16  ;;  %vm4159_vm0 = vcmp.lt.s32.totalorder %v8945_v8, 0 }
 0x3f0   : > { %v4281_v2 = vsub.s32 4, %v9175_v63  ;;  %v4371_v16 = vshll.u32 %v9210_v12, 16  ;;  %v4387_v61 = vmul.u32 %v4385_v24, %v4361_v25  ;;  %v4389_v14 = vmul.u32 %v4385_v24, %v4362_v52 }
 0x3f1   : > { %vm5652_vm1 = vcmp.lt.s32.totalorder %v5651_v15, 0  ;;  %vm4373_vm2 = vc.u32 %v4365_v54, %v4369_v59  ;;  %v4375_v0 = vadd.s32 %v4369_v59, %v4365_v54  ;;  %v4391_v23 = vshll.u32 %v4388_v13, 16 }
 0x3f2   : > { %v4266_v18 = vsel %vm5652_vm1, 0, %v5651_v15  ;;  %v4374_v26 = vsel %vm4373_vm2, 1, %v6039_v1  ;;  %v4390_v17 = vmul.u32 %v4386_v62, %v4362_v52  ;;  %v4467_v35 = vand.u32 2147483647, %v9217_v60 }
 0x3f3   : > { %v4267_v29 = vsub.s32 32, %v4266_v18  ;;  %v4268_v43 = vshll.u32 %v9193_v31, %v4266_v18  ;;  %v4271_v7 = vsub.s32 4294967266, %v4266_v18  ;;  %v4376_v9 = vadd.s32 %v4374_v26, %v4368_v10 }
 0x3f4   : > { %v4370_v22 = vshrl.u32 %v4366_v50, 16  ;;  %v4372_v3 = vshrl.u32 %v9210_v12, 16  ;;  %vm4377_vm3 = vc.u32 %v4375_v0, %v4371_v16  ;;  %v4393_v27 = vshll.u32 %v4389_v14, 16 }
 0x3f5   : > { %v4269_v58 = vshrl.u32 %v4251_v41, %v4267_v29  ;;  %v4272_v53 = vadd.s32 127, %v4271_v7  ;;  %v4378_v45 = vsel %vm4377_vm3, 1, %v6039_v1  ;;  %vm4395_vm4 = vc.u32 %v4387_v61, %v4391_v23 }
 0x3f6   : > { %v4380_v25 = vadd.s32 %v4378_v45, %v4376_v9  ;;  %v4396_v52 = vsel %vm4395_vm4, 1, %v6039_v1  ;;  %v4397_v5 = vadd.s32 %v4391_v23, %v4387_v61  ;;  %v4470_v20 = vand.u32 2139095040, %v9217_v60 }
 0x3f7   : > { %v4270_v49 = vor.u32 %v4269_v58, %v4268_v43  ;;  %v4273_v31 = vshll.u32 %v4272_v53, 23  ;;  %v4392_v11 = vshrl.u32 %v4388_v13, 16  ;;  %v4398_v21 = vadd.s32 %v4396_v52, %v4390_v17 }
 0x3f8   : > { %v4381_v37 = vadd.s32 %v4380_v25, %v4370_v22  ;;  %vm4399_vm5 = vc.u32 %v4397_v5, %v4393_v27  ;;  %v4471_v62 = vshrl.u32 %v4470_v20, 23  ;;  %v4474_v51 = vand.u32 8388607, %v4467_v35 }
 0x3f9   : > { %v4274_v28 = vor.u32 4788187, %v4273_v31  ;;  %v4277_v12 = vcvt.s32.f32 %v4270_v49  ;;  %v4282_v24 = vsel %vm4159_vm0, %v4281_v2, %v9175_v63  ;;  %v4400_v19 = vsel %vm4399_vm5, 1, %v6039_v1 }
 0x3fa   : > { %vm9243_vm6 = vcmp.le.f32.partialorder %v4157_v32, 0.7853982  ;;  %v4394_v54 = vshrl.u32 %v4389_v14, 16  ;;  %v4402_v50 = vadd.s32 %v4400_v19, %v4398_v21  ;;  %v5656_v34 = vadd.s32 4294967169, %v4471_v62 }
 0x3fb   : > { %v4275_v41 = vand.u32 2147483647, %v4274_v28  ;;  %v4351_v13 = vsel %vm4345_vm12, %v4348_v38, %v4350_v4  ;;  %v9249_v15 = vadd.s32 %v4381_v37, %v4372_v3  ;;  %v9251_v10 = vadd.s32 %v4397_v5, %v4393_v27  ;;  %v5804_v38 = vld [vmem:[#allocation8 + $0x58] sm:$0xff] }
 0x3fc   : > { %v4284_v63 = vsel %vm9243_vm6, 0, %v4282_v24  ;;  %v4403_v59 = vadd.s32 %v4402_v50, %v4392_v11  ;;  %v4475_v2 = vor.u32 8388608, %v4474_v51  ;;  %v4477_v32 = vadd.s32 1, %v5656_v34 }
 0x3fd   : > { %v4278_v16 = vmul.f32 %v4277_v12, %v4275_v41  ;;  %v4405_v14 = vmul.u32 %v9173_v30, %v4351_v13  ;;  %v4301_v23 = vadd.s32 3, %v4284_v63  ;;  %vm4407_vm8 = vc.u32 %v9249_v15, %v9251_v10 }
 0x3fe   : > { %v4404_v61 = vadd.s32 %v4403_v59, %v4394_v54  ;;  %vm4478_vm7 = vcmp.gt.s32.totalorder %v4477_v32, 0  ;;  %v9259_v4 = vadd.f32 %v5804_v38, %v9213_v33  ;;  %v9261_v17 = vshll.u32 %v4475_v2, 8 }
 0x3ff   : > { %v4279_v0 = vxor.u32 2147483648, %v4278_v16  ;;  %v4479_v47 = vsel %vm4478_vm7, %v4477_v32, 0  ;;  %v9274_v33 = vand.u32 3, %v4301_v23  ;;  %vm4314_vm12 = vcmp.lt.s32.totalorder %v9008_v6, 0 }
 0x400   : > { %v4408_v18 = vadd.s32 1, %v4404_v61  ;;  %v4481_v26 = vand.u32 31, %v4479_v47  ;;  %v9276_v3 = vshrl.u32 %v4479_v47, 5  ;;  %v9279_v27 = vand.u32 65535, %v9261_v17 }
 0x401   : > { %v4280_v29 = vsel %vm4159_vm0, %v4279_v0, %v4278_v16  ;;  %v4622_v58 = vand.u32 2147483647, %v9259_v4  ;;  %v4625_v53 = vand.u32 2139095040, %v9259_v4  ;;  %vm4307_vm9 = vcmp.eq.s32.totalorder %v9274_v33, 2 }
 0x402   : > { %v9268_v30 = vsel %vm9243_vm6, %v8945_v8, %v4280_v29  ;;  %v4409_v43 = vsel %vm4407_vm8, %v4408_v18, %v4404_v61  ;;  %v9270_v7 = vsub.s32 32, %v4481_v26  ;;  %v4487_v5 = vshll.u32 %v6034_v42, %v4481_v26 }
 0x403   : > { %v4285_v9 = vmul.f32 %v9268_v30, %v9268_v30  ;;  %v4410_v22 = vadd.s32 %v4409_v43, %v4405_v14  ;;  %v4490_v49 = vshll.u32 %v6035_v44, %v4481_v26  ;;  %v4493_v11 = vshll.u32 %v6036_v46, %v4481_v26 }
 0x404   : > { %v4488_v20 = vshrl.u32 %v6035_v44, %v9270_v7  ;;  %v4491_v31 = vshrl.u32 %v6036_v46, %v9270_v7  ;;  %v4494_v51 = vshrl.u32 %v6037_v48, %v9270_v7  ;;  %v4484_v28 = vshll.u32 %v6033_v40, %v4481_v26 }
 0x405   : > { %v4286_v45 = vmul.f32 -0.001358992, %v4285_v9  ;;  %v4293_v25 = vmul.f32 -0.00019511016, %v4285_v9  ;;  %v4411_v52 = vadd.s32 536870912, %v4410_v22  ;;  %v4485_v12 = vshrl.u32 %v6034_v42, %v9270_v7 }
 0x406   : > { %v4496_v24 = vshll.u32 %v6037_v48, %v4481_v26  ;;  %v4497_v19 = vshrl.u32 %v6038_v57, %v9270_v7  ;;  %v4626_v34 = vshrl.u32 %v4625_v53, 23  ;;  %vm4304_vm10 = vcmp.eq.s32.totalorder %v9274_v33, 0 }
 0x407   : > { %v4287_v21 = vadd.f32 0.041655596, %v4286_v45  ;;  %v4294_v37 = vadd.f32 0.008332121, %v4293_v25  ;;  %v4412_v62 = vshrl.u32 %v4411_v52, 30  ;;  %v9300_v41 = vor.u32 %v4488_v20, %v4487_v5 }
 0x408   : > { %v9302_v13 = vor.u32 %v4491_v31, %v4490_v49  ;;  %v4495_v63 = vor.u32 %v4494_v51, %v4493_v11  ;;  %v4498_v59 = vor.u32 %v4497_v19, %v4496_v24  ;;  %vm4303_vm11 = vcmp.lt.s32.totalorder %v9274_v33, 2 }
 0x409   : > { %v4288_v55 = vmul.f32 %v4287_v21, %v4285_v9  ;;  %v4295_v54 = vmul.f32 %v4294_v37, %v4285_v9  ;;  %v4413_v50 = vshll.u32 %v4412_v62, 30  ;;  %vm4499_vm13 = vcmp.lt.s32.totalorder %v9276_v3, 1 }
 0x40a   : > { %vm4300_vm14 = vweird.f32 %v8945_v8  ;;  %v9308_v61 = vor.u32 %v4485_v12, %v4484_v28  ;;  %vm4501_vm15 = vcmp.lt.s32.totalorder %v9276_v3, 3  ;;  %vm4502_vm0 = vcmp.lt.s32.totalorder %v9276_v3, 4 }
 0x40b   : > { %v4289_v2 = vadd.f32 -0.4999988, %v4288_v55  ;;  %v4296_v32 = vadd.f32 -0.16666654, %v4295_v54  ;;  %v4414_v16 = vsub.s32 %v4410_v22, %v4413_v50  ;;  %v9313_v14 = vshrl.u32 %v9261_v17, 16 }
 0x40c   : > { %vm4500_vm2 = vcmp.lt.s32.totalorder %v9276_v3, 2  ;;  %v4508_v38 = vsel %vm4502_vm0, %v4495_v63, 920167782  ;;  %v4511_v18 = vsel %vm4499_vm13, %v9300_v41, %v9302_v13  ;;  %v4512_v26 = vsel %vm4502_vm0, %v4498_v59, 1326507024 }
 0x40d   : > { %v4290_v0 = vmul.f32 %v4289_v2, %v4285_v9  ;;  %v4297_v23 = vmul.f32 %v4296_v32, %v4285_v9  ;;  %vm4415_vm1 = vcmp.lt.s32.totalorder %v4414_v16, 0  ;;  %v4416_v47 = vsub.s32 0, %v4414_v16 }
 0x40e   : > { %v5659_v53 = vadd.s32 4294967169, %v4626_v34  ;;  %vm9326_vm3 = vcmp.le.f32.partialorder %v4312_v36, 0.7853982  ;;  %v4436_v25 = vsub.s32 4, %v4412_v62  ;;  %v4507_v52 = vsel %vm4499_vm13, %v9308_v61, %v9300_v41 }
 0x40f   : > { %v4291_v29 = vadd.f32 1.0, %v4290_v0  ;;  %v4298_v43 = vadd.f32 1.0, %v4297_v23  ;;  %v4417_v22 = vsel %vm4415_vm1, %v4416_v47, %v4414_v16  ;;  %v4513_v5 = vsel %vm4501_vm15, %v4495_v63, %v4512_v26 }
 0x410   : > { %v4418_v45 = vclz %v4417_v22  ;;  %v4509_v36 = vsel %vm4501_vm15, %v9302_v13, %v4508_v38  ;;  %v4514_v31 = vsel %vm4500_vm2, %v4511_v18, %v4513_v5  ;;  %v4406_v11 = vadd.s32 %v9251_v10, %v9249_v15 }
 0x411   : > { %v4299_v20 = vmul.f32 %v4298_v43, %v9268_v30  ;;  %v4308_v49 = vxor.u32 2147483648, %v4291_v29  ;;  %v4518_v37 = vand.u32 65535, %v4514_v31  ;;  %v4519_v51 = vshrl.u32 %v4514_v31, 16 }
 0x412   : > { %v5654_v21 = vadd.s32 4294967294, %v4418_v45  ;;  %v9348_v30 = vand.u32 8388607, %v4622_v58  ;;  %v4632_v24 = vadd.s32 1, %v5659_v53  ;;  %v4437_v19 = vsel %vm4314_vm12, %v4436_v25, %v4412_v62 }
 0x413   : > { %v4305_v28 = vxor.u32 2147483648, %v4299_v20  ;;  %v4309_v12 = vsel %vm4307_vm9, %v4308_v49, %v4299_v20  ;;  %v4510_v55 = vsel %vm4500_vm2, %v4507_v52, %v4509_v36  ;;  %v4521_v15 = vmul.u32 %v4519_v51, %v9279_v27 }
 0x414   : > { %vm5655_vm4 = vcmp.lt.s32.totalorder %v5654_v21, 0  ;;  %v4520_v50 = vmul.u32 %v4518_v37, %v9279_v27  ;;  %v4522_v34 = vmul.u32 %v4518_v37, %v9313_v14  ;;  %v4483_v0 = vshrl.u32 %v6033_v40, %v9270_v7 }
 0x415   : > { %v4306_v10 = vsel %vm4304_vm10, %v4291_v29, %v4305_v28  ;;  %v4421_v54 = vsel %vm5655_vm4, 0, %v5654_v21  ;;  %v4540_v23 = vand.u32 65535, %v4510_v55  ;;  %v4541_v47 = vshrl.u32 %v4510_v55, 16 }
 0x416   : > { %v4310_v63 = vsel %vm4303_vm11, %v4306_v10, %v4309_v12  ;;  %v4422_v59 = vsub.s32 32, %v4421_v54  ;;  %v4423_v2 = vshll.u32 %v4414_v16, %v4421_v54  ;;  %v4426_v62 = vsub.s32 4294967266, %v4421_v54  ;;  %v5805_v54 = vld [vmem:[#allocation7 + $0x60] sm:$0xff] }
 0x417   : > { %v4311_v32 = vsel %vm4300_vm14, nan, %v4310_v63  ;;  %v4523_v26 = vmul.u32 %v4519_v51, %v9313_v14  ;;  %v4524_v29 = vshll.u32 %v4521_v15, 16  ;;  %v4439_v33 = vsel %vm9326_vm3, 0, %v4437_v19 }
 0x418   : > { %v4424_v38 = vshrl.u32 %v4406_v11, %v4422_v59  ;;  %v4427_v18 = vadd.s32 127, %v4426_v62  ;;  %5405 = vst [vmem:[%s6516_s25 + $0xc0] sm:$0xff] %v4311_v32  ;;  %v4504_v16 = vsel %vm4502_vm0, %v9302_v13, 2102212464  ;;  %v4525_v8 = vshrl.u32 %v4521_v15, 16 }
 0x419   : > { %v4526_v43 = vshll.u32 %v4522_v34, 16  ;;  %vm4528_vm5 = vc.u32 %v4520_v50, %v4524_v29  ;;  %v4530_v7 = vadd.s32 %v4524_v29, %v4520_v50  ;;  %v4542_v25 = vmul.u32 %v4540_v23, %v9279_v27 }
 0x41a   : > { %v4425_v22 = vor.u32 %v4424_v38, %v4423_v2  ;;  %v4428_v53 = vshll.u32 %v4427_v18, 23  ;;  %v4529_v45 = vsel %vm4528_vm5, 1, %v6039_v1  ;;  %v4543_v52 = vmul.u32 %v4541_v47, %v9279_v27 }
 0x41b   : > { %v4544_v5 = vmul.u32 %v4540_v23, %v9313_v14  ;;  %v4531_v36 = vadd.s32 %v4529_v45, %v4523_v26  ;;  %vm4532_vm6 = vc.u32 %v4530_v7, %v4526_v43  ;;  %v4545_v31 = vmul.u32 %v4541_v47, %v9313_v14 }
 0x41c   : > { %v4429_v20 = vor.u32 4788187, %v4428_v53  ;;  %v4432_v49 = vcvt.s32.f32 %v4425_v22  ;;  %v4533_v13 = vsel %vm4532_vm6, 1, %v6039_v1  ;;  %v4546_v11 = vshll.u32 %v4543_v52, 16 }
 0x41d   : > { %v4548_v21 = vshll.u32 %v4544_v5, 16  ;;  %v4503_v51 = vsel %vm4499_vm13, %v4483_v0, %v9308_v61  ;;  %v4505_v27 = vsel %vm4501_vm15, %v9300_v41, %v4504_v16  ;;  %v4535_v28 = vadd.s32 %v4533_v13, %v4531_v36 }
 0x41e   : > { %v4430_v37 = vand.u32 2147483647, %v4429_v20  ;;  %v4527_v12 = vshrl.u32 %v4522_v34, 16  ;;  %vm4550_vm7 = vc.u32 %v4542_v25, %v4546_v11  ;;  %v4552_v19 = vadd.s32 %v4546_v11, %v4542_v25 }
 0x41f   : > { %vm4633_vm8 = vcmp.gt.s32.totalorder %v4632_v24, 0  ;;  %v4536_v15 = vadd.s32 %v4535_v28, %v4525_v8  ;;  %v4551_v14 = vsel %vm4550_vm7, 1, %v6039_v1  ;;  %v9386_v50 = vmul.f32 %v5805_v54, %v8026_v39 }
 0x420   : > { %v4433_v55 = vmul.f32 %v4432_v49, %v4430_v37  ;;  %v4634_v10 = vsel %vm4633_vm8, %v4632_v24, 0  ;;  %v4547_v63 = vshrl.u32 %v4543_v52, 16  ;;  %v4553_v61 = vadd.s32 %v4551_v14, %v4545_v31 }
 0x421   : > { %vm4554_vm9 = vc.u32 %v4552_v19, %v4548_v21  ;;  %v4630_v34 = vor.u32 8388608, %v9348_v30  ;;  %v4636_v2 = vand.u32 31, %v4634_v10  ;;  %v4456_v62 = vadd.s32 3, %v4439_v33 }
 0x422   : > { %v4434_v59 = vxor.u32 2147483648, %v4433_v55  ;;  %v4555_v41 = vsel %vm4554_vm9, 1, %v6039_v1  ;;  %v4506_v32 = vsel %vm4500_vm2, %v4503_v51, %v4505_v27  ;;  %v4549_v0 = vshrl.u32 %v4544_v5, 16 }
 0x423   : > { %v4557_v23 = vadd.s32 %v4555_v41, %v4553_v61  ;;  %v9394_v47 = vadd.s32 %v4536_v15, %v4527_v12  ;;  %v9396_v38 = vadd.s32 %v4552_v19, %v4548_v21  ;;  %v9398_v18 = vsub.s32 32, %v4636_v2 }
 0x424   : > { %v4435_v24 = vsel %vm4314_vm12, %v4434_v59, %v4433_v55  ;;  %v9403_v29 = vshrl.u32 %v4634_v10, 5  ;;  %v4639_v3 = vshll.u32 %v6033_v40, %v4636_v2  ;;  %v4642_v8 = vshll.u32 %v6034_v42, %v4636_v2 }
 0x425   : > { %v4438_v30 = vsel %vm9326_vm3, %v9008_v6, %v4435_v24  ;;  %v4558_v26 = vadd.s32 %v4557_v23, %v4547_v63  ;;  %v4640_v16 = vshrl.u32 %v6034_v42, %v9398_v18  ;;  %v4643_v43 = vshrl.u32 %v6035_v44, %v9398_v18  ;;  %v5806_v23 = vld [vmem:[#allocation7 + $0x68] sm:$0xff] }
 0x426   : > { %v4440_v33 = vmul.f32 %v4438_v30, %v4438_v30  ;;  %v4645_v53 = vshll.u32 %v6035_v44, %v4636_v2  ;;  %v4646_v9 = vshrl.u32 %v6036_v46, %v9398_v18  ;;  %v4648_v7 = vshll.u32 %v6036_v46, %v4636_v2 }
 0x427   : > { %v4559_v22 = vadd.s32 %v4558_v26, %v4549_v0  ;;  %v4560_v52 = vmul.u32 %v9261_v17, %v4506_v32  ;;  %vm4562_vm10 = vc.u32 %v9394_v47, %v9396_v38  ;;  %v9418_v20 = vor.u32 %v4640_v16, %v4639_v3  ;;  %v5807_v16 = vld [vmem:[#allocation8 + $0x60] sm:$0xff] }
 0x428   : > { %v4441_v45 = vmul.f32 -0.001358992, %v4440_v33  ;;  %v4448_v25 = vmul.f32 -0.00019511016, %v4440_v33  ;;  %v4649_v49 = vshrl.u32 %v6037_v48, %v9398_v18  ;;  %v4651_v36 = vshll.u32 %v6037_v48, %v4636_v2 }
 0x429   : > { %v4563_v5 = vadd.s32 1, %v4559_v22  ;;  %v9423_v11 = vor.u32 %v4643_v43, %v4642_v8  ;;  %v4652_v21 = vshrl.u32 %v6038_v57, %v9398_v18  ;;  %v9427_v17 = vor.u32 %v4646_v9, %v4645_v53 }
 0x42a   : > { %v4442_v13 = vadd.f32 0.041655596, %v4441_v45  ;;  %v4449_v31 = vadd.f32 0.008332121, %v4448_v25  ;;  %v4650_v51 = vor.u32 %v4649_v49, %v4648_v7  ;;  %vm4654_vm11 = vcmp.lt.s32.totalorder %v9403_v29, 1 }
 0x42b   : > { %v4564_v37 = vsel %vm4562_vm10, %v4563_v5, %v4559_v22  ;;  %vm4657_vm12 = vcmp.lt.s32.totalorder %v9403_v29, 4  ;;  %v4457_v19 = vand.u32 3, %v4456_v62  ;;  %v4653_v55 = vor.u32 %v4652_v21, %v4651_v36 }
 0x42c   : > { %v4443_v27 = vmul.f32 %v4442_v13, %v4440_v33  ;;  %v4450_v28 = vmul.f32 %v4449_v31, %v4440_v33  ;;  %v4565_v12 = vadd.s32 %v4564_v37, %v4560_v52  ;;  %vm4655_vm13 = vcmp.lt.s32.totalorder %v9403_v29, 2 }
 0x42d   : > { %vm4656_vm14 = vcmp.lt.s32.totalorder %v9403_v29, 3  ;;  %v4662_v54 = vsel %vm4654_vm11, %v9418_v20, %v9423_v11  ;;  %v4663_v63 = vsel %vm4657_vm12, %v4650_v51, 920167782  ;;  %v4666_v61 = vsel %vm4654_vm11, %v9423_v11, %v9427_v17 }
 0x42e   : > { %v4444_v15 = vadd.f32 -0.4999988, %v4443_v27  ;;  %v4451_v14 = vadd.f32 -0.16666654, %v4450_v28  ;;  %v4566_v10 = vadd.s32 536870912, %v4565_v12  ;;  %v9445_v41 = vshll.u32 %v4630_v34, 8 }
 0x42f   : > { %v4667_v59 = vsel %vm4657_vm12, %v4653_v55, 1326507024  ;;  %v4664_v0 = vsel %vm4656_vm14, %v9427_v17, %v4663_v63  ;;  %v2898_v24 = vmul.f32 %v5806_v23, %v8043_v56  ;;  %v9458_v34 = vadd.f32 %v5807_v16, %v9386_v50 }
 0x430   : > { %v4445_v2 = vmul.f32 %v4444_v15, %v4440_v33  ;;  %v4452_v62 = vmul.f32 %v4451_v14, %v4440_v33  ;;  %v9447_v32 = vshrl.u32 %v4566_v10, 30  ;;  %v4665_v26 = vsel %vm4655_vm13, %v4662_v54, %v4664_v0  ;;  %v5808_v10 = vld [vmem:[#allocation8 + $0x68] sm:$0xff] }
 0x431   : > { %v4668_v3 = vsel %vm4656_vm14, %v4650_v51, %v4667_v59  ;;  %vm4462_vm15 = vcmp.eq.s32.totalorder %v4457_v19, 2  ;;  %v4671_v53 = vand.u32 65535, %v9445_v41  ;;  %v4672_v9 = vshrl.u32 %v9445_v41, 16 }
 0x432   : > { %v4446_v33 = vadd.f32 1.0, %v4445_v2  ;;  %v4453_v8 = vadd.f32 1.0, %v4452_v62  ;;  %v4568_v43 = vshll.u32 %v9447_v32, 30  ;;  %v4669_v22 = vsel %vm4655_vm13, %v4666_v61, %v4668_v3 }
 0x433   : > { %v4696_v52 = vshrl.u32 %v4665_v26, 16  ;;  %vm4458_vm0 = vcmp.lt.s32.totalorder %v4457_v19, 2  ;;  %vm4459_vm1 = vcmp.eq.s32.totalorder %v4457_v19, 0  ;;  %v4673_v50 = vand.u32 65535, %v4669_v22 }
 0x434   : > { %v4454_v7 = vmul.f32 %v4453_v8, %v4438_v30  ;;  %v4463_v45 = vxor.u32 2147483648, %v4446_v33  ;;  %v4569_v25 = vsub.s32 %v4565_v12, %v4568_v43  ;;  %v4674_v5 = vshrl.u32 %v4669_v22, 16 }
 0x435   : > { %vm4455_vm3 = vweird.f32 %v9008_v6  ;;  %v4675_v31 = vmul.u32 %v4673_v50, %v4671_v53  ;;  %v9466_v37 = vmul.u32 %v4673_v50, %v4672_v9  ;;  %v4695_v30 = vand.u32 65535, %v4665_v26 }
 0x436   : > { %v4460_v49 = vxor.u32 2147483648, %v4454_v7  ;;  %v4464_v36 = vsel %vm4462_vm15, %v4463_v45, %v4454_v7  ;;  %vm4570_vm2 = vcmp.lt.s32.totalorder %v4569_v25, 0  ;;  %v4571_v13 = vsub.s32 0, %v4569_v25 }
 0x437   : > { %v4676_v21 = vmul.u32 %v4674_v5, %v4671_v53  ;;  %v9468_v28 = vmul.u32 %v4696_v52, %v4671_v53  ;;  %v4678_v15 = vmul.u32 %v4674_v5, %v4672_v9  ;;  %v9471_v54 = vadd.f32 %v5808_v10, %v2898_v24 }
 0x438   : > { %v4461_v51 = vsel %vm4459_vm1, %v4446_v33, %v4460_v49  ;;  %v4572_v27 = vsel %vm4570_vm2, %v4571_v13, %v4569_v25  ;;  %v4561_v6 = vadd.s32 %v9396_v38, %v9394_v47  ;;  %v4681_v61 = vshll.u32 %v9466_v37, 16 }
 0x439   : > { %v4465_v12 = vsel %vm4458_vm0, %v4461_v51, %v4464_v36  ;;  %v4573_v55 = vclz %v4572_v27  ;;  %v4679_v14 = vshll.u32 %v4676_v21, 16  ;;  %v4638_v2 = vshrl.u32 %v6033_v40, %v9398_v18 }
 0x43a   : > { %v4466_v63 = vsel %vm4455_vm3, nan, %v4465_v12  ;;  %v4697_v0 = vmul.u32 %v4695_v30, %v4671_v53  ;;  %v4699_v23 = vmul.u32 %v4695_v30, %v4672_v9  ;;  %v4701_v24 = vshll.u32 %v9468_v28, 16 }
 0x43b   : > { %v5657_v59 = vadd.s32 4294967294, %v4573_v55  ;;  %vm4683_vm4 = vc.u32 %v4675_v31, %v4679_v14  ;;  %v4685_v62 = vadd.s32 %v4679_v14, %v4675_v31  ;;  %5406 = vst [vmem:[%s6516_s25 + $0xc8] sm:$0xff] %v4466_v63  ;;  %v4659_v47 = vsel %vm4657_vm12, %v9427_v17, 2102212464 }
 0x43c   : > { %v4684_v19 = vsel %vm4683_vm4, 1, %v6039_v1  ;;  %v4680_v3 = vshrl.u32 %v4676_v21, 16  ;;  %v4700_v16 = vmul.u32 %v4696_v52, %v4672_v9  ;;  %vm4469_vm7 = vcmp.lt.s32.totalorder %v9217_v60, 0 }
 0x43d   : > { %vm5658_vm5 = vcmp.lt.s32.totalorder %v5657_v59, 0  ;;  %v4686_v38 = vadd.s32 %v4684_v19, %v4678_v15  ;;  %vm4687_vm6 = vc.u32 %v4685_v62, %v4681_v61  ;;  %v4658_v53 = vsel %vm4654_vm11, %v4638_v2, %v9418_v20 }
 0x43e   : > { %v4576_v26 = vsel %vm5658_vm5, 0, %v5657_v59  ;;  %v4688_v18 = vsel %vm4687_vm6, 1, %v6039_v1  ;;  %v4703_v7 = vshll.u32 %v4699_v23, 16  ;;  %vm4705_vm8 = vc.u32 %v4697_v0, %v4701_v24 }
 0x43f   : > { %v4577_v33 = vsub.s32 32, %v4576_v26  ;;  %v4578_v8 = vshll.u32 %v4569_v25, %v4576_v26  ;;  %v4581_v43 = vsub.s32 4294967266, %v4576_v26  ;;  %v4690_v22 = vadd.s32 %v4688_v18, %v4686_v38 }
 0x440   : > { %v4591_v50 = vsub.s32 4, %v9447_v32  ;;  %v4706_v5 = vsel %vm4705_vm8, 1, %v6039_v1  ;;  %v4660_v9 = vsel %vm4656_vm14, %v9423_v11, %v4659_v47  ;;  %v4707_v25 = vadd.s32 %v4701_v24, %v4697_v0 }
 0x441   : > { %v4579_v17 = vshrl.u32 %v4561_v6, %v4577_v33  ;;  %v4582_v45 = vadd.s32 127, %v4581_v43  ;;  %v4708_v52 = vadd.s32 %v4706_v5, %v4700_v16  ;;  %v4780_v49 = vand.u32 2139095040, %v9458_v34  ;;  %v5809_v16 = vld [vmem:[#allocation7 + $0x70] sm:$0xff] }
 0x442   : > { %v4682_v20 = vshrl.u32 %v9466_v37, 16  ;;  %v4691_v31 = vadd.s32 %v4690_v22, %v4680_v3  ;;  %v4702_v21 = vshrl.u32 %v9468_v28, 16  ;;  %vm4709_vm9 = vc.u32 %v4707_v25, %v4703_v7 }
 0x443   : > { %v4580_v36 = vor.u32 %v4579_v17, %v4578_v8  ;;  %v4583_v13 = vshll.u32 %v4582_v45, 23  ;;  %v4777_v51 = vand.u32 2147483647, %v9458_v34  ;;  %v4781_v27 = vshrl.u32 %v4780_v49, 23 }
 0x444   : > { %v4592_v11 = vsel %vm4469_vm7, %v4591_v50, %v9447_v32  ;;  %v4710_v55 = vsel %vm4709_vm9, 1, %v6039_v1  ;;  %vm9504_vm10 = vcmp.le.f32.partialorder %v4467_v35, 0.7853982  ;;  %v4704_v37 = vshrl.u32 %v4699_v23, 16 }
 0x445   : > { %v4584_v30 = vor.u32 4788187, %v4583_v13  ;;  %v4587_v12 = vcvt.s32.f32 %v4580_v36  ;;  %v4712_v28 = vadd.s32 %v4710_v55, %v4708_v52  ;;  %v5662_v14 = vadd.s32 4294967169, %v4781_v27 }
 0x446   : > { %v4661_v63 = vsel %vm4655_vm13, %v4658_v53, %v4660_v9  ;;  %v4692_v6 = vadd.s32 %v4691_v31, %v4682_v20  ;;  %v4711_v61 = vadd.s32 %v4707_v25, %v4703_v7  ;;  %v4594_v32 = vsel %vm9504_vm10, 0, %v4592_v11 }
 0x447   : > { %v4585_v10 = vand.u32 2147483647, %v4584_v30  ;;  %v4713_v59 = vadd.s32 %v4712_v28, %v4702_v21  ;;  %v4784_v2 = vand.u32 8388607, %v4777_v51  ;;  %v4787_v35 = vadd.s32 1, %v5662_v14 }
 0x448   : > { %v4715_v0 = vmul.u32 %v9445_v41, %v4661_v63  ;;  %v4611_v24 = vadd.s32 3, %v4594_v32  ;;  %vm4717_vm12 = vc.u32 %v4692_v6, %v4711_v61  ;;  %v4935_v3 = vand.u32 2139095040, %v9471_v54 }
 0x449   : > { %v4588_v62 = vmul.f32 %v4587_v12, %v4585_v10  ;;  %v4714_v19 = vadd.s32 %v4713_v59, %v4704_v37  ;;  %vm4788_vm11 = vcmp.gt.s32.totalorder %v4787_v35, 0  ;;  %v4785_v38 = vor.u32 8388608, %v4784_v2 }
 0x44a   : > { %v4789_v29 = vsel %vm4788_vm11, %v4787_v35, 0  ;;  %v9519_v33 = vmul.f32 %v5809_v16, %v8026_v39  ;;  %v9530_v53 = vand.u32 3, %v4611_v24  ;;  %v4932_v17 = vand.u32 2147483647, %v9471_v54 }
 0x44b   : > { %v4589_v23 = vxor.u32 2147483648, %v4588_v62  ;;  %v4718_v47 = vadd.s32 1, %v4714_v19  ;;  %v4791_v26 = vand.u32 31, %v4789_v29  ;;  %v9533_v45 = vadd.s32 %v4711_v61, %v4692_v6 }
 0x44c   : > { %v9535_v39 = vshrl.u32 %v4789_v29, 5  ;;  %v9537_v50 = vshll.u32 %v4785_v38, 8  ;;  %v4936_v5 = vshrl.u32 %v4935_v3, 23  ;;  %vm4617_vm13 = vcmp.eq.s32.totalorder %v9530_v53, 2 }
 0x44d   : > { %v4590_v18 = vsel %vm4469_vm7, %v4589_v23, %v4588_v62  ;;  %v4719_v8 = vsel %vm4717_vm12, %v4718_v47, %v4714_v19  ;;  %v9526_v43 = vsub.s32 32, %v4791_v26  ;;  %v4797_v49 = vshll.u32 %v6034_v42, %v4791_v26 }
 0x44e   : > { %v9524_v41 = vsel %vm9504_vm10, %v9217_v60, %v4590_v18  ;;  %v4720_v7 = vadd.s32 %v4719_v8, %v4715_v0  ;;  %v4800_v13 = vshll.u32 %v6035_v44, %v4791_v26  ;;  %v4803_v31 = vshll.u32 %v6036_v46, %v4791_v26 }
 0x44f   : > { %v4595_v22 = vmul.f32 %v9524_v41, %v9524_v41  ;;  %v4798_v36 = vshrl.u32 %v6035_v44, %v9526_v43  ;;  %v4801_v20 = vshrl.u32 %v6036_v46, %v9526_v43  ;;  %v4804_v12 = vshrl.u32 %v6037_v48, %v9526_v43 }
 0x450   : > { %v4721_v52 = vadd.s32 536870912, %v4720_v7  ;;  %v4794_v11 = vshll.u32 %v6033_v40, %v4791_v26  ;;  %v4795_v55 = vshrl.u32 %v6034_v42, %v9526_v43  ;;  %v4806_v15 = vshll.u32 %v6037_v48, %v4791_v26 }
 0x451   : > { %v4596_v9 = vmul.f32 -0.001358992, %v4595_v22  ;;  %v4603_v25 = vmul.f32 -0.00019511016, %v4595_v22  ;;  %v4807_v37 = vshrl.u32 %v6038_v57, %v9526_v43  ;;  %v9559_v63 = vand.u32 65535, %v9537_v50 }
 0x452   : > { %v9546_v30 = vshrl.u32 %v4721_v52, 30  ;;  %vm4614_vm14 = vcmp.eq.s32.totalorder %v9530_v53, 0  ;;  %v9562_v6 = vor.u32 %v4798_v36, %v4797_v49  ;;  %v4802_v61 = vor.u32 %v4801_v20, %v4800_v13 }
 0x453   : > { %v4597_v21 = vadd.f32 0.041655596, %v4596_v9  ;;  %v4604_v27 = vadd.f32 0.008332121, %v4603_v25  ;;  %v4805_v32 = vor.u32 %v4804_v12, %v4803_v31  ;;  %v4808_v59 = vor.u32 %v4807_v37, %v4806_v15 }
 0x454   : > { %v4723_v10 = vshll.u32 %v9546_v30, 30  ;;  %vm4613_vm15 = vcmp.lt.s32.totalorder %v9530_v53, 2  ;;  %vm4809_vm0 = vcmp.lt.s32.totalorder %v9535_v39, 1  ;;  %vm4610_vm1 = vweird.f32 %v9217_v60 }
 0x455   : > { %v4598_v28 = vmul.f32 %v4597_v21, %v4595_v22  ;;  %v4605_v14 = vmul.f32 %v4604_v27, %v4595_v22  ;;  %v4796_v19 = vor.u32 %v4795_v55, %v4794_v11  ;;  %vm4811_vm2 = vcmp.lt.s32.totalorder %v9535_v39, 3 }
 0x456   : > { %v9565_v62 = vsub.s32 %v4720_v7, %v4723_v10  ;;  %vm4812_vm3 = vcmp.lt.s32.totalorder %v9535_v39, 4  ;;  %v5665_v0 = vadd.s32 4294967169, %v4936_v5  ;;  %vm4624_vm5 = vcmp.lt.s32.totalorder %v9259_v4, 0 }
 0x457   : > { %v4599_v2 = vadd.f32 -0.4999988, %v4598_v28  ;;  %v4606_v35 = vadd.f32 -0.16666654, %v4605_v14  ;;  %vm4810_vm6 = vcmp.lt.s32.totalorder %v9535_v39, 2  ;;  %v4821_v38 = vsel %vm4809_vm0, %v9562_v6, %v4802_v61 }
 0x458   : > { %vm4725_vm4 = vcmp.lt.s32.totalorder %v9565_v62, 0  ;;  %v4726_v29 = vsub.s32 0, %v9565_v62  ;;  %v4818_v47 = vsel %vm4812_vm3, %v4805_v32, 920167782  ;;  %v4822_v26 = vsel %vm4812_vm3, %v4808_v59, 1326507024 }
 0x459   : > { %v4600_v23 = vmul.f32 %v4599_v2, %v4595_v22  ;;  %v4607_v24 = vmul.f32 %v4606_v35, %v4595_v22  ;;  %v4827_v8 = vshrl.u32 %v9537_v50, 16  ;;  %v4817_v7 = vsel %vm4809_vm0, %v4796_v19, %v9562_v6 }
 0x45a   : > { %v4727_v16 = vsel %vm4725_vm4, %v4726_v29, %v9565_v62  ;;  %v4823_v5 = vsel %vm4811_vm2, %v4805_v32, %v4822_v26  ;;  %v9589_v9 = vadd.s32 1, %v5665_v0  ;;  %v4819_v49 = vsel %vm4811_vm2, %v4802_v61, %v4818_v47 }
 0x45b   : > { %v4601_v3 = vadd.f32 1.0, %v4600_v23  ;;  %v4608_v18 = vadd.f32 1.0, %v4607_v24  ;;  %v4728_v22 = vclz %v4727_v16  ;;  %v4824_v36 = vsel %vm4810_vm6, %v4821_v38, %v4823_v5 }
 0x45c   : > { %v4828_v20 = vand.u32 65535, %v4824_v36  ;;  %v4829_v31 = vshrl.u32 %v4824_v36, 16  ;;  %v9598_v21 = vand.u32 8388607, %v4932_v17  ;;  %v4793_v11 = vshrl.u32 %v6033_v40, %v9526_v43 }
 0x45d   : > { %v4609_v25 = vmul.f32 %v4608_v18, %v9524_v41  ;;  %v4618_v52 = vxor.u32 2147483648, %v4601_v3  ;;  %v5660_v13 = vadd.s32 4294967294, %v4728_v22  ;;  %v4746_v41 = vsub.s32 4, %v9546_v30 }
 0x45e   : > { %v4814_v55 = vsel %vm4812_vm3, %v4802_v61, 2102212464  ;;  %v4820_v15 = vsel %vm4810_vm6, %v4817_v7, %v4819_v49  ;;  %v4831_v37 = vmul.u32 %v4829_v31, %v9559_v63  ;;  %vm4943_vm8 = vcmp.gt.s32.totalorder %v9589_v9, 0 }
 0x45f   : > { %v4615_v27 = vxor.u32 2147483648, %v4609_v25  ;;  %v4619_v12 = vsel %vm4617_vm13, %v4618_v52, %v4609_v25  ;;  %vm5661_vm7 = vcmp.lt.s32.totalorder %v5660_v13, 0  ;;  %vm9615_vm9 = vcmp.le.f32.partialorder %v4622_v58, 0.7853982 }
 0x460   : > { %v4731_v43 = vsel %vm5661_vm7, 0, %v5660_v13  ;;  %v4830_v10 = vmul.u32 %v4828_v20, %v9559_v63  ;;  %v4832_v61 = vmul.u32 %v4828_v20, %v4827_v8  ;;  %v4747_v58 = vsel %vm4624_vm5, %v4746_v41, %v9546_v30 }
 0x461   : > { %v4616_v28 = vsel %vm4614_vm14, %v4601_v3, %v4615_v27  ;;  %v4732_v59 = vsub.s32 32, %v4731_v43  ;;  %v4733_v2 = vshll.u32 %v9565_v62, %v4731_v43  ;;  %v4736_v35 = vsub.s32 4294967266, %v4731_v43 }
 0x462   : > { %v4620_v32 = vsel %vm4613_vm15, %v4616_v28, %v4619_v12  ;;  %v4850_v23 = vand.u32 65535, %v4820_v15  ;;  %v4851_v24 = vshrl.u32 %v4820_v15, 16  ;;  %v4833_v38 = vmul.u32 %v4829_v31, %v4827_v8 }
 0x463   : > { %v4621_v0 = vsel %vm4610_vm1, nan, %v4620_v32  ;;  %v4734_v29 = vshrl.u32 %v9533_v45, %v4732_v59  ;;  %v4737_v47 = vadd.s32 127, %v4736_v35  ;;  %v4834_v26 = vshll.u32 %v4831_v37, 16 }
 0x464   : > { %5407 = vst [vmem:[%s6516_s25 + $0xd0] sm:$0xff] %v4621_v0  ;;  %v4813_v53 = vsel %vm4809_vm0, %v4793_v11, %v4796_v19  ;;  %v4815_v60 = vsel %vm4811_vm2, %v9562_v6, %v4814_v55  ;;  %v4835_v62 = vshrl.u32 %v4831_v37, 16  ;;  %v4836_v3 = vshll.u32 %v4832_v61, 16 }
 0x465   : > { %v4735_v18 = vor.u32 %v4734_v29, %v4733_v2  ;;  %v4738_v16 = vshll.u32 %v4737_v47, 23  ;;  %vm4838_vm10 = vc.u32 %v4830_v10, %v4834_v26  ;;  %v4840_v30 = vadd.s32 %v4834_v26, %v4830_v10 }
 0x466   : > { %v4839_v22 = vsel %vm4838_vm10, 1, %v6039_v1  ;;  %v4852_v45 = vmul.u32 %v4850_v23, %v9559_v63  ;;  %v4853_v7 = vmul.u32 %v4851_v24, %v9559_v63  ;;  %v4854_v5 = vmul.u32 %v4850_v23, %v4827_v8 }
 0x467   : > { %v4739_v25 = vor.u32 4788187, %v4738_v16  ;;  %v4742_v52 = vcvt.s32.f32 %v4735_v18  ;;  %v4841_v19 = vadd.s32 %v4839_v22, %v4833_v38  ;;  %vm4842_vm11 = vc.u32 %v4840_v30, %v4836_v3 }
 0x468   : > { %v4843_v49 = vsel %vm4842_vm11, 1, %v6039_v1  ;;  %v4855_v6 = vmul.u32 %v4851_v24, %v4827_v8  ;;  %v4856_v36 = vshll.u32 %v4853_v7, 16  ;;  %v4858_v13 = vshll.u32 %v4854_v5, 16 }
 0x469   : > { %v4740_v20 = vand.u32 2147483647, %v4739_v25  ;;  %v4749_v31 = vsel %vm9615_vm9, 0, %v4747_v58  ;;  %v4845_v27 = vadd.s32 %v4843_v49, %v4841_v19  ;;  %v4940_v12 = vor.u32 8388608, %v9598_v21 }
 0x46a   : > { %v4816_v63 = vsel %vm4810_vm6, %v4813_v53, %v4815_v60  ;;  %vm4860_vm12 = vc.u32 %v4852_v45, %v4856_v36  ;;  %v4862_v41 = vadd.s32 %v4856_v36, %v4852_v45  ;;  %v4944_v11 = vsel %vm4943_vm8, %v9589_v9, 0 }
 0x46b   : > { %v4743_v55 = vmul.f32 %v4742_v52, %v4740_v20  ;;  %v4837_v8 = vshrl.u32 %v4832_v61, 16  ;;  %v4846_v15 = vadd.s32 %v4845_v27, %v4835_v62  ;;  %v4861_v37 = vsel %vm4860_vm12, 1, %v6039_v1 }
 0x46c   : > { %v4857_v28 = vshrl.u32 %v4853_v7, 16  ;;  %v4863_v43 = vadd.s32 %v4861_v37, %v4855_v6  ;;  %vm4864_vm13 = vc.u32 %v4862_v41, %v4858_v13  ;;  %v4946_v10 = vand.u32 31, %v4944_v11 }
 0x46d   : > { %v4744_v32 = vxor.u32 2147483648, %v4743_v55  ;;  %v4766_v21 = vadd.s32 3, %v4749_v31  ;;  %v4859_v59 = vshrl.u32 %v4854_v5, 16  ;;  %v4865_v39 = vsel %vm4864_vm13, 1, %v6039_v1 }
 0x46e   : > { %v4867_v2 = vadd.s32 %v4865_v39, %v4863_v43  ;;  %v4870_v35 = vmul.u32 %v9537_v50, %v4816_v63  ;;  %v9650_v0 = vshrl.u32 %v4944_v11, 5  ;;  %v9652_v9 = vsub.s32 32, %v4946_v10 }
 0x46f   : > { %v4745_v61 = vsel %vm4624_vm5, %v4744_v32, %v4743_v55  ;;  %v9656_v58 = vadd.s32 %v4846_v15, %v4837_v8  ;;  %v9658_v23 = vadd.s32 %v4862_v41, %v4858_v13  ;;  %v4949_v24 = vshll.u32 %v6033_v40, %v4946_v10  ;;  %v5810_v41 = vld [vmem:[#allocation7 + $0x78] sm:$0xff] }
 0x470   : > { %v9664_v29 = vsel %vm9615_vm9, %v9259_v4, %v4745_v61  ;;  %v4868_v47 = vadd.s32 %v4867_v2, %v4857_v28  ;;  %v4950_v50 = vshrl.u32 %v6034_v42, %v9652_v9  ;;  %v4952_v38 = vshll.u32 %v6034_v42, %v4946_v10 }
 0x471   : > { %v4750_v26 = vmul.f32 %v9664_v29, %v9664_v29  ;;  %v4953_v53 = vshrl.u32 %v6035_v44, %v9652_v9  ;;  %v4955_v60 = vshll.u32 %v6035_v44, %v4946_v10  ;;  %v4958_v62 = vshll.u32 %v6036_v46, %v4946_v10 }
 0x472   : > { %v4869_v3 = vadd.s32 %v4868_v47, %v4859_v59  ;;  %v4956_v14 = vshrl.u32 %v6036_v46, %v9652_v9  ;;  %v4959_v18 = vshrl.u32 %v6037_v48, %v9652_v9  ;;  %v4961_v16 = vshll.u32 %v6037_v48, %v4946_v10 }
 0x473   : > { %v4751_v30 = vmul.f32 -0.001358992, %v4750_v26  ;;  %v4758_v22 = vmul.f32 -0.00019511016, %v4750_v26  ;;  %vm4872_vm14 = vc.u32 %v9656_v58, %v9658_v23  ;;  %v9682_v45 = vor.u32 %v4950_v50, %v4949_v24  ;;  %v5812_v24 = vld [vmem:[#allocation8 + $0x78] sm:$0xff] }
 0x474   : > { %v4873_v7 = vadd.s32 1, %v4869_v3  ;;  %v9684_v5 = vor.u32 %v4953_v53, %v4952_v38  ;;  %v4960_v25 = vor.u32 %v4959_v18, %v4958_v62  ;;  %v4962_v52 = vshrl.u32 %v6038_v57, %v9652_v9 }
 0x475   : > { %v4752_v19 = vadd.f32 0.041655596, %v4751_v30  ;;  %v4759_v49 = vadd.f32 0.008332121, %v4758_v22  ;;  %vm4964_vm15 = vcmp.lt.s32.totalorder %v9650_v0, 1  ;;  %vm4967_vm0 = vcmp.lt.s32.totalorder %v9650_v0, 4 }
 0x476   : > { %v4874_v6 = vsel %vm4872_vm14, %v4873_v7, %v4869_v3  ;;  %v9690_v36 = vor.u32 %v4956_v14, %v4955_v60  ;;  %v4963_v13 = vor.u32 %v4962_v52, %v4961_v16  ;;  %v9692_v20 = vshll.u32 %v4940_v12, 8 }
 0x477   : > { %v4753_v31 = vmul.f32 %v4752_v19, %v4750_v26  ;;  %v4760_v27 = vmul.f32 %v4759_v49, %v4750_v26  ;;  %v4875_v63 = vadd.s32 %v4874_v6, %v4870_v35  ;;  %vm4966_vm1 = vcmp.lt.s32.totalorder %v9650_v0, 3  ;;  %v5811_v35 = vld [vmem:[#allocation8 + $0x70] sm:$0xff] }
 0x478   : > { %v2900_v11 = vmul.f32 %v5810_v41, %v8043_v56  ;;  %vm4965_vm2 = vcmp.lt.s32.totalorder %v9650_v0, 2  ;;  %v4972_v55 = vsel %vm4964_vm15, %v9682_v45, %v9684_v5  ;;  %v4973_v8 = vsel %vm4967_vm0, %v4960_v25, 920167782 }
 0x479   : > { %v4754_v12 = vadd.f32 -0.4999988, %v4753_v31  ;;  %v4761_v15 = vadd.f32 -0.16666654, %v4760_v27  ;;  %v4767_v37 = vand.u32 3, %v4766_v21  ;;  %v4876_v28 = vadd.s32 536870912, %v4875_v63 }
 0x47a   : > { %v4974_v43 = vsel %vm4966_vm1, %v9690_v36, %v4973_v8  ;;  %v4976_v56 = vsel %vm4964_vm15, %v9684_v5, %v9690_v36  ;;  %v4977_v10 = vsel %vm4967_vm0, %v4963_v13, 1326507024  ;;  %v4981_v32 = vand.u32 65535, %v9692_v20 }
 0x47b   : > { %v4755_v59 = vmul.f32 %v4754_v12, %v4750_v26  ;;  %v4762_v39 = vmul.f32 %v4761_v15, %v4750_v26  ;;  %v9713_v2 = vshrl.u32 %v4876_v28, 30  ;;  %v4975_v21 = vsel %vm4965_vm2, %v4972_v55, %v4974_v43 }
 0x47c   : > { %v9718_v61 = vadd.f32 %v5811_v35, %v9519_v33  ;;  %v9720_v47 = vadd.f32 %v5812_v24, %v2900_v11  ;;  %v4978_v50 = vsel %vm4966_vm1, %v4960_v25, %v4977_v10  ;;  %v5006_v38 = vshrl.u32 %v4975_v21, 16 }
 0x47d   : > { %v4756_v53 = vadd.f32 1.0, %v4755_v59  ;;  %v4763_v60 = vadd.f32 1.0, %v4762_v39  ;;  %vm4765_vm3 = vweird.f32 %v9259_v4  ;;  %v4878_v26 = vshll.u32 %v9713_v2, 30 }
 0x47e   : > { %vm4772_vm4 = vcmp.eq.s32.totalorder %v4767_v37, 2  ;;  %v4979_v62 = vsel %vm4965_vm2, %v4976_v56, %v4978_v50  ;;  %v4982_v33 = vshrl.u32 %v9692_v20, 16  ;;  %v5005_v3 = vand.u32 65535, %v4975_v21 }
 0x47f   : > { %v4764_v14 = vmul.f32 %v4763_v60, %v9664_v29  ;;  %v4773_v18 = vxor.u32 2147483648, %v4756_v53  ;;  %v4879_v16 = vsub.s32 %v4875_v63, %v4878_v26  ;;  %v9730_v30 = vmul.u32 %v5006_v38, %v4981_v32 }
 0x480   : > { %vm4768_vm5 = vcmp.lt.s32.totalorder %v4767_v37, 2  ;;  %vm4769_vm6 = vcmp.eq.s32.totalorder %v4767_v37, 0  ;;  %v4983_v22 = vand.u32 65535, %v4979_v62  ;;  %v4984_v7 = vshrl.u32 %v4979_v62, 16 }
 0x481   : > { %v4770_v25 = vxor.u32 2147483648, %v4764_v14  ;;  %v4774_v52 = vsel %vm4772_vm4, %v4773_v18, %v4764_v14  ;;  %vm4880_vm7 = vcmp.lt.s32.totalorder %v4879_v16, 0  ;;  %v4881_v19 = vsub.s32 0, %v4879_v16 }
 0x482   : > { %v4985_v49 = vmul.u32 %v4983_v22, %v4981_v32  ;;  %v4986_v6 = vmul.u32 %v4984_v7, %v4981_v32  ;;  %v4987_v13 = vmul.u32 %v4983_v22, %v4982_v33  ;;  %v5007_v31 = vmul.u32 %v5005_v3, %v4981_v32 }
 0x483   : > { %v4771_v27 = vsel %vm4769_vm6, %v4756_v53, %v4770_v25  ;;  %v4882_v41 = vsel %vm4880_vm7, %v4881_v19, %v4879_v16  ;;  %v9732_v29 = vmul.u32 %v5005_v3, %v4982_v33  ;;  %v5011_v63 = vshll.u32 %v9730_v30, 16 }
 0x484   : > { %v4775_v11 = vsel %vm4768_vm5, %v4771_v27, %v4774_v52  ;;  %v4883_v55 = vclz %v4882_v41  ;;  %v4988_v8 = vmul.u32 %v4984_v7, %v4982_v33  ;;  %v4989_v12 = vshll.u32 %v4986_v6, 16 }
 0x485   : > { %v4776_v15 = vsel %vm4765_vm3, nan, %v4775_v11  ;;  %v4871_v28 = vadd.s32 %v9658_v23, %v9656_v58  ;;  %v4948_v43 = vshrl.u32 %v6033_v40, %v9652_v9  ;;  %v4991_v56 = vshll.u32 %v4987_v13, 16 }
 0x486   : > { %v5663_v10 = vadd.s32 4294967294, %v4883_v55  ;;  %vm4993_vm8 = vc.u32 %v4985_v49, %v4989_v12  ;;  %v4995_v32 = vadd.s32 %v4989_v12, %v4985_v49  ;;  %v5010_v59 = vmul.u32 %v5006_v38, %v4982_v33  ;;  %5408 = vst [vmem:[%s6516_s25 + $0xd8] sm:$0xff] %v4776_v15 }
 0x487   : > { %v4990_v37 = vshrl.u32 %v4986_v6, 16  ;;  %v4994_v39 = vsel %vm4993_vm8, 1, %v6039_v1  ;;  %v5013_v21 = vshll.u32 %v9732_v29, 16  ;;  %vm5015_vm9 = vc.u32 %v5007_v31, %v5011_v63 }
 0x488   : > { %vm4779_vm10 = vcmp.lt.s32.totalorder %v9458_v34, 0  ;;  %vm5664_vm11 = vcmp.lt.s32.totalorder %v5663_v10, 0  ;;  %v4996_v4 = vadd.s32 %v4994_v39, %v4988_v8  ;;  %vm4997_vm12 = vc.u32 %v4995_v32, %v4991_v56 }
 0x489   : > { %v5017_v58 = vadd.s32 %v5011_v63, %v5007_v31  ;;  %v4886_v23 = vsel %vm5664_vm11, 0, %v5663_v10  ;;  %v4969_v9 = vsel %vm4967_vm0, %v9690_v36, 2102212464  ;;  %v4998_v35 = vsel %vm4997_vm12, 1, %v6039_v1 }
 0x48a   : > { %v5016_v24 = vsel %vm5015_vm9, 1, %v6039_v1  ;;  %v4887_v50 = vsub.s32 32, %v4886_v23  ;;  %v4888_v38 = vshll.u32 %v4879_v16, %v4886_v23  ;;  %v4891_v53 = vsub.s32 4294967266, %v4886_v23 }
 0x48b   : > { %v5000_v60 = vadd.s32 %v4998_v35, %v4996_v4  ;;  %v4968_v26 = vsel %vm4964_vm15, %v4948_v43, %v9682_v45  ;;  %v4992_v62 = vshrl.u32 %v4987_v13, 16  ;;  %v5012_v33 = vshrl.u32 %v9730_v30, 16 }
 0x48c   : > { %v5018_v3 = vadd.s32 %v5016_v24, %v5010_v59  ;;  %v4889_v14 = vshrl.u32 %v4871_v28, %v4887_v50  ;;  %v4892_v18 = vadd.s32 127, %v4891_v53  ;;  %vm5019_vm13 = vc.u32 %v5017_v58, %v5013_v21 }
 0x48d   : > { %v5001_v22 = vadd.s32 %v5000_v60, %v4990_v37  ;;  %v4901_v36 = vsub.s32 4, %v9713_v2  ;;  %v4970_v16 = vsel %vm4966_vm1, %v9684_v5, %v4969_v9  ;;  %v5020_v7 = vsel %vm5019_vm13, 1, %v6039_v1 }
 0x48e   : > { %v5087_v25 = vand.u32 2147483647, %v9718_v61  ;;  %v4890_v52 = vor.u32 %v4889_v14, %v4888_v38  ;;  %v4893_v45 = vshll.u32 %v4892_v18, 23  ;;  %v5014_v19 = vshrl.u32 %v9732_v29, 16 }
 0x48f   : > { %v5022_v30 = vadd.s32 %v5020_v7, %v5018_v3  ;;  %v5002_v49 = vadd.s32 %v5001_v22, %v4992_v62  ;;  %v5021_v6 = vadd.s32 %v5017_v58, %v5013_v21  ;;  %v5090_v13 = vand.u32 2139095040, %v9718_v61 }
 0x490   : > { %v5245_v31 = vand.u32 2139095040, %v9720_v47  ;;  %v4894_v27 = vor.u32 4788187, %v4893_v45  ;;  %v4897_v41 = vcvt.s32.f32 %v4890_v52  ;;  %v4971_v5 = vsel %vm4965_vm2, %v4968_v26, %v4970_v16 }
 0x491   : > { %v5023_v63 = vadd.s32 %v5022_v30, %v5012_v33  ;;  %v4902_v11 = vsel %vm4779_vm10, %v4901_v36, %v9713_v2  ;;  %v5091_v55 = vshrl.u32 %v5090_v13, 23  ;;  %v5094_v29 = vand.u32 8388607, %v5087_v25 }
 0x492   : > { %v5246_v8 = vshrl.u32 %v5245_v31, 23  ;;  %vm9773_vm14 = vcmp.le.f32.partialorder %v4777_v51, 0.7853982  ;;  %v4895_v15 = vand.u32 2147483647, %v4894_v27  ;;  %v5025_v0 = vmul.u32 %v9692_v20, %v4971_v5 }
 0x493   : > { %v5024_v28 = vadd.s32 %v5023_v63, %v5014_v19  ;;  %vm5027_vm15 = vc.u32 %v5002_v49, %v5021_v6  ;;  %v5668_v43 = vadd.s32 4294967169, %v5091_v55  ;;  %v4904_v2 = vsel %vm9773_vm14, 0, %v4902_v11 }
 0x494   : > { %v5671_v56 = vadd.s32 4294967169, %v5246_v8  ;;  %v4898_v10 = vmul.f32 %v4897_v41, %v4895_v15  ;;  %v5095_v59 = vor.u32 8388608, %v5094_v29  ;;  %v4921_v51 = vadd.s32 3, %v4904_v2 }
 0x495   : > { %v5028_v32 = vadd.s32 1, %v5024_v28  ;;  %v5097_v37 = vadd.s32 1, %v5668_v43  ;;  %v5242_v9 = vand.u32 2147483647, %v9720_v47  ;;  %v9792_v3 = vadd.s32 %v5021_v6, %v5002_v49 }
 0x496   : > { %v4899_v39 = vxor.u32 2147483648, %v4898_v10  ;;  %v5252_v58 = vadd.s32 1, %v5671_v56  ;;  %v9786_v38 = vshll.u32 %v5095_v59, 8  ;;  %v9788_v60 = vand.u32 3, %v4921_v51 }
 0x497   : > { %v5029_v21 = vsel %vm5027_vm15, %v5028_v32, %v5024_v28  ;;  %vm5098_vm0 = vcmp.gt.s32.totalorder %v5097_v37, 0  ;;  %v9803_v16 = vand.u32 8388607, %v5242_v9  ;;  %vm4934_vm6 = vcmp.lt.s32.totalorder %v9471_v54, 0 }
 0x498   : > { %v5030_v4 = vadd.s32 %v5029_v21, %v5025_v0  ;;  %v4900_v23 = vsel %vm4779_vm10, %v4899_v39, %v4898_v10  ;;  %v5099_v20 = vsel %vm5098_vm0, %v5097_v37, 0  ;;  %vm5253_vm1 = vcmp.gt.s32.totalorder %v5252_v58, 0 }
 0x499   : > { %v4903_v35 = vsel %vm9773_vm14, %v9458_v34, %v4900_v23  ;;  %v5101_v50 = vand.u32 31, %v5099_v20  ;;  %v9796_v22 = vand.u32 65535, %v9786_v38  ;;  %v9799_v36 = vshrl.u32 %v9786_v38, 16 }
 0x49a   : > { %v5031_v24 = vadd.s32 536870912, %v5030_v4  ;;  %v4905_v53 = vmul.f32 %v4903_v35, %v4903_v35  ;;  %v9805_v45 = vshrl.u32 %v5099_v20, 5  ;;  %v9807_v19 = vsel %vm5253_vm1, %v5252_v58, 0 }
 0x49b   : > { %v5102_v14 = vsub.s32 32, %v5101_v50  ;;  %vm4927_vm2 = vcmp.eq.s32.totalorder %v9788_v60, 2  ;;  %v5104_v49 = vshll.u32 %v6033_v40, %v5101_v50  ;;  %v5107_v6 = vshll.u32 %v6034_v42, %v5101_v50 }
 0x49c   : > { %v9790_v26 = vshrl.u32 %v5031_v24, 30  ;;  %v4906_v62 = vmul.f32 -0.001358992, %v4905_v53  ;;  %v4913_v33 = vmul.f32 -0.00019511016, %v4905_v53  ;;  %v9815_v13 = vshrl.u32 %v9807_v19, 5 }
 0x49d   : > { %v5113_v41 = vshll.u32 %v6036_v46, %v5101_v50  ;;  %v5114_v5 = vshrl.u32 %v6037_v48, %v5102_v14  ;;  %vm4924_vm3 = vcmp.eq.s32.totalorder %v9788_v60, 0  ;;  %v5105_v11 = vshrl.u32 %v6034_v42, %v5102_v14 }
 0x49e   : > { %v5033_v18 = vshll.u32 %v9790_v26, 30  ;;  %v4907_v7 = vadd.f32 0.041655596, %v4906_v62  ;;  %v4914_v52 = vadd.f32 0.008332121, %v4913_v33  ;;  %v5108_v55 = vshrl.u32 %v6035_v44, %v5102_v14 }
 0x49f   : > { %vm4923_vm5 = vcmp.lt.s32.totalorder %v9788_v60, 2  ;;  %v5116_v12 = vshll.u32 %v6037_v48, %v5101_v50  ;;  %v5117_v15 = vshrl.u32 %v6038_v57, %v5102_v14  ;;  %vm4920_vm7 = vweird.f32 %v9458_v34 }
 0x4a0   : > { %v9810_v30 = vsub.s32 %v5030_v4, %v5033_v18  ;;  %v4908_v31 = vmul.f32 %v4907_v7, %v4905_v53  ;;  %v4915_v27 = vmul.f32 %v4914_v52, %v4905_v53  ;;  %v5056_v0 = vsub.s32 4, %v9790_v26 }
 0x4a1   : > { %v5110_v43 = vshll.u32 %v6035_v44, %v5101_v50  ;;  %v5111_v56 = vshrl.u32 %v6036_v46, %v5102_v14  ;;  %v5115_v59 = vor.u32 %v5114_v5, %v5113_v41  ;;  %v5106_v37 = vor.u32 %v5105_v11, %v5104_v49 }
 0x4a2   : > { %vm5035_vm4 = vcmp.lt.s32.totalorder %v9810_v30, 0  ;;  %v5036_v63 = vsub.s32 0, %v9810_v30  ;;  %v4909_v29 = vadd.f32 -0.4999988, %v4908_v31  ;;  %v4916_v8 = vadd.f32 -0.16666654, %v4915_v27 }
 0x4a3   : > { %v5109_v39 = vor.u32 %v5108_v55, %v5107_v6  ;;  %v5118_v21 = vor.u32 %v5117_v15, %v5116_v12  ;;  %vm5122_vm8 = vcmp.lt.s32.totalorder %v9805_v45, 4  ;;  %vm5119_vm9 = vcmp.lt.s32.totalorder %v9805_v45, 1 }
 0x4a4   : > { %v5037_v28 = vsel %vm5035_vm4, %v5036_v63, %v9810_v30  ;;  %v4910_v10 = vmul.f32 %v4909_v29, %v4905_v53  ;;  %v4917_v2 = vmul.f32 %v4916_v8, %v4905_v53  ;;  %vm9837_vm10 = vcmp.le.f32.partialorder %v4932_v17, 0.7853982 }
 0x4a5   : > { %v5038_v32 = vclz %v5037_v28  ;;  %v5103_v20 = vshrl.u32 %v6033_v40, %v5102_v14  ;;  %v5112_v24 = vor.u32 %v5111_v56, %v5110_v43  ;;  %vm5120_vm11 = vcmp.lt.s32.totalorder %v9805_v45, 2 }
 0x4a6   : > { %v4911_v51 = vadd.f32 1.0, %v4910_v10  ;;  %v4918_v4 = vadd.f32 1.0, %v4917_v2  ;;  %vm5121_vm12 = vcmp.lt.s32.totalorder %v9805_v45, 3  ;;  %v5128_v62 = vsel %vm5122_vm8, %v5115_v59, 920167782 }
 0x4a7   : > { %v5666_v58 = vadd.s32 4294967294, %v5038_v32  ;;  %v5124_v17 = vsel %vm5122_vm8, %v5112_v24, 2102212464  ;;  %v5127_v18 = vsel %vm5119_vm9, %v5106_v37, %v5109_v39  ;;  %v5132_v14 = vsel %vm5122_vm8, %v5118_v21, 1326507024 }
 0x4a8   : > { %v4919_v50 = vmul.f32 %v4918_v4, %v4903_v35  ;;  %v4928_v53 = vxor.u32 2147483648, %v4911_v51  ;;  %v5057_v31 = vsel %vm4934_vm6, %v5056_v0, %v9790_v26  ;;  %v5129_v27 = vsel %vm5121_vm12, %v5112_v24, %v5128_v62 }
 0x4a9   : > { %vm5667_vm13 = vcmp.lt.s32.totalorder %v5666_v58, 0  ;;  %v5131_v41 = vsel %vm5119_vm9, %v5109_v39, %v5112_v24  ;;  %v5133_v11 = vsel %vm5121_vm12, %v5115_v59, %v5132_v14  ;;  %v5125_v29 = vsel %vm5121_vm12, %v5109_v39, %v5124_v17 }
 0x4aa   : > { %v5041_v33 = vsel %vm5667_vm13, 0, %v5666_v58  ;;  %v4925_v7 = vxor.u32 2147483648, %v4919_v50  ;;  %v4929_v52 = vsel %vm4927_vm2, %v4928_v53, %v4919_v50  ;;  %v5130_v8 = vsel %vm5120_vm11, %v5127_v18, %v5129_v27 }
 0x4ab   : > { %v5042_v35 = vsub.s32 32, %v5041_v33  ;;  %v5043_v49 = vshll.u32 %v9810_v30, %v5041_v33  ;;  %v5046_v6 = vsub.s32 4294967266, %v5041_v33  ;;  %v5123_v30 = vsel %vm5119_vm9, %v5103_v20, %v5106_v37 }
 0x4ac   : > { %v4926_v5 = vsel %vm4924_vm3, %v4911_v51, %v4925_v7  ;;  %v5134_v15 = vsel %vm5120_vm11, %v5131_v41, %v5133_v11  ;;  %v9880_v28 = vand.u32 31, %v9807_v19  ;;  %v5160_v56 = vand.u32 65535, %v5130_v8 }
 0x4ad   : > { %v5044_v63 = vshrl.u32 %v9792_v3, %v5042_v35  ;;  %v4930_v26 = vsel %vm4923_vm5, %v4926_v5, %v4929_v52  ;;  %v5047_v55 = vadd.s32 127, %v5046_v6  ;;  %v5138_v60 = vand.u32 65535, %v5134_v15 }
 0x4ae   : > { %v4931_v12 = vsel %vm4920_vm7, nan, %v4930_v26  ;;  %v5139_v43 = vshrl.u32 %v5134_v15, 16  ;;  %v5059_v2 = vsel %vm9837_vm10, 0, %v5057_v31  ;;  %v9887_v34 = vsel %vm5120_vm11, %v5123_v30, %v5125_v29 }
 0x4af   : > { %v5045_v3 = vor.u32 %v5044_v63, %v5043_v49  ;;  %v5048_v0 = vshll.u32 %v5047_v55, 23  ;;  %5409 = vst [vmem:[%s6516_s25 + $0xe0] sm:$0xff] %v4931_v12  ;;  %v5161_v32 = vshrl.u32 %v5130_v8, 16  ;;  %v5140_v37 = vmul.u32 %v5138_v60, %v9796_v22 }
 0x4b0   : > { %v5141_v19 = vmul.u32 %v5139_v43, %v9796_v22  ;;  %v5142_v39 = vmul.u32 %v5138_v60, %v9799_v36  ;;  %v5162_v21 = vmul.u32 %v5160_v56, %v9796_v22  ;;  %v5164_v4 = vmul.u32 %v5160_v56, %v9799_v36 }
 0x4b1   : > { %v5052_v10 = vcvt.s32.f32 %v5045_v3  ;;  %v5049_v59 = vor.u32 4788187, %v5048_v0  ;;  %v5163_v51 = vmul.u32 %v5161_v32, %v9796_v22  ;;  %v9896_v58 = vsub.s32 32, %v9880_v28 }
 0x4b2   : > { %v5143_v20 = vmul.u32 %v5139_v43, %v9799_v36  ;;  %v5144_v24 = vshll.u32 %v5141_v19, 16  ;;  %v5146_v50 = vshll.u32 %v5142_v39, 16  ;;  %v9899_v53 = vadd.s32 3, %v5059_v2 }
 0x4b3   : > { %v5050_v45 = vand.u32 2147483647, %v5049_v59  ;;  %v5165_v62 = vmul.u32 %v5161_v32, %v9799_v36  ;;  %v5166_v33 = vshll.u32 %v5163_v51, 16  ;;  %v5180_v17 = vmul.u32 %v9786_v38, %v9887_v34 }
 0x4b4   : > { %vm5148_vm14 = vc.u32 %v5140_v37, %v5144_v24  ;;  %v5150_v22 = vadd.s32 %v5144_v24, %v5140_v37  ;;  %v5168_v14 = vshll.u32 %v5164_v4, 16  ;;  %v5145_v7 = vshrl.u32 %v5141_v19, 16 }
 0x4b5   : > { %v5053_v18 = vmul.f32 %v5052_v10, %v5050_v45  ;;  %v5149_v52 = vsel %vm5148_vm14, 1, %v6039_v1  ;;  %vm5170_vm15 = vc.u32 %v5162_v21, %v5166_v33  ;;  %v5172_v35 = vadd.s32 %v5166_v33, %v5162_v21 }
 0x4b6   : > { %v5151_v6 = vadd.s32 %v5149_v52, %v5143_v20  ;;  %vm5152_vm0 = vc.u32 %v5150_v22, %v5146_v50  ;;  %v5171_v31 = vsel %vm5170_vm15, 1, %v6039_v1  ;;  %v5167_v27 = vshrl.u32 %v5163_v51, 16 }
 0x4b7   : > { %v5054_v49 = vxor.u32 2147483648, %v5053_v18  ;;  %v5153_v36 = vsel %vm5152_vm0, 1, %v6039_v1  ;;  %v5173_v41 = vadd.s32 %v5171_v31, %v5165_v62  ;;  %vm5174_vm1 = vc.u32 %v5172_v35, %v5168_v14 }
 0x4b8   : > { %v5147_v5 = vshrl.u32 %v5142_v39, 16  ;;  %v5155_v63 = vadd.s32 %v5153_v36, %v5151_v6  ;;  %v5175_v30 = vsel %vm5174_vm1, 1, %v6039_v1  ;;  %v5169_v26 = vshrl.u32 %v5164_v4, 16 }
 0x4b9   : > { %v5055_v38 = vsel %vm4934_vm6, %v5054_v49, %v5053_v18  ;;  %v9913_v55 = vadd.s32 %v5172_v35, %v5168_v14  ;;  %v5177_v29 = vadd.s32 %v5175_v30, %v5173_v41  ;;  %v5259_v3 = vshll.u32 %v6033_v40, %v9880_v28 }
 0x4ba   : > { %v5058_v11 = vsel %vm9837_vm10, %v9471_v54, %v5055_v38  ;;  %v5156_v12 = vadd.s32 %v5155_v63, %v5145_v7  ;;  %v5260_v15 = vshrl.u32 %v6034_v42, %v9896_v58  ;;  %v5262_v60 = vshll.u32 %v6034_v42, %v9880_v28 }
 0x4bb   : > { %v5060_v8 = vmul.f32 %v5058_v11, %v5058_v11  ;;  %v5178_v0 = vadd.s32 %v5177_v29, %v5167_v27  ;;  %v5263_v23 = vshrl.u32 %v6035_v44, %v9896_v58  ;;  %v5268_v43 = vshll.u32 %v6036_v46, %v9880_v28 }
 0x4bc   : > { %v9925_v2 = vadd.s32 %v5156_v12, %v5147_v5  ;;  %v5265_v34 = vshll.u32 %v6035_v44, %v9880_v28  ;;  %v5266_v59 = vshrl.u32 %v6036_v46, %v9896_v58  ;;  %v5269_v42 = vshrl.u32 %v6037_v48, %v9896_v58 }
 0x4bd   : > { %v5061_v56 = vmul.f32 -0.001358992, %v5060_v8  ;;  %v5068_v10 = vmul.f32 -0.00019511016, %v5060_v8  ;;  %v5179_v32 = vadd.s32 %v5178_v0, %v5169_v26  ;;  %v5271_v37 = vshll.u32 %v6037_v48, %v9880_v28 }
 0x4be   : > { %vm5182_vm2 = vc.u32 %v9925_v2, %v9913_v55  ;;  %v9937_v21 = vor.u32 %v5260_v15, %v5259_v3  ;;  %v9939_v4 = vor.u32 %v5263_v23, %v5262_v60  ;;  %v5270_v44 = vor.u32 %v5269_v42, %v5268_v43 }
 0x4bf   : > { %v5062_v19 = vadd.f32 0.041655596, %v5061_v56  ;;  %v5069_v39 = vadd.f32 0.008332121, %v5068_v10  ;;  %v5183_v51 = vadd.s32 1, %v5179_v32  ;;  %v5272_v46 = vshrl.u32 %v6038_v57, %v9896_v58 }
 0x4c0   : > { %v5250_v24 = vor.u32 8388608, %v9803_v16  ;;  %vm5274_vm3 = vcmp.lt.s32.totalorder %v9815_v13, 1  ;;  %v9945_v28 = vor.u32 %v5266_v59, %v5265_v34  ;;  %vm5277_vm4 = vcmp.lt.s32.totalorder %v9815_v13, 4 }
 0x4c1   : > { %v5063_v45 = vmul.f32 %v5062_v19, %v5060_v8  ;;  %v5070_v20 = vmul.f32 %v5069_v39, %v5060_v8  ;;  %v5184_v48 = vsel %vm5182_vm2, %v5183_v51, %v5179_v32  ;;  %v5273_v50 = vor.u32 %v5272_v46, %v5271_v37 }
 0x4c2   : > { %v5185_v18 = vadd.s32 %v5184_v48, %v5180_v17  ;;  %vm5276_vm5 = vcmp.lt.s32.totalorder %v9815_v13, 3  ;;  %v5077_v22 = vand.u32 3, %v9899_v53  ;;  %vm5275_vm6 = vcmp.lt.s32.totalorder %v9815_v13, 2 }
 0x4c3   : > { %v5064_v62 = vadd.f32 -0.4999988, %v5063_v45  ;;  %v5071_v33 = vadd.f32 -0.16666654, %v5070_v20  ;;  %v5282_v57 = vsel %vm5274_vm3, %v9937_v21, %v9939_v4  ;;  %v5283_v16 = vsel %vm5277_vm4, %v5270_v44, 920167782 }
 0x4c4   : > { %v5186_v52 = vadd.s32 536870912, %v5185_v18  ;;  %v5284_v17 = vsel %vm5276_vm5, %v9945_v28, %v5283_v16  ;;  %v5286_v53 = vsel %vm5274_vm3, %v9939_v4, %v9945_v28  ;;  %v5287_v35 = vsel %vm5277_vm4, %v5273_v50, 1326507024 }
 0x4c5   : > { %v5065_v14 = vmul.f32 %v5064_v62, %v5060_v8  ;;  %v5072_v7 = vmul.f32 %v5071_v33, %v5060_v8  ;;  %v5285_v36 = vsel %vm5275_vm6, %v5282_v57, %v5284_v17  ;;  %vm5078_vm7 = vcmp.lt.s32.totalorder %v5077_v22, 2 }
 0x4c6   : > { %v9966_v31 = vshrl.u32 %v5186_v52, 30  ;;  %vm5082_vm8 = vcmp.eq.s32.totalorder %v5077_v22, 2  ;;  %v5288_v27 = vsel %vm5276_vm5, %v5270_v44, %v5287_v35  ;;  %v9972_v41 = vshll.u32 %v5250_v24, 8 }
 0x4c7   : > { %v5066_v49 = vadd.f32 1.0, %v5065_v14  ;;  %v5073_v6 = vadd.f32 1.0, %v5072_v7  ;;  %v5316_v30 = vshrl.u32 %v5285_v36, 16  ;;  %vm5079_vm9 = vcmp.eq.s32.totalorder %v5077_v22, 0 }
 0x4c8   : > { %v5188_v63 = vshll.u32 %v9966_v31, 30  ;;  %v5289_v26 = vsel %vm5275_vm6, %v5286_v53, %v5288_v27  ;;  %v5291_v29 = vand.u32 65535, %v9972_v41  ;;  %v5292_v8 = vshrl.u32 %v9972_v41, 16 }
 0x4c9   : > { %v5074_v38 = vmul.f32 %v5073_v6, %v5058_v11  ;;  %v5083_v5 = vxor.u32 2147483648, %v5066_v49  ;;  %v5315_v0 = vand.u32 65535, %v5285_v36  ;;  %vm5075_vm10 = vweird.f32 %v9471_v54 }
 0x4ca   : > { %v5189_v15 = vsub.s32 %v5185_v18, %v5188_v63  ;;  %v5293_v60 = vand.u32 65535, %v5289_v26  ;;  %v5294_v11 = vshrl.u32 %v5289_v26, 16  ;;  %v5318_v56 = vmul.u32 %v5316_v30, %v5291_v29 }
 0x4cb   : > { %v5080_v12 = vxor.u32 2147483648, %v5074_v38  ;;  %v5084_v3 = vsel %vm5082_vm8, %v5083_v5, %v5074_v38  ;;  %v5317_v19 = vmul.u32 %v5315_v0, %v5291_v29  ;;  %v5319_v54 = vmul.u32 %v5315_v0, %v5292_v8 }
 0x4cc   : > { %vm5190_vm11 = vcmp.lt.s32.totalorder %v5189_v15, 0  ;;  %v5191_v43 = vsub.s32 0, %v5189_v15  ;;  %v5295_v34 = vmul.u32 %v5293_v60, %v5291_v29  ;;  %v5296_v32 = vmul.u32 %v5294_v11, %v5291_v29 }
 0x4cd   : > { %v5081_v23 = vsel %vm5079_vm9, %v5066_v49, %v5080_v12  ;;  %v5297_v59 = vmul.u32 %v5293_v60, %v5292_v8  ;;  %v5298_v51 = vmul.u32 %v5294_v11, %v5292_v8  ;;  %v5321_v45 = vshll.u32 %v5318_v56, 16 }
 0x4ce   : > { %v5085_v10 = vsel %vm5078_vm7, %v5081_v23, %v5084_v3  ;;  %v5192_v37 = vsel %vm5190_vm11, %v5191_v43, %v5189_v15  ;;  %v5299_v44 = vshll.u32 %v5296_v32, 16  ;;  %v5258_v24 = vshrl.u32 %v6033_v40, %v9896_v58 }
 0x4cf   : > { %v5086_v42 = vsel %vm5075_vm10, nan, %v5085_v10  ;;  %v5193_v39 = vclz %v5192_v37  ;;  %v5301_v46 = vshll.u32 %v5297_v59, 16  ;;  %v5181_v50 = vadd.s32 %v9913_v55, %v9925_v2 }
 0x4d0   : > { %5410 = vst [vmem:[%s6516_s25 + $0xe8] sm:$0xff] %v5086_v42  ;;  %vm5303_vm12 = vc.u32 %v5295_v34, %v5299_v44  ;;  %v5305_v48 = vadd.s32 %v5299_v44, %v5295_v34  ;;  %v5300_v62 = vshrl.u32 %v5296_v32, 16  ;;  %vm5325_vm13 = vc.u32 %v5317_v19, %v5321_v45 }
 0x4d1   : > { %v5669_v20 = vadd.s32 4294967294, %v5193_v39  ;;  %v5304_v33 = vsel %vm5303_vm12, 1, %v6039_v1  ;;  %v5320_v22 = vmul.u32 %v5316_v30, %v5292_v8  ;;  %v5323_v14 = vshll.u32 %v5319_v54, 16 }
 0x4d2   : > { %v5306_v18 = vadd.s32 %v5304_v33, %v5298_v51  ;;  %vm5307_vm15 = vc.u32 %v5305_v48, %v5301_v46  ;;  %v5326_v7 = vsel %vm5325_vm13, 1, %v6039_v1  ;;  %v5279_v55 = vsel %vm5277_vm4, %v9945_v28, 2102212464 }
 0x4d3   : > { %vm5670_vm14 = vcmp.lt.s32.totalorder %v5669_v20, 0  ;;  %v5308_v16 = vsel %vm5307_vm15, 1, %v6039_v1  ;;  %v5302_v2 = vshrl.u32 %v5297_v59, 16  ;;  %v5327_v53 = vadd.s32 %v5321_v45, %v5317_v19 }
 0x4d4   : > { %v5196_v57 = vsel %vm5670_vm14, 0, %v5669_v20  ;;  %v5310_v17 = vadd.s32 %v5308_v16, %v5306_v18  ;;  %v5328_v36 = vadd.s32 %v5326_v7, %v5320_v22  ;;  %v5278_v27 = vsel %vm5274_vm3, %v5258_v24, %v9937_v21 }
 0x4d5   : > { %v5197_v40 = vsub.s32 32, %v5196_v57  ;;  %v5198_v58 = vshll.u32 %v5189_v15, %v5196_v57  ;;  %v5201_v52 = vsub.s32 4294967266, %v5196_v57  ;;  %v5322_v38 = vshrl.u32 %v5318_v56, 16 }
 0x4d6   : > { %v5311_v6 = vadd.s32 %v5310_v17, %v5300_v62  ;;  %vm5329_vm0 = vc.u32 %v5327_v53, %v5323_v14  ;;  %v5280_v30 = vsel %vm5276_vm5, %v9939_v4, %v5279_v55  ;;  %v5324_v26 = vshrl.u32 %v5319_v54, 16 }
 0x4d7   : > { %v5199_v35 = vshrl.u32 %v5181_v50, %v5197_v40  ;;  %v5202_v49 = vadd.s32 127, %v5201_v52  ;;  %v5330_v28 = vsel %vm5329_vm0, 1, %v6039_v1  ;;  %v5331_v15 = vadd.s32 %v5327_v53, %v5323_v14 }
 0x4d8   : > { %v5332_v29 = vadd.s32 %v5330_v28, %v5328_v36  ;;  %v5312_v3 = vadd.s32 %v5311_v6, %v5302_v2  ;;  %v5281_v0 = vsel %vm5275_vm6, %v5278_v27, %v5280_v30  ;;  %vm5089_vm2 = vcmp.lt.s32.totalorder %v9718_v61, 0 }
 0x4d9   : > { %v5200_v5 = vor.u32 %v5199_v35, %v5198_v58  ;;  %v5203_v63 = vshll.u32 %v5202_v49, 23  ;;  %v5335_v43 = vmul.u32 %v9972_v41, %v5281_v0  ;;  %v5211_v1 = vsub.s32 4, %v9966_v31 }
 0x4da   : > { %v5333_v21 = vadd.s32 %v5332_v29, %v5322_v38  ;;  %vm5337_vm1 = vc.u32 %v5312_v3, %v5331_v15  ;;  %vm10006_vm3 = vcmp.le.f32.partialorder %v5087_v25, 0.7853982  ;;  %v5336_v17 = vadd.s32 %v5331_v15, %v5312_v3 }
 0x4db   : > { %v5204_v8 = vor.u32 4788187, %v5203_v63  ;;  %v5207_v12 = vcvt.s32.f32 %v5200_v5  ;;  %v5212_v59 = vsel %vm5089_vm2, %v5211_v1, %v9966_v31  ;;  %vm5230_vm9 = vweird.f32 %v9718_v61 }
 0x4dc   : > { %v5334_v11 = vadd.s32 %v5333_v21, %v5324_v26  ;;  %v5214_v19 = vsel %vm10006_vm3, 0, %v5212_v59  ;;  %vm5244_vm10 = vcmp.lt.s32.totalorder %v9720_v47, 0  ;;  %vm5243_vm11 = vcmp.le.f32.partialorder %v5242_v9, 0.7853982 }
 0x4dd   : > { %v5205_v60 = vand.u32 2147483647, %v5204_v8  ;;  %v5231_v45 = vadd.s32 3, %v5214_v19  ;;  %vm5385_vm15 = vweird.f32 %v9720_v47 }
 0x4de   : > { %v5338_v4 = vadd.s32 1, %v5334_v11 }
 0x4df   : > { %v5208_v23 = vmul.f32 %v5207_v12, %v5205_v60  ;;  %v5232_v33 = vand.u32 3, %v5231_v45 }
 0x4e0   : > { %v5339_v10 = vsel %vm5337_vm1, %v5338_v4, %v5334_v11 }
 0x4e1   : > { %v5209_v13 = vxor.u32 2147483648, %v5208_v23  ;;  %v5340_v32 = vadd.s32 %v5339_v10, %v5335_v43  ;;  %vm5237_vm5 = vcmp.eq.s32.totalorder %v5232_v33, 2  ;;  %vm5234_vm6 = vcmp.eq.s32.totalorder %v5232_v33, 0 }
 0x4e2   : > { %vm5233_vm8 = vcmp.lt.s32.totalorder %v5232_v33, 2 }
 0x4e3   : > { %v5210_v34 = vsel %vm5089_vm2, %v5209_v13, %v5208_v23  ;;  %v5341_v37 = vadd.s32 536870912, %v5340_v32 }
 0x4e4   : > { %v5213_v41 = vsel %vm10006_vm3, %v9718_v61, %v5210_v34 }
 0x4e5   : > { %v5215_v42 = vmul.f32 %v5213_v41, %v5213_v41  ;;  %v5342_v51 = vshrl.u32 %v5341_v37, 30 }
 0x4e7   : > { %v5216_v39 = vmul.f32 -0.001358992, %v5215_v42  ;;  %v5223_v25 = vmul.f32 -0.00019511016, %v5215_v42  ;;  %v5343_v54 = vshll.u32 %v5342_v51, 30  ;;  %v5366_v3 = vsub.s32 4, %v5342_v51 }
 0x4e9   : > { %v5217_v44 = vadd.f32 0.041655596, %v5216_v39  ;;  %v5224_v46 = vadd.f32 0.008332121, %v5223_v25  ;;  %v5344_v48 = vsub.s32 %v5340_v32, %v5343_v54  ;;  %v5367_v0 = vsel %vm5244_vm10, %v5366_v3, %v5342_v51 }
 0x4ea   : > { %v5369_v11 = vsel %vm5243_vm11, 0, %v5367_v0 }
 0x4eb   : > { %v5218_v20 = vmul.f32 %v5217_v44, %v5215_v42  ;;  %v5225_v24 = vmul.f32 %v5224_v46, %v5215_v42  ;;  %vm5345_vm4 = vcmp.lt.s32.totalorder %v5344_v48, 0  ;;  %v5346_v62 = vsub.s32 0, %v5344_v48 }
 0x4ec   : > { %v5386_v56 = vadd.s32 3, %v5369_v11 }
 0x4ed   : > { %v5219_v31 = vadd.f32 -0.4999988, %v5218_v20  ;;  %v5226_v50 = vadd.f32 -0.16666654, %v5225_v24  ;;  %v5347_v57 = vsel %vm5345_vm4, %v5346_v62, %v5344_v48 }
 0x4ee   : > { %v5348_v16 = vclz %v5347_v57  ;;  %v5387_v59 = vand.u32 3, %v5386_v56 }
 0x4ef   : > { %v5220_v18 = vmul.f32 %v5219_v31, %v5215_v42  ;;  %v5227_v22 = vmul.f32 %v5226_v50, %v5215_v42 }
 0x4f0   : > { %v5672_v40 = vadd.s32 4294967294, %v5348_v16  ;;  %vm5392_vm12 = vcmp.eq.s32.totalorder %v5387_v59, 2  ;;  %vm5389_vm13 = vcmp.eq.s32.totalorder %v5387_v59, 0  ;;  %vm5388_vm14 = vcmp.lt.s32.totalorder %v5387_v59, 2 }
 0x4f1   : > { %v5221_v14 = vadd.f32 1.0, %v5220_v18  ;;  %v5228_v7 = vadd.f32 1.0, %v5227_v22 }
 0x4f2   : > { %vm5673_vm7 = vcmp.lt.s32.totalorder %v5672_v40, 0 }
 0x4f3   : > { %v5229_v58 = vmul.f32 %v5228_v7, %v5213_v41  ;;  %v5238_v52 = vxor.u32 2147483648, %v5221_v14  ;;  %v5351_v53 = vsel %vm5673_vm7, 0, %v5672_v40 }
 0x4f4   : > { %v5352_v35 = vsub.s32 32, %v5351_v53  ;;  %v5353_v49 = vshll.u32 %v5344_v48, %v5351_v53  ;;  %v5356_v6 = vsub.s32 4294967266, %v5351_v53 }
 0x4f5   : > { %v5235_v55 = vxor.u32 2147483648, %v5229_v58  ;;  %v5239_v2 = vsel %vm5237_vm5, %v5238_v52, %v5229_v58 }
 0x4f6   : > { %v5354_v38 = vshrl.u32 %v5336_v17, %v5352_v35  ;;  %v5357_v5 = vadd.s32 127, %v5356_v6 }
 0x4f7   : > { %v5236_v36 = vsel %vm5234_vm6, %v5221_v14, %v5235_v55 }
 0x4f8   : > { %v5240_v27 = vsel %vm5233_vm8, %v5236_v36, %v5239_v2  ;;  %v5355_v30 = vor.u32 %v5354_v38, %v5353_v49  ;;  %v5358_v28 = vshll.u32 %v5357_v5, 23 }
 0x4f9   : > { %v5241_v63 = vsel %vm5230_vm9, nan, %v5240_v27 }
 0x4fa   : > { %5411 = vst [vmem:[%s6516_s25 + $0xf0] sm:$0xff] %v5241_v63  ;;  %v5359_v26 = vor.u32 4788187, %v5358_v28  ;;  %v5362_v29 = vcvt.s32.f32 %v5355_v30 }
 0x4fc   : > { %v5360_v8 = vand.u32 2147483647, %v5359_v26 }
 0x4fe   : > { %v5363_v12 = vmul.f32 %v5362_v29, %v5360_v8 }
 0x500   : > { %v5364_v61 = vxor.u32 2147483648, %v5363_v12 }
 0x502   : > { %v5365_v15 = vsel %vm5244_vm10, %v5364_v61, %v5363_v12 }
 0x503   : > { %v5368_v21 = vsel %vm5243_vm11, %v9720_v47, %v5365_v15 }
 0x504   : > { %v5370_v60 = vmul.f32 %v5368_v21, %v5368_v21 }
 0x506   : > { %v5371_v23 = vmul.f32 -0.001358992, %v5370_v60  ;;  %v5378_v43 = vmul.f32 -0.00019511016, %v5370_v60 }
 0x508   : > { %v5372_v1 = vadd.f32 0.041655596, %v5371_v23  ;;  %v5379_v4 = vadd.f32 0.008332121, %v5378_v43 }
 0x50a   : > { %v5373_v13 = vmul.f32 %v5372_v1, %v5370_v60  ;;  %v5380_v10 = vmul.f32 %v5379_v4, %v5370_v60 }
 0x50c   : > { %v5374_v34 = vadd.f32 -0.4999988, %v5373_v13  ;;  %v5381_v32 = vadd.f32 -0.16666654, %v5380_v10 }
 0x50e   : > { %v5375_v9 = vmul.f32 %v5374_v34, %v5370_v60  ;;  %v5382_v41 = vmul.f32 %v5381_v32, %v5370_v60 }
 0x510   : > { %v5376_v42 = vadd.f32 1.0, %v5375_v9  ;;  %v5383_v37 = vadd.f32 1.0, %v5382_v41 }
 0x512   : > { %v5384_v19 = vmul.f32 %v5383_v37, %v5368_v21  ;;  %v5393_v39 = vxor.u32 2147483648, %v5376_v42 }
 0x514   : > { %v5390_v25 = vxor.u32 2147483648, %v5384_v19  ;;  %v5394_v51 = vsel %vm5392_vm12, %v5393_v39, %v5384_v19 }
 0x516   : > { %v5391_v44 = vsel %vm5389_vm13, %v5376_v42, %v5390_v25 }
 0x517   : > { %v5395_v46 = vsel %vm5388_vm14, %v5391_v44, %v5394_v51 }
 0x518   : > { %v5396_v54 = vsel %vm5385_vm15, nan, %v5395_v46 }
 0x519   : > { %5412 = vst [vmem:[%s6516_s25 + $0xf8] sm:$0xff] %v5396_v54 }
 0x51a   : > { %5960 = shalt.err (!%p5957_p13)
}
 0x51b   : > { %s6040_s12 = smov 256   ;;  %s6041_s30 = smov 16  }
 0x51c   : > { %5694 = dma.vmem_to_hbm [thread:$0]  (%p6141_p2), %s5430_s5, 4096, %s5432_s6, %s5414_s18, %s6040_s12, %s6040_s12, %s6041_s30  }
 0x51d PF: > { %s5446_s26 = sand.u32 1, %s6007_s15   ;;  %p5711_p0 = pnand %p5567_p6, %p6148_p5 }
 0x51e   : > { %s5447_s2 = scalar_lea.sflag [#allocation4], %s5446_s26 }
 0x51f   : > { %p5712_p4 = pneg %p5711_p0 }
 0x521   : > { %6002 = dma.done.wait (%p5712_p4), %s5447_s2, 4096  }
 0x522   : > { %6004 = vsyncadd (%p5712_p4), %s5447_s2, 4294963200  ;;  %s24_s20 = sadd.s32 1, %s6027_s20   ;;  %s10142_s3 = sld [smem:[#allocation18_spill]] }
 0x523   : > { %p21_p7 = scmp.ge.s32.totalorder %s24_s20, 4   ;;  %s10143_s18 = sld [smem:[#allocation16_spill]] }
 0x524   : > { %s10144_s19 = sld [smem:[#allocation17_spill]]  ;;  %s10145_s15 = smov %s6011_s16 }
 0x525   : > { %s10146_s16 = smov %s6015_s17  ;;  %23 = sbr.rel (!%p21_p7) target bundleno = 12 (0xc), region = 102 }
 0x528   : > { %s10147_s17 = smov %s10142_s3 }
 0x52a   :  { %5453 = vsyncpa [#allocation3], 1 }
 0x52b   :  { %5455 = vsyncpa [#allocation3 + $0x1], 1 }
 0x52c   :  { %5456 = vsyncpa [#allocation6], 1 }
 0x52d   :  { %5458 = vsyncpa [#allocation6 + $0x1], 1 }
 0x52e   :  { %5459 = vsyncpa [#allocation9], 1 }
 0x52f   :  { %5460 = vsyncpa [#allocation4], 1 }
 0x530   :  { %5462 = vsyncpa [#allocation4 + $0x1], 1 }

</bundles_post_ra>
